<compile_context>
chip_gen: v6e
topology: v6e:2x2x1
jax: 0.10.0
libtpu: 0.0.40
codegen_flags: <defaults>
</compile_context>

<pallas_src>
import math

import jax
import jax.numpy as jnp
from jax.experimental import pallas as pl
from jax.experimental.pallas import tpu as pltpu

HIDDEN = 32            # transformer d_model (small test size; real Hybrid uses 128)
HEADS = 4
HEAD_DIM = HIDDEN // HEADS
LAYERS = 2
MAX_SEQ = 16
FFN_DIM = HIDDEN * 4
NUM_CITIES = 8         # = seq length of both src and tgt, and fc_out width
LN_EPS = 1e-5

ATTN_FIELDS = ["wq", "bq", "wk", "bk", "wv", "bv", "wo", "bo"]
ENC_FIELDS = (["sa_" + f for f in ATTN_FIELDS] + ["ln1_g", "ln1_b",
              "ff_w1", "ff_b1", "ff_w2", "ff_b2", "ln2_g", "ln2_b"])
DEC_FIELDS = (["sa_" + f for f in ATTN_FIELDS] + ["ln1_g", "ln1_b"]
              + ["ca_" + f for f in ATTN_FIELDS] + ["ln2_g", "ln2_b"]
              + ["ff_w1", "ff_b1", "ff_w2", "ff_b2", "ln3_g", "ln3_b"])
HEAD_FIELDS = ["enc_ng", "enc_nb", "dec_ng", "dec_nb", "fc_w", "fc_b"]


# ----------------------------- in-kernel math helpers -----------------------------

def _layernorm(x, g, b):
    mean = jnp.mean(x, axis=-1, keepdims=True)
    var = jnp.mean(jnp.square(x - mean), axis=-1, keepdims=True)
    return (x - mean) * jax.lax.rsqrt(var + LN_EPS) * g + b


def _softmax(x):
    x = x - jnp.max(x, axis=-1, keepdims=True)
    e = jnp.exp(x)
    return e / jnp.sum(e, axis=-1, keepdims=True)


def _mha(q_in, kv_in, p, prefix, layer):
    """Multi-head attention with per-head-split projection weights.

    p[prefix+'wq'] : (L, H, D, hd) ref     p[prefix+'bq'] : (L, H, 1, hd) ref
    p[prefix+'wo'] : (L, H, hd, D) ref     p[prefix+'bo'] : (L, 1, D) ref
    Mathematically identical to concat_h(softmax(q_h k_h^T / sqrt(hd)) v_h) @ Wo + bo,
    with the concat folded into Wo as a sum over heads (no lane slicing / concatenate).
    """
    scale = 1.0 / math.sqrt(HEAD_DIM)
    acc = None
    for h in range(HEADS):  # static unroll; all ops are plain 2-D matmuls / adds
        q = jnp.dot(q_in, p[prefix + "wq"][layer, h],
                    preferred_element_type=jnp.float32) + p[prefix + "bq"][layer, h]
        k = jnp.dot(kv_in, p[prefix + "wk"][layer, h],
                    preferred_element_type=jnp.float32) + p[prefix + "bk"][layer, h]
        v = jnp.dot(kv_in, p[prefix + "wv"][layer, h],
                    preferred_element_type=jnp.float32) + p[prefix + "bv"][layer, h]
        s = jnp.dot(q, k.T, preferred_element_type=jnp.float32) * scale
        o = jnp.dot(_softmax(s), v, preferred_element_type=jnp.float32)        # (Sq, hd)
        c = jnp.dot(o, p[prefix + "wo"][layer, h],
                    preferred_element_type=jnp.float32)                         # (Sq, D)
        acc = c if acc is None else acc + c
    return acc + p[prefix + "bo"][layer]


def _ffn(x, w1, b1, w2, b2):
    h = jnp.maximum(jnp.dot(x, w1, preferred_element_type=jnp.float32) + b1, 0.0)
    return jnp.dot(h, w2, preferred_element_type=jnp.float32) + b2


# ----------------------------------- fused kernel ----------------------------------

def hybrid_kernel(*refs):
    n_enc, n_dec, n_head = len(ENC_FIELDS), len(DEC_FIELDS), len(HEAD_FIELDS)
    src_ref, tgt_ref, pos_ref = refs[0], refs[1], refs[2]
    i = 3
    enc = dict(zip(ENC_FIELDS, refs[i:i + n_enc])); i += n_enc
    dec = dict(zip(DEC_FIELDS, refs[i:i + n_dec])); i += n_dec
    head = dict(zip(HEAD_FIELDS, refs[i:i + n_head])); i += n_head
    assert i == len(refs) - 1
    out_ref = refs[-1]

    S = src_ref.shape[1]
    T = tgt_ref.shape[1]
    pos = pos_ref[0]                                   # (MAX_SEQ, D)

    # ------------------------------- encoder stack --------------------------------
    x = src_ref[0] + pos[:S, :]                        # (S, D)
    for l in range(LAYERS):                            # static unroll, weights in VMEM
        attn = _mha(x, x, enc, "sa_", l)
        x = _layernorm(x + attn, enc["ln1_g"][l], enc["ln1_b"][l])
        ff = _ffn(x, enc["ff_w1"][l], enc["ff_b1"][l], enc["ff_w2"][l], enc["ff_b2"][l])
        x = _layernorm(x + ff, enc["ln2_g"][l], enc["ln2_b"][l])
    memory = _layernorm(x, head["enc_ng"][...], head["enc_nb"][...])

    # ------------------------------- decoder stack --------------------------------
    y = tgt_ref[0] + pos[:T, :]                        # (T, D)
    for l in range(LAYERS):
        sa = _mha(y, y, dec, "sa_", l)                 # no causal mask: module passes none
        y = _layernorm(y + sa, dec["ln1_g"][l], dec["ln1_b"][l])
        ca = _mha(y, memory, dec, "ca_", l)
        y = _layernorm(y + ca, dec["ln2_g"][l], dec["ln2_b"][l])
        ff = _ffn(y, dec["ff_w1"][l], dec["ff_b1"][l], dec["ff_w2"][l], dec["ff_b2"][l])
        y = _layernorm(y + ff, dec["ln3_g"][l], dec["ln3_b"][l])
    y = _layernorm(y, head["dec_ng"][...], head["dec_nb"][...])

    # -------------------------- Hybrid head: fc_out + softmax ---------------------
    logits = jnp.dot(y, head["fc_w"][...],
                     preferred_element_type=jnp.float32) + head["fc_b"][...]
    out_ref[0] = _softmax(logits)


# --------------------------------- pallas wrapper ----------------------------------

def hybrid_transformer_forward(src, tgt, params):
    """src: (B, S, D), tgt: (B, T, D) float32. Returns softmax probs (B, T, num_cities)."""
    B, S, D = src.shape
    T = tgt.shape[1]
    C = params["head"]["fc_w"].shape[-1]

    param_arrays = ([params["pos"]]
                    + [params["enc"][f] for f in ENC_FIELDS]
                    + [params["dec"][f] for f in DEC_FIELDS]
                    + [params["head"][f] for f in HEAD_FIELDS])

    seq_specs = [pl.BlockSpec((1, S, D), lambda b: (b, 0, 0)),
                 pl.BlockSpec((1, T, D), lambda b: (b, 0, 0))]
    param_specs = [pl.BlockSpec(a.shape, (lambda b, _n=a.ndim: (0,) * _n))
                   for a in param_arrays]
    out_spec = pl.BlockSpec((1, T, C), lambda b: (b, 0, 0))

    return pl.pallas_call(
        hybrid_kernel,
        out_shape=jax.ShapeDtypeStruct((B, T, C), jnp.float32),
        grid=(B,),
        in_specs=seq_specs + param_specs,
        out_specs=out_spec,
        compiler_params=pltpu.CompilerParams(dimension_semantics=("parallel",)),
    )(src, tgt, *param_arrays)


def hybrid_forward(node_embeddings, optimal_tours, params):
    """Hybrid.forward with the GNN output supplied directly (see TODO at top)."""
    # tgt = stack([node_embeddings[i][optimal_tours[i]]]) — cheap gather done as glue.
    tgt = jnp.take_along_axis(node_embeddings, optimal_tours[:, :, None], axis=1)
    return hybrid_transformer_forward(node_embeddings, tgt, params)


# ------------------------------ deterministic init ---------------------------------

def _w(key, shape, scale=0.1):
    return scale * jax.random.normal(key, shape, dtype=jnp.float32)


def _split_in(w):   # (D, D) -> (H, D, hd): head h gets columns h*hd:(h+1)*hd
    return jnp.transpose(w.reshape(HIDDEN, HEADS, HEAD_DIM), (1, 0, 2))


def _split_out(w):  # (D, D) -> (H, hd, D): head h gets rows h*hd:(h+1)*hd of Wo
    return w.reshape(HEADS, HEAD_DIM, HIDDEN)


def _init_attn(key, prefix):
    ks = jax.random.split(key, 8)
    return {prefix + "wq": _split_in(_w(ks[0], (HIDDEN, HIDDEN))),
            prefix + "bq": _w(ks[1], (HEADS, 1, HEAD_DIM), 0.01),
            prefix + "wk": _split_in(_w(ks[2], (HIDDEN, HIDDEN))),
            prefix + "bk": _w(ks[3], (HEADS, 1, HEAD_DIM), 0.01),
            prefix + "wv": _split_in(_w(ks[4], (HIDDEN, HIDDEN))),
            prefix + "bv": _w(ks[5], (HEADS, 1, HEAD_DIM), 0.01),
            prefix + "wo": _split_out(_w(ks[6], (HIDDEN, HIDDEN))),
            prefix + "bo": _w(ks[7], (1, HIDDEN), 0.01)}


def _init_ln(prefix):
    return {prefix + "g": jnp.ones((1, HIDDEN), jnp.float32),
            prefix + "b": jnp.zeros((1, HIDDEN), jnp.float32)}


def _init_ffn(key):
    ks = jax.random.split(key, 4)
    return {"ff_w1": _w(ks[0], (HIDDEN, FFN_DIM)),
            "ff_b1": _w(ks[1], (1, FFN_DIM), 0.01),
            "ff_w2": _w(ks[2], (FFN_DIM, HIDDEN)),
            "ff_b2": _w(ks[3], (1, HIDDEN), 0.01)}


def _init_encoder_layer(key):
    k1, k2 = jax.random.split(key)
    d = {}
    d.update(_init_attn(k1, "sa_")); d.update(_init_ln("ln1_"))
    d.update(_init_ffn(k2));         d.update(_init_ln("ln2_"))
    return d


def _init_decoder_layer(key):
    k1, k2, k3 = jax.random.split(key, 3)
    d = {}
    d.update(_init_attn(k1, "sa_")); d.update(_init_ln("ln1_"))
    d.update(_init_attn(k2, "ca_")); d.update(_init_ln("ln2_"))
    d.update(_init_ffn(k3));         d.update(_init_ln("ln3_"))
    return d


def init_params(key):
    keys = jax.random.split(key, 2 + 2 * LAYERS)
    pos = _w(keys[0], (1, MAX_SEQ, HIDDEN), 0.01)
    enc_layers = [_init_encoder_layer(keys[1 + i]) for i in range(LAYERS)]
    dec_layers = [_init_decoder_layer(keys[1 + LAYERS + i]) for i in range(LAYERS)]
    # Stack per-layer weights along a leading layer axis (one pallas input per field).
    enc = {f: jnp.stack([d[f] for d in enc_layers], axis=0) for f in ENC_FIELDS}
    dec = {f: jnp.stack([d[f] for d in dec_layers], axis=0) for f in DEC_FIELDS}
    kf = keys[1 + 2 * LAYERS]
    head = {"enc_ng": jnp.ones((1, HIDDEN), jnp.float32),
            "enc_nb": jnp.zeros((1, HIDDEN), jnp.float32),
            "dec_ng": jnp.ones((1, HIDDEN), jnp.float32),
            "dec_nb": jnp.zeros((1, HIDDEN), jnp.float32),
            "fc_w": _w(kf, (HIDDEN, NUM_CITIES)),       # xavier-like random
            "fc_b": jnp.zeros((1, NUM_CITIES), jnp.float32)}  # init.zeros_ on fc_out bias
    return {"pos": pos, "enc": enc, "dec": dec, "head": head}


# ------------------------------------- main -----------------------------------------

if __name__ == "__main__":
    key = jax.random.PRNGKey(0)
    k_param, k_emb, k_tour = jax.random.split(key, 3)
    params = init_params(k_param)

    B = 2
    # Stand-in for the GNN output, already reshaped to (B, num_cities, hidden).
    node_embeddings = jax.random.normal(k_emb, (B, NUM_CITIES, HIDDEN), dtype=jnp.float32)
    # One optimal tour (a permutation of the cities) per batch element.
    optimal_tours = jnp.stack(
        [jax.random.permutation(jax.random.fold_in(k_tour, i), NUM_CITIES)
         for i in range(B)]).astype(jnp.int32)

    out = hybrid_forward(node_embeddings, optimal_tours, params)
    out = jax.block_until_ready(out)

    assert out.shape == (B, NUM_CITIES, NUM_CITIES), out.shape
    assert bool(jnp.all(jnp.isfinite(out)))
    assert bool(jnp.allclose(jnp.sum(out, axis=-1), 1.0, atol=1e-5))  # softmax rows sum to 1
    print("KERNEL_OK")
</pallas_src>

<mosaic_0001>
module attributes {stable_mosaic.version = 11 : i64} {
  func.func @hybrid_kernel(%arg0: i32, %arg1: memref<1x8x32xf32, #tpu.memory_space<vmem>>, %arg2: memref<1x8x32xf32, #tpu.memory_space<vmem>>, %arg3: memref<1x16x32xf32, #tpu.memory_space<vmem>>, %arg4: memref<2x4x32x8xf32, #tpu.memory_space<vmem>>, %arg5: memref<2x4x1x8xf32, #tpu.memory_space<vmem>>, %arg6: memref<2x4x32x8xf32, #tpu.memory_space<vmem>>, %arg7: memref<2x4x1x8xf32, #tpu.memory_space<vmem>>, %arg8: memref<2x4x32x8xf32, #tpu.memory_space<vmem>>, %arg9: memref<2x4x1x8xf32, #tpu.memory_space<vmem>>, %arg10: memref<2x4x8x32xf32, #tpu.memory_space<vmem>>, %arg11: memref<2x1x32xf32, #tpu.memory_space<vmem>>, %arg12: memref<2x1x32xf32, #tpu.memory_space<vmem>>, %arg13: memref<2x1x32xf32, #tpu.memory_space<vmem>>, %arg14: memref<2x32x128xf32, #tpu.memory_space<vmem>>, %arg15: memref<2x1x128xf32, #tpu.memory_space<vmem>>, %arg16: memref<2x128x32xf32, #tpu.memory_space<vmem>>, %arg17: memref<2x1x32xf32, #tpu.memory_space<vmem>>, %arg18: memref<2x1x32xf32, #tpu.memory_space<vmem>>, %arg19: memref<2x1x32xf32, #tpu.memory_space<vmem>>, %arg20: memref<2x4x32x8xf32, #tpu.memory_space<vmem>>, %arg21: memref<2x4x1x8xf32, #tpu.memory_space<vmem>>, %arg22: memref<2x4x32x8xf32, #tpu.memory_space<vmem>>, %arg23: memref<2x4x1x8xf32, #tpu.memory_space<vmem>>, %arg24: memref<2x4x32x8xf32, #tpu.memory_space<vmem>>, %arg25: memref<2x4x1x8xf32, #tpu.memory_space<vmem>>, %arg26: memref<2x4x8x32xf32, #tpu.memory_space<vmem>>, %arg27: memref<2x1x32xf32, #tpu.memory_space<vmem>>, %arg28: memref<2x1x32xf32, #tpu.memory_space<vmem>>, %arg29: memref<2x1x32xf32, #tpu.memory_space<vmem>>, %arg30: memref<2x4x32x8xf32, #tpu.memory_space<vmem>>, %arg31: memref<2x4x1x8xf32, #tpu.memory_space<vmem>>, %arg32: memref<2x4x32x8xf32, #tpu.memory_space<vmem>>, %arg33: memref<2x4x1x8xf32, #tpu.memory_space<vmem>>, %arg34: memref<2x4x32x8xf32, #tpu.memory_space<vmem>>, %arg35: memref<2x4x1x8xf32, #tpu.memory_space<vmem>>, %arg36: memref<2x4x8x32xf32, #tpu.memory_space<vmem>>, %arg37: memref<2x1x32xf32, #tpu.memory_space<vmem>>, %arg38: memref<2x1x32xf32, #tpu.memory_space<vmem>>, %arg39: memref<2x1x32xf32, #tpu.memory_space<vmem>>, %arg40: memref<2x32x128xf32, #tpu.memory_space<vmem>>, %arg41: memref<2x1x128xf32, #tpu.memory_space<vmem>>, %arg42: memref<2x128x32xf32, #tpu.memory_space<vmem>>, %arg43: memref<2x1x32xf32, #tpu.memory_space<vmem>>, %arg44: memref<2x1x32xf32, #tpu.memory_space<vmem>>, %arg45: memref<2x1x32xf32, #tpu.memory_space<vmem>>, %arg46: memref<1x32xf32, #tpu.memory_space<vmem>>, %arg47: memref<1x32xf32, #tpu.memory_space<vmem>>, %arg48: memref<1x32xf32, #tpu.memory_space<vmem>>, %arg49: memref<1x32xf32, #tpu.memory_space<vmem>>, %arg50: memref<32x8xf32, #tpu.memory_space<vmem>>, %arg51: memref<1x8xf32, #tpu.memory_space<vmem>>, %arg52: memref<1x8x8xf32, #tpu.memory_space<vmem>>) attributes {dimension_semantics = [#tpu.dimension_semantics<parallel>], iteration_bounds = array<i64: 2>, scalar_prefetch = 0 : i64, scratch_operands = 0 : i64, tpu.core_type = #tpu.core_type<tc>, window_params = [{transform_indices = @transform_0, window_bounds = array<i64: 1, 8, 32>}, {transform_indices = @transform_1, window_bounds = array<i64: 1, 8, 32>}, {pipeline_mode = #tpu.pipeline_mode<synchronous>, transform_indices = @transform_2, window_bounds = array<i64: 1, 16, 32>}, {pipeline_mode = #tpu.pipeline_mode<synchronous>, transform_indices = @transform_3, window_bounds = array<i64: 2, 4, 32, 8>}, {pipeline_mode = #tpu.pipeline_mode<synchronous>, transform_indices = @transform_4, window_bounds = array<i64: 2, 4, 1, 8>}, {pipeline_mode = #tpu.pipeline_mode<synchronous>, transform_indices = @transform_5, window_bounds = array<i64: 2, 4, 32, 8>}, {pipeline_mode = #tpu.pipeline_mode<synchronous>, transform_indices = @transform_6, window_bounds = array<i64: 2, 4, 1, 8>}, {pipeline_mode = #tpu.pipeline_mode<synchronous>, transform_indices = @transform_7, window_bounds = array<i64: 2, 4, 32, 8>}, {pipeline_mode = #tpu.pipeline_mode<synchronous>, transform_indices = @transform_8, window_bounds = array<i64: 2, 4, 1, 8>}, {pipeline_mode = #tpu.pipeline_mode<synchronous>, transform_indices = @transform_9, window_bounds = array<i64: 2, 4, 8, 32>}, {pipeline_mode = #tpu.pipeline_mode<synchronous>, transform_indices = @transform_10, window_bounds = array<i64: 2, 1, 32>}, {pipeline_mode = #tpu.pipeline_mode<synchronous>, transform_indices = @transform_11, window_bounds = array<i64: 2, 1, 32>}, {pipeline_mode = #tpu.pipeline_mode<synchronous>, transform_indices = @transform_12, window_bounds = array<i64: 2, 1, 32>}, {pipeline_mode = #tpu.pipeline_mode<synchronous>, transform_indices = @transform_13, window_bounds = array<i64: 2, 32, 128>}, {pipeline_mode = #tpu.pipeline_mode<synchronous>, transform_indices = @transform_14, window_bounds = array<i64: 2, 1, 128>}, {pipeline_mode = #tpu.pipeline_mode<synchronous>, transform_indices = @transform_15, window_bounds = array<i64: 2, 128, 32>}, {pipeline_mode = #tpu.pipeline_mode<synchronous>, transform_indices = @transform_16, window_bounds = array<i64: 2, 1, 32>}, {pipeline_mode = #tpu.pipeline_mode<synchronous>, transform_indices = @transform_17, window_bounds = array<i64: 2, 1, 32>}, {pipeline_mode = #tpu.pipeline_mode<synchronous>, transform_indices = @transform_18, window_bounds = array<i64: 2, 1, 32>}, {pipeline_mode = #tpu.pipeline_mode<synchronous>, transform_indices = @transform_19, window_bounds = array<i64: 2, 4, 32, 8>}, {pipeline_mode = #tpu.pipeline_mode<synchronous>, transform_indices = @transform_20, window_bounds = array<i64: 2, 4, 1, 8>}, {pipeline_mode = #tpu.pipeline_mode<synchronous>, transform_indices = @transform_21, window_bounds = array<i64: 2, 4, 32, 8>}, {pipeline_mode = #tpu.pipeline_mode<synchronous>, transform_indices = @transform_22, window_bounds = array<i64: 2, 4, 1, 8>}, {pipeline_mode = #tpu.pipeline_mode<synchronous>, transform_indices = @transform_23, window_bounds = array<i64: 2, 4, 32, 8>}, {pipeline_mode = #tpu.pipeline_mode<synchronous>, transform_indices = @transform_24, window_bounds = array<i64: 2, 4, 1, 8>}, {pipeline_mode = #tpu.pipeline_mode<synchronous>, transform_indices = @transform_25, window_bounds = array<i64: 2, 4, 8, 32>}, {pipeline_mode = #tpu.pipeline_mode<synchronous>, transform_indices = @transform_26, window_bounds = array<i64: 2, 1, 32>}, {pipeline_mode = #tpu.pipeline_mode<synchronous>, transform_indices = @transform_27, window_bounds = array<i64: 2, 1, 32>}, {pipeline_mode = #tpu.pipeline_mode<synchronous>, transform_indices = @transform_28, window_bounds = array<i64: 2, 1, 32>}, {pipeline_mode = #tpu.pipeline_mode<synchronous>, transform_indices = @transform_29, window_bounds = array<i64: 2, 4, 32, 8>}, {pipeline_mode = #tpu.pipeline_mode<synchronous>, transform_indices = @transform_30, window_bounds = array<i64: 2, 4, 1, 8>}, {pipeline_mode = #tpu.pipeline_mode<synchronous>, transform_indices = @transform_31, window_bounds = array<i64: 2, 4, 32, 8>}, {pipeline_mode = #tpu.pipeline_mode<synchronous>, transform_indices = @transform_32, window_bounds = array<i64: 2, 4, 1, 8>}, {pipeline_mode = #tpu.pipeline_mode<synchronous>, transform_indices = @transform_33, window_bounds = array<i64: 2, 4, 32, 8>}, {pipeline_mode = #tpu.pipeline_mode<synchronous>, transform_indices = @transform_34, window_bounds = array<i64: 2, 4, 1, 8>}, {pipeline_mode = #tpu.pipeline_mode<synchronous>, transform_indices = @transform_35, window_bounds = array<i64: 2, 4, 8, 32>}, {pipeline_mode = #tpu.pipeline_mode<synchronous>, transform_indices = @transform_36, window_bounds = array<i64: 2, 1, 32>}, {pipeline_mode = #tpu.pipeline_mode<synchronous>, transform_indices = @transform_37, window_bounds = array<i64: 2, 1, 32>}, {pipeline_mode = #tpu.pipeline_mode<synchronous>, transform_indices = @transform_38, window_bounds = array<i64: 2, 1, 32>}, {pipeline_mode = #tpu.pipeline_mode<synchronous>, transform_indices = @transform_39, window_bounds = array<i64: 2, 32, 128>}, {pipeline_mode = #tpu.pipeline_mode<synchronous>, transform_indices = @transform_40, window_bounds = array<i64: 2, 1, 128>}, {pipeline_mode = #tpu.pipeline_mode<synchronous>, transform_indices = @transform_41, window_bounds = array<i64: 2, 128, 32>}, {pipeline_mode = #tpu.pipeline_mode<synchronous>, transform_indices = @transform_42, window_bounds = array<i64: 2, 1, 32>}, {pipeline_mode = #tpu.pipeline_mode<synchronous>, transform_indices = @transform_43, window_bounds = array<i64: 2, 1, 32>}, {pipeline_mode = #tpu.pipeline_mode<synchronous>, transform_indices = @transform_44, window_bounds = array<i64: 2, 1, 32>}, {pipeline_mode = #tpu.pipeline_mode<synchronous>, transform_indices = @transform_45, window_bounds = array<i64: 1, 32>}, {pipeline_mode = #tpu.pipeline_mode<synchronous>, transform_indices = @transform_46, window_bounds = array<i64: 1, 32>}, {pipeline_mode = #tpu.pipeline_mode<synchronous>, transform_indices = @transform_47, window_bounds = array<i64: 1, 32>}, {pipeline_mode = #tpu.pipeline_mode<synchronous>, transform_indices = @transform_48, window_bounds = array<i64: 1, 32>}, {pipeline_mode = #tpu.pipeline_mode<synchronous>, transform_indices = @transform_49, window_bounds = array<i64: 32, 8>}, {pipeline_mode = #tpu.pipeline_mode<synchronous>, transform_indices = @transform_50, window_bounds = array<i64: 1, 8>}, {transform_indices = @transform_51, window_bounds = array<i64: 1, 8, 8>}]} {
    %c0 = arith.constant 0 : index
    %c0_0 = arith.constant 0 : index
    %c0_1 = arith.constant 0 : index
    %0 = vector.load %arg3[%c0, %c0_0, %c0_1] : memref<1x16x32xf32, #tpu.memory_space<vmem>>, vector<1x16x32xf32>
    %1 = vector.shape_cast %0 : vector<1x16x32xf32> to vector<16x32xf32>
    %c0_2 = arith.constant 0 : index
    %c0_3 = arith.constant 0 : index
    %c0_4 = arith.constant 0 : index
    %2 = vector.load %arg1[%c0_2, %c0_3, %c0_4] : memref<1x8x32xf32, #tpu.memory_space<vmem>>, vector<1x8x32xf32>
    %3 = vector.shape_cast %2 : vector<1x8x32xf32> to vector<8x32xf32>
    %4 = vector.extract_strided_slice %1 {offsets = [0, 0], sizes = [8, 32], strides = [1, 1]} : vector<16x32xf32> to vector<8x32xf32>
    %5 = arith.addf %3, %4 : vector<8x32xf32>
    %c0_5 = arith.constant 0 : index
    %c0_6 = arith.constant 0 : index
    %c0_7 = arith.constant 0 : index
    %c0_8 = arith.constant 0 : index
    %6 = vector.load %arg4[%c0_5, %c0_6, %c0_7, %c0_8] : memref<2x4x32x8xf32, #tpu.memory_space<vmem>>, vector<1x1x32x8xf32>
    %7 = vector.shape_cast %6 : vector<1x1x32x8xf32> to vector<32x8xf32>
    %cst = arith.constant dense<0.000000e+00> : vector<8x8xf32>
    %8 = tpu.matmul %5, %7, %cst {dimension_numbers = #tpu.dot_dimension_numbers<[1], [0], [0], [1], [0, 0, 1, 1], [], []>} : vector<8x32xf32>, vector<32x8xf32>, vector<8x8xf32> -> vector<8x8xf32>
    %c0_9 = arith.constant 0 : index
    %c0_10 = arith.constant 0 : index
    %c0_11 = arith.constant 0 : index
    %c0_12 = arith.constant 0 : index
    %9 = vector.load %arg5[%c0_9, %c0_10, %c0_11, %c0_12] : memref<2x4x1x8xf32, #tpu.memory_space<vmem>>, vector<1x1x1x8xf32>
    %10 = vector.shape_cast %9 : vector<1x1x1x8xf32> to vector<1x8xf32>
    %11 = vector.broadcast %10 : vector<1x8xf32> to vector<8x8xf32>
    %12 = arith.addf %8, %11 : vector<8x8xf32>
    %c0_13 = arith.constant 0 : index
    %c0_14 = arith.constant 0 : index
    %c0_15 = arith.constant 0 : index
    %c0_16 = arith.constant 0 : index
    %13 = vector.load %arg6[%c0_13, %c0_14, %c0_15, %c0_16] : memref<2x4x32x8xf32, #tpu.memory_space<vmem>>, vector<1x1x32x8xf32>
    %14 = vector.shape_cast %13 : vector<1x1x32x8xf32> to vector<32x8xf32>
    %cst_17 = arith.constant dense<0.000000e+00> : vector<8x8xf32>
    %15 = tpu.matmul %5, %14, %cst_17 {dimension_numbers = #tpu.dot_dimension_numbers<[1], [0], [0], [1], [0, 0, 1, 1], [], []>} : vector<8x32xf32>, vector<32x8xf32>, vector<8x8xf32> -> vector<8x8xf32>
    %c0_18 = arith.constant 0 : index
    %c0_19 = arith.constant 0 : index
    %c0_20 = arith.constant 0 : index
    %c0_21 = arith.constant 0 : index
    %16 = vector.load %arg7[%c0_18, %c0_19, %c0_20, %c0_21] : memref<2x4x1x8xf32, #tpu.memory_space<vmem>>, vector<1x1x1x8xf32>
    %17 = vector.shape_cast %16 : vector<1x1x1x8xf32> to vector<1x8xf32>
    %18 = vector.broadcast %17 : vector<1x8xf32> to vector<8x8xf32>
    %19 = arith.addf %15, %18 : vector<8x8xf32>
    %c0_22 = arith.constant 0 : index
    %c0_23 = arith.constant 0 : index
    %c0_24 = arith.constant 0 : index
    %c0_25 = arith.constant 0 : index
    %20 = vector.load %arg8[%c0_22, %c0_23, %c0_24, %c0_25] : memref<2x4x32x8xf32, #tpu.memory_space<vmem>>, vector<1x1x32x8xf32>
    %21 = vector.shape_cast %20 : vector<1x1x32x8xf32> to vector<32x8xf32>
    %cst_26 = arith.constant dense<0.000000e+00> : vector<8x8xf32>
    %22 = tpu.matmul %5, %21, %cst_26 {dimension_numbers = #tpu.dot_dimension_numbers<[1], [0], [0], [1], [0, 0, 1, 1], [], []>} : vector<8x32xf32>, vector<32x8xf32>, vector<8x8xf32> -> vector<8x8xf32>
    %c0_27 = arith.constant 0 : index
    %c0_28 = arith.constant 0 : index
    %c0_29 = arith.constant 0 : index
    %c0_30 = arith.constant 0 : index
    %23 = vector.load %arg9[%c0_27, %c0_28, %c0_29, %c0_30] : memref<2x4x1x8xf32, #tpu.memory_space<vmem>>, vector<1x1x1x8xf32>
    %24 = vector.shape_cast %23 : vector<1x1x1x8xf32> to vector<1x8xf32>
    %25 = vector.broadcast %24 : vector<1x8xf32> to vector<8x8xf32>
    %26 = arith.addf %22, %25 : vector<8x8xf32>
    %27 = tpu.transpose %19, [1, 0] : vector<8x8xf32> -> vector<8x8xf32>
    %cst_31 = arith.constant dense<0.000000e+00> : vector<8x8xf32>
    %28 = tpu.matmul %12, %27, %cst_31 {dimension_numbers = #tpu.dot_dimension_numbers<[1], [0], [0], [1], [0, 0, 1, 1], [], []>} : vector<8x8xf32>, vector<8x8xf32>, vector<8x8xf32> -> vector<8x8xf32>
    %cst_32 = arith.constant 0.353553385 : f32
    %29 = vector.broadcast %cst_32 : f32 to vector<8x8xf32>
    %30 = arith.mulf %28, %29 : vector<8x8xf32>
    %cst_33 = arith.constant dense<0xFF800000> : vector<8xf32>
    %31 = vector.multi_reduction <maximumf>, %30, %cst_33 [1] : vector<8x8xf32> to vector<8xf32>
    %32 = vector.shape_cast %31 : vector<8xf32> to vector<8x1xf32>
    %33 = vector.broadcast %32 : vector<8x1xf32> to vector<8x8xf32>
    %34 = arith.subf %30, %33 : vector<8x8xf32>
    %35 = math.exp %34 : vector<8x8xf32>
    %cst_34 = arith.constant dense<0.000000e+00> : vector<8xf32>
    %36 = vector.multi_reduction <add>, %35, %cst_34 [1] : vector<8x8xf32> to vector<8xf32>
    %37 = vector.shape_cast %36 : vector<8xf32> to vector<8x1xf32>
    %38 = vector.broadcast %37 : vector<8x1xf32> to vector<8x8xf32>
    %39 = arith.divf %35, %38 : vector<8x8xf32>
    %cst_35 = arith.constant dense<0.000000e+00> : vector<8x8xf32>
    %40 = tpu.matmul %39, %26, %cst_35 {dimension_numbers = #tpu.dot_dimension_numbers<[1], [0], [0], [1], [0, 0, 1, 1], [], []>} : vector<8x8xf32>, vector<8x8xf32>, vector<8x8xf32> -> vector<8x8xf32>
    %c0_36 = arith.constant 0 : index
    %c0_37 = arith.constant 0 : index
    %c0_38 = arith.constant 0 : index
    %c0_39 = arith.constant 0 : index
    %41 = vector.load %arg10[%c0_36, %c0_37, %c0_38, %c0_39] : memref<2x4x8x32xf32, #tpu.memory_space<vmem>>, vector<1x1x8x32xf32>
    %42 = vector.shape_cast %41 : vector<1x1x8x32xf32> to vector<8x32xf32>
    %cst_40 = arith.constant dense<0.000000e+00> : vector<8x32xf32>
    %43 = tpu.matmul %40, %42, %cst_40 {dimension_numbers = #tpu.dot_dimension_numbers<[1], [0], [0], [1], [0, 0, 1, 1], [], []>} : vector<8x8xf32>, vector<8x32xf32>, vector<8x32xf32> -> vector<8x32xf32>
    %c0_41 = arith.constant 0 : index
    %c1 = arith.constant 1 : index
    %c0_42 = arith.constant 0 : index
    %c0_43 = arith.constant 0 : index
    %44 = vector.load %arg4[%c0_41, %c1, %c0_42, %c0_43] : memref<2x4x32x8xf32, #tpu.memory_space<vmem>>, vector<1x1x32x8xf32>
    %45 = vector.shape_cast %44 : vector<1x1x32x8xf32> to vector<32x8xf32>
    %cst_44 = arith.constant dense<0.000000e+00> : vector<8x8xf32>
    %46 = tpu.matmul %5, %45, %cst_44 {dimension_numbers = #tpu.dot_dimension_numbers<[1], [0], [0], [1], [0, 0, 1, 1], [], []>} : vector<8x32xf32>, vector<32x8xf32>, vector<8x8xf32> -> vector<8x8xf32>
    %c0_45 = arith.constant 0 : index
    %c1_46 = arith.constant 1 : index
    %c0_47 = arith.constant 0 : index
    %c0_48 = arith.constant 0 : index
    %47 = vector.load %arg5[%c0_45, %c1_46, %c0_47, %c0_48] : memref<2x4x1x8xf32, #tpu.memory_space<vmem>>, vector<1x1x1x8xf32>
    %48 = vector.shape_cast %47 : vector<1x1x1x8xf32> to vector<1x8xf32>
    %49 = vector.broadcast %48 : vector<1x8xf32> to vector<8x8xf32>
    %50 = arith.addf %46, %49 : vector<8x8xf32>
    %c0_49 = arith.constant 0 : index
    %c1_50 = arith.constant 1 : index
    %c0_51 = arith.constant 0 : index
    %c0_52 = arith.constant 0 : index
    %51 = vector.load %arg6[%c0_49, %c1_50, %c0_51, %c0_52] : memref<2x4x32x8xf32, #tpu.memory_space<vmem>>, vector<1x1x32x8xf32>
    %52 = vector.shape_cast %51 : vector<1x1x32x8xf32> to vector<32x8xf32>
    %cst_53 = arith.constant dense<0.000000e+00> : vector<8x8xf32>
    %53 = tpu.matmul %5, %52, %cst_53 {dimension_numbers = #tpu.dot_dimension_numbers<[1], [0], [0], [1], [0, 0, 1, 1], [], []>} : vector<8x32xf32>, vector<32x8xf32>, vector<8x8xf32> -> vector<8x8xf32>
    %c0_54 = arith.constant 0 : index
    %c1_55 = arith.constant 1 : index
    %c0_56 = arith.constant 0 : index
    %c0_57 = arith.constant 0 : index
    %54 = vector.load %arg7[%c0_54, %c1_55, %c0_56, %c0_57] : memref<2x4x1x8xf32, #tpu.memory_space<vmem>>, vector<1x1x1x8xf32>
    %55 = vector.shape_cast %54 : vector<1x1x1x8xf32> to vector<1x8xf32>
    %56 = vector.broadcast %55 : vector<1x8xf32> to vector<8x8xf32>
    %57 = arith.addf %53, %56 : vector<8x8xf32>
    %c0_58 = arith.constant 0 : index
    %c1_59 = arith.constant 1 : index
    %c0_60 = arith.constant 0 : index
    %c0_61 = arith.constant 0 : index
    %58 = vector.load %arg8[%c0_58, %c1_59, %c0_60, %c0_61] : memref<2x4x32x8xf32, #tpu.memory_space<vmem>>, vector<1x1x32x8xf32>
    %59 = vector.shape_cast %58 : vector<1x1x32x8xf32> to vector<32x8xf32>
    %cst_62 = arith.constant dense<0.000000e+00> : vector<8x8xf32>
    %60 = tpu.matmul %5, %59, %cst_62 {dimension_numbers = #tpu.dot_dimension_numbers<[1], [0], [0], [1], [0, 0, 1, 1], [], []>} : vector<8x32xf32>, vector<32x8xf32>, vector<8x8xf32> -> vector<8x8xf32>
    %c0_63 = arith.constant 0 : index
    %c1_64 = arith.constant 1 : index
    %c0_65 = arith.constant 0 : index
    %c0_66 = arith.constant 0 : index
    %61 = vector.load %arg9[%c0_63, %c1_64, %c0_65, %c0_66] : memref<2x4x1x8xf32, #tpu.memory_space<vmem>>, vector<1x1x1x8xf32>
    %62 = vector.shape_cast %61 : vector<1x1x1x8xf32> to vector<1x8xf32>
    %63 = vector.broadcast %62 : vector<1x8xf32> to vector<8x8xf32>
    %64 = arith.addf %60, %63 : vector<8x8xf32>
    %65 = tpu.transpose %57, [1, 0] : vector<8x8xf32> -> vector<8x8xf32>
    %cst_67 = arith.constant dense<0.000000e+00> : vector<8x8xf32>
    %66 = tpu.matmul %50, %65, %cst_67 {dimension_numbers = #tpu.dot_dimension_numbers<[1], [0], [0], [1], [0, 0, 1, 1], [], []>} : vector<8x8xf32>, vector<8x8xf32>, vector<8x8xf32> -> vector<8x8xf32>
    %cst_68 = arith.constant 0.353553385 : f32
    %67 = vector.broadcast %cst_68 : f32 to vector<8x8xf32>
    %68 = arith.mulf %66, %67 : vector<8x8xf32>
    %cst_69 = arith.constant dense<0xFF800000> : vector<8xf32>
    %69 = vector.multi_reduction <maximumf>, %68, %cst_69 [1] : vector<8x8xf32> to vector<8xf32>
    %70 = vector.shape_cast %69 : vector<8xf32> to vector<8x1xf32>
    %71 = vector.broadcast %70 : vector<8x1xf32> to vector<8x8xf32>
    %72 = arith.subf %68, %71 : vector<8x8xf32>
    %73 = math.exp %72 : vector<8x8xf32>
    %cst_70 = arith.constant dense<0.000000e+00> : vector<8xf32>
    %74 = vector.multi_reduction <add>, %73, %cst_70 [1] : vector<8x8xf32> to vector<8xf32>
    %75 = vector.shape_cast %74 : vector<8xf32> to vector<8x1xf32>
    %76 = vector.broadcast %75 : vector<8x1xf32> to vector<8x8xf32>
    %77 = arith.divf %73, %76 : vector<8x8xf32>
    %cst_71 = arith.constant dense<0.000000e+00> : vector<8x8xf32>
    %78 = tpu.matmul %77, %64, %cst_71 {dimension_numbers = #tpu.dot_dimension_numbers<[1], [0], [0], [1], [0, 0, 1, 1], [], []>} : vector<8x8xf32>, vector<8x8xf32>, vector<8x8xf32> -> vector<8x8xf32>
    %c0_72 = arith.constant 0 : index
    %c1_73 = arith.constant 1 : index
    %c0_74 = arith.constant 0 : index
    %c0_75 = arith.constant 0 : index
    %79 = vector.load %arg10[%c0_72, %c1_73, %c0_74, %c0_75] : memref<2x4x8x32xf32, #tpu.memory_space<vmem>>, vector<1x1x8x32xf32>
    %80 = vector.shape_cast %79 : vector<1x1x8x32xf32> to vector<8x32xf32>
    %cst_76 = arith.constant dense<0.000000e+00> : vector<8x32xf32>
    %81 = tpu.matmul %78, %80, %cst_76 {dimension_numbers = #tpu.dot_dimension_numbers<[1], [0], [0], [1], [0, 0, 1, 1], [], []>} : vector<8x8xf32>, vector<8x32xf32>, vector<8x32xf32> -> vector<8x32xf32>
    %82 = arith.addf %43, %81 : vector<8x32xf32>
    %c0_77 = arith.constant 0 : index
    %c2 = arith.constant 2 : index
    %c0_78 = arith.constant 0 : index
    %c0_79 = arith.constant 0 : index
    %83 = vector.load %arg4[%c0_77, %c2, %c0_78, %c0_79] : memref<2x4x32x8xf32, #tpu.memory_space<vmem>>, vector<1x1x32x8xf32>
    %84 = vector.shape_cast %83 : vector<1x1x32x8xf32> to vector<32x8xf32>
    %cst_80 = arith.constant dense<0.000000e+00> : vector<8x8xf32>
    %85 = tpu.matmul %5, %84, %cst_80 {dimension_numbers = #tpu.dot_dimension_numbers<[1], [0], [0], [1], [0, 0, 1, 1], [], []>} : vector<8x32xf32>, vector<32x8xf32>, vector<8x8xf32> -> vector<8x8xf32>
    %c0_81 = arith.constant 0 : index
    %c2_82 = arith.constant 2 : index
    %c0_83 = arith.constant 0 : index
    %c0_84 = arith.constant 0 : index
    %86 = vector.load %arg5[%c0_81, %c2_82, %c0_83, %c0_84] : memref<2x4x1x8xf32, #tpu.memory_space<vmem>>, vector<1x1x1x8xf32>
    %87 = vector.shape_cast %86 : vector<1x1x1x8xf32> to vector<1x8xf32>
    %88 = vector.broadcast %87 : vector<1x8xf32> to vector<8x8xf32>
    %89 = arith.addf %85, %88 : vector<8x8xf32>
    %c0_85 = arith.constant 0 : index
    %c2_86 = arith.constant 2 : index
    %c0_87 = arith.constant 0 : index
    %c0_88 = arith.constant 0 : index
    %90 = vector.load %arg6[%c0_85, %c2_86, %c0_87, %c0_88] : memref<2x4x32x8xf32, #tpu.memory_space<vmem>>, vector<1x1x32x8xf32>
    %91 = vector.shape_cast %90 : vector<1x1x32x8xf32> to vector<32x8xf32>
    %cst_89 = arith.constant dense<0.000000e+00> : vector<8x8xf32>
    %92 = tpu.matmul %5, %91, %cst_89 {dimension_numbers = #tpu.dot_dimension_numbers<[1], [0], [0], [1], [0, 0, 1, 1], [], []>} : vector<8x32xf32>, vector<32x8xf32>, vector<8x8xf32> -> vector<8x8xf32>
    %c0_90 = arith.constant 0 : index
    %c2_91 = arith.constant 2 : index
    %c0_92 = arith.constant 0 : index
    %c0_93 = arith.constant 0 : index
    %93 = vector.load %arg7[%c0_90, %c2_91, %c0_92, %c0_93] : memref<2x4x1x8xf32, #tpu.memory_space<vmem>>, vector<1x1x1x8xf32>
    %94 = vector.shape_cast %93 : vector<1x1x1x8xf32> to vector<1x8xf32>
    %95 = vector.broadcast %94 : vector<1x8xf32> to vector<8x8xf32>
    %96 = arith.addf %92, %95 : vector<8x8xf32>
    %c0_94 = arith.constant 0 : index
    %c2_95 = arith.constant 2 : index
    %c0_96 = arith.constant 0 : index
    %c0_97 = arith.constant 0 : index
    %97 = vector.load %arg8[%c0_94, %c2_95, %c0_96, %c0_97] : memref<2x4x32x8xf32, #tpu.memory_space<vmem>>, vector<1x1x32x8xf32>
    %98 = vector.shape_cast %97 : vector<1x1x32x8xf32> to vector<32x8xf32>
    %cst_98 = arith.constant dense<0.000000e+00> : vector<8x8xf32>
    %99 = tpu.matmul %5, %98, %cst_98 {dimension_numbers = #tpu.dot_dimension_numbers<[1], [0], [0], [1], [0, 0, 1, 1], [], []>} : vector<8x32xf32>, vector<32x8xf32>, vector<8x8xf32> -> vector<8x8xf32>
    %c0_99 = arith.constant 0 : index
    %c2_100 = arith.constant 2 : index
    %c0_101 = arith.constant 0 : index
    %c0_102 = arith.constant 0 : index
    %100 = vector.load %arg9[%c0_99, %c2_100, %c0_101, %c0_102] : memref<2x4x1x8xf32, #tpu.memory_space<vmem>>, vector<1x1x1x8xf32>
    %101 = vector.shape_cast %100 : vector<1x1x1x8xf32> to vector<1x8xf32>
    %102 = vector.broadcast %101 : vector<1x8xf32> to vector<8x8xf32>
    %103 = arith.addf %99, %102 : vector<8x8xf32>
    %104 = tpu.transpose %96, [1, 0] : vector<8x8xf32> -> vector<8x8xf32>
    %cst_103 = arith.constant dense<0.000000e+00> : vector<8x8xf32>
    %105 = tpu.matmul %89, %104, %cst_103 {dimension_numbers = #tpu.dot_dimension_numbers<[1], [0], [0], [1], [0, 0, 1, 1], [], []>} : vector<8x8xf32>, vector<8x8xf32>, vector<8x8xf32> -> vector<8x8xf32>
    %cst_104 = arith.constant 0.353553385 : f32
    %106 = vector.broadcast %cst_104 : f32 to vector<8x8xf32>
    %107 = arith.mulf %105, %106 : vector<8x8xf32>
    %cst_105 = arith.constant dense<0xFF800000> : vector<8xf32>
    %108 = vector.multi_reduction <maximumf>, %107, %cst_105 [1] : vector<8x8xf32> to vector<8xf32>
    %109 = vector.shape_cast %108 : vector<8xf32> to vector<8x1xf32>
    %110 = vector.broadcast %109 : vector<8x1xf32> to vector<8x8xf32>
    %111 = arith.subf %107, %110 : vector<8x8xf32>
    %112 = math.exp %111 : vector<8x8xf32>
    %cst_106 = arith.constant dense<0.000000e+00> : vector<8xf32>
    %113 = vector.multi_reduction <add>, %112, %cst_106 [1] : vector<8x8xf32> to vector<8xf32>
    %114 = vector.shape_cast %113 : vector<8xf32> to vector<8x1xf32>
    %115 = vector.broadcast %114 : vector<8x1xf32> to vector<8x8xf32>
    %116 = arith.divf %112, %115 : vector<8x8xf32>
    %cst_107 = arith.constant dense<0.000000e+00> : vector<8x8xf32>
    %117 = tpu.matmul %116, %103, %cst_107 {dimension_numbers = #tpu.dot_dimension_numbers<[1], [0], [0], [1], [0, 0, 1, 1], [], []>} : vector<8x8xf32>, vector<8x8xf32>, vector<8x8xf32> -> vector<8x8xf32>
    %c0_108 = arith.constant 0 : index
    %c2_109 = arith.constant 2 : index
    %c0_110 = arith.constant 0 : index
    %c0_111 = arith.constant 0 : index
    %118 = vector.load %arg10[%c0_108, %c2_109, %c0_110, %c0_111] : memref<2x4x8x32xf32, #tpu.memory_space<vmem>>, vector<1x1x8x32xf32>
    %119 = vector.shape_cast %118 : vector<1x1x8x32xf32> to vector<8x32xf32>
    %cst_112 = arith.constant dense<0.000000e+00> : vector<8x32xf32>
    %120 = tpu.matmul %117, %119, %cst_112 {dimension_numbers = #tpu.dot_dimension_numbers<[1], [0], [0], [1], [0, 0, 1, 1], [], []>} : vector<8x8xf32>, vector<8x32xf32>, vector<8x32xf32> -> vector<8x32xf32>
    %121 = arith.addf %82, %120 : vector<8x32xf32>
    %c0_113 = arith.constant 0 : index
    %c3 = arith.constant 3 : index
    %c0_114 = arith.constant 0 : index
    %c0_115 = arith.constant 0 : index
    %122 = vector.load %arg4[%c0_113, %c3, %c0_114, %c0_115] : memref<2x4x32x8xf32, #tpu.memory_space<vmem>>, vector<1x1x32x8xf32>
    %123 = vector.shape_cast %122 : vector<1x1x32x8xf32> to vector<32x8xf32>
    %cst_116 = arith.constant dense<0.000000e+00> : vector<8x8xf32>
    %124 = tpu.matmul %5, %123, %cst_116 {dimension_numbers = #tpu.dot_dimension_numbers<[1], [0], [0], [1], [0, 0, 1, 1], [], []>} : vector<8x32xf32>, vector<32x8xf32>, vector<8x8xf32> -> vector<8x8xf32>
    %c0_117 = arith.constant 0 : index
    %c3_118 = arith.constant 3 : index
    %c0_119 = arith.constant 0 : index
    %c0_120 = arith.constant 0 : index
    %125 = vector.load %arg5[%c0_117, %c3_118, %c0_119, %c0_120] : memref<2x4x1x8xf32, #tpu.memory_space<vmem>>, vector<1x1x1x8xf32>
    %126 = vector.shape_cast %125 : vector<1x1x1x8xf32> to vector<1x8xf32>
    %127 = vector.broadcast %126 : vector<1x8xf32> to vector<8x8xf32>
    %128 = arith.addf %124, %127 : vector<8x8xf32>
    %c0_121 = arith.constant 0 : index
    %c3_122 = arith.constant 3 : index
    %c0_123 = arith.constant 0 : index
    %c0_124 = arith.constant 0 : index
    %129 = vector.load %arg6[%c0_121, %c3_122, %c0_123, %c0_124] : memref<2x4x32x8xf32, #tpu.memory_space<vmem>>, vector<1x1x32x8xf32>
    %130 = vector.shape_cast %129 : vector<1x1x32x8xf32> to vector<32x8xf32>
    %cst_125 = arith.constant dense<0.000000e+00> : vector<8x8xf32>
    %131 = tpu.matmul %5, %130, %cst_125 {dimension_numbers = #tpu.dot_dimension_numbers<[1], [0], [0], [1], [0, 0, 1, 1], [], []>} : vector<8x32xf32>, vector<32x8xf32>, vector<8x8xf32> -> vector<8x8xf32>
    %c0_126 = arith.constant 0 : index
    %c3_127 = arith.constant 3 : index
    %c0_128 = arith.constant 0 : index
    %c0_129 = arith.constant 0 : index
    %132 = vector.load %arg7[%c0_126, %c3_127, %c0_128, %c0_129] : memref<2x4x1x8xf32, #tpu.memory_space<vmem>>, vector<1x1x1x8xf32>
    %133 = vector.shape_cast %132 : vector<1x1x1x8xf32> to vector<1x8xf32>
    %134 = vector.broadcast %133 : vector<1x8xf32> to vector<8x8xf32>
    %135 = arith.addf %131, %134 : vector<8x8xf32>
    %c0_130 = arith.constant 0 : index
    %c3_131 = arith.constant 3 : index
    %c0_132 = arith.constant 0 : index
    %c0_133 = arith.constant 0 : index
    %136 = vector.load %arg8[%c0_130, %c3_131, %c0_132, %c0_133] : memref<2x4x32x8xf32, #tpu.memory_space<vmem>>, vector<1x1x32x8xf32>
    %137 = vector.shape_cast %136 : vector<1x1x32x8xf32> to vector<32x8xf32>
    %cst_134 = arith.constant dense<0.000000e+00> : vector<8x8xf32>
    %138 = tpu.matmul %5, %137, %cst_134 {dimension_numbers = #tpu.dot_dimension_numbers<[1], [0], [0], [1], [0, 0, 1, 1], [], []>} : vector<8x32xf32>, vector<32x8xf32>, vector<8x8xf32> -> vector<8x8xf32>
    %c0_135 = arith.constant 0 : index
    %c3_136 = arith.constant 3 : index
    %c0_137 = arith.constant 0 : index
    %c0_138 = arith.constant 0 : index
    %139 = vector.load %arg9[%c0_135, %c3_136, %c0_137, %c0_138] : memref<2x4x1x8xf32, #tpu.memory_space<vmem>>, vector<1x1x1x8xf32>
    %140 = vector.shape_cast %139 : vector<1x1x1x8xf32> to vector<1x8xf32>
    %141 = vector.broadcast %140 : vector<1x8xf32> to vector<8x8xf32>
    %142 = arith.addf %138, %141 : vector<8x8xf32>
    %143 = tpu.transpose %135, [1, 0] : vector<8x8xf32> -> vector<8x8xf32>
    %cst_139 = arith.constant dense<0.000000e+00> : vector<8x8xf32>
    %144 = tpu.matmul %128, %143, %cst_139 {dimension_numbers = #tpu.dot_dimension_numbers<[1], [0], [0], [1], [0, 0, 1, 1], [], []>} : vector<8x8xf32>, vector<8x8xf32>, vector<8x8xf32> -> vector<8x8xf32>
    %cst_140 = arith.constant 0.353553385 : f32
    %145 = vector.broadcast %cst_140 : f32 to vector<8x8xf32>
    %146 = arith.mulf %144, %145 : vector<8x8xf32>
    %cst_141 = arith.constant dense<0xFF800000> : vector<8xf32>
    %147 = vector.multi_reduction <maximumf>, %146, %cst_141 [1] : vector<8x8xf32> to vector<8xf32>
    %148 = vector.shape_cast %147 : vector<8xf32> to vector<8x1xf32>
    %149 = vector.broadcast %148 : vector<8x1xf32> to vector<8x8xf32>
    %150 = arith.subf %146, %149 : vector<8x8xf32>
    %151 = math.exp %150 : vector<8x8xf32>
    %cst_142 = arith.constant dense<0.000000e+00> : vector<8xf32>
    %152 = vector.multi_reduction <add>, %151, %cst_142 [1] : vector<8x8xf32> to vector<8xf32>
    %153 = vector.shape_cast %152 : vector<8xf32> to vector<8x1xf32>
    %154 = vector.broadcast %153 : vector<8x1xf32> to vector<8x8xf32>
    %155 = arith.divf %151, %154 : vector<8x8xf32>
    %cst_143 = arith.constant dense<0.000000e+00> : vector<8x8xf32>
    %156 = tpu.matmul %155, %142, %cst_143 {dimension_numbers = #tpu.dot_dimension_numbers<[1], [0], [0], [1], [0, 0, 1, 1], [], []>} : vector<8x8xf32>, vector<8x8xf32>, vector<8x8xf32> -> vector<8x8xf32>
    %c0_144 = arith.constant 0 : index
    %c3_145 = arith.constant 3 : index
    %c0_146 = arith.constant 0 : index
    %c0_147 = arith.constant 0 : index
    %157 = vector.load %arg10[%c0_144, %c3_145, %c0_146, %c0_147] : memref<2x4x8x32xf32, #tpu.memory_space<vmem>>, vector<1x1x8x32xf32>
    %158 = vector.shape_cast %157 : vector<1x1x8x32xf32> to vector<8x32xf32>
    %cst_148 = arith.constant dense<0.000000e+00> : vector<8x32xf32>
    %159 = tpu.matmul %156, %158, %cst_148 {dimension_numbers = #tpu.dot_dimension_numbers<[1], [0], [0], [1], [0, 0, 1, 1], [], []>} : vector<8x8xf32>, vector<8x32xf32>, vector<8x32xf32> -> vector<8x32xf32>
    %160 = arith.addf %121, %159 : vector<8x32xf32>
    %c0_149 = arith.constant 0 : index
    %c0_150 = arith.constant 0 : index
    %c0_151 = arith.constant 0 : index
    %161 = vector.load %arg11[%c0_149, %c0_150, %c0_151] : memref<2x1x32xf32, #tpu.memory_space<vmem>>, vector<1x1x32xf32>
    %162 = vector.shape_cast %161 : vector<1x1x32xf32> to vector<1x32xf32>
    %163 = vector.broadcast %162 : vector<1x32xf32> to vector<8x32xf32>
    %164 = arith.addf %160, %163 : vector<8x32xf32>
    %165 = arith.addf %5, %164 : vector<8x32xf32>
    %c0_152 = arith.constant 0 : index
    %c0_153 = arith.constant 0 : index
    %c0_154 = arith.constant 0 : index
    %166 = vector.load %arg12[%c0_152, %c0_153, %c0_154] : memref<2x1x32xf32, #tpu.memory_space<vmem>>, vector<1x1x32xf32>
    %167 = vector.shape_cast %166 : vector<1x1x32xf32> to vector<1x32xf32>
    %c0_155 = arith.constant 0 : index
    %c0_156 = arith.constant 0 : index
    %c0_157 = arith.constant 0 : index
    %168 = vector.load %arg13[%c0_155, %c0_156, %c0_157] : memref<2x1x32xf32, #tpu.memory_space<vmem>>, vector<1x1x32xf32>
    %169 = vector.shape_cast %168 : vector<1x1x32xf32> to vector<1x32xf32>
    %cst_158 = arith.constant dense<0.000000e+00> : vector<8xf32>
    %170 = vector.multi_reduction <add>, %165, %cst_158 [1] : vector<8x32xf32> to vector<8xf32>
    %171 = vector.shape_cast %170 : vector<8xf32> to vector<8x1xf32>
    %cst_159 = arith.constant 3.200000e+01 : f32
    %172 = vector.broadcast %cst_159 : f32 to vector<8x1xf32>
    %173 = arith.divf %171, %172 : vector<8x1xf32>
    %174 = vector.broadcast %173 : vector<8x1xf32> to vector<8x32xf32>
    %175 = arith.subf %165, %174 : vector<8x32xf32>
    %176 = arith.mulf %175, %175 : vector<8x32xf32>
    %cst_160 = arith.constant dense<0.000000e+00> : vector<8xf32>
    %177 = vector.multi_reduction <add>, %176, %cst_160 [1] : vector<8x32xf32> to vector<8xf32>
    %178 = vector.shape_cast %177 : vector<8xf32> to vector<8x1xf32>
    %cst_161 = arith.constant 3.200000e+01 : f32
    %179 = vector.broadcast %cst_161 : f32 to vector<8x1xf32>
    %180 = arith.divf %178, %179 : vector<8x1xf32>
    %181 = vector.broadcast %173 : vector<8x1xf32> to vector<8x32xf32>
    %182 = arith.subf %165, %181 : vector<8x32xf32>
    %cst_162 = arith.constant 9.99999974E-6 : f32
    %183 = vector.broadcast %cst_162 : f32 to vector<8x1xf32>
    %184 = arith.addf %180, %183 : vector<8x1xf32>
    %185 = math.rsqrt %184 : vector<8x1xf32>
    %186 = vector.broadcast %185 : vector<8x1xf32> to vector<8x32xf32>
    %187 = arith.mulf %182, %186 : vector<8x32xf32>
    %188 = vector.broadcast %167 : vector<1x32xf32> to vector<8x32xf32>
    %189 = arith.mulf %187, %188 : vector<8x32xf32>
    %190 = vector.broadcast %169 : vector<1x32xf32> to vector<8x32xf32>
    %191 = arith.addf %189, %190 : vector<8x32xf32>
    %c0_163 = arith.constant 0 : index
    %c0_164 = arith.constant 0 : index
    %c0_165 = arith.constant 0 : index
    %192 = vector.load %arg14[%c0_163, %c0_164, %c0_165] : memref<2x32x128xf32, #tpu.memory_space<vmem>>, vector<1x32x128xf32>
    %193 = vector.shape_cast %192 : vector<1x32x128xf32> to vector<32x128xf32>
    %c0_166 = arith.constant 0 : index
    %c0_167 = arith.constant 0 : index
    %c0_168 = arith.constant 0 : index
    %194 = vector.load %arg15[%c0_166, %c0_167, %c0_168] : memref<2x1x128xf32, #tpu.memory_space<vmem>>, vector<1x1x128xf32>
    %195 = vector.shape_cast %194 : vector<1x1x128xf32> to vector<1x128xf32>
    %c0_169 = arith.constant 0 : index
    %c0_170 = arith.constant 0 : index
    %c0_171 = arith.constant 0 : index
    %196 = vector.load %arg16[%c0_169, %c0_170, %c0_171] : memref<2x128x32xf32, #tpu.memory_space<vmem>>, vector<1x128x32xf32>
    %197 = vector.shape_cast %196 : vector<1x128x32xf32> to vector<128x32xf32>
    %c0_172 = arith.constant 0 : index
    %c0_173 = arith.constant 0 : index
    %c0_174 = arith.constant 0 : index
    %198 = vector.load %arg17[%c0_172, %c0_173, %c0_174] : memref<2x1x32xf32, #tpu.memory_space<vmem>>, vector<1x1x32xf32>
    %199 = vector.shape_cast %198 : vector<1x1x32xf32> to vector<1x32xf32>
    %cst_175 = arith.constant dense<0.000000e+00> : vector<8x128xf32>
    %200 = tpu.matmul %191, %193, %cst_175 {dimension_numbers = #tpu.dot_dimension_numbers<[1], [0], [0], [1], [0, 0, 1, 1], [], []>} : vector<8x32xf32>, vector<32x128xf32>, vector<8x128xf32> -> vector<8x128xf32>
    %201 = vector.broadcast %195 : vector<1x128xf32> to vector<8x128xf32>
    %202 = arith.addf %200, %201 : vector<8x128xf32>
    %cst_176 = arith.constant 0.000000e+00 : f32
    %203 = vector.broadcast %cst_176 : f32 to vector<8x128xf32>
    %204 = arith.maximumf %202, %203 : vector<8x128xf32>
    %cst_177 = arith.constant dense<0.000000e+00> : vector<8x32xf32>
    %205 = tpu.matmul %204, %197, %cst_177 {dimension_numbers = #tpu.dot_dimension_numbers<[1], [0], [0], [1], [0, 0, 1, 1], [], []>} : vector<8x128xf32>, vector<128x32xf32>, vector<8x32xf32> -> vector<8x32xf32>
    %206 = vector.broadcast %199 : vector<1x32xf32> to vector<8x32xf32>
    %207 = arith.addf %205, %206 : vector<8x32xf32>
    %208 = arith.addf %191, %207 : vector<8x32xf32>
    %c0_178 = arith.constant 0 : index
    %c0_179 = arith.constant 0 : index
    %c0_180 = arith.constant 0 : index
    %209 = vector.load %arg18[%c0_178, %c0_179, %c0_180] : memref<2x1x32xf32, #tpu.memory_space<vmem>>, vector<1x1x32xf32>
    %210 = vector.shape_cast %209 : vector<1x1x32xf32> to vector<1x32xf32>
    %c0_181 = arith.constant 0 : index
    %c0_182 = arith.constant 0 : index
    %c0_183 = arith.constant 0 : index
    %211 = vector.load %arg19[%c0_181, %c0_182, %c0_183] : memref<2x1x32xf32, #tpu.memory_space<vmem>>, vector<1x1x32xf32>
    %212 = vector.shape_cast %211 : vector<1x1x32xf32> to vector<1x32xf32>
    %cst_184 = arith.constant dense<0.000000e+00> : vector<8xf32>
    %213 = vector.multi_reduction <add>, %208, %cst_184 [1] : vector<8x32xf32> to vector<8xf32>
    %214 = vector.shape_cast %213 : vector<8xf32> to vector<8x1xf32>
    %cst_185 = arith.constant 3.200000e+01 : f32
    %215 = vector.broadcast %cst_185 : f32 to vector<8x1xf32>
    %216 = arith.divf %214, %215 : vector<8x1xf32>
    %217 = vector.broadcast %216 : vector<8x1xf32> to vector<8x32xf32>
    %218 = arith.subf %208, %217 : vector<8x32xf32>
    %219 = arith.mulf %218, %218 : vector<8x32xf32>
    %cst_186 = arith.constant dense<0.000000e+00> : vector<8xf32>
    %220 = vector.multi_reduction <add>, %219, %cst_186 [1] : vector<8x32xf32> to vector<8xf32>
    %221 = vector.shape_cast %220 : vector<8xf32> to vector<8x1xf32>
    %cst_187 = arith.constant 3.200000e+01 : f32
    %222 = vector.broadcast %cst_187 : f32 to vector<8x1xf32>
    %223 = arith.divf %221, %222 : vector<8x1xf32>
    %224 = vector.broadcast %216 : vector<8x1xf32> to vector<8x32xf32>
    %225 = arith.subf %208, %224 : vector<8x32xf32>
    %cst_188 = arith.constant 9.99999974E-6 : f32
    %226 = vector.broadcast %cst_188 : f32 to vector<8x1xf32>
    %227 = arith.addf %223, %226 : vector<8x1xf32>
    %228 = math.rsqrt %227 : vector<8x1xf32>
    %229 = vector.broadcast %228 : vector<8x1xf32> to vector<8x32xf32>
    %230 = arith.mulf %225, %229 : vector<8x32xf32>
    %231 = vector.broadcast %210 : vector<1x32xf32> to vector<8x32xf32>
    %232 = arith.mulf %230, %231 : vector<8x32xf32>
    %233 = vector.broadcast %212 : vector<1x32xf32> to vector<8x32xf32>
    %234 = arith.addf %232, %233 : vector<8x32xf32>
    %c1_189 = arith.constant 1 : index
    %c0_190 = arith.constant 0 : index
    %c0_191 = arith.constant 0 : index
    %c0_192 = arith.constant 0 : index
    %235 = vector.load %arg4[%c1_189, %c0_190, %c0_191, %c0_192] : memref<2x4x32x8xf32, #tpu.memory_space<vmem>>, vector<1x1x32x8xf32>
    %236 = vector.shape_cast %235 : vector<1x1x32x8xf32> to vector<32x8xf32>
    %cst_193 = arith.constant dense<0.000000e+00> : vector<8x8xf32>
    %237 = tpu.matmul %234, %236, %cst_193 {dimension_numbers = #tpu.dot_dimension_numbers<[1], [0], [0], [1], [0, 0, 1, 1], [], []>} : vector<8x32xf32>, vector<32x8xf32>, vector<8x8xf32> -> vector<8x8xf32>
    %c1_194 = arith.constant 1 : index
    %c0_195 = arith.constant 0 : index
    %c0_196 = arith.constant 0 : index
    %c0_197 = arith.constant 0 : index
    %238 = vector.load %arg5[%c1_194, %c0_195, %c0_196, %c0_197] : memref<2x4x1x8xf32, #tpu.memory_space<vmem>>, vector<1x1x1x8xf32>
    %239 = vector.shape_cast %238 : vector<1x1x1x8xf32> to vector<1x8xf32>
    %240 = vector.broadcast %239 : vector<1x8xf32> to vector<8x8xf32>
    %241 = arith.addf %237, %240 : vector<8x8xf32>
    %c1_198 = arith.constant 1 : index
    %c0_199 = arith.constant 0 : index
    %c0_200 = arith.constant 0 : index
    %c0_201 = arith.constant 0 : index
    %242 = vector.load %arg6[%c1_198, %c0_199, %c0_200, %c0_201] : memref<2x4x32x8xf32, #tpu.memory_space<vmem>>, vector<1x1x32x8xf32>
    %243 = vector.shape_cast %242 : vector<1x1x32x8xf32> to vector<32x8xf32>
    %cst_202 = arith.constant dense<0.000000e+00> : vector<8x8xf32>
    %244 = tpu.matmul %234, %243, %cst_202 {dimension_numbers = #tpu.dot_dimension_numbers<[1], [0], [0], [1], [0, 0, 1, 1], [], []>} : vector<8x32xf32>, vector<32x8xf32>, vector<8x8xf32> -> vector<8x8xf32>
    %c1_203 = arith.constant 1 : index
    %c0_204 = arith.constant 0 : index
    %c0_205 = arith.constant 0 : index
    %c0_206 = arith.constant 0 : index
    %245 = vector.load %arg7[%c1_203, %c0_204, %c0_205, %c0_206] : memref<2x4x1x8xf32, #tpu.memory_space<vmem>>, vector<1x1x1x8xf32>
    %246 = vector.shape_cast %245 : vector<1x1x1x8xf32> to vector<1x8xf32>
    %247 = vector.broadcast %246 : vector<1x8xf32> to vector<8x8xf32>
    %248 = arith.addf %244, %247 : vector<8x8xf32>
    %c1_207 = arith.constant 1 : index
    %c0_208 = arith.constant 0 : index
    %c0_209 = arith.constant 0 : index
    %c0_210 = arith.constant 0 : index
    %249 = vector.load %arg8[%c1_207, %c0_208, %c0_209, %c0_210] : memref<2x4x32x8xf32, #tpu.memory_space<vmem>>, vector<1x1x32x8xf32>
    %250 = vector.shape_cast %249 : vector<1x1x32x8xf32> to vector<32x8xf32>
    %cst_211 = arith.constant dense<0.000000e+00> : vector<8x8xf32>
    %251 = tpu.matmul %234, %250, %cst_211 {dimension_numbers = #tpu.dot_dimension_numbers<[1], [0], [0], [1], [0, 0, 1, 1], [], []>} : vector<8x32xf32>, vector<32x8xf32>, vector<8x8xf32> -> vector<8x8xf32>
    %c1_212 = arith.constant 1 : index
    %c0_213 = arith.constant 0 : index
    %c0_214 = arith.constant 0 : index
    %c0_215 = arith.constant 0 : index
    %252 = vector.load %arg9[%c1_212, %c0_213, %c0_214, %c0_215] : memref<2x4x1x8xf32, #tpu.memory_space<vmem>>, vector<1x1x1x8xf32>
    %253 = vector.shape_cast %252 : vector<1x1x1x8xf32> to vector<1x8xf32>
    %254 = vector.broadcast %253 : vector<1x8xf32> to vector<8x8xf32>
    %255 = arith.addf %251, %254 : vector<8x8xf32>
    %256 = tpu.transpose %248, [1, 0] : vector<8x8xf32> -> vector<8x8xf32>
    %cst_216 = arith.constant dense<0.000000e+00> : vector<8x8xf32>
    %257 = tpu.matmul %241, %256, %cst_216 {dimension_numbers = #tpu.dot_dimension_numbers<[1], [0], [0], [1], [0, 0, 1, 1], [], []>} : vector<8x8xf32>, vector<8x8xf32>, vector<8x8xf32> -> vector<8x8xf32>
    %cst_217 = arith.constant 0.353553385 : f32
    %258 = vector.broadcast %cst_217 : f32 to vector<8x8xf32>
    %259 = arith.mulf %257, %258 : vector<8x8xf32>
    %cst_218 = arith.constant dense<0xFF800000> : vector<8xf32>
    %260 = vector.multi_reduction <maximumf>, %259, %cst_218 [1] : vector<8x8xf32> to vector<8xf32>
    %261 = vector.shape_cast %260 : vector<8xf32> to vector<8x1xf32>
    %262 = vector.broadcast %261 : vector<8x1xf32> to vector<8x8xf32>
    %263 = arith.subf %259, %262 : vector<8x8xf32>
    %264 = math.exp %263 : vector<8x8xf32>
    %cst_219 = arith.constant dense<0.000000e+00> : vector<8xf32>
    %265 = vector.multi_reduction <add>, %264, %cst_219 [1] : vector<8x8xf32> to vector<8xf32>
    %266 = vector.shape_cast %265 : vector<8xf32> to vector<8x1xf32>
    %267 = vector.broadcast %266 : vector<8x1xf32> to vector<8x8xf32>
    %268 = arith.divf %264, %267 : vector<8x8xf32>
    %cst_220 = arith.constant dense<0.000000e+00> : vector<8x8xf32>
    %269 = tpu.matmul %268, %255, %cst_220 {dimension_numbers = #tpu.dot_dimension_numbers<[1], [0], [0], [1], [0, 0, 1, 1], [], []>} : vector<8x8xf32>, vector<8x8xf32>, vector<8x8xf32> -> vector<8x8xf32>
    %c1_221 = arith.constant 1 : index
    %c0_222 = arith.constant 0 : index
    %c0_223 = arith.constant 0 : index
    %c0_224 = arith.constant 0 : index
    %270 = vector.load %arg10[%c1_221, %c0_222, %c0_223, %c0_224] : memref<2x4x8x32xf32, #tpu.memory_space<vmem>>, vector<1x1x8x32xf32>
    %271 = vector.shape_cast %270 : vector<1x1x8x32xf32> to vector<8x32xf32>
    %cst_225 = arith.constant dense<0.000000e+00> : vector<8x32xf32>
    %272 = tpu.matmul %269, %271, %cst_225 {dimension_numbers = #tpu.dot_dimension_numbers<[1], [0], [0], [1], [0, 0, 1, 1], [], []>} : vector<8x8xf32>, vector<8x32xf32>, vector<8x32xf32> -> vector<8x32xf32>
    %c1_226 = arith.constant 1 : index
    %c1_227 = arith.constant 1 : index
    %c0_228 = arith.constant 0 : index
    %c0_229 = arith.constant 0 : index
    %273 = vector.load %arg4[%c1_226, %c1_227, %c0_228, %c0_229] : memref<2x4x32x8xf32, #tpu.memory_space<vmem>>, vector<1x1x32x8xf32>
    %274 = vector.shape_cast %273 : vector<1x1x32x8xf32> to vector<32x8xf32>
    %cst_230 = arith.constant dense<0.000000e+00> : vector<8x8xf32>
    %275 = tpu.matmul %234, %274, %cst_230 {dimension_numbers = #tpu.dot_dimension_numbers<[1], [0], [0], [1], [0, 0, 1, 1], [], []>} : vector<8x32xf32>, vector<32x8xf32>, vector<8x8xf32> -> vector<8x8xf32>
    %c1_231 = arith.constant 1 : index
    %c1_232 = arith.constant 1 : index
    %c0_233 = arith.constant 0 : index
    %c0_234 = arith.constant 0 : index
    %276 = vector.load %arg5[%c1_231, %c1_232, %c0_233, %c0_234] : memref<2x4x1x8xf32, #tpu.memory_space<vmem>>, vector<1x1x1x8xf32>
    %277 = vector.shape_cast %276 : vector<1x1x1x8xf32> to vector<1x8xf32>
    %278 = vector.broadcast %277 : vector<1x8xf32> to vector<8x8xf32>
    %279 = arith.addf %275, %278 : vector<8x8xf32>
    %c1_235 = arith.constant 1 : index
    %c1_236 = arith.constant 1 : index
    %c0_237 = arith.constant 0 : index
    %c0_238 = arith.constant 0 : index
    %280 = vector.load %arg6[%c1_235, %c1_236, %c0_237, %c0_238] : memref<2x4x32x8xf32, #tpu.memory_space<vmem>>, vector<1x1x32x8xf32>
    %281 = vector.shape_cast %280 : vector<1x1x32x8xf32> to vector<32x8xf32>
    %cst_239 = arith.constant dense<0.000000e+00> : vector<8x8xf32>
    %282 = tpu.matmul %234, %281, %cst_239 {dimension_numbers = #tpu.dot_dimension_numbers<[1], [0], [0], [1], [0, 0, 1, 1], [], []>} : vector<8x32xf32>, vector<32x8xf32>, vector<8x8xf32> -> vector<8x8xf32>
    %c1_240 = arith.constant 1 : index
    %c1_241 = arith.constant 1 : index
    %c0_242 = arith.constant 0 : index
    %c0_243 = arith.constant 0 : index
    %283 = vector.load %arg7[%c1_240, %c1_241, %c0_242, %c0_243] : memref<2x4x1x8xf32, #tpu.memory_space<vmem>>, vector<1x1x1x8xf32>
    %284 = vector.shape_cast %283 : vector<1x1x1x8xf32> to vector<1x8xf32>
    %285 = vector.broadcast %284 : vector<1x8xf32> to vector<8x8xf32>
    %286 = arith.addf %282, %285 : vector<8x8xf32>
    %c1_244 = arith.constant 1 : index
    %c1_245 = arith.constant 1 : index
    %c0_246 = arith.constant 0 : index
    %c0_247 = arith.constant 0 : index
    %287 = vector.load %arg8[%c1_244, %c1_245, %c0_246, %c0_247] : memref<2x4x32x8xf32, #tpu.memory_space<vmem>>, vector<1x1x32x8xf32>
    %288 = vector.shape_cast %287 : vector<1x1x32x8xf32> to vector<32x8xf32>
    %cst_248 = arith.constant dense<0.000000e+00> : vector<8x8xf32>
    %289 = tpu.matmul %234, %288, %cst_248 {dimension_numbers = #tpu.dot_dimension_numbers<[1], [0], [0], [1], [0, 0, 1, 1], [], []>} : vector<8x32xf32>, vector<32x8xf32>, vector<8x8xf32> -> vector<8x8xf32>
    %c1_249 = arith.constant 1 : index
    %c1_250 = arith.constant 1 : index
    %c0_251 = arith.constant 0 : index
    %c0_252 = arith.constant 0 : index
    %290 = vector.load %arg9[%c1_249, %c1_250, %c0_251, %c0_252] : memref<2x4x1x8xf32, #tpu.memory_space<vmem>>, vector<1x1x1x8xf32>
    %291 = vector.shape_cast %290 : vector<1x1x1x8xf32> to vector<1x8xf32>
    %292 = vector.broadcast %291 : vector<1x8xf32> to vector<8x8xf32>
    %293 = arith.addf %289, %292 : vector<8x8xf32>
    %294 = tpu.transpose %286, [1, 0] : vector<8x8xf32> -> vector<8x8xf32>
    %cst_253 = arith.constant dense<0.000000e+00> : vector<8x8xf32>
    %295 = tpu.matmul %279, %294, %cst_253 {dimension_numbers = #tpu.dot_dimension_numbers<[1], [0], [0], [1], [0, 0, 1, 1], [], []>} : vector<8x8xf32>, vector<8x8xf32>, vector<8x8xf32> -> vector<8x8xf32>
    %cst_254 = arith.constant 0.353553385 : f32
    %296 = vector.broadcast %cst_254 : f32 to vector<8x8xf32>
    %297 = arith.mulf %295, %296 : vector<8x8xf32>
    %cst_255 = arith.constant dense<0xFF800000> : vector<8xf32>
    %298 = vector.multi_reduction <maximumf>, %297, %cst_255 [1] : vector<8x8xf32> to vector<8xf32>
    %299 = vector.shape_cast %298 : vector<8xf32> to vector<8x1xf32>
    %300 = vector.broadcast %299 : vector<8x1xf32> to vector<8x8xf32>
    %301 = arith.subf %297, %300 : vector<8x8xf32>
    %302 = math.exp %301 : vector<8x8xf32>
    %cst_256 = arith.constant dense<0.000000e+00> : vector<8xf32>
    %303 = vector.multi_reduction <add>, %302, %cst_256 [1] : vector<8x8xf32> to vector<8xf32>
    %304 = vector.shape_cast %303 : vector<8xf32> to vector<8x1xf32>
    %305 = vector.broadcast %304 : vector<8x1xf32> to vector<8x8xf32>
    %306 = arith.divf %302, %305 : vector<8x8xf32>
    %cst_257 = arith.constant dense<0.000000e+00> : vector<8x8xf32>
    %307 = tpu.matmul %306, %293, %cst_257 {dimension_numbers = #tpu.dot_dimension_numbers<[1], [0], [0], [1], [0, 0, 1, 1], [], []>} : vector<8x8xf32>, vector<8x8xf32>, vector<8x8xf32> -> vector<8x8xf32>
    %c1_258 = arith.constant 1 : index
    %c1_259 = arith.constant 1 : index
    %c0_260 = arith.constant 0 : index
    %c0_261 = arith.constant 0 : index
    %308 = vector.load %arg10[%c1_258, %c1_259, %c0_260, %c0_261] : memref<2x4x8x32xf32, #tpu.memory_space<vmem>>, vector<1x1x8x32xf32>
    %309 = vector.shape_cast %308 : vector<1x1x8x32xf32> to vector<8x32xf32>
    %cst_262 = arith.constant dense<0.000000e+00> : vector<8x32xf32>
    %310 = tpu.matmul %307, %309, %cst_262 {dimension_numbers = #tpu.dot_dimension_numbers<[1], [0], [0], [1], [0, 0, 1, 1], [], []>} : vector<8x8xf32>, vector<8x32xf32>, vector<8x32xf32> -> vector<8x32xf32>
    %311 = arith.addf %272, %310 : vector<8x32xf32>
    %c1_263 = arith.constant 1 : index
    %c2_264 = arith.constant 2 : index
    %c0_265 = arith.constant 0 : index
    %c0_266 = arith.constant 0 : index
    %312 = vector.load %arg4[%c1_263, %c2_264, %c0_265, %c0_266] : memref<2x4x32x8xf32, #tpu.memory_space<vmem>>, vector<1x1x32x8xf32>
    %313 = vector.shape_cast %312 : vector<1x1x32x8xf32> to vector<32x8xf32>
    %cst_267 = arith.constant dense<0.000000e+00> : vector<8x8xf32>
    %314 = tpu.matmul %234, %313, %cst_267 {dimension_numbers = #tpu.dot_dimension_numbers<[1], [0], [0], [1], [0, 0, 1, 1], [], []>} : vector<8x32xf32>, vector<32x8xf32>, vector<8x8xf32> -> vector<8x8xf32>
    %c1_268 = arith.constant 1 : index
    %c2_269 = arith.constant 2 : index
    %c0_270 = arith.constant 0 : index
    %c0_271 = arith.constant 0 : index
    %315 = vector.load %arg5[%c1_268, %c2_269, %c0_270, %c0_271] : memref<2x4x1x8xf32, #tpu.memory_space<vmem>>, vector<1x1x1x8xf32>
    %316 = vector.shape_cast %315 : vector<1x1x1x8xf32> to vector<1x8xf32>
    %317 = vector.broadcast %316 : vector<1x8xf32> to vector<8x8xf32>
    %318 = arith.addf %314, %317 : vector<8x8xf32>
    %c1_272 = arith.constant 1 : index
    %c2_273 = arith.constant 2 : index
    %c0_274 = arith.constant 0 : index
    %c0_275 = arith.constant 0 : index
    %319 = vector.load %arg6[%c1_272, %c2_273, %c0_274, %c0_275] : memref<2x4x32x8xf32, #tpu.memory_space<vmem>>, vector<1x1x32x8xf32>
    %320 = vector.shape_cast %319 : vector<1x1x32x8xf32> to vector<32x8xf32>
    %cst_276 = arith.constant dense<0.000000e+00> : vector<8x8xf32>
    %321 = tpu.matmul %234, %320, %cst_276 {dimension_numbers = #tpu.dot_dimension_numbers<[1], [0], [0], [1], [0, 0, 1, 1], [], []>} : vector<8x32xf32>, vector<32x8xf32>, vector<8x8xf32> -> vector<8x8xf32>
    %c1_277 = arith.constant 1 : index
    %c2_278 = arith.constant 2 : index
    %c0_279 = arith.constant 0 : index
    %c0_280 = arith.constant 0 : index
    %322 = vector.load %arg7[%c1_277, %c2_278, %c0_279, %c0_280] : memref<2x4x1x8xf32, #tpu.memory_space<vmem>>, vector<1x1x1x8xf32>
    %323 = vector.shape_cast %322 : vector<1x1x1x8xf32> to vector<1x8xf32>
    %324 = vector.broadcast %323 : vector<1x8xf32> to vector<8x8xf32>
    %325 = arith.addf %321, %324 : vector<8x8xf32>
    %c1_281 = arith.constant 1 : index
    %c2_282 = arith.constant 2 : index
    %c0_283 = arith.constant 0 : index
    %c0_284 = arith.constant 0 : index
    %326 = vector.load %arg8[%c1_281, %c2_282, %c0_283, %c0_284] : memref<2x4x32x8xf32, #tpu.memory_space<vmem>>, vector<1x1x32x8xf32>
    %327 = vector.shape_cast %326 : vector<1x1x32x8xf32> to vector<32x8xf32>
    %cst_285 = arith.constant dense<0.000000e+00> : vector<8x8xf32>
    %328 = tpu.matmul %234, %327, %cst_285 {dimension_numbers = #tpu.dot_dimension_numbers<[1], [0], [0], [1], [0, 0, 1, 1], [], []>} : vector<8x32xf32>, vector<32x8xf32>, vector<8x8xf32> -> vector<8x8xf32>
    %c1_286 = arith.constant 1 : index
    %c2_287 = arith.constant 2 : index
    %c0_288 = arith.constant 0 : index
    %c0_289 = arith.constant 0 : index
    %329 = vector.load %arg9[%c1_286, %c2_287, %c0_288, %c0_289] : memref<2x4x1x8xf32, #tpu.memory_space<vmem>>, vector<1x1x1x8xf32>
    %330 = vector.shape_cast %329 : vector<1x1x1x8xf32> to vector<1x8xf32>
    %331 = vector.broadcast %330 : vector<1x8xf32> to vector<8x8xf32>
    %332 = arith.addf %328, %331 : vector<8x8xf32>
    %333 = tpu.transpose %325, [1, 0] : vector<8x8xf32> -> vector<8x8xf32>
    %cst_290 = arith.constant dense<0.000000e+00> : vector<8x8xf32>
    %334 = tpu.matmul %318, %333, %cst_290 {dimension_numbers = #tpu.dot_dimension_numbers<[1], [0], [0], [1], [0, 0, 1, 1], [], []>} : vector<8x8xf32>, vector<8x8xf32>, vector<8x8xf32> -> vector<8x8xf32>
    %cst_291 = arith.constant 0.353553385 : f32
    %335 = vector.broadcast %cst_291 : f32 to vector<8x8xf32>
    %336 = arith.mulf %334, %335 : vector<8x8xf32>
    %cst_292 = arith.constant dense<0xFF800000> : vector<8xf32>
    %337 = vector.multi_reduction <maximumf>, %336, %cst_292 [1] : vector<8x8xf32> to vector<8xf32>
    %338 = vector.shape_cast %337 : vector<8xf32> to vector<8x1xf32>
    %339 = vector.broadcast %338 : vector<8x1xf32> to vector<8x8xf32>
    %340 = arith.subf %336, %339 : vector<8x8xf32>
    %341 = math.exp %340 : vector<8x8xf32>
    %cst_293 = arith.constant dense<0.000000e+00> : vector<8xf32>
    %342 = vector.multi_reduction <add>, %341, %cst_293 [1] : vector<8x8xf32> to vector<8xf32>
    %343 = vector.shape_cast %342 : vector<8xf32> to vector<8x1xf32>
    %344 = vector.broadcast %343 : vector<8x1xf32> to vector<8x8xf32>
    %345 = arith.divf %341, %344 : vector<8x8xf32>
    %cst_294 = arith.constant dense<0.000000e+00> : vector<8x8xf32>
    %346 = tpu.matmul %345, %332, %cst_294 {dimension_numbers = #tpu.dot_dimension_numbers<[1], [0], [0], [1], [0, 0, 1, 1], [], []>} : vector<8x8xf32>, vector<8x8xf32>, vector<8x8xf32> -> vector<8x8xf32>
    %c1_295 = arith.constant 1 : index
    %c2_296 = arith.constant 2 : index
    %c0_297 = arith.constant 0 : index
    %c0_298 = arith.constant 0 : index
    %347 = vector.load %arg10[%c1_295, %c2_296, %c0_297, %c0_298] : memref<2x4x8x32xf32, #tpu.memory_space<vmem>>, vector<1x1x8x32xf32>
    %348 = vector.shape_cast %347 : vector<1x1x8x32xf32> to vector<8x32xf32>
    %cst_299 = arith.constant dense<0.000000e+00> : vector<8x32xf32>
    %349 = tpu.matmul %346, %348, %cst_299 {dimension_numbers = #tpu.dot_dimension_numbers<[1], [0], [0], [1], [0, 0, 1, 1], [], []>} : vector<8x8xf32>, vector<8x32xf32>, vector<8x32xf32> -> vector<8x32xf32>
    %350 = arith.addf %311, %349 : vector<8x32xf32>
    %c1_300 = arith.constant 1 : index
    %c3_301 = arith.constant 3 : index
    %c0_302 = arith.constant 0 : index
    %c0_303 = arith.constant 0 : index
    %351 = vector.load %arg4[%c1_300, %c3_301, %c0_302, %c0_303] : memref<2x4x32x8xf32, #tpu.memory_space<vmem>>, vector<1x1x32x8xf32>
    %352 = vector.shape_cast %351 : vector<1x1x32x8xf32> to vector<32x8xf32>
    %cst_304 = arith.constant dense<0.000000e+00> : vector<8x8xf32>
    %353 = tpu.matmul %234, %352, %cst_304 {dimension_numbers = #tpu.dot_dimension_numbers<[1], [0], [0], [1], [0, 0, 1, 1], [], []>} : vector<8x32xf32>, vector<32x8xf32>, vector<8x8xf32> -> vector<8x8xf32>
    %c1_305 = arith.constant 1 : index
    %c3_306 = arith.constant 3 : index
    %c0_307 = arith.constant 0 : index
    %c0_308 = arith.constant 0 : index
    %354 = vector.load %arg5[%c1_305, %c3_306, %c0_307, %c0_308] : memref<2x4x1x8xf32, #tpu.memory_space<vmem>>, vector<1x1x1x8xf32>
    %355 = vector.shape_cast %354 : vector<1x1x1x8xf32> to vector<1x8xf32>
    %356 = vector.broadcast %355 : vector<1x8xf32> to vector<8x8xf32>
    %357 = arith.addf %353, %356 : vector<8x8xf32>
    %c1_309 = arith.constant 1 : index
    %c3_310 = arith.constant 3 : index
    %c0_311 = arith.constant 0 : index
    %c0_312 = arith.constant 0 : index
    %358 = vector.load %arg6[%c1_309, %c3_310, %c0_311, %c0_312] : memref<2x4x32x8xf32, #tpu.memory_space<vmem>>, vector<1x1x32x8xf32>
    %359 = vector.shape_cast %358 : vector<1x1x32x8xf32> to vector<32x8xf32>
    %cst_313 = arith.constant dense<0.000000e+00> : vector<8x8xf32>
    %360 = tpu.matmul %234, %359, %cst_313 {dimension_numbers = #tpu.dot_dimension_numbers<[1], [0], [0], [1], [0, 0, 1, 1], [], []>} : vector<8x32xf32>, vector<32x8xf32>, vector<8x8xf32> -> vector<8x8xf32>
    %c1_314 = arith.constant 1 : index
    %c3_315 = arith.constant 3 : index
    %c0_316 = arith.constant 0 : index
    %c0_317 = arith.constant 0 : index
    %361 = vector.load %arg7[%c1_314, %c3_315, %c0_316, %c0_317] : memref<2x4x1x8xf32, #tpu.memory_space<vmem>>, vector<1x1x1x8xf32>
    %362 = vector.shape_cast %361 : vector<1x1x1x8xf32> to vector<1x8xf32>
    %363 = vector.broadcast %362 : vector<1x8xf32> to vector<8x8xf32>
    %364 = arith.addf %360, %363 : vector<8x8xf32>
    %c1_318 = arith.constant 1 : index
    %c3_319 = arith.constant 3 : index
    %c0_320 = arith.constant 0 : index
    %c0_321 = arith.constant 0 : index
    %365 = vector.load %arg8[%c1_318, %c3_319, %c0_320, %c0_321] : memref<2x4x32x8xf32, #tpu.memory_space<vmem>>, vector<1x1x32x8xf32>
    %366 = vector.shape_cast %365 : vector<1x1x32x8xf32> to vector<32x8xf32>
    %cst_322 = arith.constant dense<0.000000e+00> : vector<8x8xf32>
    %367 = tpu.matmul %234, %366, %cst_322 {dimension_numbers = #tpu.dot_dimension_numbers<[1], [0], [0], [1], [0, 0, 1, 1], [], []>} : vector<8x32xf32>, vector<32x8xf32>, vector<8x8xf32> -> vector<8x8xf32>
    %c1_323 = arith.constant 1 : index
    %c3_324 = arith.constant 3 : index
    %c0_325 = arith.constant 0 : index
    %c0_326 = arith.constant 0 : index
    %368 = vector.load %arg9[%c1_323, %c3_324, %c0_325, %c0_326] : memref<2x4x1x8xf32, #tpu.memory_space<vmem>>, vector<1x1x1x8xf32>
    %369 = vector.shape_cast %368 : vector<1x1x1x8xf32> to vector<1x8xf32>
    %370 = vector.broadcast %369 : vector<1x8xf32> to vector<8x8xf32>
    %371 = arith.addf %367, %370 : vector<8x8xf32>
    %372 = tpu.transpose %364, [1, 0] : vector<8x8xf32> -> vector<8x8xf32>
    %cst_327 = arith.constant dense<0.000000e+00> : vector<8x8xf32>
    %373 = tpu.matmul %357, %372, %cst_327 {dimension_numbers = #tpu.dot_dimension_numbers<[1], [0], [0], [1], [0, 0, 1, 1], [], []>} : vector<8x8xf32>, vector<8x8xf32>, vector<8x8xf32> -> vector<8x8xf32>
    %cst_328 = arith.constant 0.353553385 : f32
    %374 = vector.broadcast %cst_328 : f32 to vector<8x8xf32>
    %375 = arith.mulf %373, %374 : vector<8x8xf32>
    %cst_329 = arith.constant dense<0xFF800000> : vector<8xf32>
    %376 = vector.multi_reduction <maximumf>, %375, %cst_329 [1] : vector<8x8xf32> to vector<8xf32>
    %377 = vector.shape_cast %376 : vector<8xf32> to vector<8x1xf32>
    %378 = vector.broadcast %377 : vector<8x1xf32> to vector<8x8xf32>
    %379 = arith.subf %375, %378 : vector<8x8xf32>
    %380 = math.exp %379 : vector<8x8xf32>
    %cst_330 = arith.constant dense<0.000000e+00> : vector<8xf32>
    %381 = vector.multi_reduction <add>, %380, %cst_330 [1] : vector<8x8xf32> to vector<8xf32>
    %382 = vector.shape_cast %381 : vector<8xf32> to vector<8x1xf32>
    %383 = vector.broadcast %382 : vector<8x1xf32> to vector<8x8xf32>
    %384 = arith.divf %380, %383 : vector<8x8xf32>
    %cst_331 = arith.constant dense<0.000000e+00> : vector<8x8xf32>
    %385 = tpu.matmul %384, %371, %cst_331 {dimension_numbers = #tpu.dot_dimension_numbers<[1], [0], [0], [1], [0, 0, 1, 1], [], []>} : vector<8x8xf32>, vector<8x8xf32>, vector<8x8xf32> -> vector<8x8xf32>
    %c1_332 = arith.constant 1 : index
    %c3_333 = arith.constant 3 : index
    %c0_334 = arith.constant 0 : index
    %c0_335 = arith.constant 0 : index
    %386 = vector.load %arg10[%c1_332, %c3_333, %c0_334, %c0_335] : memref<2x4x8x32xf32, #tpu.memory_space<vmem>>, vector<1x1x8x32xf32>
    %387 = vector.shape_cast %386 : vector<1x1x8x32xf32> to vector<8x32xf32>
    %cst_336 = arith.constant dense<0.000000e+00> : vector<8x32xf32>
    %388 = tpu.matmul %385, %387, %cst_336 {dimension_numbers = #tpu.dot_dimension_numbers<[1], [0], [0], [1], [0, 0, 1, 1], [], []>} : vector<8x8xf32>, vector<8x32xf32>, vector<8x32xf32> -> vector<8x32xf32>
    %389 = arith.addf %350, %388 : vector<8x32xf32>
    %c1_337 = arith.constant 1 : index
    %c0_338 = arith.constant 0 : index
    %c0_339 = arith.constant 0 : index
    %390 = vector.load %arg11[%c1_337, %c0_338, %c0_339] : memref<2x1x32xf32, #tpu.memory_space<vmem>>, vector<1x1x32xf32>
    %391 = vector.shape_cast %390 : vector<1x1x32xf32> to vector<1x32xf32>
    %392 = vector.broadcast %391 : vector<1x32xf32> to vector<8x32xf32>
    %393 = arith.addf %389, %392 : vector<8x32xf32>
    %394 = arith.addf %234, %393 : vector<8x32xf32>
    %c1_340 = arith.constant 1 : index
    %c0_341 = arith.constant 0 : index
    %c0_342 = arith.constant 0 : index
    %395 = vector.load %arg12[%c1_340, %c0_341, %c0_342] : memref<2x1x32xf32, #tpu.memory_space<vmem>>, vector<1x1x32xf32>
    %396 = vector.shape_cast %395 : vector<1x1x32xf32> to vector<1x32xf32>
    %c1_343 = arith.constant 1 : index
    %c0_344 = arith.constant 0 : index
    %c0_345 = arith.constant 0 : index
    %397 = vector.load %arg13[%c1_343, %c0_344, %c0_345] : memref<2x1x32xf32, #tpu.memory_space<vmem>>, vector<1x1x32xf32>
    %398 = vector.shape_cast %397 : vector<1x1x32xf32> to vector<1x32xf32>
    %cst_346 = arith.constant dense<0.000000e+00> : vector<8xf32>
    %399 = vector.multi_reduction <add>, %394, %cst_346 [1] : vector<8x32xf32> to vector<8xf32>
    %400 = vector.shape_cast %399 : vector<8xf32> to vector<8x1xf32>
    %cst_347 = arith.constant 3.200000e+01 : f32
    %401 = vector.broadcast %cst_347 : f32 to vector<8x1xf32>
    %402 = arith.divf %400, %401 : vector<8x1xf32>
    %403 = vector.broadcast %402 : vector<8x1xf32> to vector<8x32xf32>
    %404 = arith.subf %394, %403 : vector<8x32xf32>
    %405 = arith.mulf %404, %404 : vector<8x32xf32>
    %cst_348 = arith.constant dense<0.000000e+00> : vector<8xf32>
    %406 = vector.multi_reduction <add>, %405, %cst_348 [1] : vector<8x32xf32> to vector<8xf32>
    %407 = vector.shape_cast %406 : vector<8xf32> to vector<8x1xf32>
    %cst_349 = arith.constant 3.200000e+01 : f32
    %408 = vector.broadcast %cst_349 : f32 to vector<8x1xf32>
    %409 = arith.divf %407, %408 : vector<8x1xf32>
    %410 = vector.broadcast %402 : vector<8x1xf32> to vector<8x32xf32>
    %411 = arith.subf %394, %410 : vector<8x32xf32>
    %cst_350 = arith.constant 9.99999974E-6 : f32
    %412 = vector.broadcast %cst_350 : f32 to vector<8x1xf32>
    %413 = arith.addf %409, %412 : vector<8x1xf32>
    %414 = math.rsqrt %413 : vector<8x1xf32>
    %415 = vector.broadcast %414 : vector<8x1xf32> to vector<8x32xf32>
    %416 = arith.mulf %411, %415 : vector<8x32xf32>
    %417 = vector.broadcast %396 : vector<1x32xf32> to vector<8x32xf32>
    %418 = arith.mulf %416, %417 : vector<8x32xf32>
    %419 = vector.broadcast %398 : vector<1x32xf32> to vector<8x32xf32>
    %420 = arith.addf %418, %419 : vector<8x32xf32>
    %c1_351 = arith.constant 1 : index
    %c0_352 = arith.constant 0 : index
    %c0_353 = arith.constant 0 : index
    %421 = vector.load %arg14[%c1_351, %c0_352, %c0_353] : memref<2x32x128xf32, #tpu.memory_space<vmem>>, vector<1x32x128xf32>
    %422 = vector.shape_cast %421 : vector<1x32x128xf32> to vector<32x128xf32>
    %c1_354 = arith.constant 1 : index
    %c0_355 = arith.constant 0 : index
    %c0_356 = arith.constant 0 : index
    %423 = vector.load %arg15[%c1_354, %c0_355, %c0_356] : memref<2x1x128xf32, #tpu.memory_space<vmem>>, vector<1x1x128xf32>
    %424 = vector.shape_cast %423 : vector<1x1x128xf32> to vector<1x128xf32>
    %c1_357 = arith.constant 1 : index
    %c0_358 = arith.constant 0 : index
    %c0_359 = arith.constant 0 : index
    %425 = vector.load %arg16[%c1_357, %c0_358, %c0_359] : memref<2x128x32xf32, #tpu.memory_space<vmem>>, vector<1x128x32xf32>
    %426 = vector.shape_cast %425 : vector<1x128x32xf32> to vector<128x32xf32>
    %c1_360 = arith.constant 1 : index
    %c0_361 = arith.constant 0 : index
    %c0_362 = arith.constant 0 : index
    %427 = vector.load %arg17[%c1_360, %c0_361, %c0_362] : memref<2x1x32xf32, #tpu.memory_space<vmem>>, vector<1x1x32xf32>
    %428 = vector.shape_cast %427 : vector<1x1x32xf32> to vector<1x32xf32>
    %cst_363 = arith.constant dense<0.000000e+00> : vector<8x128xf32>
    %429 = tpu.matmul %420, %422, %cst_363 {dimension_numbers = #tpu.dot_dimension_numbers<[1], [0], [0], [1], [0, 0, 1, 1], [], []>} : vector<8x32xf32>, vector<32x128xf32>, vector<8x128xf32> -> vector<8x128xf32>
    %430 = vector.broadcast %424 : vector<1x128xf32> to vector<8x128xf32>
    %431 = arith.addf %429, %430 : vector<8x128xf32>
    %cst_364 = arith.constant 0.000000e+00 : f32
    %432 = vector.broadcast %cst_364 : f32 to vector<8x128xf32>
    %433 = arith.maximumf %431, %432 : vector<8x128xf32>
    %cst_365 = arith.constant dense<0.000000e+00> : vector<8x32xf32>
    %434 = tpu.matmul %433, %426, %cst_365 {dimension_numbers = #tpu.dot_dimension_numbers<[1], [0], [0], [1], [0, 0, 1, 1], [], []>} : vector<8x128xf32>, vector<128x32xf32>, vector<8x32xf32> -> vector<8x32xf32>
    %435 = vector.broadcast %428 : vector<1x32xf32> to vector<8x32xf32>
    %436 = arith.addf %434, %435 : vector<8x32xf32>
    %437 = arith.addf %420, %436 : vector<8x32xf32>
    %c1_366 = arith.constant 1 : index
    %c0_367 = arith.constant 0 : index
    %c0_368 = arith.constant 0 : index
    %438 = vector.load %arg18[%c1_366, %c0_367, %c0_368] : memref<2x1x32xf32, #tpu.memory_space<vmem>>, vector<1x1x32xf32>
    %439 = vector.shape_cast %438 : vector<1x1x32xf32> to vector<1x32xf32>
    %c1_369 = arith.constant 1 : index
    %c0_370 = arith.constant 0 : index
    %c0_371 = arith.constant 0 : index
    %440 = vector.load %arg19[%c1_369, %c0_370, %c0_371] : memref<2x1x32xf32, #tpu.memory_space<vmem>>, vector<1x1x32xf32>
    %441 = vector.shape_cast %440 : vector<1x1x32xf32> to vector<1x32xf32>
    %cst_372 = arith.constant dense<0.000000e+00> : vector<8xf32>
    %442 = vector.multi_reduction <add>, %437, %cst_372 [1] : vector<8x32xf32> to vector<8xf32>
    %443 = vector.shape_cast %442 : vector<8xf32> to vector<8x1xf32>
    %cst_373 = arith.constant 3.200000e+01 : f32
    %444 = vector.broadcast %cst_373 : f32 to vector<8x1xf32>
    %445 = arith.divf %443, %444 : vector<8x1xf32>
    %446 = vector.broadcast %445 : vector<8x1xf32> to vector<8x32xf32>
    %447 = arith.subf %437, %446 : vector<8x32xf32>
    %448 = arith.mulf %447, %447 : vector<8x32xf32>
    %cst_374 = arith.constant dense<0.000000e+00> : vector<8xf32>
    %449 = vector.multi_reduction <add>, %448, %cst_374 [1] : vector<8x32xf32> to vector<8xf32>
    %450 = vector.shape_cast %449 : vector<8xf32> to vector<8x1xf32>
    %cst_375 = arith.constant 3.200000e+01 : f32
    %451 = vector.broadcast %cst_375 : f32 to vector<8x1xf32>
    %452 = arith.divf %450, %451 : vector<8x1xf32>
    %453 = vector.broadcast %445 : vector<8x1xf32> to vector<8x32xf32>
    %454 = arith.subf %437, %453 : vector<8x32xf32>
    %cst_376 = arith.constant 9.99999974E-6 : f32
    %455 = vector.broadcast %cst_376 : f32 to vector<8x1xf32>
    %456 = arith.addf %452, %455 : vector<8x1xf32>
    %457 = math.rsqrt %456 : vector<8x1xf32>
    %458 = vector.broadcast %457 : vector<8x1xf32> to vector<8x32xf32>
    %459 = arith.mulf %454, %458 : vector<8x32xf32>
    %460 = vector.broadcast %439 : vector<1x32xf32> to vector<8x32xf32>
    %461 = arith.mulf %459, %460 : vector<8x32xf32>
    %462 = vector.broadcast %441 : vector<1x32xf32> to vector<8x32xf32>
    %463 = arith.addf %461, %462 : vector<8x32xf32>
    %c0_377 = arith.constant 0 : index
    %c0_378 = arith.constant 0 : index
    %464 = vector.load %arg46[%c0_377, %c0_378] : memref<1x32xf32, #tpu.memory_space<vmem>>, vector<1x32xf32>
    %c0_379 = arith.constant 0 : index
    %c0_380 = arith.constant 0 : index
    %465 = vector.load %arg47[%c0_379, %c0_380] : memref<1x32xf32, #tpu.memory_space<vmem>>, vector<1x32xf32>
    %cst_381 = arith.constant dense<0.000000e+00> : vector<8xf32>
    %466 = vector.multi_reduction <add>, %463, %cst_381 [1] : vector<8x32xf32> to vector<8xf32>
    %467 = vector.shape_cast %466 : vector<8xf32> to vector<8x1xf32>
    %cst_382 = arith.constant 3.200000e+01 : f32
    %468 = vector.broadcast %cst_382 : f32 to vector<8x1xf32>
    %469 = arith.divf %467, %468 : vector<8x1xf32>
    %470 = vector.broadcast %469 : vector<8x1xf32> to vector<8x32xf32>
    %471 = arith.subf %463, %470 : vector<8x32xf32>
    %472 = arith.mulf %471, %471 : vector<8x32xf32>
    %cst_383 = arith.constant dense<0.000000e+00> : vector<8xf32>
    %473 = vector.multi_reduction <add>, %472, %cst_383 [1] : vector<8x32xf32> to vector<8xf32>
    %474 = vector.shape_cast %473 : vector<8xf32> to vector<8x1xf32>
    %cst_384 = arith.constant 3.200000e+01 : f32
    %475 = vector.broadcast %cst_384 : f32 to vector<8x1xf32>
    %476 = arith.divf %474, %475 : vector<8x1xf32>
    %477 = vector.broadcast %469 : vector<8x1xf32> to vector<8x32xf32>
    %478 = arith.subf %463, %477 : vector<8x32xf32>
    %cst_385 = arith.constant 9.99999974E-6 : f32
    %479 = vector.broadcast %cst_385 : f32 to vector<8x1xf32>
    %480 = arith.addf %476, %479 : vector<8x1xf32>
    %481 = math.rsqrt %480 : vector<8x1xf32>
    %482 = vector.broadcast %481 : vector<8x1xf32> to vector<8x32xf32>
    %483 = arith.mulf %478, %482 : vector<8x32xf32>
    %484 = vector.broadcast %464 : vector<1x32xf32> to vector<8x32xf32>
    %485 = arith.mulf %483, %484 : vector<8x32xf32>
    %486 = vector.broadcast %465 : vector<1x32xf32> to vector<8x32xf32>
    %487 = arith.addf %485, %486 : vector<8x32xf32>
    %c0_386 = arith.constant 0 : index
    %c0_387 = arith.constant 0 : index
    %c0_388 = arith.constant 0 : index
    %488 = vector.load %arg2[%c0_386, %c0_387, %c0_388] : memref<1x8x32xf32, #tpu.memory_space<vmem>>, vector<1x8x32xf32>
    %489 = vector.shape_cast %488 : vector<1x8x32xf32> to vector<8x32xf32>
    %490 = vector.extract_strided_slice %1 {offsets = [0, 0], sizes = [8, 32], strides = [1, 1]} : vector<16x32xf32> to vector<8x32xf32>
    %491 = arith.addf %489, %490 : vector<8x32xf32>
    %c0_389 = arith.constant 0 : index
    %c0_390 = arith.constant 0 : index
    %c0_391 = arith.constant 0 : index
    %c0_392 = arith.constant 0 : index
    %492 = vector.load %arg20[%c0_389, %c0_390, %c0_391, %c0_392] : memref<2x4x32x8xf32, #tpu.memory_space<vmem>>, vector<1x1x32x8xf32>
    %493 = vector.shape_cast %492 : vector<1x1x32x8xf32> to vector<32x8xf32>
    %cst_393 = arith.constant dense<0.000000e+00> : vector<8x8xf32>
    %494 = tpu.matmul %491, %493, %cst_393 {dimension_numbers = #tpu.dot_dimension_numbers<[1], [0], [0], [1], [0, 0, 1, 1], [], []>} : vector<8x32xf32>, vector<32x8xf32>, vector<8x8xf32> -> vector<8x8xf32>
    %c0_394 = arith.constant 0 : index
    %c0_395 = arith.constant 0 : index
    %c0_396 = arith.constant 0 : index
    %c0_397 = arith.constant 0 : index
    %495 = vector.load %arg21[%c0_394, %c0_395, %c0_396, %c0_397] : memref<2x4x1x8xf32, #tpu.memory_space<vmem>>, vector<1x1x1x8xf32>
    %496 = vector.shape_cast %495 : vector<1x1x1x8xf32> to vector<1x8xf32>
    %497 = vector.broadcast %496 : vector<1x8xf32> to vector<8x8xf32>
    %498 = arith.addf %494, %497 : vector<8x8xf32>
    %c0_398 = arith.constant 0 : index
    %c0_399 = arith.constant 0 : index
    %c0_400 = arith.constant 0 : index
    %c0_401 = arith.constant 0 : index
    %499 = vector.load %arg22[%c0_398, %c0_399, %c0_400, %c0_401] : memref<2x4x32x8xf32, #tpu.memory_space<vmem>>, vector<1x1x32x8xf32>
    %500 = vector.shape_cast %499 : vector<1x1x32x8xf32> to vector<32x8xf32>
    %cst_402 = arith.constant dense<0.000000e+00> : vector<8x8xf32>
    %501 = tpu.matmul %491, %500, %cst_402 {dimension_numbers = #tpu.dot_dimension_numbers<[1], [0], [0], [1], [0, 0, 1, 1], [], []>} : vector<8x32xf32>, vector<32x8xf32>, vector<8x8xf32> -> vector<8x8xf32>
    %c0_403 = arith.constant 0 : index
    %c0_404 = arith.constant 0 : index
    %c0_405 = arith.constant 0 : index
    %c0_406 = arith.constant 0 : index
    %502 = vector.load %arg23[%c0_403, %c0_404, %c0_405, %c0_406] : memref<2x4x1x8xf32, #tpu.memory_space<vmem>>, vector<1x1x1x8xf32>
    %503 = vector.shape_cast %502 : vector<1x1x1x8xf32> to vector<1x8xf32>
    %504 = vector.broadcast %503 : vector<1x8xf32> to vector<8x8xf32>
    %505 = arith.addf %501, %504 : vector<8x8xf32>
    %c0_407 = arith.constant 0 : index
    %c0_408 = arith.constant 0 : index
    %c0_409 = arith.constant 0 : index
    %c0_410 = arith.constant 0 : index
    %506 = vector.load %arg24[%c0_407, %c0_408, %c0_409, %c0_410] : memref<2x4x32x8xf32, #tpu.memory_space<vmem>>, vector<1x1x32x8xf32>
    %507 = vector.shape_cast %506 : vector<1x1x32x8xf32> to vector<32x8xf32>
    %cst_411 = arith.constant dense<0.000000e+00> : vector<8x8xf32>
    %508 = tpu.matmul %491, %507, %cst_411 {dimension_numbers = #tpu.dot_dimension_numbers<[1], [0], [0], [1], [0, 0, 1, 1], [], []>} : vector<8x32xf32>, vector<32x8xf32>, vector<8x8xf32> -> vector<8x8xf32>
    %c0_412 = arith.constant 0 : index
    %c0_413 = arith.constant 0 : index
    %c0_414 = arith.constant 0 : index
    %c0_415 = arith.constant 0 : index
    %509 = vector.load %arg25[%c0_412, %c0_413, %c0_414, %c0_415] : memref<2x4x1x8xf32, #tpu.memory_space<vmem>>, vector<1x1x1x8xf32>
    %510 = vector.shape_cast %509 : vector<1x1x1x8xf32> to vector<1x8xf32>
    %511 = vector.broadcast %510 : vector<1x8xf32> to vector<8x8xf32>
    %512 = arith.addf %508, %511 : vector<8x8xf32>
    %513 = tpu.transpose %505, [1, 0] : vector<8x8xf32> -> vector<8x8xf32>
    %cst_416 = arith.constant dense<0.000000e+00> : vector<8x8xf32>
    %514 = tpu.matmul %498, %513, %cst_416 {dimension_numbers = #tpu.dot_dimension_numbers<[1], [0], [0], [1], [0, 0, 1, 1], [], []>} : vector<8x8xf32>, vector<8x8xf32>, vector<8x8xf32> -> vector<8x8xf32>
    %cst_417 = arith.constant 0.353553385 : f32
    %515 = vector.broadcast %cst_417 : f32 to vector<8x8xf32>
    %516 = arith.mulf %514, %515 : vector<8x8xf32>
    %cst_418 = arith.constant dense<0xFF800000> : vector<8xf32>
    %517 = vector.multi_reduction <maximumf>, %516, %cst_418 [1] : vector<8x8xf32> to vector<8xf32>
    %518 = vector.shape_cast %517 : vector<8xf32> to vector<8x1xf32>
    %519 = vector.broadcast %518 : vector<8x1xf32> to vector<8x8xf32>
    %520 = arith.subf %516, %519 : vector<8x8xf32>
    %521 = math.exp %520 : vector<8x8xf32>
    %cst_419 = arith.constant dense<0.000000e+00> : vector<8xf32>
    %522 = vector.multi_reduction <add>, %521, %cst_419 [1] : vector<8x8xf32> to vector<8xf32>
    %523 = vector.shape_cast %522 : vector<8xf32> to vector<8x1xf32>
    %524 = vector.broadcast %523 : vector<8x1xf32> to vector<8x8xf32>
    %525 = arith.divf %521, %524 : vector<8x8xf32>
    %cst_420 = arith.constant dense<0.000000e+00> : vector<8x8xf32>
    %526 = tpu.matmul %525, %512, %cst_420 {dimension_numbers = #tpu.dot_dimension_numbers<[1], [0], [0], [1], [0, 0, 1, 1], [], []>} : vector<8x8xf32>, vector<8x8xf32>, vector<8x8xf32> -> vector<8x8xf32>
    %c0_421 = arith.constant 0 : index
    %c0_422 = arith.constant 0 : index
    %c0_423 = arith.constant 0 : index
    %c0_424 = arith.constant 0 : index
    %527 = vector.load %arg26[%c0_421, %c0_422, %c0_423, %c0_424] : memref<2x4x8x32xf32, #tpu.memory_space<vmem>>, vector<1x1x8x32xf32>
    %528 = vector.shape_cast %527 : vector<1x1x8x32xf32> to vector<8x32xf32>
    %cst_425 = arith.constant dense<0.000000e+00> : vector<8x32xf32>
    %529 = tpu.matmul %526, %528, %cst_425 {dimension_numbers = #tpu.dot_dimension_numbers<[1], [0], [0], [1], [0, 0, 1, 1], [], []>} : vector<8x8xf32>, vector<8x32xf32>, vector<8x32xf32> -> vector<8x32xf32>
    %c0_426 = arith.constant 0 : index
    %c1_427 = arith.constant 1 : index
    %c0_428 = arith.constant 0 : index
    %c0_429 = arith.constant 0 : index
    %530 = vector.load %arg20[%c0_426, %c1_427, %c0_428, %c0_429] : memref<2x4x32x8xf32, #tpu.memory_space<vmem>>, vector<1x1x32x8xf32>
    %531 = vector.shape_cast %530 : vector<1x1x32x8xf32> to vector<32x8xf32>
    %cst_430 = arith.constant dense<0.000000e+00> : vector<8x8xf32>
    %532 = tpu.matmul %491, %531, %cst_430 {dimension_numbers = #tpu.dot_dimension_numbers<[1], [0], [0], [1], [0, 0, 1, 1], [], []>} : vector<8x32xf32>, vector<32x8xf32>, vector<8x8xf32> -> vector<8x8xf32>
    %c0_431 = arith.constant 0 : index
    %c1_432 = arith.constant 1 : index
    %c0_433 = arith.constant 0 : index
    %c0_434 = arith.constant 0 : index
    %533 = vector.load %arg21[%c0_431, %c1_432, %c0_433, %c0_434] : memref<2x4x1x8xf32, #tpu.memory_space<vmem>>, vector<1x1x1x8xf32>
    %534 = vector.shape_cast %533 : vector<1x1x1x8xf32> to vector<1x8xf32>
    %535 = vector.broadcast %534 : vector<1x8xf32> to vector<8x8xf32>
    %536 = arith.addf %532, %535 : vector<8x8xf32>
    %c0_435 = arith.constant 0 : index
    %c1_436 = arith.constant 1 : index
    %c0_437 = arith.constant 0 : index
    %c0_438 = arith.constant 0 : index
    %537 = vector.load %arg22[%c0_435, %c1_436, %c0_437, %c0_438] : memref<2x4x32x8xf32, #tpu.memory_space<vmem>>, vector<1x1x32x8xf32>
    %538 = vector.shape_cast %537 : vector<1x1x32x8xf32> to vector<32x8xf32>
    %cst_439 = arith.constant dense<0.000000e+00> : vector<8x8xf32>
    %539 = tpu.matmul %491, %538, %cst_439 {dimension_numbers = #tpu.dot_dimension_numbers<[1], [0], [0], [1], [0, 0, 1, 1], [], []>} : vector<8x32xf32>, vector<32x8xf32>, vector<8x8xf32> -> vector<8x8xf32>
    %c0_440 = arith.constant 0 : index
    %c1_441 = arith.constant 1 : index
    %c0_442 = arith.constant 0 : index
    %c0_443 = arith.constant 0 : index
    %540 = vector.load %arg23[%c0_440, %c1_441, %c0_442, %c0_443] : memref<2x4x1x8xf32, #tpu.memory_space<vmem>>, vector<1x1x1x8xf32>
    %541 = vector.shape_cast %540 : vector<1x1x1x8xf32> to vector<1x8xf32>
    %542 = vector.broadcast %541 : vector<1x8xf32> to vector<8x8xf32>
    %543 = arith.addf %539, %542 : vector<8x8xf32>
    %c0_444 = arith.constant 0 : index
    %c1_445 = arith.constant 1 : index
    %c0_446 = arith.constant 0 : index
    %c0_447 = arith.constant 0 : index
    %544 = vector.load %arg24[%c0_444, %c1_445, %c0_446, %c0_447] : memref<2x4x32x8xf32, #tpu.memory_space<vmem>>, vector<1x1x32x8xf32>
    %545 = vector.shape_cast %544 : vector<1x1x32x8xf32> to vector<32x8xf32>
    %cst_448 = arith.constant dense<0.000000e+00> : vector<8x8xf32>
    %546 = tpu.matmul %491, %545, %cst_448 {dimension_numbers = #tpu.dot_dimension_numbers<[1], [0], [0], [1], [0, 0, 1, 1], [], []>} : vector<8x32xf32>, vector<32x8xf32>, vector<8x8xf32> -> vector<8x8xf32>
    %c0_449 = arith.constant 0 : index
    %c1_450 = arith.constant 1 : index
    %c0_451 = arith.constant 0 : index
    %c0_452 = arith.constant 0 : index
    %547 = vector.load %arg25[%c0_449, %c1_450, %c0_451, %c0_452] : memref<2x4x1x8xf32, #tpu.memory_space<vmem>>, vector<1x1x1x8xf32>
    %548 = vector.shape_cast %547 : vector<1x1x1x8xf32> to vector<1x8xf32>
    %549 = vector.broadcast %548 : vector<1x8xf32> to vector<8x8xf32>
    %550 = arith.addf %546, %549 : vector<8x8xf32>
    %551 = tpu.transpose %543, [1, 0] : vector<8x8xf32> -> vector<8x8xf32>
    %cst_453 = arith.constant dense<0.000000e+00> : vector<8x8xf32>
    %552 = tpu.matmul %536, %551, %cst_453 {dimension_numbers = #tpu.dot_dimension_numbers<[1], [0], [0], [1], [0, 0, 1, 1], [], []>} : vector<8x8xf32>, vector<8x8xf32>, vector<8x8xf32> -> vector<8x8xf32>
    %cst_454 = arith.constant 0.353553385 : f32
    %553 = vector.broadcast %cst_454 : f32 to vector<8x8xf32>
    %554 = arith.mulf %552, %553 : vector<8x8xf32>
    %cst_455 = arith.constant dense<0xFF800000> : vector<8xf32>
    %555 = vector.multi_reduction <maximumf>, %554, %cst_455 [1] : vector<8x8xf32> to vector<8xf32>
    %556 = vector.shape_cast %555 : vector<8xf32> to vector<8x1xf32>
    %557 = vector.broadcast %556 : vector<8x1xf32> to vector<8x8xf32>
    %558 = arith.subf %554, %557 : vector<8x8xf32>
    %559 = math.exp %558 : vector<8x8xf32>
    %cst_456 = arith.constant dense<0.000000e+00> : vector<8xf32>
    %560 = vector.multi_reduction <add>, %559, %cst_456 [1] : vector<8x8xf32> to vector<8xf32>
    %561 = vector.shape_cast %560 : vector<8xf32> to vector<8x1xf32>
    %562 = vector.broadcast %561 : vector<8x1xf32> to vector<8x8xf32>
    %563 = arith.divf %559, %562 : vector<8x8xf32>
    %cst_457 = arith.constant dense<0.000000e+00> : vector<8x8xf32>
    %564 = tpu.matmul %563, %550, %cst_457 {dimension_numbers = #tpu.dot_dimension_numbers<[1], [0], [0], [1], [0, 0, 1, 1], [], []>} : vector<8x8xf32>, vector<8x8xf32>, vector<8x8xf32> -> vector<8x8xf32>
    %c0_458 = arith.constant 0 : index
    %c1_459 = arith.constant 1 : index
    %c0_460 = arith.constant 0 : index
    %c0_461 = arith.constant 0 : index
    %565 = vector.load %arg26[%c0_458, %c1_459, %c0_460, %c0_461] : memref<2x4x8x32xf32, #tpu.memory_space<vmem>>, vector<1x1x8x32xf32>
    %566 = vector.shape_cast %565 : vector<1x1x8x32xf32> to vector<8x32xf32>
    %cst_462 = arith.constant dense<0.000000e+00> : vector<8x32xf32>
    %567 = tpu.matmul %564, %566, %cst_462 {dimension_numbers = #tpu.dot_dimension_numbers<[1], [0], [0], [1], [0, 0, 1, 1], [], []>} : vector<8x8xf32>, vector<8x32xf32>, vector<8x32xf32> -> vector<8x32xf32>
    %568 = arith.addf %529, %567 : vector<8x32xf32>
    %c0_463 = arith.constant 0 : index
    %c2_464 = arith.constant 2 : index
    %c0_465 = arith.constant 0 : index
    %c0_466 = arith.constant 0 : index
    %569 = vector.load %arg20[%c0_463, %c2_464, %c0_465, %c0_466] : memref<2x4x32x8xf32, #tpu.memory_space<vmem>>, vector<1x1x32x8xf32>
    %570 = vector.shape_cast %569 : vector<1x1x32x8xf32> to vector<32x8xf32>
    %cst_467 = arith.constant dense<0.000000e+00> : vector<8x8xf32>
    %571 = tpu.matmul %491, %570, %cst_467 {dimension_numbers = #tpu.dot_dimension_numbers<[1], [0], [0], [1], [0, 0, 1, 1], [], []>} : vector<8x32xf32>, vector<32x8xf32>, vector<8x8xf32> -> vector<8x8xf32>
    %c0_468 = arith.constant 0 : index
    %c2_469 = arith.constant 2 : index
    %c0_470 = arith.constant 0 : index
    %c0_471 = arith.constant 0 : index
    %572 = vector.load %arg21[%c0_468, %c2_469, %c0_470, %c0_471] : memref<2x4x1x8xf32, #tpu.memory_space<vmem>>, vector<1x1x1x8xf32>
    %573 = vector.shape_cast %572 : vector<1x1x1x8xf32> to vector<1x8xf32>
    %574 = vector.broadcast %573 : vector<1x8xf32> to vector<8x8xf32>
    %575 = arith.addf %571, %574 : vector<8x8xf32>
    %c0_472 = arith.constant 0 : index
    %c2_473 = arith.constant 2 : index
    %c0_474 = arith.constant 0 : index
    %c0_475 = arith.constant 0 : index
    %576 = vector.load %arg22[%c0_472, %c2_473, %c0_474, %c0_475] : memref<2x4x32x8xf32, #tpu.memory_space<vmem>>, vector<1x1x32x8xf32>
    %577 = vector.shape_cast %576 : vector<1x1x32x8xf32> to vector<32x8xf32>
    %cst_476 = arith.constant dense<0.000000e+00> : vector<8x8xf32>
    %578 = tpu.matmul %491, %577, %cst_476 {dimension_numbers = #tpu.dot_dimension_numbers<[1], [0], [0], [1], [0, 0, 1, 1], [], []>} : vector<8x32xf32>, vector<32x8xf32>, vector<8x8xf32> -> vector<8x8xf32>
    %c0_477 = arith.constant 0 : index
    %c2_478 = arith.constant 2 : index
    %c0_479 = arith.constant 0 : index
    %c0_480 = arith.constant 0 : index
    %579 = vector.load %arg23[%c0_477, %c2_478, %c0_479, %c0_480] : memref<2x4x1x8xf32, #tpu.memory_space<vmem>>, vector<1x1x1x8xf32>
    %580 = vector.shape_cast %579 : vector<1x1x1x8xf32> to vector<1x8xf32>
    %581 = vector.broadcast %580 : vector<1x8xf32> to vector<8x8xf32>
    %582 = arith.addf %578, %581 : vector<8x8xf32>
    %c0_481 = arith.constant 0 : index
    %c2_482 = arith.constant 2 : index
    %c0_483 = arith.constant 0 : index
    %c0_484 = arith.constant 0 : index
    %583 = vector.load %arg24[%c0_481, %c2_482, %c0_483, %c0_484] : memref<2x4x32x8xf32, #tpu.memory_space<vmem>>, vector<1x1x32x8xf32>
    %584 = vector.shape_cast %583 : vector<1x1x32x8xf32> to vector<32x8xf32>
    %cst_485 = arith.constant dense<0.000000e+00> : vector<8x8xf32>
    %585 = tpu.matmul %491, %584, %cst_485 {dimension_numbers = #tpu.dot_dimension_numbers<[1], [0], [0], [1], [0, 0, 1, 1], [], []>} : vector<8x32xf32>, vector<32x8xf32>, vector<8x8xf32> -> vector<8x8xf32>
    %c0_486 = arith.constant 0 : index
    %c2_487 = arith.constant 2 : index
    %c0_488 = arith.constant 0 : index
    %c0_489 = arith.constant 0 : index
    %586 = vector.load %arg25[%c0_486, %c2_487, %c0_488, %c0_489] : memref<2x4x1x8xf32, #tpu.memory_space<vmem>>, vector<1x1x1x8xf32>
    %587 = vector.shape_cast %586 : vector<1x1x1x8xf32> to vector<1x8xf32>
    %588 = vector.broadcast %587 : vector<1x8xf32> to vector<8x8xf32>
    %589 = arith.addf %585, %588 : vector<8x8xf32>
    %590 = tpu.transpose %582, [1, 0] : vector<8x8xf32> -> vector<8x8xf32>
    %cst_490 = arith.constant dense<0.000000e+00> : vector<8x8xf32>
    %591 = tpu.matmul %575, %590, %cst_490 {dimension_numbers = #tpu.dot_dimension_numbers<[1], [0], [0], [1], [0, 0, 1, 1], [], []>} : vector<8x8xf32>, vector<8x8xf32>, vector<8x8xf32> -> vector<8x8xf32>
    %cst_491 = arith.constant 0.353553385 : f32
    %592 = vector.broadcast %cst_491 : f32 to vector<8x8xf32>
    %593 = arith.mulf %591, %592 : vector<8x8xf32>
    %cst_492 = arith.constant dense<0xFF800000> : vector<8xf32>
    %594 = vector.multi_reduction <maximumf>, %593, %cst_492 [1] : vector<8x8xf32> to vector<8xf32>
    %595 = vector.shape_cast %594 : vector<8xf32> to vector<8x1xf32>
    %596 = vector.broadcast %595 : vector<8x1xf32> to vector<8x8xf32>
    %597 = arith.subf %593, %596 : vector<8x8xf32>
    %598 = math.exp %597 : vector<8x8xf32>
    %cst_493 = arith.constant dense<0.000000e+00> : vector<8xf32>
    %599 = vector.multi_reduction <add>, %598, %cst_493 [1] : vector<8x8xf32> to vector<8xf32>
    %600 = vector.shape_cast %599 : vector<8xf32> to vector<8x1xf32>
    %601 = vector.broadcast %600 : vector<8x1xf32> to vector<8x8xf32>
    %602 = arith.divf %598, %601 : vector<8x8xf32>
    %cst_494 = arith.constant dense<0.000000e+00> : vector<8x8xf32>
    %603 = tpu.matmul %602, %589, %cst_494 {dimension_numbers = #tpu.dot_dimension_numbers<[1], [0], [0], [1], [0, 0, 1, 1], [], []>} : vector<8x8xf32>, vector<8x8xf32>, vector<8x8xf32> -> vector<8x8xf32>
    %c0_495 = arith.constant 0 : index
    %c2_496 = arith.constant 2 : index
    %c0_497 = arith.constant 0 : index
    %c0_498 = arith.constant 0 : index
    %604 = vector.load %arg26[%c0_495, %c2_496, %c0_497, %c0_498] : memref<2x4x8x32xf32, #tpu.memory_space<vmem>>, vector<1x1x8x32xf32>
    %605 = vector.shape_cast %604 : vector<1x1x8x32xf32> to vector<8x32xf32>
    %cst_499 = arith.constant dense<0.000000e+00> : vector<8x32xf32>
    %606 = tpu.matmul %603, %605, %cst_499 {dimension_numbers = #tpu.dot_dimension_numbers<[1], [0], [0], [1], [0, 0, 1, 1], [], []>} : vector<8x8xf32>, vector<8x32xf32>, vector<8x32xf32> -> vector<8x32xf32>
    %607 = arith.addf %568, %606 : vector<8x32xf32>
    %c0_500 = arith.constant 0 : index
    %c3_501 = arith.constant 3 : index
    %c0_502 = arith.constant 0 : index
    %c0_503 = arith.constant 0 : index
    %608 = vector.load %arg20[%c0_500, %c3_501, %c0_502, %c0_503] : memref<2x4x32x8xf32, #tpu.memory_space<vmem>>, vector<1x1x32x8xf32>
    %609 = vector.shape_cast %608 : vector<1x1x32x8xf32> to vector<32x8xf32>
    %cst_504 = arith.constant dense<0.000000e+00> : vector<8x8xf32>
    %610 = tpu.matmul %491, %609, %cst_504 {dimension_numbers = #tpu.dot_dimension_numbers<[1], [0], [0], [1], [0, 0, 1, 1], [], []>} : vector<8x32xf32>, vector<32x8xf32>, vector<8x8xf32> -> vector<8x8xf32>
    %c0_505 = arith.constant 0 : index
    %c3_506 = arith.constant 3 : index
    %c0_507 = arith.constant 0 : index
    %c0_508 = arith.constant 0 : index
    %611 = vector.load %arg21[%c0_505, %c3_506, %c0_507, %c0_508] : memref<2x4x1x8xf32, #tpu.memory_space<vmem>>, vector<1x1x1x8xf32>
    %612 = vector.shape_cast %611 : vector<1x1x1x8xf32> to vector<1x8xf32>
    %613 = vector.broadcast %612 : vector<1x8xf32> to vector<8x8xf32>
    %614 = arith.addf %610, %613 : vector<8x8xf32>
    %c0_509 = arith.constant 0 : index
    %c3_510 = arith.constant 3 : index
    %c0_511 = arith.constant 0 : index
    %c0_512 = arith.constant 0 : index
    %615 = vector.load %arg22[%c0_509, %c3_510, %c0_511, %c0_512] : memref<2x4x32x8xf32, #tpu.memory_space<vmem>>, vector<1x1x32x8xf32>
    %616 = vector.shape_cast %615 : vector<1x1x32x8xf32> to vector<32x8xf32>
    %cst_513 = arith.constant dense<0.000000e+00> : vector<8x8xf32>
    %617 = tpu.matmul %491, %616, %cst_513 {dimension_numbers = #tpu.dot_dimension_numbers<[1], [0], [0], [1], [0, 0, 1, 1], [], []>} : vector<8x32xf32>, vector<32x8xf32>, vector<8x8xf32> -> vector<8x8xf32>
    %c0_514 = arith.constant 0 : index
    %c3_515 = arith.constant 3 : index
    %c0_516 = arith.constant 0 : index
    %c0_517 = arith.constant 0 : index
    %618 = vector.load %arg23[%c0_514, %c3_515, %c0_516, %c0_517] : memref<2x4x1x8xf32, #tpu.memory_space<vmem>>, vector<1x1x1x8xf32>
    %619 = vector.shape_cast %618 : vector<1x1x1x8xf32> to vector<1x8xf32>
    %620 = vector.broadcast %619 : vector<1x8xf32> to vector<8x8xf32>
    %621 = arith.addf %617, %620 : vector<8x8xf32>
    %c0_518 = arith.constant 0 : index
    %c3_519 = arith.constant 3 : index
    %c0_520 = arith.constant 0 : index
    %c0_521 = arith.constant 0 : index
    %622 = vector.load %arg24[%c0_518, %c3_519, %c0_520, %c0_521] : memref<2x4x32x8xf32, #tpu.memory_space<vmem>>, vector<1x1x32x8xf32>
    %623 = vector.shape_cast %622 : vector<1x1x32x8xf32> to vector<32x8xf32>
    %cst_522 = arith.constant dense<0.000000e+00> : vector<8x8xf32>
    %624 = tpu.matmul %491, %623, %cst_522 {dimension_numbers = #tpu.dot_dimension_numbers<[1], [0], [0], [1], [0, 0, 1, 1], [], []>} : vector<8x32xf32>, vector<32x8xf32>, vector<8x8xf32> -> vector<8x8xf32>
    %c0_523 = arith.constant 0 : index
    %c3_524 = arith.constant 3 : index
    %c0_525 = arith.constant 0 : index
    %c0_526 = arith.constant 0 : index
    %625 = vector.load %arg25[%c0_523, %c3_524, %c0_525, %c0_526] : memref<2x4x1x8xf32, #tpu.memory_space<vmem>>, vector<1x1x1x8xf32>
    %626 = vector.shape_cast %625 : vector<1x1x1x8xf32> to vector<1x8xf32>
    %627 = vector.broadcast %626 : vector<1x8xf32> to vector<8x8xf32>
    %628 = arith.addf %624, %627 : vector<8x8xf32>
    %629 = tpu.transpose %621, [1, 0] : vector<8x8xf32> -> vector<8x8xf32>
    %cst_527 = arith.constant dense<0.000000e+00> : vector<8x8xf32>
    %630 = tpu.matmul %614, %629, %cst_527 {dimension_numbers = #tpu.dot_dimension_numbers<[1], [0], [0], [1], [0, 0, 1, 1], [], []>} : vector<8x8xf32>, vector<8x8xf32>, vector<8x8xf32> -> vector<8x8xf32>
    %cst_528 = arith.constant 0.353553385 : f32
    %631 = vector.broadcast %cst_528 : f32 to vector<8x8xf32>
    %632 = arith.mulf %630, %631 : vector<8x8xf32>
    %cst_529 = arith.constant dense<0xFF800000> : vector<8xf32>
    %633 = vector.multi_reduction <maximumf>, %632, %cst_529 [1] : vector<8x8xf32> to vector<8xf32>
    %634 = vector.shape_cast %633 : vector<8xf32> to vector<8x1xf32>
    %635 = vector.broadcast %634 : vector<8x1xf32> to vector<8x8xf32>
    %636 = arith.subf %632, %635 : vector<8x8xf32>
    %637 = math.exp %636 : vector<8x8xf32>
    %cst_530 = arith.constant dense<0.000000e+00> : vector<8xf32>
    %638 = vector.multi_reduction <add>, %637, %cst_530 [1] : vector<8x8xf32> to vector<8xf32>
    %639 = vector.shape_cast %638 : vector<8xf32> to vector<8x1xf32>
    %640 = vector.broadcast %639 : vector<8x1xf32> to vector<8x8xf32>
    %641 = arith.divf %637, %640 : vector<8x8xf32>
    %cst_531 = arith.constant dense<0.000000e+00> : vector<8x8xf32>
    %642 = tpu.matmul %641, %628, %cst_531 {dimension_numbers = #tpu.dot_dimension_numbers<[1], [0], [0], [1], [0, 0, 1, 1], [], []>} : vector<8x8xf32>, vector<8x8xf32>, vector<8x8xf32> -> vector<8x8xf32>
    %c0_532 = arith.constant 0 : index
    %c3_533 = arith.constant 3 : index
    %c0_534 = arith.constant 0 : index
    %c0_535 = arith.constant 0 : index
    %643 = vector.load %arg26[%c0_532, %c3_533, %c0_534, %c0_535] : memref<2x4x8x32xf32, #tpu.memory_space<vmem>>, vector<1x1x8x32xf32>
    %644 = vector.shape_cast %643 : vector<1x1x8x32xf32> to vector<8x32xf32>
    %cst_536 = arith.constant dense<0.000000e+00> : vector<8x32xf32>
    %645 = tpu.matmul %642, %644, %cst_536 {dimension_numbers = #tpu.dot_dimension_numbers<[1], [0], [0], [1], [0, 0, 1, 1], [], []>} : vector<8x8xf32>, vector<8x32xf32>, vector<8x32xf32> -> vector<8x32xf32>
    %646 = arith.addf %607, %645 : vector<8x32xf32>
    %c0_537 = arith.constant 0 : index
    %c0_538 = arith.constant 0 : index
    %c0_539 = arith.constant 0 : index
    %647 = vector.load %arg27[%c0_537, %c0_538, %c0_539] : memref<2x1x32xf32, #tpu.memory_space<vmem>>, vector<1x1x32xf32>
    %648 = vector.shape_cast %647 : vector<1x1x32xf32> to vector<1x32xf32>
    %649 = vector.broadcast %648 : vector<1x32xf32> to vector<8x32xf32>
    %650 = arith.addf %646, %649 : vector<8x32xf32>
    %651 = arith.addf %491, %650 : vector<8x32xf32>
    %c0_540 = arith.constant 0 : index
    %c0_541 = arith.constant 0 : index
    %c0_542 = arith.constant 0 : index
    %652 = vector.load %arg28[%c0_540, %c0_541, %c0_542] : memref<2x1x32xf32, #tpu.memory_space<vmem>>, vector<1x1x32xf32>
    %653 = vector.shape_cast %652 : vector<1x1x32xf32> to vector<1x32xf32>
    %c0_543 = arith.constant 0 : index
    %c0_544 = arith.constant 0 : index
    %c0_545 = arith.constant 0 : index
    %654 = vector.load %arg29[%c0_543, %c0_544, %c0_545] : memref<2x1x32xf32, #tpu.memory_space<vmem>>, vector<1x1x32xf32>
    %655 = vector.shape_cast %654 : vector<1x1x32xf32> to vector<1x32xf32>
    %cst_546 = arith.constant dense<0.000000e+00> : vector<8xf32>
    %656 = vector.multi_reduction <add>, %651, %cst_546 [1] : vector<8x32xf32> to vector<8xf32>
    %657 = vector.shape_cast %656 : vector<8xf32> to vector<8x1xf32>
    %cst_547 = arith.constant 3.200000e+01 : f32
    %658 = vector.broadcast %cst_547 : f32 to vector<8x1xf32>
    %659 = arith.divf %657, %658 : vector<8x1xf32>
    %660 = vector.broadcast %659 : vector<8x1xf32> to vector<8x32xf32>
    %661 = arith.subf %651, %660 : vector<8x32xf32>
    %662 = arith.mulf %661, %661 : vector<8x32xf32>
    %cst_548 = arith.constant dense<0.000000e+00> : vector<8xf32>
    %663 = vector.multi_reduction <add>, %662, %cst_548 [1] : vector<8x32xf32> to vector<8xf32>
    %664 = vector.shape_cast %663 : vector<8xf32> to vector<8x1xf32>
    %cst_549 = arith.constant 3.200000e+01 : f32
    %665 = vector.broadcast %cst_549 : f32 to vector<8x1xf32>
    %666 = arith.divf %664, %665 : vector<8x1xf32>
    %667 = vector.broadcast %659 : vector<8x1xf32> to vector<8x32xf32>
    %668 = arith.subf %651, %667 : vector<8x32xf32>
    %cst_550 = arith.constant 9.99999974E-6 : f32
    %669 = vector.broadcast %cst_550 : f32 to vector<8x1xf32>
    %670 = arith.addf %666, %669 : vector<8x1xf32>
    %671 = math.rsqrt %670 : vector<8x1xf32>
    %672 = vector.broadcast %671 : vector<8x1xf32> to vector<8x32xf32>
    %673 = arith.mulf %668, %672 : vector<8x32xf32>
    %674 = vector.broadcast %653 : vector<1x32xf32> to vector<8x32xf32>
    %675 = arith.mulf %673, %674 : vector<8x32xf32>
    %676 = vector.broadcast %655 : vector<1x32xf32> to vector<8x32xf32>
    %677 = arith.addf %675, %676 : vector<8x32xf32>
    %c0_551 = arith.constant 0 : index
    %c0_552 = arith.constant 0 : index
    %c0_553 = arith.constant 0 : index
    %c0_554 = arith.constant 0 : index
    %678 = vector.load %arg30[%c0_551, %c0_552, %c0_553, %c0_554] : memref<2x4x32x8xf32, #tpu.memory_space<vmem>>, vector<1x1x32x8xf32>
    %679 = vector.shape_cast %678 : vector<1x1x32x8xf32> to vector<32x8xf32>
    %cst_555 = arith.constant dense<0.000000e+00> : vector<8x8xf32>
    %680 = tpu.matmul %677, %679, %cst_555 {dimension_numbers = #tpu.dot_dimension_numbers<[1], [0], [0], [1], [0, 0, 1, 1], [], []>} : vector<8x32xf32>, vector<32x8xf32>, vector<8x8xf32> -> vector<8x8xf32>
    %c0_556 = arith.constant 0 : index
    %c0_557 = arith.constant 0 : index
    %c0_558 = arith.constant 0 : index
    %c0_559 = arith.constant 0 : index
    %681 = vector.load %arg31[%c0_556, %c0_557, %c0_558, %c0_559] : memref<2x4x1x8xf32, #tpu.memory_space<vmem>>, vector<1x1x1x8xf32>
    %682 = vector.shape_cast %681 : vector<1x1x1x8xf32> to vector<1x8xf32>
    %683 = vector.broadcast %682 : vector<1x8xf32> to vector<8x8xf32>
    %684 = arith.addf %680, %683 : vector<8x8xf32>
    %c0_560 = arith.constant 0 : index
    %c0_561 = arith.constant 0 : index
    %c0_562 = arith.constant 0 : index
    %c0_563 = arith.constant 0 : index
    %685 = vector.load %arg32[%c0_560, %c0_561, %c0_562, %c0_563] : memref<2x4x32x8xf32, #tpu.memory_space<vmem>>, vector<1x1x32x8xf32>
    %686 = vector.shape_cast %685 : vector<1x1x32x8xf32> to vector<32x8xf32>
    %cst_564 = arith.constant dense<0.000000e+00> : vector<8x8xf32>
    %687 = tpu.matmul %487, %686, %cst_564 {dimension_numbers = #tpu.dot_dimension_numbers<[1], [0], [0], [1], [0, 0, 1, 1], [], []>} : vector<8x32xf32>, vector<32x8xf32>, vector<8x8xf32> -> vector<8x8xf32>
    %c0_565 = arith.constant 0 : index
    %c0_566 = arith.constant 0 : index
    %c0_567 = arith.constant 0 : index
    %c0_568 = arith.constant 0 : index
    %688 = vector.load %arg33[%c0_565, %c0_566, %c0_567, %c0_568] : memref<2x4x1x8xf32, #tpu.memory_space<vmem>>, vector<1x1x1x8xf32>
    %689 = vector.shape_cast %688 : vector<1x1x1x8xf32> to vector<1x8xf32>
    %690 = vector.broadcast %689 : vector<1x8xf32> to vector<8x8xf32>
    %691 = arith.addf %687, %690 : vector<8x8xf32>
    %c0_569 = arith.constant 0 : index
    %c0_570 = arith.constant 0 : index
    %c0_571 = arith.constant 0 : index
    %c0_572 = arith.constant 0 : index
    %692 = vector.load %arg34[%c0_569, %c0_570, %c0_571, %c0_572] : memref<2x4x32x8xf32, #tpu.memory_space<vmem>>, vector<1x1x32x8xf32>
    %693 = vector.shape_cast %692 : vector<1x1x32x8xf32> to vector<32x8xf32>
    %cst_573 = arith.constant dense<0.000000e+00> : vector<8x8xf32>
    %694 = tpu.matmul %487, %693, %cst_573 {dimension_numbers = #tpu.dot_dimension_numbers<[1], [0], [0], [1], [0, 0, 1, 1], [], []>} : vector<8x32xf32>, vector<32x8xf32>, vector<8x8xf32> -> vector<8x8xf32>
    %c0_574 = arith.constant 0 : index
    %c0_575 = arith.constant 0 : index
    %c0_576 = arith.constant 0 : index
    %c0_577 = arith.constant 0 : index
    %695 = vector.load %arg35[%c0_574, %c0_575, %c0_576, %c0_577] : memref<2x4x1x8xf32, #tpu.memory_space<vmem>>, vector<1x1x1x8xf32>
    %696 = vector.shape_cast %695 : vector<1x1x1x8xf32> to vector<1x8xf32>
    %697 = vector.broadcast %696 : vector<1x8xf32> to vector<8x8xf32>
    %698 = arith.addf %694, %697 : vector<8x8xf32>
    %699 = tpu.transpose %691, [1, 0] : vector<8x8xf32> -> vector<8x8xf32>
    %cst_578 = arith.constant dense<0.000000e+00> : vector<8x8xf32>
    %700 = tpu.matmul %684, %699, %cst_578 {dimension_numbers = #tpu.dot_dimension_numbers<[1], [0], [0], [1], [0, 0, 1, 1], [], []>} : vector<8x8xf32>, vector<8x8xf32>, vector<8x8xf32> -> vector<8x8xf32>
    %cst_579 = arith.constant 0.353553385 : f32
    %701 = vector.broadcast %cst_579 : f32 to vector<8x8xf32>
    %702 = arith.mulf %700, %701 : vector<8x8xf32>
    %cst_580 = arith.constant dense<0xFF800000> : vector<8xf32>
    %703 = vector.multi_reduction <maximumf>, %702, %cst_580 [1] : vector<8x8xf32> to vector<8xf32>
    %704 = vector.shape_cast %703 : vector<8xf32> to vector<8x1xf32>
    %705 = vector.broadcast %704 : vector<8x1xf32> to vector<8x8xf32>
    %706 = arith.subf %702, %705 : vector<8x8xf32>
    %707 = math.exp %706 : vector<8x8xf32>
    %cst_581 = arith.constant dense<0.000000e+00> : vector<8xf32>
    %708 = vector.multi_reduction <add>, %707, %cst_581 [1] : vector<8x8xf32> to vector<8xf32>
    %709 = vector.shape_cast %708 : vector<8xf32> to vector<8x1xf32>
    %710 = vector.broadcast %709 : vector<8x1xf32> to vector<8x8xf32>
    %711 = arith.divf %707, %710 : vector<8x8xf32>
    %cst_582 = arith.constant dense<0.000000e+00> : vector<8x8xf32>
    %712 = tpu.matmul %711, %698, %cst_582 {dimension_numbers = #tpu.dot_dimension_numbers<[1], [0], [0], [1], [0, 0, 1, 1], [], []>} : vector<8x8xf32>, vector<8x8xf32>, vector<8x8xf32> -> vector<8x8xf32>
    %c0_583 = arith.constant 0 : index
    %c0_584 = arith.constant 0 : index
    %c0_585 = arith.constant 0 : index
    %c0_586 = arith.constant 0 : index
    %713 = vector.load %arg36[%c0_583, %c0_584, %c0_585, %c0_586] : memref<2x4x8x32xf32, #tpu.memory_space<vmem>>, vector<1x1x8x32xf32>
    %714 = vector.shape_cast %713 : vector<1x1x8x32xf32> to vector<8x32xf32>
    %cst_587 = arith.constant dense<0.000000e+00> : vector<8x32xf32>
    %715 = tpu.matmul %712, %714, %cst_587 {dimension_numbers = #tpu.dot_dimension_numbers<[1], [0], [0], [1], [0, 0, 1, 1], [], []>} : vector<8x8xf32>, vector<8x32xf32>, vector<8x32xf32> -> vector<8x32xf32>
    %c0_588 = arith.constant 0 : index
    %c1_589 = arith.constant 1 : index
    %c0_590 = arith.constant 0 : index
    %c0_591 = arith.constant 0 : index
    %716 = vector.load %arg30[%c0_588, %c1_589, %c0_590, %c0_591] : memref<2x4x32x8xf32, #tpu.memory_space<vmem>>, vector<1x1x32x8xf32>
    %717 = vector.shape_cast %716 : vector<1x1x32x8xf32> to vector<32x8xf32>
    %cst_592 = arith.constant dense<0.000000e+00> : vector<8x8xf32>
    %718 = tpu.matmul %677, %717, %cst_592 {dimension_numbers = #tpu.dot_dimension_numbers<[1], [0], [0], [1], [0, 0, 1, 1], [], []>} : vector<8x32xf32>, vector<32x8xf32>, vector<8x8xf32> -> vector<8x8xf32>
    %c0_593 = arith.constant 0 : index
    %c1_594 = arith.constant 1 : index
    %c0_595 = arith.constant 0 : index
    %c0_596 = arith.constant 0 : index
    %719 = vector.load %arg31[%c0_593, %c1_594, %c0_595, %c0_596] : memref<2x4x1x8xf32, #tpu.memory_space<vmem>>, vector<1x1x1x8xf32>
    %720 = vector.shape_cast %719 : vector<1x1x1x8xf32> to vector<1x8xf32>
    %721 = vector.broadcast %720 : vector<1x8xf32> to vector<8x8xf32>
    %722 = arith.addf %718, %721 : vector<8x8xf32>
    %c0_597 = arith.constant 0 : index
    %c1_598 = arith.constant 1 : index
    %c0_599 = arith.constant 0 : index
    %c0_600 = arith.constant 0 : index
    %723 = vector.load %arg32[%c0_597, %c1_598, %c0_599, %c0_600] : memref<2x4x32x8xf32, #tpu.memory_space<vmem>>, vector<1x1x32x8xf32>
    %724 = vector.shape_cast %723 : vector<1x1x32x8xf32> to vector<32x8xf32>
    %cst_601 = arith.constant dense<0.000000e+00> : vector<8x8xf32>
    %725 = tpu.matmul %487, %724, %cst_601 {dimension_numbers = #tpu.dot_dimension_numbers<[1], [0], [0], [1], [0, 0, 1, 1], [], []>} : vector<8x32xf32>, vector<32x8xf32>, vector<8x8xf32> -> vector<8x8xf32>
    %c0_602 = arith.constant 0 : index
    %c1_603 = arith.constant 1 : index
    %c0_604 = arith.constant 0 : index
    %c0_605 = arith.constant 0 : index
    %726 = vector.load %arg33[%c0_602, %c1_603, %c0_604, %c0_605] : memref<2x4x1x8xf32, #tpu.memory_space<vmem>>, vector<1x1x1x8xf32>
    %727 = vector.shape_cast %726 : vector<1x1x1x8xf32> to vector<1x8xf32>
    %728 = vector.broadcast %727 : vector<1x8xf32> to vector<8x8xf32>
    %729 = arith.addf %725, %728 : vector<8x8xf32>
    %c0_606 = arith.constant 0 : index
    %c1_607 = arith.constant 1 : index
    %c0_608 = arith.constant 0 : index
    %c0_609 = arith.constant 0 : index
    %730 = vector.load %arg34[%c0_606, %c1_607, %c0_608, %c0_609] : memref<2x4x32x8xf32, #tpu.memory_space<vmem>>, vector<1x1x32x8xf32>
    %731 = vector.shape_cast %730 : vector<1x1x32x8xf32> to vector<32x8xf32>
    %cst_610 = arith.constant dense<0.000000e+00> : vector<8x8xf32>
    %732 = tpu.matmul %487, %731, %cst_610 {dimension_numbers = #tpu.dot_dimension_numbers<[1], [0], [0], [1], [0, 0, 1, 1], [], []>} : vector<8x32xf32>, vector<32x8xf32>, vector<8x8xf32> -> vector<8x8xf32>
    %c0_611 = arith.constant 0 : index
    %c1_612 = arith.constant 1 : index
    %c0_613 = arith.constant 0 : index
    %c0_614 = arith.constant 0 : index
    %733 = vector.load %arg35[%c0_611, %c1_612, %c0_613, %c0_614] : memref<2x4x1x8xf32, #tpu.memory_space<vmem>>, vector<1x1x1x8xf32>
    %734 = vector.shape_cast %733 : vector<1x1x1x8xf32> to vector<1x8xf32>
    %735 = vector.broadcast %734 : vector<1x8xf32> to vector<8x8xf32>
    %736 = arith.addf %732, %735 : vector<8x8xf32>
    %737 = tpu.transpose %729, [1, 0] : vector<8x8xf32> -> vector<8x8xf32>
    %cst_615 = arith.constant dense<0.000000e+00> : vector<8x8xf32>
    %738 = tpu.matmul %722, %737, %cst_615 {dimension_numbers = #tpu.dot_dimension_numbers<[1], [0], [0], [1], [0, 0, 1, 1], [], []>} : vector<8x8xf32>, vector<8x8xf32>, vector<8x8xf32> -> vector<8x8xf32>
    %cst_616 = arith.constant 0.353553385 : f32
    %739 = vector.broadcast %cst_616 : f32 to vector<8x8xf32>
    %740 = arith.mulf %738, %739 : vector<8x8xf32>
    %cst_617 = arith.constant dense<0xFF800000> : vector<8xf32>
    %741 = vector.multi_reduction <maximumf>, %740, %cst_617 [1] : vector<8x8xf32> to vector<8xf32>
    %742 = vector.shape_cast %741 : vector<8xf32> to vector<8x1xf32>
    %743 = vector.broadcast %742 : vector<8x1xf32> to vector<8x8xf32>
    %744 = arith.subf %740, %743 : vector<8x8xf32>
    %745 = math.exp %744 : vector<8x8xf32>
    %cst_618 = arith.constant dense<0.000000e+00> : vector<8xf32>
    %746 = vector.multi_reduction <add>, %745, %cst_618 [1] : vector<8x8xf32> to vector<8xf32>
    %747 = vector.shape_cast %746 : vector<8xf32> to vector<8x1xf32>
    %748 = vector.broadcast %747 : vector<8x1xf32> to vector<8x8xf32>
    %749 = arith.divf %745, %748 : vector<8x8xf32>
    %cst_619 = arith.constant dense<0.000000e+00> : vector<8x8xf32>
    %750 = tpu.matmul %749, %736, %cst_619 {dimension_numbers = #tpu.dot_dimension_numbers<[1], [0], [0], [1], [0, 0, 1, 1], [], []>} : vector<8x8xf32>, vector<8x8xf32>, vector<8x8xf32> -> vector<8x8xf32>
    %c0_620 = arith.constant 0 : index
    %c1_621 = arith.constant 1 : index
    %c0_622 = arith.constant 0 : index
    %c0_623 = arith.constant 0 : index
    %751 = vector.load %arg36[%c0_620, %c1_621, %c0_622, %c0_623] : memref<2x4x8x32xf32, #tpu.memory_space<vmem>>, vector<1x1x8x32xf32>
    %752 = vector.shape_cast %751 : vector<1x1x8x32xf32> to vector<8x32xf32>
    %cst_624 = arith.constant dense<0.000000e+00> : vector<8x32xf32>
    %753 = tpu.matmul %750, %752, %cst_624 {dimension_numbers = #tpu.dot_dimension_numbers<[1], [0], [0], [1], [0, 0, 1, 1], [], []>} : vector<8x8xf32>, vector<8x32xf32>, vector<8x32xf32> -> vector<8x32xf32>
    %754 = arith.addf %715, %753 : vector<8x32xf32>
    %c0_625 = arith.constant 0 : index
    %c2_626 = arith.constant 2 : index
    %c0_627 = arith.constant 0 : index
    %c0_628 = arith.constant 0 : index
    %755 = vector.load %arg30[%c0_625, %c2_626, %c0_627, %c0_628] : memref<2x4x32x8xf32, #tpu.memory_space<vmem>>, vector<1x1x32x8xf32>
    %756 = vector.shape_cast %755 : vector<1x1x32x8xf32> to vector<32x8xf32>
    %cst_629 = arith.constant dense<0.000000e+00> : vector<8x8xf32>
    %757 = tpu.matmul %677, %756, %cst_629 {dimension_numbers = #tpu.dot_dimension_numbers<[1], [0], [0], [1], [0, 0, 1, 1], [], []>} : vector<8x32xf32>, vector<32x8xf32>, vector<8x8xf32> -> vector<8x8xf32>
    %c0_630 = arith.constant 0 : index
    %c2_631 = arith.constant 2 : index
    %c0_632 = arith.constant 0 : index
    %c0_633 = arith.constant 0 : index
    %758 = vector.load %arg31[%c0_630, %c2_631, %c0_632, %c0_633] : memref<2x4x1x8xf32, #tpu.memory_space<vmem>>, vector<1x1x1x8xf32>
    %759 = vector.shape_cast %758 : vector<1x1x1x8xf32> to vector<1x8xf32>
    %760 = vector.broadcast %759 : vector<1x8xf32> to vector<8x8xf32>
    %761 = arith.addf %757, %760 : vector<8x8xf32>
    %c0_634 = arith.constant 0 : index
    %c2_635 = arith.constant 2 : index
    %c0_636 = arith.constant 0 : index
    %c0_637 = arith.constant 0 : index
    %762 = vector.load %arg32[%c0_634, %c2_635, %c0_636, %c0_637] : memref<2x4x32x8xf32, #tpu.memory_space<vmem>>, vector<1x1x32x8xf32>
    %763 = vector.shape_cast %762 : vector<1x1x32x8xf32> to vector<32x8xf32>
    %cst_638 = arith.constant dense<0.000000e+00> : vector<8x8xf32>
    %764 = tpu.matmul %487, %763, %cst_638 {dimension_numbers = #tpu.dot_dimension_numbers<[1], [0], [0], [1], [0, 0, 1, 1], [], []>} : vector<8x32xf32>, vector<32x8xf32>, vector<8x8xf32> -> vector<8x8xf32>
    %c0_639 = arith.constant 0 : index
    %c2_640 = arith.constant 2 : index
    %c0_641 = arith.constant 0 : index
    %c0_642 = arith.constant 0 : index
    %765 = vector.load %arg33[%c0_639, %c2_640, %c0_641, %c0_642] : memref<2x4x1x8xf32, #tpu.memory_space<vmem>>, vector<1x1x1x8xf32>
    %766 = vector.shape_cast %765 : vector<1x1x1x8xf32> to vector<1x8xf32>
    %767 = vector.broadcast %766 : vector<1x8xf32> to vector<8x8xf32>
    %768 = arith.addf %764, %767 : vector<8x8xf32>
    %c0_643 = arith.constant 0 : index
    %c2_644 = arith.constant 2 : index
    %c0_645 = arith.constant 0 : index
    %c0_646 = arith.constant 0 : index
    %769 = vector.load %arg34[%c0_643, %c2_644, %c0_645, %c0_646] : memref<2x4x32x8xf32, #tpu.memory_space<vmem>>, vector<1x1x32x8xf32>
    %770 = vector.shape_cast %769 : vector<1x1x32x8xf32> to vector<32x8xf32>
    %cst_647 = arith.constant dense<0.000000e+00> : vector<8x8xf32>
    %771 = tpu.matmul %487, %770, %cst_647 {dimension_numbers = #tpu.dot_dimension_numbers<[1], [0], [0], [1], [0, 0, 1, 1], [], []>} : vector<8x32xf32>, vector<32x8xf32>, vector<8x8xf32> -> vector<8x8xf32>
    %c0_648 = arith.constant 0 : index
    %c2_649 = arith.constant 2 : index
    %c0_650 = arith.constant 0 : index
    %c0_651 = arith.constant 0 : index
    %772 = vector.load %arg35[%c0_648, %c2_649, %c0_650, %c0_651] : memref<2x4x1x8xf32, #tpu.memory_space<vmem>>, vector<1x1x1x8xf32>
    %773 = vector.shape_cast %772 : vector<1x1x1x8xf32> to vector<1x8xf32>
    %774 = vector.broadcast %773 : vector<1x8xf32> to vector<8x8xf32>
    %775 = arith.addf %771, %774 : vector<8x8xf32>
    %776 = tpu.transpose %768, [1, 0] : vector<8x8xf32> -> vector<8x8xf32>
    %cst_652 = arith.constant dense<0.000000e+00> : vector<8x8xf32>
    %777 = tpu.matmul %761, %776, %cst_652 {dimension_numbers = #tpu.dot_dimension_numbers<[1], [0], [0], [1], [0, 0, 1, 1], [], []>} : vector<8x8xf32>, vector<8x8xf32>, vector<8x8xf32> -> vector<8x8xf32>
    %cst_653 = arith.constant 0.353553385 : f32
    %778 = vector.broadcast %cst_653 : f32 to vector<8x8xf32>
    %779 = arith.mulf %777, %778 : vector<8x8xf32>
    %cst_654 = arith.constant dense<0xFF800000> : vector<8xf32>
    %780 = vector.multi_reduction <maximumf>, %779, %cst_654 [1] : vector<8x8xf32> to vector<8xf32>
    %781 = vector.shape_cast %780 : vector<8xf32> to vector<8x1xf32>
    %782 = vector.broadcast %781 : vector<8x1xf32> to vector<8x8xf32>
    %783 = arith.subf %779, %782 : vector<8x8xf32>
    %784 = math.exp %783 : vector<8x8xf32>
    %cst_655 = arith.constant dense<0.000000e+00> : vector<8xf32>
    %785 = vector.multi_reduction <add>, %784, %cst_655 [1] : vector<8x8xf32> to vector<8xf32>
    %786 = vector.shape_cast %785 : vector<8xf32> to vector<8x1xf32>
    %787 = vector.broadcast %786 : vector<8x1xf32> to vector<8x8xf32>
    %788 = arith.divf %784, %787 : vector<8x8xf32>
    %cst_656 = arith.constant dense<0.000000e+00> : vector<8x8xf32>
    %789 = tpu.matmul %788, %775, %cst_656 {dimension_numbers = #tpu.dot_dimension_numbers<[1], [0], [0], [1], [0, 0, 1, 1], [], []>} : vector<8x8xf32>, vector<8x8xf32>, vector<8x8xf32> -> vector<8x8xf32>
    %c0_657 = arith.constant 0 : index
    %c2_658 = arith.constant 2 : index
    %c0_659 = arith.constant 0 : index
    %c0_660 = arith.constant 0 : index
    %790 = vector.load %arg36[%c0_657, %c2_658, %c0_659, %c0_660] : memref<2x4x8x32xf32, #tpu.memory_space<vmem>>, vector<1x1x8x32xf32>
    %791 = vector.shape_cast %790 : vector<1x1x8x32xf32> to vector<8x32xf32>
    %cst_661 = arith.constant dense<0.000000e+00> : vector<8x32xf32>
    %792 = tpu.matmul %789, %791, %cst_661 {dimension_numbers = #tpu.dot_dimension_numbers<[1], [0], [0], [1], [0, 0, 1, 1], [], []>} : vector<8x8xf32>, vector<8x32xf32>, vector<8x32xf32> -> vector<8x32xf32>
    %793 = arith.addf %754, %792 : vector<8x32xf32>
    %c0_662 = arith.constant 0 : index
    %c3_663 = arith.constant 3 : index
    %c0_664 = arith.constant 0 : index
    %c0_665 = arith.constant 0 : index
    %794 = vector.load %arg30[%c0_662, %c3_663, %c0_664, %c0_665] : memref<2x4x32x8xf32, #tpu.memory_space<vmem>>, vector<1x1x32x8xf32>
    %795 = vector.shape_cast %794 : vector<1x1x32x8xf32> to vector<32x8xf32>
    %cst_666 = arith.constant dense<0.000000e+00> : vector<8x8xf32>
    %796 = tpu.matmul %677, %795, %cst_666 {dimension_numbers = #tpu.dot_dimension_numbers<[1], [0], [0], [1], [0, 0, 1, 1], [], []>} : vector<8x32xf32>, vector<32x8xf32>, vector<8x8xf32> -> vector<8x8xf32>
    %c0_667 = arith.constant 0 : index
    %c3_668 = arith.constant 3 : index
    %c0_669 = arith.constant 0 : index
    %c0_670 = arith.constant 0 : index
    %797 = vector.load %arg31[%c0_667, %c3_668, %c0_669, %c0_670] : memref<2x4x1x8xf32, #tpu.memory_space<vmem>>, vector<1x1x1x8xf32>
    %798 = vector.shape_cast %797 : vector<1x1x1x8xf32> to vector<1x8xf32>
    %799 = vector.broadcast %798 : vector<1x8xf32> to vector<8x8xf32>
    %800 = arith.addf %796, %799 : vector<8x8xf32>
    %c0_671 = arith.constant 0 : index
    %c3_672 = arith.constant 3 : index
    %c0_673 = arith.constant 0 : index
    %c0_674 = arith.constant 0 : index
    %801 = vector.load %arg32[%c0_671, %c3_672, %c0_673, %c0_674] : memref<2x4x32x8xf32, #tpu.memory_space<vmem>>, vector<1x1x32x8xf32>
    %802 = vector.shape_cast %801 : vector<1x1x32x8xf32> to vector<32x8xf32>
    %cst_675 = arith.constant dense<0.000000e+00> : vector<8x8xf32>
    %803 = tpu.matmul %487, %802, %cst_675 {dimension_numbers = #tpu.dot_dimension_numbers<[1], [0], [0], [1], [0, 0, 1, 1], [], []>} : vector<8x32xf32>, vector<32x8xf32>, vector<8x8xf32> -> vector<8x8xf32>
    %c0_676 = arith.constant 0 : index
    %c3_677 = arith.constant 3 : index
    %c0_678 = arith.constant 0 : index
    %c0_679 = arith.constant 0 : index
    %804 = vector.load %arg33[%c0_676, %c3_677, %c0_678, %c0_679] : memref<2x4x1x8xf32, #tpu.memory_space<vmem>>, vector<1x1x1x8xf32>
    %805 = vector.shape_cast %804 : vector<1x1x1x8xf32> to vector<1x8xf32>
    %806 = vector.broadcast %805 : vector<1x8xf32> to vector<8x8xf32>
    %807 = arith.addf %803, %806 : vector<8x8xf32>
    %c0_680 = arith.constant 0 : index
    %c3_681 = arith.constant 3 : index
    %c0_682 = arith.constant 0 : index
    %c0_683 = arith.constant 0 : index
    %808 = vector.load %arg34[%c0_680, %c3_681, %c0_682, %c0_683] : memref<2x4x32x8xf32, #tpu.memory_space<vmem>>, vector<1x1x32x8xf32>
    %809 = vector.shape_cast %808 : vector<1x1x32x8xf32> to vector<32x8xf32>
    %cst_684 = arith.constant dense<0.000000e+00> : vector<8x8xf32>
    %810 = tpu.matmul %487, %809, %cst_684 {dimension_numbers = #tpu.dot_dimension_numbers<[1], [0], [0], [1], [0, 0, 1, 1], [], []>} : vector<8x32xf32>, vector<32x8xf32>, vector<8x8xf32> -> vector<8x8xf32>
    %c0_685 = arith.constant 0 : index
    %c3_686 = arith.constant 3 : index
    %c0_687 = arith.constant 0 : index
    %c0_688 = arith.constant 0 : index
    %811 = vector.load %arg35[%c0_685, %c3_686, %c0_687, %c0_688] : memref<2x4x1x8xf32, #tpu.memory_space<vmem>>, vector<1x1x1x8xf32>
    %812 = vector.shape_cast %811 : vector<1x1x1x8xf32> to vector<1x8xf32>
    %813 = vector.broadcast %812 : vector<1x8xf32> to vector<8x8xf32>
    %814 = arith.addf %810, %813 : vector<8x8xf32>
    %815 = tpu.transpose %807, [1, 0] : vector<8x8xf32> -> vector<8x8xf32>
    %cst_689 = arith.constant dense<0.000000e+00> : vector<8x8xf32>
    %816 = tpu.matmul %800, %815, %cst_689 {dimension_numbers = #tpu.dot_dimension_numbers<[1], [0], [0], [1], [0, 0, 1, 1], [], []>} : vector<8x8xf32>, vector<8x8xf32>, vector<8x8xf32> -> vector<8x8xf32>
    %cst_690 = arith.constant 0.353553385 : f32
    %817 = vector.broadcast %cst_690 : f32 to vector<8x8xf32>
    %818 = arith.mulf %816, %817 : vector<8x8xf32>
    %cst_691 = arith.constant dense<0xFF800000> : vector<8xf32>
    %819 = vector.multi_reduction <maximumf>, %818, %cst_691 [1] : vector<8x8xf32> to vector<8xf32>
    %820 = vector.shape_cast %819 : vector<8xf32> to vector<8x1xf32>
    %821 = vector.broadcast %820 : vector<8x1xf32> to vector<8x8xf32>
    %822 = arith.subf %818, %821 : vector<8x8xf32>
    %823 = math.exp %822 : vector<8x8xf32>
    %cst_692 = arith.constant dense<0.000000e+00> : vector<8xf32>
    %824 = vector.multi_reduction <add>, %823, %cst_692 [1] : vector<8x8xf32> to vector<8xf32>
    %825 = vector.shape_cast %824 : vector<8xf32> to vector<8x1xf32>
    %826 = vector.broadcast %825 : vector<8x1xf32> to vector<8x8xf32>
    %827 = arith.divf %823, %826 : vector<8x8xf32>
    %cst_693 = arith.constant dense<0.000000e+00> : vector<8x8xf32>
    %828 = tpu.matmul %827, %814, %cst_693 {dimension_numbers = #tpu.dot_dimension_numbers<[1], [0], [0], [1], [0, 0, 1, 1], [], []>} : vector<8x8xf32>, vector<8x8xf32>, vector<8x8xf32> -> vector<8x8xf32>
    %c0_694 = arith.constant 0 : index
    %c3_695 = arith.constant 3 : index
    %c0_696 = arith.constant 0 : index
    %c0_697 = arith.constant 0 : index
    %829 = vector.load %arg36[%c0_694, %c3_695, %c0_696, %c0_697] : memref<2x4x8x32xf32, #tpu.memory_space<vmem>>, vector<1x1x8x32xf32>
    %830 = vector.shape_cast %829 : vector<1x1x8x32xf32> to vector<8x32xf32>
    %cst_698 = arith.constant dense<0.000000e+00> : vector<8x32xf32>
    %831 = tpu.matmul %828, %830, %cst_698 {dimension_numbers = #tpu.dot_dimension_numbers<[1], [0], [0], [1], [0, 0, 1, 1], [], []>} : vector<8x8xf32>, vector<8x32xf32>, vector<8x32xf32> -> vector<8x32xf32>
    %832 = arith.addf %793, %831 : vector<8x32xf32>
    %c0_699 = arith.constant 0 : index
    %c0_700 = arith.constant 0 : index
    %c0_701 = arith.constant 0 : index
    %833 = vector.load %arg37[%c0_699, %c0_700, %c0_701] : memref<2x1x32xf32, #tpu.memory_space<vmem>>, vector<1x1x32xf32>
    %834 = vector.shape_cast %833 : vector<1x1x32xf32> to vector<1x32xf32>
    %835 = vector.broadcast %834 : vector<1x32xf32> to vector<8x32xf32>
    %836 = arith.addf %832, %835 : vector<8x32xf32>
    %837 = arith.addf %677, %836 : vector<8x32xf32>
    %c0_702 = arith.constant 0 : index
    %c0_703 = arith.constant 0 : index
    %c0_704 = arith.constant 0 : index
    %838 = vector.load %arg38[%c0_702, %c0_703, %c0_704] : memref<2x1x32xf32, #tpu.memory_space<vmem>>, vector<1x1x32xf32>
    %839 = vector.shape_cast %838 : vector<1x1x32xf32> to vector<1x32xf32>
    %c0_705 = arith.constant 0 : index
    %c0_706 = arith.constant 0 : index
    %c0_707 = arith.constant 0 : index
    %840 = vector.load %arg39[%c0_705, %c0_706, %c0_707] : memref<2x1x32xf32, #tpu.memory_space<vmem>>, vector<1x1x32xf32>
    %841 = vector.shape_cast %840 : vector<1x1x32xf32> to vector<1x32xf32>
    %cst_708 = arith.constant dense<0.000000e+00> : vector<8xf32>
    %842 = vector.multi_reduction <add>, %837, %cst_708 [1] : vector<8x32xf32> to vector<8xf32>
    %843 = vector.shape_cast %842 : vector<8xf32> to vector<8x1xf32>
    %cst_709 = arith.constant 3.200000e+01 : f32
    %844 = vector.broadcast %cst_709 : f32 to vector<8x1xf32>
    %845 = arith.divf %843, %844 : vector<8x1xf32>
    %846 = vector.broadcast %845 : vector<8x1xf32> to vector<8x32xf32>
    %847 = arith.subf %837, %846 : vector<8x32xf32>
    %848 = arith.mulf %847, %847 : vector<8x32xf32>
    %cst_710 = arith.constant dense<0.000000e+00> : vector<8xf32>
    %849 = vector.multi_reduction <add>, %848, %cst_710 [1] : vector<8x32xf32> to vector<8xf32>
    %850 = vector.shape_cast %849 : vector<8xf32> to vector<8x1xf32>
    %cst_711 = arith.constant 3.200000e+01 : f32
    %851 = vector.broadcast %cst_711 : f32 to vector<8x1xf32>
    %852 = arith.divf %850, %851 : vector<8x1xf32>
    %853 = vector.broadcast %845 : vector<8x1xf32> to vector<8x32xf32>
    %854 = arith.subf %837, %853 : vector<8x32xf32>
    %cst_712 = arith.constant 9.99999974E-6 : f32
    %855 = vector.broadcast %cst_712 : f32 to vector<8x1xf32>
    %856 = arith.addf %852, %855 : vector<8x1xf32>
    %857 = math.rsqrt %856 : vector<8x1xf32>
    %858 = vector.broadcast %857 : vector<8x1xf32> to vector<8x32xf32>
    %859 = arith.mulf %854, %858 : vector<8x32xf32>
    %860 = vector.broadcast %839 : vector<1x32xf32> to vector<8x32xf32>
    %861 = arith.mulf %859, %860 : vector<8x32xf32>
    %862 = vector.broadcast %841 : vector<1x32xf32> to vector<8x32xf32>
    %863 = arith.addf %861, %862 : vector<8x32xf32>
    %c0_713 = arith.constant 0 : index
    %c0_714 = arith.constant 0 : index
    %c0_715 = arith.constant 0 : index
    %864 = vector.load %arg40[%c0_713, %c0_714, %c0_715] : memref<2x32x128xf32, #tpu.memory_space<vmem>>, vector<1x32x128xf32>
    %865 = vector.shape_cast %864 : vector<1x32x128xf32> to vector<32x128xf32>
    %c0_716 = arith.constant 0 : index
    %c0_717 = arith.constant 0 : index
    %c0_718 = arith.constant 0 : index
    %866 = vector.load %arg41[%c0_716, %c0_717, %c0_718] : memref<2x1x128xf32, #tpu.memory_space<vmem>>, vector<1x1x128xf32>
    %867 = vector.shape_cast %866 : vector<1x1x128xf32> to vector<1x128xf32>
    %c0_719 = arith.constant 0 : index
    %c0_720 = arith.constant 0 : index
    %c0_721 = arith.constant 0 : index
    %868 = vector.load %arg42[%c0_719, %c0_720, %c0_721] : memref<2x128x32xf32, #tpu.memory_space<vmem>>, vector<1x128x32xf32>
    %869 = vector.shape_cast %868 : vector<1x128x32xf32> to vector<128x32xf32>
    %c0_722 = arith.constant 0 : index
    %c0_723 = arith.constant 0 : index
    %c0_724 = arith.constant 0 : index
    %870 = vector.load %arg43[%c0_722, %c0_723, %c0_724] : memref<2x1x32xf32, #tpu.memory_space<vmem>>, vector<1x1x32xf32>
    %871 = vector.shape_cast %870 : vector<1x1x32xf32> to vector<1x32xf32>
    %cst_725 = arith.constant dense<0.000000e+00> : vector<8x128xf32>
    %872 = tpu.matmul %863, %865, %cst_725 {dimension_numbers = #tpu.dot_dimension_numbers<[1], [0], [0], [1], [0, 0, 1, 1], [], []>} : vector<8x32xf32>, vector<32x128xf32>, vector<8x128xf32> -> vector<8x128xf32>
    %873 = vector.broadcast %867 : vector<1x128xf32> to vector<8x128xf32>
    %874 = arith.addf %872, %873 : vector<8x128xf32>
    %cst_726 = arith.constant 0.000000e+00 : f32
    %875 = vector.broadcast %cst_726 : f32 to vector<8x128xf32>
    %876 = arith.maximumf %874, %875 : vector<8x128xf32>
    %cst_727 = arith.constant dense<0.000000e+00> : vector<8x32xf32>
    %877 = tpu.matmul %876, %869, %cst_727 {dimension_numbers = #tpu.dot_dimension_numbers<[1], [0], [0], [1], [0, 0, 1, 1], [], []>} : vector<8x128xf32>, vector<128x32xf32>, vector<8x32xf32> -> vector<8x32xf32>
    %878 = vector.broadcast %871 : vector<1x32xf32> to vector<8x32xf32>
    %879 = arith.addf %877, %878 : vector<8x32xf32>
    %880 = arith.addf %863, %879 : vector<8x32xf32>
    %c0_728 = arith.constant 0 : index
    %c0_729 = arith.constant 0 : index
    %c0_730 = arith.constant 0 : index
    %881 = vector.load %arg44[%c0_728, %c0_729, %c0_730] : memref<2x1x32xf32, #tpu.memory_space<vmem>>, vector<1x1x32xf32>
    %882 = vector.shape_cast %881 : vector<1x1x32xf32> to vector<1x32xf32>
    %c0_731 = arith.constant 0 : index
    %c0_732 = arith.constant 0 : index
    %c0_733 = arith.constant 0 : index
    %883 = vector.load %arg45[%c0_731, %c0_732, %c0_733] : memref<2x1x32xf32, #tpu.memory_space<vmem>>, vector<1x1x32xf32>
    %884 = vector.shape_cast %883 : vector<1x1x32xf32> to vector<1x32xf32>
    %cst_734 = arith.constant dense<0.000000e+00> : vector<8xf32>
    %885 = vector.multi_reduction <add>, %880, %cst_734 [1] : vector<8x32xf32> to vector<8xf32>
    %886 = vector.shape_cast %885 : vector<8xf32> to vector<8x1xf32>
    %cst_735 = arith.constant 3.200000e+01 : f32
    %887 = vector.broadcast %cst_735 : f32 to vector<8x1xf32>
    %888 = arith.divf %886, %887 : vector<8x1xf32>
    %889 = vector.broadcast %888 : vector<8x1xf32> to vector<8x32xf32>
    %890 = arith.subf %880, %889 : vector<8x32xf32>
    %891 = arith.mulf %890, %890 : vector<8x32xf32>
    %cst_736 = arith.constant dense<0.000000e+00> : vector<8xf32>
    %892 = vector.multi_reduction <add>, %891, %cst_736 [1] : vector<8x32xf32> to vector<8xf32>
    %893 = vector.shape_cast %892 : vector<8xf32> to vector<8x1xf32>
    %cst_737 = arith.constant 3.200000e+01 : f32
    %894 = vector.broadcast %cst_737 : f32 to vector<8x1xf32>
    %895 = arith.divf %893, %894 : vector<8x1xf32>
    %896 = vector.broadcast %888 : vector<8x1xf32> to vector<8x32xf32>
    %897 = arith.subf %880, %896 : vector<8x32xf32>
    %cst_738 = arith.constant 9.99999974E-6 : f32
    %898 = vector.broadcast %cst_738 : f32 to vector<8x1xf32>
    %899 = arith.addf %895, %898 : vector<8x1xf32>
    %900 = math.rsqrt %899 : vector<8x1xf32>
    %901 = vector.broadcast %900 : vector<8x1xf32> to vector<8x32xf32>
    %902 = arith.mulf %897, %901 : vector<8x32xf32>
    %903 = vector.broadcast %882 : vector<1x32xf32> to vector<8x32xf32>
    %904 = arith.mulf %902, %903 : vector<8x32xf32>
    %905 = vector.broadcast %884 : vector<1x32xf32> to vector<8x32xf32>
    %906 = arith.addf %904, %905 : vector<8x32xf32>
    %c1_739 = arith.constant 1 : index
    %c0_740 = arith.constant 0 : index
    %c0_741 = arith.constant 0 : index
    %c0_742 = arith.constant 0 : index
    %907 = vector.load %arg20[%c1_739, %c0_740, %c0_741, %c0_742] : memref<2x4x32x8xf32, #tpu.memory_space<vmem>>, vector<1x1x32x8xf32>
    %908 = vector.shape_cast %907 : vector<1x1x32x8xf32> to vector<32x8xf32>
    %cst_743 = arith.constant dense<0.000000e+00> : vector<8x8xf32>
    %909 = tpu.matmul %906, %908, %cst_743 {dimension_numbers = #tpu.dot_dimension_numbers<[1], [0], [0], [1], [0, 0, 1, 1], [], []>} : vector<8x32xf32>, vector<32x8xf32>, vector<8x8xf32> -> vector<8x8xf32>
    %c1_744 = arith.constant 1 : index
    %c0_745 = arith.constant 0 : index
    %c0_746 = arith.constant 0 : index
    %c0_747 = arith.constant 0 : index
    %910 = vector.load %arg21[%c1_744, %c0_745, %c0_746, %c0_747] : memref<2x4x1x8xf32, #tpu.memory_space<vmem>>, vector<1x1x1x8xf32>
    %911 = vector.shape_cast %910 : vector<1x1x1x8xf32> to vector<1x8xf32>
    %912 = vector.broadcast %911 : vector<1x8xf32> to vector<8x8xf32>
    %913 = arith.addf %909, %912 : vector<8x8xf32>
    %c1_748 = arith.constant 1 : index
    %c0_749 = arith.constant 0 : index
    %c0_750 = arith.constant 0 : index
    %c0_751 = arith.constant 0 : index
    %914 = vector.load %arg22[%c1_748, %c0_749, %c0_750, %c0_751] : memref<2x4x32x8xf32, #tpu.memory_space<vmem>>, vector<1x1x32x8xf32>
    %915 = vector.shape_cast %914 : vector<1x1x32x8xf32> to vector<32x8xf32>
    %cst_752 = arith.constant dense<0.000000e+00> : vector<8x8xf32>
    %916 = tpu.matmul %906, %915, %cst_752 {dimension_numbers = #tpu.dot_dimension_numbers<[1], [0], [0], [1], [0, 0, 1, 1], [], []>} : vector<8x32xf32>, vector<32x8xf32>, vector<8x8xf32> -> vector<8x8xf32>
    %c1_753 = arith.constant 1 : index
    %c0_754 = arith.constant 0 : index
    %c0_755 = arith.constant 0 : index
    %c0_756 = arith.constant 0 : index
    %917 = vector.load %arg23[%c1_753, %c0_754, %c0_755, %c0_756] : memref<2x4x1x8xf32, #tpu.memory_space<vmem>>, vector<1x1x1x8xf32>
    %918 = vector.shape_cast %917 : vector<1x1x1x8xf32> to vector<1x8xf32>
    %919 = vector.broadcast %918 : vector<1x8xf32> to vector<8x8xf32>
    %920 = arith.addf %916, %919 : vector<8x8xf32>
    %c1_757 = arith.constant 1 : index
    %c0_758 = arith.constant 0 : index
    %c0_759 = arith.constant 0 : index
    %c0_760 = arith.constant 0 : index
    %921 = vector.load %arg24[%c1_757, %c0_758, %c0_759, %c0_760] : memref<2x4x32x8xf32, #tpu.memory_space<vmem>>, vector<1x1x32x8xf32>
    %922 = vector.shape_cast %921 : vector<1x1x32x8xf32> to vector<32x8xf32>
    %cst_761 = arith.constant dense<0.000000e+00> : vector<8x8xf32>
    %923 = tpu.matmul %906, %922, %cst_761 {dimension_numbers = #tpu.dot_dimension_numbers<[1], [0], [0], [1], [0, 0, 1, 1], [], []>} : vector<8x32xf32>, vector<32x8xf32>, vector<8x8xf32> -> vector<8x8xf32>
    %c1_762 = arith.constant 1 : index
    %c0_763 = arith.constant 0 : index
    %c0_764 = arith.constant 0 : index
    %c0_765 = arith.constant 0 : index
    %924 = vector.load %arg25[%c1_762, %c0_763, %c0_764, %c0_765] : memref<2x4x1x8xf32, #tpu.memory_space<vmem>>, vector<1x1x1x8xf32>
    %925 = vector.shape_cast %924 : vector<1x1x1x8xf32> to vector<1x8xf32>
    %926 = vector.broadcast %925 : vector<1x8xf32> to vector<8x8xf32>
    %927 = arith.addf %923, %926 : vector<8x8xf32>
    %928 = tpu.transpose %920, [1, 0] : vector<8x8xf32> -> vector<8x8xf32>
    %cst_766 = arith.constant dense<0.000000e+00> : vector<8x8xf32>
    %929 = tpu.matmul %913, %928, %cst_766 {dimension_numbers = #tpu.dot_dimension_numbers<[1], [0], [0], [1], [0, 0, 1, 1], [], []>} : vector<8x8xf32>, vector<8x8xf32>, vector<8x8xf32> -> vector<8x8xf32>
    %cst_767 = arith.constant 0.353553385 : f32
    %930 = vector.broadcast %cst_767 : f32 to vector<8x8xf32>
    %931 = arith.mulf %929, %930 : vector<8x8xf32>
    %cst_768 = arith.constant dense<0xFF800000> : vector<8xf32>
    %932 = vector.multi_reduction <maximumf>, %931, %cst_768 [1] : vector<8x8xf32> to vector<8xf32>
    %933 = vector.shape_cast %932 : vector<8xf32> to vector<8x1xf32>
    %934 = vector.broadcast %933 : vector<8x1xf32> to vector<8x8xf32>
    %935 = arith.subf %931, %934 : vector<8x8xf32>
    %936 = math.exp %935 : vector<8x8xf32>
    %cst_769 = arith.constant dense<0.000000e+00> : vector<8xf32>
    %937 = vector.multi_reduction <add>, %936, %cst_769 [1] : vector<8x8xf32> to vector<8xf32>
    %938 = vector.shape_cast %937 : vector<8xf32> to vector<8x1xf32>
    %939 = vector.broadcast %938 : vector<8x1xf32> to vector<8x8xf32>
    %940 = arith.divf %936, %939 : vector<8x8xf32>
    %cst_770 = arith.constant dense<0.000000e+00> : vector<8x8xf32>
    %941 = tpu.matmul %940, %927, %cst_770 {dimension_numbers = #tpu.dot_dimension_numbers<[1], [0], [0], [1], [0, 0, 1, 1], [], []>} : vector<8x8xf32>, vector<8x8xf32>, vector<8x8xf32> -> vector<8x8xf32>
    %c1_771 = arith.constant 1 : index
    %c0_772 = arith.constant 0 : index
    %c0_773 = arith.constant 0 : index
    %c0_774 = arith.constant 0 : index
    %942 = vector.load %arg26[%c1_771, %c0_772, %c0_773, %c0_774] : memref<2x4x8x32xf32, #tpu.memory_space<vmem>>, vector<1x1x8x32xf32>
    %943 = vector.shape_cast %942 : vector<1x1x8x32xf32> to vector<8x32xf32>
    %cst_775 = arith.constant dense<0.000000e+00> : vector<8x32xf32>
    %944 = tpu.matmul %941, %943, %cst_775 {dimension_numbers = #tpu.dot_dimension_numbers<[1], [0], [0], [1], [0, 0, 1, 1], [], []>} : vector<8x8xf32>, vector<8x32xf32>, vector<8x32xf32> -> vector<8x32xf32>
    %c1_776 = arith.constant 1 : index
    %c1_777 = arith.constant 1 : index
    %c0_778 = arith.constant 0 : index
    %c0_779 = arith.constant 0 : index
    %945 = vector.load %arg20[%c1_776, %c1_777, %c0_778, %c0_779] : memref<2x4x32x8xf32, #tpu.memory_space<vmem>>, vector<1x1x32x8xf32>
    %946 = vector.shape_cast %945 : vector<1x1x32x8xf32> to vector<32x8xf32>
    %cst_780 = arith.constant dense<0.000000e+00> : vector<8x8xf32>
    %947 = tpu.matmul %906, %946, %cst_780 {dimension_numbers = #tpu.dot_dimension_numbers<[1], [0], [0], [1], [0, 0, 1, 1], [], []>} : vector<8x32xf32>, vector<32x8xf32>, vector<8x8xf32> -> vector<8x8xf32>
    %c1_781 = arith.constant 1 : index
    %c1_782 = arith.constant 1 : index
    %c0_783 = arith.constant 0 : index
    %c0_784 = arith.constant 0 : index
    %948 = vector.load %arg21[%c1_781, %c1_782, %c0_783, %c0_784] : memref<2x4x1x8xf32, #tpu.memory_space<vmem>>, vector<1x1x1x8xf32>
    %949 = vector.shape_cast %948 : vector<1x1x1x8xf32> to vector<1x8xf32>
    %950 = vector.broadcast %949 : vector<1x8xf32> to vector<8x8xf32>
    %951 = arith.addf %947, %950 : vector<8x8xf32>
    %c1_785 = arith.constant 1 : index
    %c1_786 = arith.constant 1 : index
    %c0_787 = arith.constant 0 : index
    %c0_788 = arith.constant 0 : index
    %952 = vector.load %arg22[%c1_785, %c1_786, %c0_787, %c0_788] : memref<2x4x32x8xf32, #tpu.memory_space<vmem>>, vector<1x1x32x8xf32>
    %953 = vector.shape_cast %952 : vector<1x1x32x8xf32> to vector<32x8xf32>
    %cst_789 = arith.constant dense<0.000000e+00> : vector<8x8xf32>
    %954 = tpu.matmul %906, %953, %cst_789 {dimension_numbers = #tpu.dot_dimension_numbers<[1], [0], [0], [1], [0, 0, 1, 1], [], []>} : vector<8x32xf32>, vector<32x8xf32>, vector<8x8xf32> -> vector<8x8xf32>
    %c1_790 = arith.constant 1 : index
    %c1_791 = arith.constant 1 : index
    %c0_792 = arith.constant 0 : index
    %c0_793 = arith.constant 0 : index
    %955 = vector.load %arg23[%c1_790, %c1_791, %c0_792, %c0_793] : memref<2x4x1x8xf32, #tpu.memory_space<vmem>>, vector<1x1x1x8xf32>
    %956 = vector.shape_cast %955 : vector<1x1x1x8xf32> to vector<1x8xf32>
    %957 = vector.broadcast %956 : vector<1x8xf32> to vector<8x8xf32>
    %958 = arith.addf %954, %957 : vector<8x8xf32>
    %c1_794 = arith.constant 1 : index
    %c1_795 = arith.constant 1 : index
    %c0_796 = arith.constant 0 : index
    %c0_797 = arith.constant 0 : index
    %959 = vector.load %arg24[%c1_794, %c1_795, %c0_796, %c0_797] : memref<2x4x32x8xf32, #tpu.memory_space<vmem>>, vector<1x1x32x8xf32>
    %960 = vector.shape_cast %959 : vector<1x1x32x8xf32> to vector<32x8xf32>
    %cst_798 = arith.constant dense<0.000000e+00> : vector<8x8xf32>
    %961 = tpu.matmul %906, %960, %cst_798 {dimension_numbers = #tpu.dot_dimension_numbers<[1], [0], [0], [1], [0, 0, 1, 1], [], []>} : vector<8x32xf32>, vector<32x8xf32>, vector<8x8xf32> -> vector<8x8xf32>
    %c1_799 = arith.constant 1 : index
    %c1_800 = arith.constant 1 : index
    %c0_801 = arith.constant 0 : index
    %c0_802 = arith.constant 0 : index
    %962 = vector.load %arg25[%c1_799, %c1_800, %c0_801, %c0_802] : memref<2x4x1x8xf32, #tpu.memory_space<vmem>>, vector<1x1x1x8xf32>
    %963 = vector.shape_cast %962 : vector<1x1x1x8xf32> to vector<1x8xf32>
    %964 = vector.broadcast %963 : vector<1x8xf32> to vector<8x8xf32>
    %965 = arith.addf %961, %964 : vector<8x8xf32>
    %966 = tpu.transpose %958, [1, 0] : vector<8x8xf32> -> vector<8x8xf32>
    %cst_803 = arith.constant dense<0.000000e+00> : vector<8x8xf32>
    %967 = tpu.matmul %951, %966, %cst_803 {dimension_numbers = #tpu.dot_dimension_numbers<[1], [0], [0], [1], [0, 0, 1, 1], [], []>} : vector<8x8xf32>, vector<8x8xf32>, vector<8x8xf32> -> vector<8x8xf32>
    %cst_804 = arith.constant 0.353553385 : f32
    %968 = vector.broadcast %cst_804 : f32 to vector<8x8xf32>
    %969 = arith.mulf %967, %968 : vector<8x8xf32>
    %cst_805 = arith.constant dense<0xFF800000> : vector<8xf32>
    %970 = vector.multi_reduction <maximumf>, %969, %cst_805 [1] : vector<8x8xf32> to vector<8xf32>
    %971 = vector.shape_cast %970 : vector<8xf32> to vector<8x1xf32>
    %972 = vector.broadcast %971 : vector<8x1xf32> to vector<8x8xf32>
    %973 = arith.subf %969, %972 : vector<8x8xf32>
    %974 = math.exp %973 : vector<8x8xf32>
    %cst_806 = arith.constant dense<0.000000e+00> : vector<8xf32>
    %975 = vector.multi_reduction <add>, %974, %cst_806 [1] : vector<8x8xf32> to vector<8xf32>
    %976 = vector.shape_cast %975 : vector<8xf32> to vector<8x1xf32>
    %977 = vector.broadcast %976 : vector<8x1xf32> to vector<8x8xf32>
    %978 = arith.divf %974, %977 : vector<8x8xf32>
    %cst_807 = arith.constant dense<0.000000e+00> : vector<8x8xf32>
    %979 = tpu.matmul %978, %965, %cst_807 {dimension_numbers = #tpu.dot_dimension_numbers<[1], [0], [0], [1], [0, 0, 1, 1], [], []>} : vector<8x8xf32>, vector<8x8xf32>, vector<8x8xf32> -> vector<8x8xf32>
    %c1_808 = arith.constant 1 : index
    %c1_809 = arith.constant 1 : index
    %c0_810 = arith.constant 0 : index
    %c0_811 = arith.constant 0 : index
    %980 = vector.load %arg26[%c1_808, %c1_809, %c0_810, %c0_811] : memref<2x4x8x32xf32, #tpu.memory_space<vmem>>, vector<1x1x8x32xf32>
    %981 = vector.shape_cast %980 : vector<1x1x8x32xf32> to vector<8x32xf32>
    %cst_812 = arith.constant dense<0.000000e+00> : vector<8x32xf32>
    %982 = tpu.matmul %979, %981, %cst_812 {dimension_numbers = #tpu.dot_dimension_numbers<[1], [0], [0], [1], [0, 0, 1, 1], [], []>} : vector<8x8xf32>, vector<8x32xf32>, vector<8x32xf32> -> vector<8x32xf32>
    %983 = arith.addf %944, %982 : vector<8x32xf32>
    %c1_813 = arith.constant 1 : index
    %c2_814 = arith.constant 2 : index
    %c0_815 = arith.constant 0 : index
    %c0_816 = arith.constant 0 : index
    %984 = vector.load %arg20[%c1_813, %c2_814, %c0_815, %c0_816] : memref<2x4x32x8xf32, #tpu.memory_space<vmem>>, vector<1x1x32x8xf32>
    %985 = vector.shape_cast %984 : vector<1x1x32x8xf32> to vector<32x8xf32>
    %cst_817 = arith.constant dense<0.000000e+00> : vector<8x8xf32>
    %986 = tpu.matmul %906, %985, %cst_817 {dimension_numbers = #tpu.dot_dimension_numbers<[1], [0], [0], [1], [0, 0, 1, 1], [], []>} : vector<8x32xf32>, vector<32x8xf32>, vector<8x8xf32> -> vector<8x8xf32>
    %c1_818 = arith.constant 1 : index
    %c2_819 = arith.constant 2 : index
    %c0_820 = arith.constant 0 : index
    %c0_821 = arith.constant 0 : index
    %987 = vector.load %arg21[%c1_818, %c2_819, %c0_820, %c0_821] : memref<2x4x1x8xf32, #tpu.memory_space<vmem>>, vector<1x1x1x8xf32>
    %988 = vector.shape_cast %987 : vector<1x1x1x8xf32> to vector<1x8xf32>
    %989 = vector.broadcast %988 : vector<1x8xf32> to vector<8x8xf32>
    %990 = arith.addf %986, %989 : vector<8x8xf32>
    %c1_822 = arith.constant 1 : index
    %c2_823 = arith.constant 2 : index
    %c0_824 = arith.constant 0 : index
    %c0_825 = arith.constant 0 : index
    %991 = vector.load %arg22[%c1_822, %c2_823, %c0_824, %c0_825] : memref<2x4x32x8xf32, #tpu.memory_space<vmem>>, vector<1x1x32x8xf32>
    %992 = vector.shape_cast %991 : vector<1x1x32x8xf32> to vector<32x8xf32>
    %cst_826 = arith.constant dense<0.000000e+00> : vector<8x8xf32>
    %993 = tpu.matmul %906, %992, %cst_826 {dimension_numbers = #tpu.dot_dimension_numbers<[1], [0], [0], [1], [0, 0, 1, 1], [], []>} : vector<8x32xf32>, vector<32x8xf32>, vector<8x8xf32> -> vector<8x8xf32>
    %c1_827 = arith.constant 1 : index
    %c2_828 = arith.constant 2 : index
    %c0_829 = arith.constant 0 : index
    %c0_830 = arith.constant 0 : index
    %994 = vector.load %arg23[%c1_827, %c2_828, %c0_829, %c0_830] : memref<2x4x1x8xf32, #tpu.memory_space<vmem>>, vector<1x1x1x8xf32>
    %995 = vector.shape_cast %994 : vector<1x1x1x8xf32> to vector<1x8xf32>
    %996 = vector.broadcast %995 : vector<1x8xf32> to vector<8x8xf32>
    %997 = arith.addf %993, %996 : vector<8x8xf32>
    %c1_831 = arith.constant 1 : index
    %c2_832 = arith.constant 2 : index
    %c0_833 = arith.constant 0 : index
    %c0_834 = arith.constant 0 : index
    %998 = vector.load %arg24[%c1_831, %c2_832, %c0_833, %c0_834] : memref<2x4x32x8xf32, #tpu.memory_space<vmem>>, vector<1x1x32x8xf32>
    %999 = vector.shape_cast %998 : vector<1x1x32x8xf32> to vector<32x8xf32>
    %cst_835 = arith.constant dense<0.000000e+00> : vector<8x8xf32>
    %1000 = tpu.matmul %906, %999, %cst_835 {dimension_numbers = #tpu.dot_dimension_numbers<[1], [0], [0], [1], [0, 0, 1, 1], [], []>} : vector<8x32xf32>, vector<32x8xf32>, vector<8x8xf32> -> vector<8x8xf32>
    %c1_836 = arith.constant 1 : index
    %c2_837 = arith.constant 2 : index
    %c0_838 = arith.constant 0 : index
    %c0_839 = arith.constant 0 : index
    %1001 = vector.load %arg25[%c1_836, %c2_837, %c0_838, %c0_839] : memref<2x4x1x8xf32, #tpu.memory_space<vmem>>, vector<1x1x1x8xf32>
    %1002 = vector.shape_cast %1001 : vector<1x1x1x8xf32> to vector<1x8xf32>
    %1003 = vector.broadcast %1002 : vector<1x8xf32> to vector<8x8xf32>
    %1004 = arith.addf %1000, %1003 : vector<8x8xf32>
    %1005 = tpu.transpose %997, [1, 0] : vector<8x8xf32> -> vector<8x8xf32>
    %cst_840 = arith.constant dense<0.000000e+00> : vector<8x8xf32>
    %1006 = tpu.matmul %990, %1005, %cst_840 {dimension_numbers = #tpu.dot_dimension_numbers<[1], [0], [0], [1], [0, 0, 1, 1], [], []>} : vector<8x8xf32>, vector<8x8xf32>, vector<8x8xf32> -> vector<8x8xf32>
    %cst_841 = arith.constant 0.353553385 : f32
    %1007 = vector.broadcast %cst_841 : f32 to vector<8x8xf32>
    %1008 = arith.mulf %1006, %1007 : vector<8x8xf32>
    %cst_842 = arith.constant dense<0xFF800000> : vector<8xf32>
    %1009 = vector.multi_reduction <maximumf>, %1008, %cst_842 [1] : vector<8x8xf32> to vector<8xf32>
    %1010 = vector.shape_cast %1009 : vector<8xf32> to vector<8x1xf32>
    %1011 = vector.broadcast %1010 : vector<8x1xf32> to vector<8x8xf32>
    %1012 = arith.subf %1008, %1011 : vector<8x8xf32>
    %1013 = math.exp %1012 : vector<8x8xf32>
    %cst_843 = arith.constant dense<0.000000e+00> : vector<8xf32>
    %1014 = vector.multi_reduction <add>, %1013, %cst_843 [1] : vector<8x8xf32> to vector<8xf32>
    %1015 = vector.shape_cast %1014 : vector<8xf32> to vector<8x1xf32>
    %1016 = vector.broadcast %1015 : vector<8x1xf32> to vector<8x8xf32>
    %1017 = arith.divf %1013, %1016 : vector<8x8xf32>
    %cst_844 = arith.constant dense<0.000000e+00> : vector<8x8xf32>
    %1018 = tpu.matmul %1017, %1004, %cst_844 {dimension_numbers = #tpu.dot_dimension_numbers<[1], [0], [0], [1], [0, 0, 1, 1], [], []>} : vector<8x8xf32>, vector<8x8xf32>, vector<8x8xf32> -> vector<8x8xf32>
    %c1_845 = arith.constant 1 : index
    %c2_846 = arith.constant 2 : index
    %c0_847 = arith.constant 0 : index
    %c0_848 = arith.constant 0 : index
    %1019 = vector.load %arg26[%c1_845, %c2_846, %c0_847, %c0_848] : memref<2x4x8x32xf32, #tpu.memory_space<vmem>>, vector<1x1x8x32xf32>
    %1020 = vector.shape_cast %1019 : vector<1x1x8x32xf32> to vector<8x32xf32>
    %cst_849 = arith.constant dense<0.000000e+00> : vector<8x32xf32>
    %1021 = tpu.matmul %1018, %1020, %cst_849 {dimension_numbers = #tpu.dot_dimension_numbers<[1], [0], [0], [1], [0, 0, 1, 1], [], []>} : vector<8x8xf32>, vector<8x32xf32>, vector<8x32xf32> -> vector<8x32xf32>
    %1022 = arith.addf %983, %1021 : vector<8x32xf32>
    %c1_850 = arith.constant 1 : index
    %c3_851 = arith.constant 3 : index
    %c0_852 = arith.constant 0 : index
    %c0_853 = arith.constant 0 : index
    %1023 = vector.load %arg20[%c1_850, %c3_851, %c0_852, %c0_853] : memref<2x4x32x8xf32, #tpu.memory_space<vmem>>, vector<1x1x32x8xf32>
    %1024 = vector.shape_cast %1023 : vector<1x1x32x8xf32> to vector<32x8xf32>
    %cst_854 = arith.constant dense<0.000000e+00> : vector<8x8xf32>
    %1025 = tpu.matmul %906, %1024, %cst_854 {dimension_numbers = #tpu.dot_dimension_numbers<[1], [0], [0], [1], [0, 0, 1, 1], [], []>} : vector<8x32xf32>, vector<32x8xf32>, vector<8x8xf32> -> vector<8x8xf32>
    %c1_855 = arith.constant 1 : index
    %c3_856 = arith.constant 3 : index
    %c0_857 = arith.constant 0 : index
    %c0_858 = arith.constant 0 : index
    %1026 = vector.load %arg21[%c1_855, %c3_856, %c0_857, %c0_858] : memref<2x4x1x8xf32, #tpu.memory_space<vmem>>, vector<1x1x1x8xf32>
    %1027 = vector.shape_cast %1026 : vector<1x1x1x8xf32> to vector<1x8xf32>
    %1028 = vector.broadcast %1027 : vector<1x8xf32> to vector<8x8xf32>
    %1029 = arith.addf %1025, %1028 : vector<8x8xf32>
    %c1_859 = arith.constant 1 : index
    %c3_860 = arith.constant 3 : index
    %c0_861 = arith.constant 0 : index
    %c0_862 = arith.constant 0 : index
    %1030 = vector.load %arg22[%c1_859, %c3_860, %c0_861, %c0_862] : memref<2x4x32x8xf32, #tpu.memory_space<vmem>>, vector<1x1x32x8xf32>
    %1031 = vector.shape_cast %1030 : vector<1x1x32x8xf32> to vector<32x8xf32>
    %cst_863 = arith.constant dense<0.000000e+00> : vector<8x8xf32>
    %1032 = tpu.matmul %906, %1031, %cst_863 {dimension_numbers = #tpu.dot_dimension_numbers<[1], [0], [0], [1], [0, 0, 1, 1], [], []>} : vector<8x32xf32>, vector<32x8xf32>, vector<8x8xf32> -> vector<8x8xf32>
    %c1_864 = arith.constant 1 : index
    %c3_865 = arith.constant 3 : index
    %c0_866 = arith.constant 0 : index
    %c0_867 = arith.constant 0 : index
    %1033 = vector.load %arg23[%c1_864, %c3_865, %c0_866, %c0_867] : memref<2x4x1x8xf32, #tpu.memory_space<vmem>>, vector<1x1x1x8xf32>
    %1034 = vector.shape_cast %1033 : vector<1x1x1x8xf32> to vector<1x8xf32>
    %1035 = vector.broadcast %1034 : vector<1x8xf32> to vector<8x8xf32>
    %1036 = arith.addf %1032, %1035 : vector<8x8xf32>
    %c1_868 = arith.constant 1 : index
    %c3_869 = arith.constant 3 : index
    %c0_870 = arith.constant 0 : index
    %c0_871 = arith.constant 0 : index
    %1037 = vector.load %arg24[%c1_868, %c3_869, %c0_870, %c0_871] : memref<2x4x32x8xf32, #tpu.memory_space<vmem>>, vector<1x1x32x8xf32>
    %1038 = vector.shape_cast %1037 : vector<1x1x32x8xf32> to vector<32x8xf32>
    %cst_872 = arith.constant dense<0.000000e+00> : vector<8x8xf32>
    %1039 = tpu.matmul %906, %1038, %cst_872 {dimension_numbers = #tpu.dot_dimension_numbers<[1], [0], [0], [1], [0, 0, 1, 1], [], []>} : vector<8x32xf32>, vector<32x8xf32>, vector<8x8xf32> -> vector<8x8xf32>
    %c1_873 = arith.constant 1 : index
    %c3_874 = arith.constant 3 : index
    %c0_875 = arith.constant 0 : index
    %c0_876 = arith.constant 0 : index
    %1040 = vector.load %arg25[%c1_873, %c3_874, %c0_875, %c0_876] : memref<2x4x1x8xf32, #tpu.memory_space<vmem>>, vector<1x1x1x8xf32>
    %1041 = vector.shape_cast %1040 : vector<1x1x1x8xf32> to vector<1x8xf32>
    %1042 = vector.broadcast %1041 : vector<1x8xf32> to vector<8x8xf32>
    %1043 = arith.addf %1039, %1042 : vector<8x8xf32>
    %1044 = tpu.transpose %1036, [1, 0] : vector<8x8xf32> -> vector<8x8xf32>
    %cst_877 = arith.constant dense<0.000000e+00> : vector<8x8xf32>
    %1045 = tpu.matmul %1029, %1044, %cst_877 {dimension_numbers = #tpu.dot_dimension_numbers<[1], [0], [0], [1], [0, 0, 1, 1], [], []>} : vector<8x8xf32>, vector<8x8xf32>, vector<8x8xf32> -> vector<8x8xf32>
    %cst_878 = arith.constant 0.353553385 : f32
    %1046 = vector.broadcast %cst_878 : f32 to vector<8x8xf32>
    %1047 = arith.mulf %1045, %1046 : vector<8x8xf32>
    %cst_879 = arith.constant dense<0xFF800000> : vector<8xf32>
    %1048 = vector.multi_reduction <maximumf>, %1047, %cst_879 [1] : vector<8x8xf32> to vector<8xf32>
    %1049 = vector.shape_cast %1048 : vector<8xf32> to vector<8x1xf32>
    %1050 = vector.broadcast %1049 : vector<8x1xf32> to vector<8x8xf32>
    %1051 = arith.subf %1047, %1050 : vector<8x8xf32>
    %1052 = math.exp %1051 : vector<8x8xf32>
    %cst_880 = arith.constant dense<0.000000e+00> : vector<8xf32>
    %1053 = vector.multi_reduction <add>, %1052, %cst_880 [1] : vector<8x8xf32> to vector<8xf32>
    %1054 = vector.shape_cast %1053 : vector<8xf32> to vector<8x1xf32>
    %1055 = vector.broadcast %1054 : vector<8x1xf32> to vector<8x8xf32>
    %1056 = arith.divf %1052, %1055 : vector<8x8xf32>
    %cst_881 = arith.constant dense<0.000000e+00> : vector<8x8xf32>
    %1057 = tpu.matmul %1056, %1043, %cst_881 {dimension_numbers = #tpu.dot_dimension_numbers<[1], [0], [0], [1], [0, 0, 1, 1], [], []>} : vector<8x8xf32>, vector<8x8xf32>, vector<8x8xf32> -> vector<8x8xf32>
    %c1_882 = arith.constant 1 : index
    %c3_883 = arith.constant 3 : index
    %c0_884 = arith.constant 0 : index
    %c0_885 = arith.constant 0 : index
    %1058 = vector.load %arg26[%c1_882, %c3_883, %c0_884, %c0_885] : memref<2x4x8x32xf32, #tpu.memory_space<vmem>>, vector<1x1x8x32xf32>
    %1059 = vector.shape_cast %1058 : vector<1x1x8x32xf32> to vector<8x32xf32>
    %cst_886 = arith.constant dense<0.000000e+00> : vector<8x32xf32>
    %1060 = tpu.matmul %1057, %1059, %cst_886 {dimension_numbers = #tpu.dot_dimension_numbers<[1], [0], [0], [1], [0, 0, 1, 1], [], []>} : vector<8x8xf32>, vector<8x32xf32>, vector<8x32xf32> -> vector<8x32xf32>
    %1061 = arith.addf %1022, %1060 : vector<8x32xf32>
    %c1_887 = arith.constant 1 : index
    %c0_888 = arith.constant 0 : index
    %c0_889 = arith.constant 0 : index
    %1062 = vector.load %arg27[%c1_887, %c0_888, %c0_889] : memref<2x1x32xf32, #tpu.memory_space<vmem>>, vector<1x1x32xf32>
    %1063 = vector.shape_cast %1062 : vector<1x1x32xf32> to vector<1x32xf32>
    %1064 = vector.broadcast %1063 : vector<1x32xf32> to vector<8x32xf32>
    %1065 = arith.addf %1061, %1064 : vector<8x32xf32>
    %1066 = arith.addf %906, %1065 : vector<8x32xf32>
    %c1_890 = arith.constant 1 : index
    %c0_891 = arith.constant 0 : index
    %c0_892 = arith.constant 0 : index
    %1067 = vector.load %arg28[%c1_890, %c0_891, %c0_892] : memref<2x1x32xf32, #tpu.memory_space<vmem>>, vector<1x1x32xf32>
    %1068 = vector.shape_cast %1067 : vector<1x1x32xf32> to vector<1x32xf32>
    %c1_893 = arith.constant 1 : index
    %c0_894 = arith.constant 0 : index
    %c0_895 = arith.constant 0 : index
    %1069 = vector.load %arg29[%c1_893, %c0_894, %c0_895] : memref<2x1x32xf32, #tpu.memory_space<vmem>>, vector<1x1x32xf32>
    %1070 = vector.shape_cast %1069 : vector<1x1x32xf32> to vector<1x32xf32>
    %cst_896 = arith.constant dense<0.000000e+00> : vector<8xf32>
    %1071 = vector.multi_reduction <add>, %1066, %cst_896 [1] : vector<8x32xf32> to vector<8xf32>
    %1072 = vector.shape_cast %1071 : vector<8xf32> to vector<8x1xf32>
    %cst_897 = arith.constant 3.200000e+01 : f32
    %1073 = vector.broadcast %cst_897 : f32 to vector<8x1xf32>
    %1074 = arith.divf %1072, %1073 : vector<8x1xf32>
    %1075 = vector.broadcast %1074 : vector<8x1xf32> to vector<8x32xf32>
    %1076 = arith.subf %1066, %1075 : vector<8x32xf32>
    %1077 = arith.mulf %1076, %1076 : vector<8x32xf32>
    %cst_898 = arith.constant dense<0.000000e+00> : vector<8xf32>
    %1078 = vector.multi_reduction <add>, %1077, %cst_898 [1] : vector<8x32xf32> to vector<8xf32>
    %1079 = vector.shape_cast %1078 : vector<8xf32> to vector<8x1xf32>
    %cst_899 = arith.constant 3.200000e+01 : f32
    %1080 = vector.broadcast %cst_899 : f32 to vector<8x1xf32>
    %1081 = arith.divf %1079, %1080 : vector<8x1xf32>
    %1082 = vector.broadcast %1074 : vector<8x1xf32> to vector<8x32xf32>
    %1083 = arith.subf %1066, %1082 : vector<8x32xf32>
    %cst_900 = arith.constant 9.99999974E-6 : f32
    %1084 = vector.broadcast %cst_900 : f32 to vector<8x1xf32>
    %1085 = arith.addf %1081, %1084 : vector<8x1xf32>
    %1086 = math.rsqrt %1085 : vector<8x1xf32>
    %1087 = vector.broadcast %1086 : vector<8x1xf32> to vector<8x32xf32>
    %1088 = arith.mulf %1083, %1087 : vector<8x32xf32>
    %1089 = vector.broadcast %1068 : vector<1x32xf32> to vector<8x32xf32>
    %1090 = arith.mulf %1088, %1089 : vector<8x32xf32>
    %1091 = vector.broadcast %1070 : vector<1x32xf32> to vector<8x32xf32>
    %1092 = arith.addf %1090, %1091 : vector<8x32xf32>
    %c1_901 = arith.constant 1 : index
    %c0_902 = arith.constant 0 : index
    %c0_903 = arith.constant 0 : index
    %c0_904 = arith.constant 0 : index
    %1093 = vector.load %arg30[%c1_901, %c0_902, %c0_903, %c0_904] : memref<2x4x32x8xf32, #tpu.memory_space<vmem>>, vector<1x1x32x8xf32>
    %1094 = vector.shape_cast %1093 : vector<1x1x32x8xf32> to vector<32x8xf32>
    %cst_905 = arith.constant dense<0.000000e+00> : vector<8x8xf32>
    %1095 = tpu.matmul %1092, %1094, %cst_905 {dimension_numbers = #tpu.dot_dimension_numbers<[1], [0], [0], [1], [0, 0, 1, 1], [], []>} : vector<8x32xf32>, vector<32x8xf32>, vector<8x8xf32> -> vector<8x8xf32>
    %c1_906 = arith.constant 1 : index
    %c0_907 = arith.constant 0 : index
    %c0_908 = arith.constant 0 : index
    %c0_909 = arith.constant 0 : index
    %1096 = vector.load %arg31[%c1_906, %c0_907, %c0_908, %c0_909] : memref<2x4x1x8xf32, #tpu.memory_space<vmem>>, vector<1x1x1x8xf32>
    %1097 = vector.shape_cast %1096 : vector<1x1x1x8xf32> to vector<1x8xf32>
    %1098 = vector.broadcast %1097 : vector<1x8xf32> to vector<8x8xf32>
    %1099 = arith.addf %1095, %1098 : vector<8x8xf32>
    %c1_910 = arith.constant 1 : index
    %c0_911 = arith.constant 0 : index
    %c0_912 = arith.constant 0 : index
    %c0_913 = arith.constant 0 : index
    %1100 = vector.load %arg32[%c1_910, %c0_911, %c0_912, %c0_913] : memref<2x4x32x8xf32, #tpu.memory_space<vmem>>, vector<1x1x32x8xf32>
    %1101 = vector.shape_cast %1100 : vector<1x1x32x8xf32> to vector<32x8xf32>
    %cst_914 = arith.constant dense<0.000000e+00> : vector<8x8xf32>
    %1102 = tpu.matmul %487, %1101, %cst_914 {dimension_numbers = #tpu.dot_dimension_numbers<[1], [0], [0], [1], [0, 0, 1, 1], [], []>} : vector<8x32xf32>, vector<32x8xf32>, vector<8x8xf32> -> vector<8x8xf32>
    %c1_915 = arith.constant 1 : index
    %c0_916 = arith.constant 0 : index
    %c0_917 = arith.constant 0 : index
    %c0_918 = arith.constant 0 : index
    %1103 = vector.load %arg33[%c1_915, %c0_916, %c0_917, %c0_918] : memref<2x4x1x8xf32, #tpu.memory_space<vmem>>, vector<1x1x1x8xf32>
    %1104 = vector.shape_cast %1103 : vector<1x1x1x8xf32> to vector<1x8xf32>
    %1105 = vector.broadcast %1104 : vector<1x8xf32> to vector<8x8xf32>
    %1106 = arith.addf %1102, %1105 : vector<8x8xf32>
    %c1_919 = arith.constant 1 : index
    %c0_920 = arith.constant 0 : index
    %c0_921 = arith.constant 0 : index
    %c0_922 = arith.constant 0 : index
    %1107 = vector.load %arg34[%c1_919, %c0_920, %c0_921, %c0_922] : memref<2x4x32x8xf32, #tpu.memory_space<vmem>>, vector<1x1x32x8xf32>
    %1108 = vector.shape_cast %1107 : vector<1x1x32x8xf32> to vector<32x8xf32>
    %cst_923 = arith.constant dense<0.000000e+00> : vector<8x8xf32>
    %1109 = tpu.matmul %487, %1108, %cst_923 {dimension_numbers = #tpu.dot_dimension_numbers<[1], [0], [0], [1], [0, 0, 1, 1], [], []>} : vector<8x32xf32>, vector<32x8xf32>, vector<8x8xf32> -> vector<8x8xf32>
    %c1_924 = arith.constant 1 : index
    %c0_925 = arith.constant 0 : index
    %c0_926 = arith.constant 0 : index
    %c0_927 = arith.constant 0 : index
    %1110 = vector.load %arg35[%c1_924, %c0_925, %c0_926, %c0_927] : memref<2x4x1x8xf32, #tpu.memory_space<vmem>>, vector<1x1x1x8xf32>
    %1111 = vector.shape_cast %1110 : vector<1x1x1x8xf32> to vector<1x8xf32>
    %1112 = vector.broadcast %1111 : vector<1x8xf32> to vector<8x8xf32>
    %1113 = arith.addf %1109, %1112 : vector<8x8xf32>
    %1114 = tpu.transpose %1106, [1, 0] : vector<8x8xf32> -> vector<8x8xf32>
    %cst_928 = arith.constant dense<0.000000e+00> : vector<8x8xf32>
    %1115 = tpu.matmul %1099, %1114, %cst_928 {dimension_numbers = #tpu.dot_dimension_numbers<[1], [0], [0], [1], [0, 0, 1, 1], [], []>} : vector<8x8xf32>, vector<8x8xf32>, vector<8x8xf32> -> vector<8x8xf32>
    %cst_929 = arith.constant 0.353553385 : f32
    %1116 = vector.broadcast %cst_929 : f32 to vector<8x8xf32>
    %1117 = arith.mulf %1115, %1116 : vector<8x8xf32>
    %cst_930 = arith.constant dense<0xFF800000> : vector<8xf32>
    %1118 = vector.multi_reduction <maximumf>, %1117, %cst_930 [1] : vector<8x8xf32> to vector<8xf32>
    %1119 = vector.shape_cast %1118 : vector<8xf32> to vector<8x1xf32>
    %1120 = vector.broadcast %1119 : vector<8x1xf32> to vector<8x8xf32>
    %1121 = arith.subf %1117, %1120 : vector<8x8xf32>
    %1122 = math.exp %1121 : vector<8x8xf32>
    %cst_931 = arith.constant dense<0.000000e+00> : vector<8xf32>
    %1123 = vector.multi_reduction <add>, %1122, %cst_931 [1] : vector<8x8xf32> to vector<8xf32>
    %1124 = vector.shape_cast %1123 : vector<8xf32> to vector<8x1xf32>
    %1125 = vector.broadcast %1124 : vector<8x1xf32> to vector<8x8xf32>
    %1126 = arith.divf %1122, %1125 : vector<8x8xf32>
    %cst_932 = arith.constant dense<0.000000e+00> : vector<8x8xf32>
    %1127 = tpu.matmul %1126, %1113, %cst_932 {dimension_numbers = #tpu.dot_dimension_numbers<[1], [0], [0], [1], [0, 0, 1, 1], [], []>} : vector<8x8xf32>, vector<8x8xf32>, vector<8x8xf32> -> vector<8x8xf32>
    %c1_933 = arith.constant 1 : index
    %c0_934 = arith.constant 0 : index
    %c0_935 = arith.constant 0 : index
    %c0_936 = arith.constant 0 : index
    %1128 = vector.load %arg36[%c1_933, %c0_934, %c0_935, %c0_936] : memref<2x4x8x32xf32, #tpu.memory_space<vmem>>, vector<1x1x8x32xf32>
    %1129 = vector.shape_cast %1128 : vector<1x1x8x32xf32> to vector<8x32xf32>
    %cst_937 = arith.constant dense<0.000000e+00> : vector<8x32xf32>
    %1130 = tpu.matmul %1127, %1129, %cst_937 {dimension_numbers = #tpu.dot_dimension_numbers<[1], [0], [0], [1], [0, 0, 1, 1], [], []>} : vector<8x8xf32>, vector<8x32xf32>, vector<8x32xf32> -> vector<8x32xf32>
    %c1_938 = arith.constant 1 : index
    %c1_939 = arith.constant 1 : index
    %c0_940 = arith.constant 0 : index
    %c0_941 = arith.constant 0 : index
    %1131 = vector.load %arg30[%c1_938, %c1_939, %c0_940, %c0_941] : memref<2x4x32x8xf32, #tpu.memory_space<vmem>>, vector<1x1x32x8xf32>
    %1132 = vector.shape_cast %1131 : vector<1x1x32x8xf32> to vector<32x8xf32>
    %cst_942 = arith.constant dense<0.000000e+00> : vector<8x8xf32>
    %1133 = tpu.matmul %1092, %1132, %cst_942 {dimension_numbers = #tpu.dot_dimension_numbers<[1], [0], [0], [1], [0, 0, 1, 1], [], []>} : vector<8x32xf32>, vector<32x8xf32>, vector<8x8xf32> -> vector<8x8xf32>
    %c1_943 = arith.constant 1 : index
    %c1_944 = arith.constant 1 : index
    %c0_945 = arith.constant 0 : index
    %c0_946 = arith.constant 0 : index
    %1134 = vector.load %arg31[%c1_943, %c1_944, %c0_945, %c0_946] : memref<2x4x1x8xf32, #tpu.memory_space<vmem>>, vector<1x1x1x8xf32>
    %1135 = vector.shape_cast %1134 : vector<1x1x1x8xf32> to vector<1x8xf32>
    %1136 = vector.broadcast %1135 : vector<1x8xf32> to vector<8x8xf32>
    %1137 = arith.addf %1133, %1136 : vector<8x8xf32>
    %c1_947 = arith.constant 1 : index
    %c1_948 = arith.constant 1 : index
    %c0_949 = arith.constant 0 : index
    %c0_950 = arith.constant 0 : index
    %1138 = vector.load %arg32[%c1_947, %c1_948, %c0_949, %c0_950] : memref<2x4x32x8xf32, #tpu.memory_space<vmem>>, vector<1x1x32x8xf32>
    %1139 = vector.shape_cast %1138 : vector<1x1x32x8xf32> to vector<32x8xf32>
    %cst_951 = arith.constant dense<0.000000e+00> : vector<8x8xf32>
    %1140 = tpu.matmul %487, %1139, %cst_951 {dimension_numbers = #tpu.dot_dimension_numbers<[1], [0], [0], [1], [0, 0, 1, 1], [], []>} : vector<8x32xf32>, vector<32x8xf32>, vector<8x8xf32> -> vector<8x8xf32>
    %c1_952 = arith.constant 1 : index
    %c1_953 = arith.constant 1 : index
    %c0_954 = arith.constant 0 : index
    %c0_955 = arith.constant 0 : index
    %1141 = vector.load %arg33[%c1_952, %c1_953, %c0_954, %c0_955] : memref<2x4x1x8xf32, #tpu.memory_space<vmem>>, vector<1x1x1x8xf32>
    %1142 = vector.shape_cast %1141 : vector<1x1x1x8xf32> to vector<1x8xf32>
    %1143 = vector.broadcast %1142 : vector<1x8xf32> to vector<8x8xf32>
    %1144 = arith.addf %1140, %1143 : vector<8x8xf32>
    %c1_956 = arith.constant 1 : index
    %c1_957 = arith.constant 1 : index
    %c0_958 = arith.constant 0 : index
    %c0_959 = arith.constant 0 : index
    %1145 = vector.load %arg34[%c1_956, %c1_957, %c0_958, %c0_959] : memref<2x4x32x8xf32, #tpu.memory_space<vmem>>, vector<1x1x32x8xf32>
    %1146 = vector.shape_cast %1145 : vector<1x1x32x8xf32> to vector<32x8xf32>
    %cst_960 = arith.constant dense<0.000000e+00> : vector<8x8xf32>
    %1147 = tpu.matmul %487, %1146, %cst_960 {dimension_numbers = #tpu.dot_dimension_numbers<[1], [0], [0], [1], [0, 0, 1, 1], [], []>} : vector<8x32xf32>, vector<32x8xf32>, vector<8x8xf32> -> vector<8x8xf32>
    %c1_961 = arith.constant 1 : index
    %c1_962 = arith.constant 1 : index
    %c0_963 = arith.constant 0 : index
    %c0_964 = arith.constant 0 : index
    %1148 = vector.load %arg35[%c1_961, %c1_962, %c0_963, %c0_964] : memref<2x4x1x8xf32, #tpu.memory_space<vmem>>, vector<1x1x1x8xf32>
    %1149 = vector.shape_cast %1148 : vector<1x1x1x8xf32> to vector<1x8xf32>
    %1150 = vector.broadcast %1149 : vector<1x8xf32> to vector<8x8xf32>
    %1151 = arith.addf %1147, %1150 : vector<8x8xf32>
    %1152 = tpu.transpose %1144, [1, 0] : vector<8x8xf32> -> vector<8x8xf32>
    %cst_965 = arith.constant dense<0.000000e+00> : vector<8x8xf32>
    %1153 = tpu.matmul %1137, %1152, %cst_965 {dimension_numbers = #tpu.dot_dimension_numbers<[1], [0], [0], [1], [0, 0, 1, 1], [], []>} : vector<8x8xf32>, vector<8x8xf32>, vector<8x8xf32> -> vector<8x8xf32>
    %cst_966 = arith.constant 0.353553385 : f32
    %1154 = vector.broadcast %cst_966 : f32 to vector<8x8xf32>
    %1155 = arith.mulf %1153, %1154 : vector<8x8xf32>
    %cst_967 = arith.constant dense<0xFF800000> : vector<8xf32>
    %1156 = vector.multi_reduction <maximumf>, %1155, %cst_967 [1] : vector<8x8xf32> to vector<8xf32>
    %1157 = vector.shape_cast %1156 : vector<8xf32> to vector<8x1xf32>
    %1158 = vector.broadcast %1157 : vector<8x1xf32> to vector<8x8xf32>
    %1159 = arith.subf %1155, %1158 : vector<8x8xf32>
    %1160 = math.exp %1159 : vector<8x8xf32>
    %cst_968 = arith.constant dense<0.000000e+00> : vector<8xf32>
    %1161 = vector.multi_reduction <add>, %1160, %cst_968 [1] : vector<8x8xf32> to vector<8xf32>
    %1162 = vector.shape_cast %1161 : vector<8xf32> to vector<8x1xf32>
    %1163 = vector.broadcast %1162 : vector<8x1xf32> to vector<8x8xf32>
    %1164 = arith.divf %1160, %1163 : vector<8x8xf32>
    %cst_969 = arith.constant dense<0.000000e+00> : vector<8x8xf32>
    %1165 = tpu.matmul %1164, %1151, %cst_969 {dimension_numbers = #tpu.dot_dimension_numbers<[1], [0], [0], [1], [0, 0, 1, 1], [], []>} : vector<8x8xf32>, vector<8x8xf32>, vector<8x8xf32> -> vector<8x8xf32>
    %c1_970 = arith.constant 1 : index
    %c1_971 = arith.constant 1 : index
    %c0_972 = arith.constant 0 : index
    %c0_973 = arith.constant 0 : index
    %1166 = vector.load %arg36[%c1_970, %c1_971, %c0_972, %c0_973] : memref<2x4x8x32xf32, #tpu.memory_space<vmem>>, vector<1x1x8x32xf32>
    %1167 = vector.shape_cast %1166 : vector<1x1x8x32xf32> to vector<8x32xf32>
    %cst_974 = arith.constant dense<0.000000e+00> : vector<8x32xf32>
    %1168 = tpu.matmul %1165, %1167, %cst_974 {dimension_numbers = #tpu.dot_dimension_numbers<[1], [0], [0], [1], [0, 0, 1, 1], [], []>} : vector<8x8xf32>, vector<8x32xf32>, vector<8x32xf32> -> vector<8x32xf32>
    %1169 = arith.addf %1130, %1168 : vector<8x32xf32>
    %c1_975 = arith.constant 1 : index
    %c2_976 = arith.constant 2 : index
    %c0_977 = arith.constant 0 : index
    %c0_978 = arith.constant 0 : index
    %1170 = vector.load %arg30[%c1_975, %c2_976, %c0_977, %c0_978] : memref<2x4x32x8xf32, #tpu.memory_space<vmem>>, vector<1x1x32x8xf32>
    %1171 = vector.shape_cast %1170 : vector<1x1x32x8xf32> to vector<32x8xf32>
    %cst_979 = arith.constant dense<0.000000e+00> : vector<8x8xf32>
    %1172 = tpu.matmul %1092, %1171, %cst_979 {dimension_numbers = #tpu.dot_dimension_numbers<[1], [0], [0], [1], [0, 0, 1, 1], [], []>} : vector<8x32xf32>, vector<32x8xf32>, vector<8x8xf32> -> vector<8x8xf32>
    %c1_980 = arith.constant 1 : index
    %c2_981 = arith.constant 2 : index
    %c0_982 = arith.constant 0 : index
    %c0_983 = arith.constant 0 : index
    %1173 = vector.load %arg31[%c1_980, %c2_981, %c0_982, %c0_983] : memref<2x4x1x8xf32, #tpu.memory_space<vmem>>, vector<1x1x1x8xf32>
    %1174 = vector.shape_cast %1173 : vector<1x1x1x8xf32> to vector<1x8xf32>
    %1175 = vector.broadcast %1174 : vector<1x8xf32> to vector<8x8xf32>
    %1176 = arith.addf %1172, %1175 : vector<8x8xf32>
    %c1_984 = arith.constant 1 : index
    %c2_985 = arith.constant 2 : index
    %c0_986 = arith.constant 0 : index
    %c0_987 = arith.constant 0 : index
    %1177 = vector.load %arg32[%c1_984, %c2_985, %c0_986, %c0_987] : memref<2x4x32x8xf32, #tpu.memory_space<vmem>>, vector<1x1x32x8xf32>
    %1178 = vector.shape_cast %1177 : vector<1x1x32x8xf32> to vector<32x8xf32>
    %cst_988 = arith.constant dense<0.000000e+00> : vector<8x8xf32>
    %1179 = tpu.matmul %487, %1178, %cst_988 {dimension_numbers = #tpu.dot_dimension_numbers<[1], [0], [0], [1], [0, 0, 1, 1], [], []>} : vector<8x32xf32>, vector<32x8xf32>, vector<8x8xf32> -> vector<8x8xf32>
    %c1_989 = arith.constant 1 : index
    %c2_990 = arith.constant 2 : index
    %c0_991 = arith.constant 0 : index
    %c0_992 = arith.constant 0 : index
    %1180 = vector.load %arg33[%c1_989, %c2_990, %c0_991, %c0_992] : memref<2x4x1x8xf32, #tpu.memory_space<vmem>>, vector<1x1x1x8xf32>
    %1181 = vector.shape_cast %1180 : vector<1x1x1x8xf32> to vector<1x8xf32>
    %1182 = vector.broadcast %1181 : vector<1x8xf32> to vector<8x8xf32>
    %1183 = arith.addf %1179, %1182 : vector<8x8xf32>
    %c1_993 = arith.constant 1 : index
    %c2_994 = arith.constant 2 : index
    %c0_995 = arith.constant 0 : index
    %c0_996 = arith.constant 0 : index
    %1184 = vector.load %arg34[%c1_993, %c2_994, %c0_995, %c0_996] : memref<2x4x32x8xf32, #tpu.memory_space<vmem>>, vector<1x1x32x8xf32>
    %1185 = vector.shape_cast %1184 : vector<1x1x32x8xf32> to vector<32x8xf32>
    %cst_997 = arith.constant dense<0.000000e+00> : vector<8x8xf32>
    %1186 = tpu.matmul %487, %1185, %cst_997 {dimension_numbers = #tpu.dot_dimension_numbers<[1], [0], [0], [1], [0, 0, 1, 1], [], []>} : vector<8x32xf32>, vector<32x8xf32>, vector<8x8xf32> -> vector<8x8xf32>
    %c1_998 = arith.constant 1 : index
    %c2_999 = arith.constant 2 : index
    %c0_1000 = arith.constant 0 : index
    %c0_1001 = arith.constant 0 : index
    %1187 = vector.load %arg35[%c1_998, %c2_999, %c0_1000, %c0_1001] : memref<2x4x1x8xf32, #tpu.memory_space<vmem>>, vector<1x1x1x8xf32>
    %1188 = vector.shape_cast %1187 : vector<1x1x1x8xf32> to vector<1x8xf32>
    %1189 = vector.broadcast %1188 : vector<1x8xf32> to vector<8x8xf32>
    %1190 = arith.addf %1186, %1189 : vector<8x8xf32>
    %1191 = tpu.transpose %1183, [1, 0] : vector<8x8xf32> -> vector<8x8xf32>
    %cst_1002 = arith.constant dense<0.000000e+00> : vector<8x8xf32>
    %1192 = tpu.matmul %1176, %1191, %cst_1002 {dimension_numbers = #tpu.dot_dimension_numbers<[1], [0], [0], [1], [0, 0, 1, 1], [], []>} : vector<8x8xf32>, vector<8x8xf32>, vector<8x8xf32> -> vector<8x8xf32>
    %cst_1003 = arith.constant 0.353553385 : f32
    %1193 = vector.broadcast %cst_1003 : f32 to vector<8x8xf32>
    %1194 = arith.mulf %1192, %1193 : vector<8x8xf32>
    %cst_1004 = arith.constant dense<0xFF800000> : vector<8xf32>
    %1195 = vector.multi_reduction <maximumf>, %1194, %cst_1004 [1] : vector<8x8xf32> to vector<8xf32>
    %1196 = vector.shape_cast %1195 : vector<8xf32> to vector<8x1xf32>
    %1197 = vector.broadcast %1196 : vector<8x1xf32> to vector<8x8xf32>
    %1198 = arith.subf %1194, %1197 : vector<8x8xf32>
    %1199 = math.exp %1198 : vector<8x8xf32>
    %cst_1005 = arith.constant dense<0.000000e+00> : vector<8xf32>
    %1200 = vector.multi_reduction <add>, %1199, %cst_1005 [1] : vector<8x8xf32> to vector<8xf32>
    %1201 = vector.shape_cast %1200 : vector<8xf32> to vector<8x1xf32>
    %1202 = vector.broadcast %1201 : vector<8x1xf32> to vector<8x8xf32>
    %1203 = arith.divf %1199, %1202 : vector<8x8xf32>
    %cst_1006 = arith.constant dense<0.000000e+00> : vector<8x8xf32>
    %1204 = tpu.matmul %1203, %1190, %cst_1006 {dimension_numbers = #tpu.dot_dimension_numbers<[1], [0], [0], [1], [0, 0, 1, 1], [], []>} : vector<8x8xf32>, vector<8x8xf32>, vector<8x8xf32> -> vector<8x8xf32>
    %c1_1007 = arith.constant 1 : index
    %c2_1008 = arith.constant 2 : index
    %c0_1009 = arith.constant 0 : index
    %c0_1010 = arith.constant 0 : index
    %1205 = vector.load %arg36[%c1_1007, %c2_1008, %c0_1009, %c0_1010] : memref<2x4x8x32xf32, #tpu.memory_space<vmem>>, vector<1x1x8x32xf32>
    %1206 = vector.shape_cast %1205 : vector<1x1x8x32xf32> to vector<8x32xf32>
    %cst_1011 = arith.constant dense<0.000000e+00> : vector<8x32xf32>
    %1207 = tpu.matmul %1204, %1206, %cst_1011 {dimension_numbers = #tpu.dot_dimension_numbers<[1], [0], [0], [1], [0, 0, 1, 1], [], []>} : vector<8x8xf32>, vector<8x32xf32>, vector<8x32xf32> -> vector<8x32xf32>
    %1208 = arith.addf %1169, %1207 : vector<8x32xf32>
    %c1_1012 = arith.constant 1 : index
    %c3_1013 = arith.constant 3 : index
    %c0_1014 = arith.constant 0 : index
    %c0_1015 = arith.constant 0 : index
    %1209 = vector.load %arg30[%c1_1012, %c3_1013, %c0_1014, %c0_1015] : memref<2x4x32x8xf32, #tpu.memory_space<vmem>>, vector<1x1x32x8xf32>
    %1210 = vector.shape_cast %1209 : vector<1x1x32x8xf32> to vector<32x8xf32>
    %cst_1016 = arith.constant dense<0.000000e+00> : vector<8x8xf32>
    %1211 = tpu.matmul %1092, %1210, %cst_1016 {dimension_numbers = #tpu.dot_dimension_numbers<[1], [0], [0], [1], [0, 0, 1, 1], [], []>} : vector<8x32xf32>, vector<32x8xf32>, vector<8x8xf32> -> vector<8x8xf32>
    %c1_1017 = arith.constant 1 : index
    %c3_1018 = arith.constant 3 : index
    %c0_1019 = arith.constant 0 : index
    %c0_1020 = arith.constant 0 : index
    %1212 = vector.load %arg31[%c1_1017, %c3_1018, %c0_1019, %c0_1020] : memref<2x4x1x8xf32, #tpu.memory_space<vmem>>, vector<1x1x1x8xf32>
    %1213 = vector.shape_cast %1212 : vector<1x1x1x8xf32> to vector<1x8xf32>
    %1214 = vector.broadcast %1213 : vector<1x8xf32> to vector<8x8xf32>
    %1215 = arith.addf %1211, %1214 : vector<8x8xf32>
    %c1_1021 = arith.constant 1 : index
    %c3_1022 = arith.constant 3 : index
    %c0_1023 = arith.constant 0 : index
    %c0_1024 = arith.constant 0 : index
    %1216 = vector.load %arg32[%c1_1021, %c3_1022, %c0_1023, %c0_1024] : memref<2x4x32x8xf32, #tpu.memory_space<vmem>>, vector<1x1x32x8xf32>
    %1217 = vector.shape_cast %1216 : vector<1x1x32x8xf32> to vector<32x8xf32>
    %cst_1025 = arith.constant dense<0.000000e+00> : vector<8x8xf32>
    %1218 = tpu.matmul %487, %1217, %cst_1025 {dimension_numbers = #tpu.dot_dimension_numbers<[1], [0], [0], [1], [0, 0, 1, 1], [], []>} : vector<8x32xf32>, vector<32x8xf32>, vector<8x8xf32> -> vector<8x8xf32>
    %c1_1026 = arith.constant 1 : index
    %c3_1027 = arith.constant 3 : index
    %c0_1028 = arith.constant 0 : index
    %c0_1029 = arith.constant 0 : index
    %1219 = vector.load %arg33[%c1_1026, %c3_1027, %c0_1028, %c0_1029] : memref<2x4x1x8xf32, #tpu.memory_space<vmem>>, vector<1x1x1x8xf32>
    %1220 = vector.shape_cast %1219 : vector<1x1x1x8xf32> to vector<1x8xf32>
    %1221 = vector.broadcast %1220 : vector<1x8xf32> to vector<8x8xf32>
    %1222 = arith.addf %1218, %1221 : vector<8x8xf32>
    %c1_1030 = arith.constant 1 : index
    %c3_1031 = arith.constant 3 : index
    %c0_1032 = arith.constant 0 : index
    %c0_1033 = arith.constant 0 : index
    %1223 = vector.load %arg34[%c1_1030, %c3_1031, %c0_1032, %c0_1033] : memref<2x4x32x8xf32, #tpu.memory_space<vmem>>, vector<1x1x32x8xf32>
    %1224 = vector.shape_cast %1223 : vector<1x1x32x8xf32> to vector<32x8xf32>
    %cst_1034 = arith.constant dense<0.000000e+00> : vector<8x8xf32>
    %1225 = tpu.matmul %487, %1224, %cst_1034 {dimension_numbers = #tpu.dot_dimension_numbers<[1], [0], [0], [1], [0, 0, 1, 1], [], []>} : vector<8x32xf32>, vector<32x8xf32>, vector<8x8xf32> -> vector<8x8xf32>
    %c1_1035 = arith.constant 1 : index
    %c3_1036 = arith.constant 3 : index
    %c0_1037 = arith.constant 0 : index
    %c0_1038 = arith.constant 0 : index
    %1226 = vector.load %arg35[%c1_1035, %c3_1036, %c0_1037, %c0_1038] : memref<2x4x1x8xf32, #tpu.memory_space<vmem>>, vector<1x1x1x8xf32>
    %1227 = vector.shape_cast %1226 : vector<1x1x1x8xf32> to vector<1x8xf32>
    %1228 = vector.broadcast %1227 : vector<1x8xf32> to vector<8x8xf32>
    %1229 = arith.addf %1225, %1228 : vector<8x8xf32>
    %1230 = tpu.transpose %1222, [1, 0] : vector<8x8xf32> -> vector<8x8xf32>
    %cst_1039 = arith.constant dense<0.000000e+00> : vector<8x8xf32>
    %1231 = tpu.matmul %1215, %1230, %cst_1039 {dimension_numbers = #tpu.dot_dimension_numbers<[1], [0], [0], [1], [0, 0, 1, 1], [], []>} : vector<8x8xf32>, vector<8x8xf32>, vector<8x8xf32> -> vector<8x8xf32>
    %cst_1040 = arith.constant 0.353553385 : f32
    %1232 = vector.broadcast %cst_1040 : f32 to vector<8x8xf32>
    %1233 = arith.mulf %1231, %1232 : vector<8x8xf32>
    %cst_1041 = arith.constant dense<0xFF800000> : vector<8xf32>
    %1234 = vector.multi_reduction <maximumf>, %1233, %cst_1041 [1] : vector<8x8xf32> to vector<8xf32>
    %1235 = vector.shape_cast %1234 : vector<8xf32> to vector<8x1xf32>
    %1236 = vector.broadcast %1235 : vector<8x1xf32> to vector<8x8xf32>
    %1237 = arith.subf %1233, %1236 : vector<8x8xf32>
    %1238 = math.exp %1237 : vector<8x8xf32>
    %cst_1042 = arith.constant dense<0.000000e+00> : vector<8xf32>
    %1239 = vector.multi_reduction <add>, %1238, %cst_1042 [1] : vector<8x8xf32> to vector<8xf32>
    %1240 = vector.shape_cast %1239 : vector<8xf32> to vector<8x1xf32>
    %1241 = vector.broadcast %1240 : vector<8x1xf32> to vector<8x8xf32>
    %1242 = arith.divf %1238, %1241 : vector<8x8xf32>
    %cst_1043 = arith.constant dense<0.000000e+00> : vector<8x8xf32>
    %1243 = tpu.matmul %1242, %1229, %cst_1043 {dimension_numbers = #tpu.dot_dimension_numbers<[1], [0], [0], [1], [0, 0, 1, 1], [], []>} : vector<8x8xf32>, vector<8x8xf32>, vector<8x8xf32> -> vector<8x8xf32>
    %c1_1044 = arith.constant 1 : index
    %c3_1045 = arith.constant 3 : index
    %c0_1046 = arith.constant 0 : index
    %c0_1047 = arith.constant 0 : index
    %1244 = vector.load %arg36[%c1_1044, %c3_1045, %c0_1046, %c0_1047] : memref<2x4x8x32xf32, #tpu.memory_space<vmem>>, vector<1x1x8x32xf32>
    %1245 = vector.shape_cast %1244 : vector<1x1x8x32xf32> to vector<8x32xf32>
    %cst_1048 = arith.constant dense<0.000000e+00> : vector<8x32xf32>
    %1246 = tpu.matmul %1243, %1245, %cst_1048 {dimension_numbers = #tpu.dot_dimension_numbers<[1], [0], [0], [1], [0, 0, 1, 1], [], []>} : vector<8x8xf32>, vector<8x32xf32>, vector<8x32xf32> -> vector<8x32xf32>
    %1247 = arith.addf %1208, %1246 : vector<8x32xf32>
    %c1_1049 = arith.constant 1 : index
    %c0_1050 = arith.constant 0 : index
    %c0_1051 = arith.constant 0 : index
    %1248 = vector.load %arg37[%c1_1049, %c0_1050, %c0_1051] : memref<2x1x32xf32, #tpu.memory_space<vmem>>, vector<1x1x32xf32>
    %1249 = vector.shape_cast %1248 : vector<1x1x32xf32> to vector<1x32xf32>
    %1250 = vector.broadcast %1249 : vector<1x32xf32> to vector<8x32xf32>
    %1251 = arith.addf %1247, %1250 : vector<8x32xf32>
    %1252 = arith.addf %1092, %1251 : vector<8x32xf32>
    %c1_1052 = arith.constant 1 : index
    %c0_1053 = arith.constant 0 : index
    %c0_1054 = arith.constant 0 : index
    %1253 = vector.load %arg38[%c1_1052, %c0_1053, %c0_1054] : memref<2x1x32xf32, #tpu.memory_space<vmem>>, vector<1x1x32xf32>
    %1254 = vector.shape_cast %1253 : vector<1x1x32xf32> to vector<1x32xf32>
    %c1_1055 = arith.constant 1 : index
    %c0_1056 = arith.constant 0 : index
    %c0_1057 = arith.constant 0 : index
    %1255 = vector.load %arg39[%c1_1055, %c0_1056, %c0_1057] : memref<2x1x32xf32, #tpu.memory_space<vmem>>, vector<1x1x32xf32>
    %1256 = vector.shape_cast %1255 : vector<1x1x32xf32> to vector<1x32xf32>
    %cst_1058 = arith.constant dense<0.000000e+00> : vector<8xf32>
    %1257 = vector.multi_reduction <add>, %1252, %cst_1058 [1] : vector<8x32xf32> to vector<8xf32>
    %1258 = vector.shape_cast %1257 : vector<8xf32> to vector<8x1xf32>
    %cst_1059 = arith.constant 3.200000e+01 : f32
    %1259 = vector.broadcast %cst_1059 : f32 to vector<8x1xf32>
    %1260 = arith.divf %1258, %1259 : vector<8x1xf32>
    %1261 = vector.broadcast %1260 : vector<8x1xf32> to vector<8x32xf32>
    %1262 = arith.subf %1252, %1261 : vector<8x32xf32>
    %1263 = arith.mulf %1262, %1262 : vector<8x32xf32>
    %cst_1060 = arith.constant dense<0.000000e+00> : vector<8xf32>
    %1264 = vector.multi_reduction <add>, %1263, %cst_1060 [1] : vector<8x32xf32> to vector<8xf32>
    %1265 = vector.shape_cast %1264 : vector<8xf32> to vector<8x1xf32>
    %cst_1061 = arith.constant 3.200000e+01 : f32
    %1266 = vector.broadcast %cst_1061 : f32 to vector<8x1xf32>
    %1267 = arith.divf %1265, %1266 : vector<8x1xf32>
    %1268 = vector.broadcast %1260 : vector<8x1xf32> to vector<8x32xf32>
    %1269 = arith.subf %1252, %1268 : vector<8x32xf32>
    %cst_1062 = arith.constant 9.99999974E-6 : f32
    %1270 = vector.broadcast %cst_1062 : f32 to vector<8x1xf32>
    %1271 = arith.addf %1267, %1270 : vector<8x1xf32>
    %1272 = math.rsqrt %1271 : vector<8x1xf32>
    %1273 = vector.broadcast %1272 : vector<8x1xf32> to vector<8x32xf32>
    %1274 = arith.mulf %1269, %1273 : vector<8x32xf32>
    %1275 = vector.broadcast %1254 : vector<1x32xf32> to vector<8x32xf32>
    %1276 = arith.mulf %1274, %1275 : vector<8x32xf32>
    %1277 = vector.broadcast %1256 : vector<1x32xf32> to vector<8x32xf32>
    %1278 = arith.addf %1276, %1277 : vector<8x32xf32>
    %c1_1063 = arith.constant 1 : index
    %c0_1064 = arith.constant 0 : index
    %c0_1065 = arith.constant 0 : index
    %1279 = vector.load %arg40[%c1_1063, %c0_1064, %c0_1065] : memref<2x32x128xf32, #tpu.memory_space<vmem>>, vector<1x32x128xf32>
    %1280 = vector.shape_cast %1279 : vector<1x32x128xf32> to vector<32x128xf32>
    %c1_1066 = arith.constant 1 : index
    %c0_1067 = arith.constant 0 : index
    %c0_1068 = arith.constant 0 : index
    %1281 = vector.load %arg41[%c1_1066, %c0_1067, %c0_1068] : memref<2x1x128xf32, #tpu.memory_space<vmem>>, vector<1x1x128xf32>
    %1282 = vector.shape_cast %1281 : vector<1x1x128xf32> to vector<1x128xf32>
    %c1_1069 = arith.constant 1 : index
    %c0_1070 = arith.constant 0 : index
    %c0_1071 = arith.constant 0 : index
    %1283 = vector.load %arg42[%c1_1069, %c0_1070, %c0_1071] : memref<2x128x32xf32, #tpu.memory_space<vmem>>, vector<1x128x32xf32>
    %1284 = vector.shape_cast %1283 : vector<1x128x32xf32> to vector<128x32xf32>
    %c1_1072 = arith.constant 1 : index
    %c0_1073 = arith.constant 0 : index
    %c0_1074 = arith.constant 0 : index
    %1285 = vector.load %arg43[%c1_1072, %c0_1073, %c0_1074] : memref<2x1x32xf32, #tpu.memory_space<vmem>>, vector<1x1x32xf32>
    %1286 = vector.shape_cast %1285 : vector<1x1x32xf32> to vector<1x32xf32>
    %cst_1075 = arith.constant dense<0.000000e+00> : vector<8x128xf32>
    %1287 = tpu.matmul %1278, %1280, %cst_1075 {dimension_numbers = #tpu.dot_dimension_numbers<[1], [0], [0], [1], [0, 0, 1, 1], [], []>} : vector<8x32xf32>, vector<32x128xf32>, vector<8x128xf32> -> vector<8x128xf32>
    %1288 = vector.broadcast %1282 : vector<1x128xf32> to vector<8x128xf32>
    %1289 = arith.addf %1287, %1288 : vector<8x128xf32>
    %cst_1076 = arith.constant 0.000000e+00 : f32
    %1290 = vector.broadcast %cst_1076 : f32 to vector<8x128xf32>
    %1291 = arith.maximumf %1289, %1290 : vector<8x128xf32>
    %cst_1077 = arith.constant dense<0.000000e+00> : vector<8x32xf32>
    %1292 = tpu.matmul %1291, %1284, %cst_1077 {dimension_numbers = #tpu.dot_dimension_numbers<[1], [0], [0], [1], [0, 0, 1, 1], [], []>} : vector<8x128xf32>, vector<128x32xf32>, vector<8x32xf32> -> vector<8x32xf32>
    %1293 = vector.broadcast %1286 : vector<1x32xf32> to vector<8x32xf32>
    %1294 = arith.addf %1292, %1293 : vector<8x32xf32>
    %1295 = arith.addf %1278, %1294 : vector<8x32xf32>
    %c1_1078 = arith.constant 1 : index
    %c0_1079 = arith.constant 0 : index
    %c0_1080 = arith.constant 0 : index
    %1296 = vector.load %arg44[%c1_1078, %c0_1079, %c0_1080] : memref<2x1x32xf32, #tpu.memory_space<vmem>>, vector<1x1x32xf32>
    %1297 = vector.shape_cast %1296 : vector<1x1x32xf32> to vector<1x32xf32>
    %c1_1081 = arith.constant 1 : index
    %c0_1082 = arith.constant 0 : index
    %c0_1083 = arith.constant 0 : index
    %1298 = vector.load %arg45[%c1_1081, %c0_1082, %c0_1083] : memref<2x1x32xf32, #tpu.memory_space<vmem>>, vector<1x1x32xf32>
    %1299 = vector.shape_cast %1298 : vector<1x1x32xf32> to vector<1x32xf32>
    %cst_1084 = arith.constant dense<0.000000e+00> : vector<8xf32>
    %1300 = vector.multi_reduction <add>, %1295, %cst_1084 [1] : vector<8x32xf32> to vector<8xf32>
    %1301 = vector.shape_cast %1300 : vector<8xf32> to vector<8x1xf32>
    %cst_1085 = arith.constant 3.200000e+01 : f32
    %1302 = vector.broadcast %cst_1085 : f32 to vector<8x1xf32>
    %1303 = arith.divf %1301, %1302 : vector<8x1xf32>
    %1304 = vector.broadcast %1303 : vector<8x1xf32> to vector<8x32xf32>
    %1305 = arith.subf %1295, %1304 : vector<8x32xf32>
    %1306 = arith.mulf %1305, %1305 : vector<8x32xf32>
    %cst_1086 = arith.constant dense<0.000000e+00> : vector<8xf32>
    %1307 = vector.multi_reduction <add>, %1306, %cst_1086 [1] : vector<8x32xf32> to vector<8xf32>
    %1308 = vector.shape_cast %1307 : vector<8xf32> to vector<8x1xf32>
    %cst_1087 = arith.constant 3.200000e+01 : f32
    %1309 = vector.broadcast %cst_1087 : f32 to vector<8x1xf32>
    %1310 = arith.divf %1308, %1309 : vector<8x1xf32>
    %1311 = vector.broadcast %1303 : vector<8x1xf32> to vector<8x32xf32>
    %1312 = arith.subf %1295, %1311 : vector<8x32xf32>
    %cst_1088 = arith.constant 9.99999974E-6 : f32
    %1313 = vector.broadcast %cst_1088 : f32 to vector<8x1xf32>
    %1314 = arith.addf %1310, %1313 : vector<8x1xf32>
    %1315 = math.rsqrt %1314 : vector<8x1xf32>
    %1316 = vector.broadcast %1315 : vector<8x1xf32> to vector<8x32xf32>
    %1317 = arith.mulf %1312, %1316 : vector<8x32xf32>
    %1318 = vector.broadcast %1297 : vector<1x32xf32> to vector<8x32xf32>
    %1319 = arith.mulf %1317, %1318 : vector<8x32xf32>
    %1320 = vector.broadcast %1299 : vector<1x32xf32> to vector<8x32xf32>
    %1321 = arith.addf %1319, %1320 : vector<8x32xf32>
    %c0_1089 = arith.constant 0 : index
    %c0_1090 = arith.constant 0 : index
    %1322 = vector.load %arg48[%c0_1089, %c0_1090] : memref<1x32xf32, #tpu.memory_space<vmem>>, vector<1x32xf32>
    %c0_1091 = arith.constant 0 : index
    %c0_1092 = arith.constant 0 : index
    %1323 = vector.load %arg49[%c0_1091, %c0_1092] : memref<1x32xf32, #tpu.memory_space<vmem>>, vector<1x32xf32>
    %cst_1093 = arith.constant dense<0.000000e+00> : vector<8xf32>
    %1324 = vector.multi_reduction <add>, %1321, %cst_1093 [1] : vector<8x32xf32> to vector<8xf32>
    %1325 = vector.shape_cast %1324 : vector<8xf32> to vector<8x1xf32>
    %cst_1094 = arith.constant 3.200000e+01 : f32
    %1326 = vector.broadcast %cst_1094 : f32 to vector<8x1xf32>
    %1327 = arith.divf %1325, %1326 : vector<8x1xf32>
    %1328 = vector.broadcast %1327 : vector<8x1xf32> to vector<8x32xf32>
    %1329 = arith.subf %1321, %1328 : vector<8x32xf32>
    %1330 = arith.mulf %1329, %1329 : vector<8x32xf32>
    %cst_1095 = arith.constant dense<0.000000e+00> : vector<8xf32>
    %1331 = vector.multi_reduction <add>, %1330, %cst_1095 [1] : vector<8x32xf32> to vector<8xf32>
    %1332 = vector.shape_cast %1331 : vector<8xf32> to vector<8x1xf32>
    %cst_1096 = arith.constant 3.200000e+01 : f32
    %1333 = vector.broadcast %cst_1096 : f32 to vector<8x1xf32>
    %1334 = arith.divf %1332, %1333 : vector<8x1xf32>
    %1335 = vector.broadcast %1327 : vector<8x1xf32> to vector<8x32xf32>
    %1336 = arith.subf %1321, %1335 : vector<8x32xf32>
    %cst_1097 = arith.constant 9.99999974E-6 : f32
    %1337 = vector.broadcast %cst_1097 : f32 to vector<8x1xf32>
    %1338 = arith.addf %1334, %1337 : vector<8x1xf32>
    %1339 = math.rsqrt %1338 : vector<8x1xf32>
    %1340 = vector.broadcast %1339 : vector<8x1xf32> to vector<8x32xf32>
    %1341 = arith.mulf %1336, %1340 : vector<8x32xf32>
    %1342 = vector.broadcast %1322 : vector<1x32xf32> to vector<8x32xf32>
    %1343 = arith.mulf %1341, %1342 : vector<8x32xf32>
    %1344 = vector.broadcast %1323 : vector<1x32xf32> to vector<8x32xf32>
    %1345 = arith.addf %1343, %1344 : vector<8x32xf32>
    %c0_1098 = arith.constant 0 : index
    %c0_1099 = arith.constant 0 : index
    %1346 = vector.load %arg50[%c0_1098, %c0_1099] : memref<32x8xf32, #tpu.memory_space<vmem>>, vector<32x8xf32>
    %cst_1100 = arith.constant dense<0.000000e+00> : vector<8x8xf32>
    %1347 = tpu.matmul %1345, %1346, %cst_1100 {dimension_numbers = #tpu.dot_dimension_numbers<[1], [0], [0], [1], [0, 0, 1, 1], [], []>} : vector<8x32xf32>, vector<32x8xf32>, vector<8x8xf32> -> vector<8x8xf32>
    %c0_1101 = arith.constant 0 : index
    %c0_1102 = arith.constant 0 : index
    %1348 = vector.load %arg51[%c0_1101, %c0_1102] : memref<1x8xf32, #tpu.memory_space<vmem>>, vector<1x8xf32>
    %1349 = vector.broadcast %1348 : vector<1x8xf32> to vector<8x8xf32>
    %1350 = arith.addf %1347, %1349 : vector<8x8xf32>
    %cst_1103 = arith.constant dense<0xFF800000> : vector<8xf32>
    %1351 = vector.multi_reduction <maximumf>, %1350, %cst_1103 [1] : vector<8x8xf32> to vector<8xf32>
    %1352 = vector.shape_cast %1351 : vector<8xf32> to vector<8x1xf32>
    %1353 = vector.broadcast %1352 : vector<8x1xf32> to vector<8x8xf32>
    %1354 = arith.subf %1350, %1353 : vector<8x8xf32>
    %1355 = math.exp %1354 : vector<8x8xf32>
    %cst_1104 = arith.constant dense<0.000000e+00> : vector<8xf32>
    %1356 = vector.multi_reduction <add>, %1355, %cst_1104 [1] : vector<8x8xf32> to vector<8xf32>
    %1357 = vector.shape_cast %1356 : vector<8xf32> to vector<8x1xf32>
    %1358 = vector.broadcast %1357 : vector<8x1xf32> to vector<8x8xf32>
    %1359 = arith.divf %1355, %1358 : vector<8x8xf32>
    %c0_1105 = arith.constant 0 : index
    %c0_1106 = arith.constant 0 : index
    %c0_1107 = arith.constant 0 : index
    %1360 = vector.load %arg52[%c0_1105, %c0_1106, %c0_1107] : memref<1x8x8xf32, #tpu.memory_space<vmem>>, vector<1x8x8xf32>
    %1361 = vector.shape_cast %1360 : vector<1x8x8xf32> to vector<8x8xf32>
    %1362 = vector.shape_cast %1359 : vector<8x8xf32> to vector<1x8x8xf32>
    tpu.vector_store %arg52[%c0_1105, %c0_1106, %c0_1107], %1362 {strides = array<i32>} : memref<1x8x8xf32, #tpu.memory_space<vmem>>, vector<1x8x8xf32>,
    return
  }
  func.func @transform_0(%arg0: i32) -> (i32, i32, i32) {
    %c0_i32 = arith.constant 0 : i32
    %c0_i32_0 = arith.constant 0 : i32
    %c0_i32_1 = arith.constant 0 : i32
    return %arg0, %c0_i32, %c0_i32_0 : i32, i32, i32
  }
  func.func @transform_1(%arg0: i32) -> (i32, i32, i32) {
    %c0_i32 = arith.constant 0 : i32
    %c0_i32_0 = arith.constant 0 : i32
    %c0_i32_1 = arith.constant 0 : i32
    return %arg0, %c0_i32, %c0_i32_0 : i32, i32, i32
  }
  func.func @transform_2(%arg0: i32) -> (i32, i32, i32) {
    %c0_i32 = arith.constant 0 : i32
    %c0_i32_0 = arith.constant 0 : i32
    %c0_i32_1 = arith.constant 0 : i32
    %c0_i32_2 = arith.constant 0 : i32
    return %c0_i32, %c0_i32_0, %c0_i32_1 : i32, i32, i32
  }
  func.func @transform_3(%arg0: i32) -> (i32, i32, i32, i32) {
    %c0_i32 = arith.constant 0 : i32
    %c0_i32_0 = arith.constant 0 : i32
    %c0_i32_1 = arith.constant 0 : i32
    %c0_i32_2 = arith.constant 0 : i32
    %c0_i32_3 = arith.constant 0 : i32
    return %c0_i32, %c0_i32_0, %c0_i32_1, %c0_i32_2 : i32, i32, i32, i32
  }
  func.func @transform_4(%arg0: i32) -> (i32, i32, i32, i32) {
    %c0_i32 = arith.constant 0 : i32
    %c0_i32_0 = arith.constant 0 : i32
    %c0_i32_1 = arith.constant 0 : i32
    %c0_i32_2 = arith.constant 0 : i32
    %c0_i32_3 = arith.constant 0 : i32
    return %c0_i32, %c0_i32_0, %c0_i32_1, %c0_i32_2 : i32, i32, i32, i32
  }
  func.func @transform_5(%arg0: i32) -> (i32, i32, i32, i32) {
    %c0_i32 = arith.constant 0 : i32
    %c0_i32_0 = arith.constant 0 : i32
    %c0_i32_1 = arith.constant 0 : i32
    %c0_i32_2 = arith.constant 0 : i32
    %c0_i32_3 = arith.constant 0 : i32
    return %c0_i32, %c0_i32_0, %c0_i32_1, %c0_i32_2 : i32, i32, i32, i32
  }
  func.func @transform_6(%arg0: i32) -> (i32, i32, i32, i32) {
    %c0_i32 = arith.constant 0 : i32
    %c0_i32_0 = arith.constant 0 : i32
    %c0_i32_1 = arith.constant 0 : i32
    %c0_i32_2 = arith.constant 0 : i32
    %c0_i32_3 = arith.constant 0 : i32
    return %c0_i32, %c0_i32_0, %c0_i32_1, %c0_i32_2 : i32, i32, i32, i32
  }
  func.func @transform_7(%arg0: i32) -> (i32, i32, i32, i32) {
    %c0_i32 = arith.constant 0 : i32
    %c0_i32_0 = arith.constant 0 : i32
    %c0_i32_1 = arith.constant 0 : i32
    %c0_i32_2 = arith.constant 0 : i32
    %c0_i32_3 = arith.constant 0 : i32
    return %c0_i32, %c0_i32_0, %c0_i32_1, %c0_i32_2 : i32, i32, i32, i32
  }
  func.func @transform_8(%arg0: i32) -> (i32, i32, i32, i32) {
    %c0_i32 = arith.constant 0 : i32
    %c0_i32_0 = arith.constant 0 : i32
    %c0_i32_1 = arith.constant 0 : i32
    %c0_i32_2 = arith.constant 0 : i32
    %c0_i32_3 = arith.constant 0 : i32
    return %c0_i32, %c0_i32_0, %c0_i32_1, %c0_i32_2 : i32, i32, i32, i32
  }
  func.func @transform_9(%arg0: i32) -> (i32, i32, i32, i32) {
    %c0_i32 = arith.constant 0 : i32
    %c0_i32_0 = arith.constant 0 : i32
    %c0_i32_1 = arith.constant 0 : i32
    %c0_i32_2 = arith.constant 0 : i32
    %c0_i32_3 = arith.constant 0 : i32
    return %c0_i32, %c0_i32_0, %c0_i32_1, %c0_i32_2 : i32, i32, i32, i32
  }
  func.func @transform_10(%arg0: i32) -> (i32, i32, i32) {
    %c0_i32 = arith.constant 0 : i32
    %c0_i32_0 = arith.constant 0 : i32
    %c0_i32_1 = arith.constant 0 : i32
    %c0_i32_2 = arith.constant 0 : i32
    return %c0_i32, %c0_i32_0, %c0_i32_1 : i32, i32, i32
  }
  func.func @transform_11(%arg0: i32) -> (i32, i32, i32) {
    %c0_i32 = arith.constant 0 : i32
    %c0_i32_0 = arith.constant 0 : i32
    %c0_i32_1 = arith.constant 0 : i32
    %c0_i32_2 = arith.constant 0 : i32
    return %c0_i32, %c0_i32_0, %c0_i32_1 : i32, i32, i32
  }
  func.func @transform_12(%arg0: i32) -> (i32, i32, i32) {
    %c0_i32 = arith.constant 0 : i32
    %c0_i32_0 = arith.constant 0 : i32
    %c0_i32_1 = arith.constant 0 : i32
    %c0_i32_2 = arith.constant 0 : i32
    return %c0_i32, %c0_i32_0, %c0_i32_1 : i32, i32, i32
  }
  func.func @transform_13(%arg0: i32) -> (i32, i32, i32) {
    %c0_i32 = arith.constant 0 : i32
    %c0_i32_0 = arith.constant 0 : i32
    %c0_i32_1 = arith.constant 0 : i32
    %c0_i32_2 = arith.constant 0 : i32
    return %c0_i32, %c0_i32_0, %c0_i32_1 : i32, i32, i32
  }
  func.func @transform_14(%arg0: i32) -> (i32, i32, i32) {
    %c0_i32 = arith.constant 0 : i32
    %c0_i32_0 = arith.constant 0 : i32
    %c0_i32_1 = arith.constant 0 : i32
    %c0_i32_2 = arith.constant 0 : i32
    return %c0_i32, %c0_i32_0, %c0_i32_1 : i32, i32, i32
  }
  func.func @transform_15(%arg0: i32) -> (i32, i32, i32) {
    %c0_i32 = arith.constant 0 : i32
    %c0_i32_0 = arith.constant 0 : i32
    %c0_i32_1 = arith.constant 0 : i32
    %c0_i32_2 = arith.constant 0 : i32
    return %c0_i32, %c0_i32_0, %c0_i32_1 : i32, i32, i32
  }
  func.func @transform_16(%arg0: i32) -> (i32, i32, i32) {
    %c0_i32 = arith.constant 0 : i32
    %c0_i32_0 = arith.constant 0 : i32
    %c0_i32_1 = arith.constant 0 : i32
    %c0_i32_2 = arith.constant 0 : i32
    return %c0_i32, %c0_i32_0, %c0_i32_1 : i32, i32, i32
  }
  func.func @transform_17(%arg0: i32) -> (i32, i32, i32) {
    %c0_i32 = arith.constant 0 : i32
    %c0_i32_0 = arith.constant 0 : i32
    %c0_i32_1 = arith.constant 0 : i32
    %c0_i32_2 = arith.constant 0 : i32
    return %c0_i32, %c0_i32_0, %c0_i32_1 : i32, i32, i32
  }
  func.func @transform_18(%arg0: i32) -> (i32, i32, i32) {
    %c0_i32 = arith.constant 0 : i32
    %c0_i32_0 = arith.constant 0 : i32
    %c0_i32_1 = arith.constant 0 : i32
    %c0_i32_2 = arith.constant 0 : i32
    return %c0_i32, %c0_i32_0, %c0_i32_1 : i32, i32, i32
  }
  func.func @transform_19(%arg0: i32) -> (i32, i32, i32, i32) {
    %c0_i32 = arith.constant 0 : i32
    %c0_i32_0 = arith.constant 0 : i32
    %c0_i32_1 = arith.constant 0 : i32
    %c0_i32_2 = arith.constant 0 : i32
    %c0_i32_3 = arith.constant 0 : i32
    return %c0_i32, %c0_i32_0, %c0_i32_1, %c0_i32_2 : i32, i32, i32, i32
  }
  func.func @transform_20(%arg0: i32) -> (i32, i32, i32, i32) {
    %c0_i32 = arith.constant 0 : i32
    %c0_i32_0 = arith.constant 0 : i32
    %c0_i32_1 = arith.constant 0 : i32
    %c0_i32_2 = arith.constant 0 : i32
    %c0_i32_3 = arith.constant 0 : i32
    return %c0_i32, %c0_i32_0, %c0_i32_1, %c0_i32_2 : i32, i32, i32, i32
  }
  func.func @transform_21(%arg0: i32) -> (i32, i32, i32, i32) {
    %c0_i32 = arith.constant 0 : i32
    %c0_i32_0 = arith.constant 0 : i32
    %c0_i32_1 = arith.constant 0 : i32
    %c0_i32_2 = arith.constant 0 : i32
    %c0_i32_3 = arith.constant 0 : i32
    return %c0_i32, %c0_i32_0, %c0_i32_1, %c0_i32_2 : i32, i32, i32, i32
  }
  func.func @transform_22(%arg0: i32) -> (i32, i32, i32, i32) {
    %c0_i32 = arith.constant 0 : i32
    %c0_i32_0 = arith.constant 0 : i32
    %c0_i32_1 = arith.constant 0 : i32
    %c0_i32_2 = arith.constant 0 : i32
    %c0_i32_3 = arith.constant 0 : i32
    return %c0_i32, %c0_i32_0, %c0_i32_1, %c0_i32_2 : i32, i32, i32, i32
  }
  func.func @transform_23(%arg0: i32) -> (i32, i32, i32, i32) {
    %c0_i32 = arith.constant 0 : i32
    %c0_i32_0 = arith.constant 0 : i32
    %c0_i32_1 = arith.constant 0 : i32
    %c0_i32_2 = arith.constant 0 : i32
    %c0_i32_3 = arith.constant 0 : i32
    return %c0_i32, %c0_i32_0, %c0_i32_1, %c0_i32_2 : i32, i32, i32, i32
  }
  func.func @transform_24(%arg0: i32) -> (i32, i32, i32, i32) {
    %c0_i32 = arith.constant 0 : i32
    %c0_i32_0 = arith.constant 0 : i32
    %c0_i32_1 = arith.constant 0 : i32
    %c0_i32_2 = arith.constant 0 : i32
    %c0_i32_3 = arith.constant 0 : i32
    return %c0_i32, %c0_i32_0, %c0_i32_1, %c0_i32_2 : i32, i32, i32, i32
  }
  func.func @transform_25(%arg0: i32) -> (i32, i32, i32, i32) {
    %c0_i32 = arith.constant 0 : i32
    %c0_i32_0 = arith.constant 0 : i32
    %c0_i32_1 = arith.constant 0 : i32
    %c0_i32_2 = arith.constant 0 : i32
    %c0_i32_3 = arith.constant 0 : i32
    return %c0_i32, %c0_i32_0, %c0_i32_1, %c0_i32_2 : i32, i32, i32, i32
  }
  func.func @transform_26(%arg0: i32) -> (i32, i32, i32) {
    %c0_i32 = arith.constant 0 : i32
    %c0_i32_0 = arith.constant 0 : i32
    %c0_i32_1 = arith.constant 0 : i32
    %c0_i32_2 = arith.constant 0 : i32
    return %c0_i32, %c0_i32_0, %c0_i32_1 : i32, i32, i32
  }
  func.func @transform_27(%arg0: i32) -> (i32, i32, i32) {
    %c0_i32 = arith.constant 0 : i32
    %c0_i32_0 = arith.constant 0 : i32
    %c0_i32_1 = arith.constant 0 : i32
    %c0_i32_2 = arith.constant 0 : i32
    return %c0_i32, %c0_i32_0, %c0_i32_1 : i32, i32, i32
  }
  func.func @transform_28(%arg0: i32) -> (i32, i32, i32) {
    %c0_i32 = arith.constant 0 : i32
    %c0_i32_0 = arith.constant 0 : i32
    %c0_i32_1 = arith.constant 0 : i32
    %c0_i32_2 = arith.constant 0 : i32
    return %c0_i32, %c0_i32_0, %c0_i32_1 : i32, i32, i32
  }
  func.func @transform_29(%arg0: i32) -> (i32, i32, i32, i32) {
    %c0_i32 = arith.constant 0 : i32
    %c0_i32_0 = arith.constant 0 : i32
    %c0_i32_1 = arith.constant 0 : i32
    %c0_i32_2 = arith.constant 0 : i32
    %c0_i32_3 = arith.constant 0 : i32
    return %c0_i32, %c0_i32_0, %c0_i32_1, %c0_i32_2 : i32, i32, i32, i32
  }
  func.func @transform_30(%arg0: i32) -> (i32, i32, i32, i32) {
    %c0_i32 = arith.constant 0 : i32
    %c0_i32_0 = arith.constant 0 : i32
    %c0_i32_1 = arith.constant 0 : i32
    %c0_i32_2 = arith.constant 0 : i32
    %c0_i32_3 = arith.constant 0 : i32
    return %c0_i32, %c0_i32_0, %c0_i32_1, %c0_i32_2 : i32, i32, i32, i32
  }
  func.func @transform_31(%arg0: i32) -> (i32, i32, i32, i32) {
    %c0_i32 = arith.constant 0 : i32
    %c0_i32_0 = arith.constant 0 : i32
    %c0_i32_1 = arith.constant 0 : i32
    %c0_i32_2 = arith.constant 0 : i32
    %c0_i32_3 = arith.constant 0 : i32
    return %c0_i32, %c0_i32_0, %c0_i32_1, %c0_i32_2 : i32, i32, i32, i32
  }
  func.func @transform_32(%arg0: i32) -> (i32, i32, i32, i32) {
    %c0_i32 = arith.constant 0 : i32
    %c0_i32_0 = arith.constant 0 : i32
    %c0_i32_1 = arith.constant 0 : i32
    %c0_i32_2 = arith.constant 0 : i32
    %c0_i32_3 = arith.constant 0 : i32
    return %c0_i32, %c0_i32_0, %c0_i32_1, %c0_i32_2 : i32, i32, i32, i32
  }
  func.func @transform_33(%arg0: i32) -> (i32, i32, i32, i32) {
    %c0_i32 = arith.constant 0 : i32
    %c0_i32_0 = arith.constant 0 : i32
    %c0_i32_1 = arith.constant 0 : i32
    %c0_i32_2 = arith.constant 0 : i32
    %c0_i32_3 = arith.constant 0 : i32
    return %c0_i32, %c0_i32_0, %c0_i32_1, %c0_i32_2 : i32, i32, i32, i32
  }
  func.func @transform_34(%arg0: i32) -> (i32, i32, i32, i32) {
    %c0_i32 = arith.constant 0 : i32
    %c0_i32_0 = arith.constant 0 : i32
    %c0_i32_1 = arith.constant 0 : i32
    %c0_i32_2 = arith.constant 0 : i32
    %c0_i32_3 = arith.constant 0 : i32
    return %c0_i32, %c0_i32_0, %c0_i32_1, %c0_i32_2 : i32, i32, i32, i32
  }
  func.func @transform_35(%arg0: i32) -> (i32, i32, i32, i32) {
    %c0_i32 = arith.constant 0 : i32
    %c0_i32_0 = arith.constant 0 : i32
    %c0_i32_1 = arith.constant 0 : i32
    %c0_i32_2 = arith.constant 0 : i32
    %c0_i32_3 = arith.constant 0 : i32
    return %c0_i32, %c0_i32_0, %c0_i32_1, %c0_i32_2 : i32, i32, i32, i32
  }
  func.func @transform_36(%arg0: i32) -> (i32, i32, i32) {
    %c0_i32 = arith.constant 0 : i32
    %c0_i32_0 = arith.constant 0 : i32
    %c0_i32_1 = arith.constant 0 : i32
    %c0_i32_2 = arith.constant 0 : i32
    return %c0_i32, %c0_i32_0, %c0_i32_1 : i32, i32, i32
  }
  func.func @transform_37(%arg0: i32) -> (i32, i32, i32) {
    %c0_i32 = arith.constant 0 : i32
    %c0_i32_0 = arith.constant 0 : i32
    %c0_i32_1 = arith.constant 0 : i32
    %c0_i32_2 = arith.constant 0 : i32
    return %c0_i32, %c0_i32_0, %c0_i32_1 : i32, i32, i32
  }
  func.func @transform_38(%arg0: i32) -> (i32, i32, i32) {
    %c0_i32 = arith.constant 0 : i32
    %c0_i32_0 = arith.constant 0 : i32
    %c0_i32_1 = arith.constant 0 : i32
    %c0_i32_2 = arith.constant 0 : i32
    return %c0_i32, %c0_i32_0, %c0_i32_1 : i32, i32, i32
  }
  func.func @transform_39(%arg0: i32) -> (i32, i32, i32) {
    %c0_i32 = arith.constant 0 : i32
    %c0_i32_0 = arith.constant 0 : i32
    %c0_i32_1 = arith.constant 0 : i32
    %c0_i32_2 = arith.constant 0 : i32
    return %c0_i32, %c0_i32_0, %c0_i32_1 : i32, i32, i32
  }
  func.func @transform_40(%arg0: i32) -> (i32, i32, i32) {
    %c0_i32 = arith.constant 0 : i32
    %c0_i32_0 = arith.constant 0 : i32
    %c0_i32_1 = arith.constant 0 : i32
    %c0_i32_2 = arith.constant 0 : i32
    return %c0_i32, %c0_i32_0, %c0_i32_1 : i32, i32, i32
  }
  func.func @transform_41(%arg0: i32) -> (i32, i32, i32) {
    %c0_i32 = arith.constant 0 : i32
    %c0_i32_0 = arith.constant 0 : i32
    %c0_i32_1 = arith.constant 0 : i32
    %c0_i32_2 = arith.constant 0 : i32
    return %c0_i32, %c0_i32_0, %c0_i32_1 : i32, i32, i32
  }
  func.func @transform_42(%arg0: i32) -> (i32, i32, i32) {
    %c0_i32 = arith.constant 0 : i32
    %c0_i32_0 = arith.constant 0 : i32
    %c0_i32_1 = arith.constant 0 : i32
    %c0_i32_2 = arith.constant 0 : i32
    return %c0_i32, %c0_i32_0, %c0_i32_1 : i32, i32, i32
  }
  func.func @transform_43(%arg0: i32) -> (i32, i32, i32) {
    %c0_i32 = arith.constant 0 : i32
    %c0_i32_0 = arith.constant 0 : i32
    %c0_i32_1 = arith.constant 0 : i32
    %c0_i32_2 = arith.constant 0 : i32
    return %c0_i32, %c0_i32_0, %c0_i32_1 : i32, i32, i32
  }
  func.func @transform_44(%arg0: i32) -> (i32, i32, i32) {
    %c0_i32 = arith.constant 0 : i32
    %c0_i32_0 = arith.constant 0 : i32
    %c0_i32_1 = arith.constant 0 : i32
    %c0_i32_2 = arith.constant 0 : i32
    return %c0_i32, %c0_i32_0, %c0_i32_1 : i32, i32, i32
  }
  func.func @transform_45(%arg0: i32) -> (i32, i32) {
    %c0_i32 = arith.constant 0 : i32
    %c0_i32_0 = arith.constant 0 : i32
    %c0_i32_1 = arith.constant 0 : i32
    return %c0_i32, %c0_i32_0 : i32, i32
  }
  func.func @transform_46(%arg0: i32) -> (i32, i32) {
    %c0_i32 = arith.constant 0 : i32
    %c0_i32_0 = arith.constant 0 : i32
    %c0_i32_1 = arith.constant 0 : i32
    return %c0_i32, %c0_i32_0 : i32, i32
  }
  func.func @transform_47(%arg0: i32) -> (i32, i32) {
    %c0_i32 = arith.constant 0 : i32
    %c0_i32_0 = arith.constant 0 : i32
    %c0_i32_1 = arith.constant 0 : i32
    return %c0_i32, %c0_i32_0 : i32, i32
  }
  func.func @transform_48(%arg0: i32) -> (i32, i32) {
    %c0_i32 = arith.constant 0 : i32
    %c0_i32_0 = arith.constant 0 : i32
    %c0_i32_1 = arith.constant 0 : i32
    return %c0_i32, %c0_i32_0 : i32, i32
  }
  func.func @transform_49(%arg0: i32) -> (i32, i32) {
    %c0_i32 = arith.constant 0 : i32
    %c0_i32_0 = arith.constant 0 : i32
    %c0_i32_1 = arith.constant 0 : i32
    return %c0_i32, %c0_i32_0 : i32, i32
  }
  func.func @transform_50(%arg0: i32) -> (i32, i32) {
    %c0_i32 = arith.constant 0 : i32
    %c0_i32_0 = arith.constant 0 : i32
    %c0_i32_1 = arith.constant 0 : i32
    return %c0_i32, %c0_i32_0 : i32, i32
  }
  func.func @transform_51(%arg0: i32) -> (i32, i32, i32) {
    %c0_i32 = arith.constant 0 : i32
    %c0_i32_0 = arith.constant 0 : i32
    %c0_i32_1 = arith.constant 0 : i32
    return %arg0, %c0_i32, %c0_i32_0 : i32, i32, i32
  }
}

</mosaic_0001>

<bundles_post_ra>
// kernel: tpu_custom_call.1
= control target key start
LH: loop header
LB: loop body
LE: loop exit
PB: predicated region body
PF: predicated region fallthrough
CT: control target
= control target key end

     0   :  { %s17606_s6 = smov 1   ;;  %s17607_s10 = smov 2   ;;  %s19694_s0 = inlined_call_operand.smem [shape: u32[52], index: -1, kind: input, shape index: {}] }
   0x1   :  { %s17670_s5 = sld [smem:[%s19694_s0]]   ;;  %s17608_s14 = smov 3  }
   0x2   :  { %s17675_s9 = sld [smem:[%s19694_s0 + %s17606_s6]]   ;;  %s17609_s18 = smov 4  }
   0x3   :  { %s17680_s13 = sld [smem:[%s19694_s0 + %s17607_s10]]   ;;  %s17610_s22 = smov 5  }
   0x4   :  { %s17685_s17 = sld [smem:[%s19694_s0 + %s17608_s14]]   ;;  %s17611_s26 = smov 6  }
   0x5   :  { %s17690_s21 = sld [smem:[%s19694_s0 + %s17609_s18]]   ;;  %s17612_s30 = smov 7  }
   0x6   :  { %s17695_s25 = sld [smem:[%s19694_s0 + %s17610_s22]]   ;;  %s17613_s4 = smov 8  }
   0x7   :  { %19766 = sst [smem:[#allocation11_spill]] %s17670_s5  ;;  %s17614_s10 = smov 9  }
   0x8   :  { %19767 = sst [smem:[#allocation12_spill]] %s17675_s9  ;;  %s17615_s15 = smov 10  }
   0x9   :  { %19768 = sst [smem:[#allocation13_spill]] %s17680_s13  ;;  %s17616_s20 = smov 11  }
   0xa   :  { %19769 = sst [smem:[#allocation14_spill]] %s17685_s17  ;;  %s17618_s1 = smov 13  }
   0xb   :  { %19770 = sst [smem:[#allocation15_spill]] %s17690_s21  ;;  %s17619_s7 = smov 14  }
   0xc   :  { %19771 = sst [smem:[#allocation16_spill]] %s17695_s25  ;;  %s17621_s22 = smov 16  }
   0xd   :  { %s17700_s29 = sld [smem:[%s19694_s0 + %s17611_s26]]   ;;  %s17617_s26 = smov 12  }
   0xe   :  { %s17705_s3 = sld [smem:[%s19694_s0 + %s17612_s30]]   ;;  %s17622_s28 = smov 17  }
   0xf   :  { %s17710_s8 = sld [smem:[%s19694_s0 + %s17613_s4]]  }
  0x10   :  { %s17715_s14 = sld [smem:[%s19694_s0 + %s17614_s10]]  }
  0x11   :  { %s17720_s19 = sld [smem:[%s19694_s0 + %s17615_s15]]   ;;  %s17620_s15 = smov 15  }
  0x12   :  { %s17725_s24 = sld [smem:[%s19694_s0 + %s17616_s20]]  }
  0x13   :  { %19772 = sst [smem:[#allocation17_spill]] %s17700_s29 }
  0x14   :  { %19773 = sst [smem:[#allocation18_spill]] %s17705_s3 }
  0x15   :  { %19774 = sst [smem:[#allocation19_spill]] %s17710_s8 }
  0x16   :  { %19775 = sst [smem:[#allocation20_spill]] %s17715_s14 }
  0x17   :  { %19776 = sst [smem:[#allocation21_spill]] %s17720_s19 }
  0x18   :  { %19777 = sst [smem:[#allocation22_spill]] %s17725_s24 }
  0x19   :  { %s17730_s30 = sld [smem:[%s19694_s0 + %s17617_s26]]  }
  0x1a   :  { %s17735_s6 = sld [smem:[%s19694_s0 + %s17618_s1]]  }
  0x1b   :  { %s17740_s12 = sld [smem:[%s19694_s0 + %s17619_s7]]   ;;  %s17623_s7 = smov 18  }
  0x1c   :  { %s17745_s20 = sld [smem:[%s19694_s0 + %s17620_s15]]   ;;  %s17624_s15 = smov 19  }
  0x1d   :  { %s17750_s27 = sld [smem:[%s19694_s0 + %s17621_s22]]   ;;  %s17625_s22 = smov 20  }
  0x1e   :  { %s17755_s4 = sld [smem:[%s19694_s0 + %s17622_s28]]   ;;  %s17626_s28 = smov 21  }
  0x1f   :  { %19778 = sst [smem:[#allocation23_spill]] %s17730_s30 }
  0x20   :  { %19779 = sst [smem:[#allocation24_spill]] %s17735_s6 }
  0x21   :  { %19780 = sst [smem:[#allocation25_spill]] %s17740_s12 }
  0x22   :  { %19781 = sst [smem:[#allocation26_spill]] %s17745_s20 }
  0x23   :  { %19782 = sst [smem:[#allocation27_spill]] %s17750_s27 }
  0x24   :  { %19783 = sst [smem:[#allocation28_spill]] %s17755_s4 }
  0x25   :  { %s17760_s9 = sld [smem:[%s19694_s0 + %s17623_s7]]   ;;  %s17627_s7 = smov 22  }
  0x26   :  { %s17765_s12 = sld [smem:[%s19694_s0 + %s17624_s15]]   ;;  %s17628_s15 = smov 23  }
  0x27   :  { %s17770_s27 = sld [smem:[%s19694_s0 + %s17625_s22]]   ;;  %s17629_s22 = smov 24  }
  0x28   :  { %s17775_s4 = sld [smem:[%s19694_s0 + %s17626_s28]]   ;;  %s17630_s28 = smov 25  }
  0x2b   :  { %19784 = sst [smem:[#allocation29_spill]] %s17760_s9 }
  0x2c   :  { %19785 = sst [smem:[#allocation30_spill]] %s17765_s12 }
  0x2d   :  { %19786 = sst [smem:[#allocation31_spill]] %s17770_s27 }
  0x2e   :  { %19787 = sst [smem:[#allocation32_spill]] %s17775_s4 }
  0x2f   :  { %s17780_s9 = sld [smem:[%s19694_s0 + %s17627_s7]]   ;;  %s17631_s7 = smov 26  }
  0x30   :  { %s17785_s12 = sld [smem:[%s19694_s0 + %s17628_s15]]   ;;  %s17632_s15 = smov 27  }
  0x31   :  { %s17790_s27 = sld [smem:[%s19694_s0 + %s17629_s22]]   ;;  %s17633_s22 = smov 28  }
  0x32   :  { %s17795_s4 = sld [smem:[%s19694_s0 + %s17630_s28]]   ;;  %s17634_s28 = smov 29  }
  0x35   :  { %19788 = sst [smem:[#allocation33_spill]] %s17780_s9 }
  0x36   :  { %19789 = sst [smem:[#allocation34_spill]] %s17785_s12 }
  0x37   :  { %19790 = sst [smem:[#allocation35_spill]] %s17790_s27 }
  0x38   :  { %19791 = sst [smem:[#allocation36_spill]] %s17795_s4 }
  0x39   :  { %s17800_s9 = sld [smem:[%s19694_s0 + %s17631_s7]]   ;;  %s17635_s7 = smov 30  }
  0x3a   :  { %s17805_s12 = sld [smem:[%s19694_s0 + %s17632_s15]]   ;;  %s17636_s15 = smov 31  }
  0x3b   :  { %s17810_s27 = sld [smem:[%s19694_s0 + %s17633_s22]]   ;;  %s17637_s22 = smov 32  }
  0x3c   :  { %s17815_s4 = sld [smem:[%s19694_s0 + %s17634_s28]]   ;;  %s17638_s28 = smov 33  }
  0x3f   :  { %19792 = sst [smem:[#allocation37_spill]] %s17800_s9 }
  0x40   :  { %19793 = sst [smem:[#allocation38_spill]] %s17805_s12 }
  0x41   :  { %19794 = sst [smem:[#allocation39_spill]] %s17810_s27 }
  0x42   :  { %19795 = sst [smem:[#allocation40_spill]] %s17815_s4 }
  0x43   :  { %s17820_s9 = sld [smem:[%s19694_s0 + %s17635_s7]]   ;;  %s17639_s7 = smov 34  }
  0x44   :  { %s17825_s12 = sld [smem:[%s19694_s0 + %s17636_s15]]   ;;  %s17640_s15 = smov 35  }
  0x45   :  { %s17830_s27 = sld [smem:[%s19694_s0 + %s17637_s22]]   ;;  %s17641_s22 = smov 36  }
  0x46   :  { %s17835_s4 = sld [smem:[%s19694_s0 + %s17638_s28]]   ;;  %s17642_s28 = smov 37  }
  0x49   :  { %19796 = sst [smem:[#allocation41_spill]] %s17820_s9 }
  0x4a   :  { %19797 = sst [smem:[#allocation42_spill]] %s17825_s12 }
  0x4b   :  { %19798 = sst [smem:[#allocation43_spill]] %s17830_s27 }
  0x4c   :  { %19799 = sst [smem:[#allocation44_spill]] %s17835_s4 }
  0x4d   :  { %s17840_s9 = sld [smem:[%s19694_s0 + %s17639_s7]]   ;;  %s17643_s7 = smov 38  }
  0x4e   :  { %s17845_s12 = sld [smem:[%s19694_s0 + %s17640_s15]]   ;;  %s17644_s15 = smov 39  }
  0x4f   :  { %s17850_s27 = sld [smem:[%s19694_s0 + %s17641_s22]]   ;;  %s17645_s22 = smov 40  }
  0x50   :  { %s17855_s4 = sld [smem:[%s19694_s0 + %s17642_s28]]   ;;  %s17646_s28 = smov 41  }
  0x53   :  { %19800 = sst [smem:[#allocation45_spill]] %s17840_s9 }
  0x54   :  { %19801 = sst [smem:[#allocation46_spill]] %s17845_s12 }
  0x55   :  { %19802 = sst [smem:[#allocation47_spill]] %s17850_s27 }
  0x56   :  { %19803 = sst [smem:[#allocation48_spill]] %s17855_s4 }
  0x57   :  { %s17860_s9 = sld [smem:[%s19694_s0 + %s17643_s7]]   ;;  %s17647_s7 = smov 42  }
  0x58   :  { %s17865_s12 = sld [smem:[%s19694_s0 + %s17644_s15]]   ;;  %s17648_s15 = smov 43  }
  0x59   :  { %s17870_s27 = sld [smem:[%s19694_s0 + %s17645_s22]]   ;;  %s17649_s22 = smov 44  }
  0x5a   :  { %s17875_s4 = sld [smem:[%s19694_s0 + %s17646_s28]]   ;;  %s17650_s28 = smov 45  }
  0x5d   :  { %19804 = sst [smem:[#allocation49_spill]] %s17860_s9 }
  0x5e   :  { %19805 = sst [smem:[#allocation50_spill]] %s17865_s12 }
  0x5f   :  { %19806 = sst [smem:[#allocation51_spill]] %s17870_s27 }
  0x60   :  { %19807 = sst [smem:[#allocation52_spill]] %s17875_s4 }
  0x61   :  { %s17880_s9 = sld [smem:[%s19694_s0 + %s17647_s7]]   ;;  %s17651_s7 = smov 46  }
  0x62   :  { %s17885_s12 = sld [smem:[%s19694_s0 + %s17648_s15]]   ;;  %s17652_s15 = smov 47  }
  0x63   :  { %s17890_s27 = sld [smem:[%s19694_s0 + %s17649_s22]]   ;;  %s17653_s22 = smov 48  }
  0x64   :  { %s17895_s4 = sld [smem:[%s19694_s0 + %s17650_s28]]   ;;  %s17654_s28 = smov 49  }
  0x67   :  { %19808 = sst [smem:[#allocation53_spill]] %s17880_s9 }
  0x68   :  { %19809 = sst [smem:[#allocation54_spill]] %s17885_s12 }
  0x69   :  { %19810 = sst [smem:[#allocation55_spill]] %s17890_s27 }
  0x6a   :  { %19811 = sst [smem:[#allocation56_spill]] %s17895_s4 }
  0x6b   :  { %s17900_s9 = sld [smem:[%s19694_s0 + %s17651_s7]]   ;;  %s17655_s7 = smov 50  }
  0x6c   :  { %s17905_s12 = sld [smem:[%s19694_s0 + %s17652_s15]]   ;;  %s17656_s15 = smov 51  }
  0x6d   :  { %s17910_s27 = sld [smem:[%s19694_s0 + %s17653_s22]]  }
  0x6e   :  { %s17915_s4 = sld [smem:[%s19694_s0 + %s17654_s28]]  }
  0x71   :  { %19812 = sst [smem:[#allocation57_spill]] %s17900_s9 }
  0x72   :  { %19813 = sst [smem:[#allocation58_spill]] %s17905_s12 }
  0x73   :  { %19814 = sst [smem:[#allocation59_spill]] %s17910_s27 }
  0x74   :  { %19815 = sst [smem:[#allocation60_spill]] %s17915_s4 }
  0x75   :  { %s17920_s9 = sld [smem:[%s19694_s0 + %s17655_s7]]  }
  0x76   :  { %s17925_s12 = sld [smem:[%s19694_s0 + %s17656_s15]]  }
  0x7b   :  { %19816 = sst [smem:[#allocation61_spill]] %s17920_s9 }
  0x7c   :  { %19817 = sst [smem:[#allocation62_spill]] %s17925_s12 }
  0x7d   :  { %108 = vsyncpa [#allocation3], 0 }
  0x7e   :  { %109 = vsyncpa [#allocation6], 0 }
  0x7f   :  { %110 = vsyncpa [#allocation4], 0 }
  0x80   :  { %112 = vsyncpa [#allocation4 + $0x1], 0  ;;  %s17927_s22 = smov 0   ;;  %s17929_s23 = smov 0  }
  0x81   :  { %s17931_s26 = smov 0   ;;  %s17933_s28 = smov 0  }
  0x82 LB: > { %s19818_s4 = sld [smem:[#allocation60_spill]]  ;;  %s17948_s0 = sadd.s32 4294967295, %s17604_s28   ;;  %s17596_s23 = sphi %s17929_s23, %s19908_s23   ;;  %s17592_s22 = sphi %s17927_s22, %s19907_s22   ;;  %s17604_s28 = sphi %s17933_s28, %s19904_s28   ;;  %s17600_s26 = sphi %s17931_s26, %s19906_s26  }
  0x83   : > { %s19819_s30 = sld [smem:[#allocation23_spill]]  ;;  %s14610_s1 = sadd.s32 4294967294, %s17604_s28  }
  0x84   : > { %s19820_s29 = sld [smem:[#allocation17_spill]]  ;;  %s17952_s2 = sadd.s32 1, %s17604_s28  }
  0x85   : > { %s19821_s25 = sld [smem:[#allocation16_spill]]  ;;  %s1206_s7 = sadd.s32 1, %s17600_s26 }
  0x86   : > { %s19822_s24 = sld [smem:[#allocation22_spill]]  ;;  %s1203_s10 = ssub.s32 %s17604_s28, %s17952_s2 }
  0x87   : > { %s19823_s21 = sld [smem:[#allocation15_spill]]  ;;  %p1216_p0 = scmp.ne.s32.totalorder %s17600_s26, %s17596_s23 }
  0x88   : > { %s19824_s20 = sld [smem:[#allocation26_spill]]  ;;  %p1204_p1 = scmp.eq.s32.totalorder %s1203_s10, 0 }
  0x89   : > { %s19825_s19 = sld [smem:[#allocation21_spill]]  ;;  %p1217_p2 = scmp.eq.s32.totalorder %s17948_s0, 1 }
  0x8a   : > { %s19826_s17 = sld [smem:[#allocation14_spill]]  ;;  %p1222_p3 = scmp.ne.s32.totalorder %s17596_s23, %s17592_s22 }
  0x8b   : > { %s19827_s14 = sld [smem:[#allocation20_spill]]  ;;  %p1223_p4 = scmp.eq.s32.totalorder %s14610_s1, 1 }
  0x8c   : > { %s19828_s13 = sld [smem:[#allocation13_spill]]  ;;  %p17965_p5 = por %p1217_p2, %p1216_p0 }
  0x8d   : > { %s19829_s8 = sld [smem:[#allocation19_spill]]  ;;  %p17969_p6 = por %p1223_p4, %p1222_p3 }
  0x8e   : > { %s19830_s6 = sld [smem:[#allocation24_spill]]  ;;  %p14611_p7 = scmp.ge.s32.totalorder %s17604_s28, 1 }
  0x8f   : > { %s19831_s3 = sld [smem:[#allocation18_spill]]  ;;  %p1230_p8 = scmp.lt.s32.totalorder %s17604_s28, 3 }
  0x90   : > { %19832 = sst [smem:[#allocation63_spill]] %s17592_s22  ;;  %p19728_p9 = scmp.eq.s32.totalorder %s17948_s0, 0 }
  0x91   : > { %19833 = sst [smem:[#allocation64_spill]] %s17600_s26  ;;  %p17976_p10 = pnand %p14611_p7, %p1230_p8 }
  0x92   : > { %19834 = sst [smem:[#allocation65_spill]] %s17948_s0  ;;  %s17657_s10 = smov [#allocation2]  }
  0x93   : > { %19835 = sst [smem:[#allocation66_spill]] %s17952_s2  ;;  %s1381_s1 = sshll.u32 %s17657_s10, 4  ;;  %s1382_s1 = int_to_ptr.vmem [resolvable:$true] %s1381_s1 }
  0x94   : > { %s17963_s11 = scalar_select %p1204_p1, %s17600_s26, %s1206_s7  }
  0x95   : > { %s19837_s15 = scalar_select %p17965_p5, 1, 0 }
  0x96   : > { %19836 = sst [smem:[#allocation67_spill]] %s17963_s11  ;;  %p17256_p11 = pneg %p17976_p10 }
  0x97   : > { %19838 = sst [smem:[#allocation68_spill]] %s19837_s15  ;;  %s17658_s7 = smov [#allocation5]  }
  0x98   : > { %s19839_s16 = scalar_select %p17969_p6, 1, 0 }
  0x99   : > { %s19841_s18 = scalar_select %p17976_p10, 1, 0 }
  0x9a   : > { %19840 = sst [smem:[#allocation69_spill]] %s19839_s16  ;;  %s1395_s11 = sshll.u32 %s17658_s7, 4  ;;  %s1396_s11 = int_to_ptr.vmem [resolvable:$true] %s1395_s11 }
  0x9b   : > { %p17984_p12 = pnand %p19728_p9, %p17256_p11  ;;  %s17495_s2 = scalar_lea.vmem %s1382_s1, 16 }
  0x9c   : > { %p17496_p0 = scmp.ne.s32.totalorder %s1382_s1, %s17495_s2  ;;  %s17502_s10 = scalar_lea.vmem %s1382_s1, 32 }
  0x9d   : > { %p17486_p13 = pneg %p17984_p12  ;;  %p17503_p3 = scmp.lt.s32.totalorder %s1382_s1, %s1382_s1 }
  0x9e   : > { %p17504_p4 = scmp.lt.s32.totalorder %s17502_s10, %s17495_s2 }
  0x9f   : > { %p17498_p1 = pnand %p17496_p0, %p17486_p13 }
  0xa0   : > { %p17505_p7 = por %p17504_p4, %p17503_p3 }
  0xa1   : > { %p17499_p2 = pneg %p17498_p1 }
  0xa3   : > { %p17506_p8 = pnand %p17505_p7, %p17499_p2 }
  0xa5   : > { %17509 = shalt.err (!%p17506_p8)
}
  0xa6   : > { %s19843_s27 = sld [smem:[#allocation59_spill]]  ;;  %s17521_s7 = scalar_lea.vmem %s1396_s11, 16 }
  0xa7   : > { %p17522_p11 = scmp.ne.s32.totalorder %s1396_s11, %s17521_s7  ;;  %s17528_s16 = scalar_lea.vmem %s1396_s11, 32 }
  0xa8   : > { %p17529_p0 = scmp.lt.s32.totalorder %s1396_s11, %s1396_s11  ;;  %p17530_p1 = scmp.lt.s32.totalorder %s17528_s16, %s17521_s7 }
  0xa9   : > { %p17524_p9 = pnand %p17522_p11, %p17486_p13 }
  0xaa   : > { %p17531_p5 = por %p17530_p1, %p17529_p0 }
  0xab   : > { %p17525_p6 = pneg %p17524_p9 }
  0xac   : > { %17259 = dma.hbm_to_vmem [thread:$0]  (!%p17984_p12), %s19843_s27, 16, %s1382_s1, [#allocation3]  }
  0xad   : > { %p17532_p10 = pnand %p17531_p5, %p17525_p6 }
  0xaf   : > { %17535 = shalt.err (!%p17532_p10)
}
  0xb0   : > { %s19844_s9 = sld [smem:[#allocation61_spill]]  ;;  %p19845_p2 = scmp.ne.s32.totalorder %s19841_s18, 0 }
  0xb1   : > { %p19846_p3 = scmp.eq.s32.totalorder (!%p19845_p2), %s17948_s0, 0 }
  0xb2   : > { %1422 = sbr.rel (%p19845_p2) target bundleno = 26727 (0x6867), region = 224 }
  0xb6   : > { %17262 = dma.hbm_to_vmem [thread:$0]  (!%p17984_p12), %s19844_s9, 16, %s1396_s11, [#allocation6]  }
  0xb7   : > { %17579 = dma.done.wait (%p19846_p3), [#allocation3], 16   ;;  %p19847_p4 = pmov %p19846_p3 }
  0xb8   : > { %p19848_p9 = pmov %p19846_p3 }
  0xb9   : > { %17581 = vsyncadd (%p19847_p4), [#allocation3], 4294967280 }
  0xba   : > { %17583 = dma.done.wait (%p19848_p9), [#allocation6], 16   ;;  %p19849_p13 = pmov %p19846_p3 }
  0xbb   : > { %s19850_s5 = sld [smem:[#allocation11_spill]]  ;;  %p1549_p5 = scmp.lt.s32.totalorder %s17948_s0, 1  ;;  %v17659_v0 = vmov 0.0   ;;  %vm17660_vm0 = vmmov 0   ;;  %v1563_v1 = vld [vmem:[%s19826_s17 + $0x18] sm:$0xff]  ;;  %v1562_v2 = vld [vmem:[%s19826_s17 + $0x10] sm:$0xff] }
  0xbc   : > { %17585 = vsyncadd (%p19849_p13), [#allocation6], 4294967280  ;;  %15899 = vmatprep.subr.mxu0 %v17659_v0  ;;  %15907 = vmatprep.mubr.msk.f32.mxu0 %vm17660_vm0, %v17659_v0  ;;  %v1557_v3 = vld [vmem:[%s19828_s13] sm:$0xff]  ;;  %v1561_v5 = vld [vmem:[%s19826_s17 + $0x8] sm:$0xff]  ;;  %vm1571_vm1 = vcmask 261120   ;;  %vm1807_vm2 = vcmask 64512  }
  0xbd   : > { %s18017_s26 = scalar_select %p1549_p5, %s17948_s0, 1  ;;  %15932 = vmatprep.subr.mxu1 %v17659_v0  ;;  %15934 = vmatprep.mubr.msk.f32.mxu1 %vm17660_vm0, %v17659_v0  ;;  %v1560_v6 = vld [vmem:[%s19826_s17] sm:$0xff]  ;;  %v1648_v8 = vld [vmem:[%s19821_s25 + $0x18] sm:$0xff]  ;;  %v1647_v9 = vld [vmem:[%s19821_s25 + $0x10] sm:$0xff] }
  0xbe   : > { %15900 = vmatpush3.msra.mxu0 %v1563_v1  ;;  %v1646_v10 = vld [vmem:[%s19821_s25 + $0x8] sm:$0xff]  ;;  %v1645_v11 = vld [vmem:[%s19821_s25] sm:$0xff]  ;;  %v1729_v20 = vld [vmem:[%s19831_s3 + $0x18] sm:$0xff]  ;;  %s19851_s16 = sld [smem:[#allocation25_spill]] }
  0xbf   : > { %s14619_s2 = sshll.u32 %s18017_s26, 3  ;;  %15901 = vmatprep.subr.mxu0 %v17659_v0  ;;  %v14623_v14 = vld [vmem:[%s19820_s29] ss:$0 sm:$0xff]  ;;  %v1728_v21 = vld [vmem:[%s19831_s3 + $0x10] sm:$0xff]  ;;  %v1727_v22 = vld [vmem:[%s19831_s3 + $0x8] sm:$0xff]  ;;  %s19852_s18 = sld [smem:[#allocation27_spill]] }
  0xc0   : > { %15902 = vmatpush3.msra.mxu0 %v1562_v2  ;;  %v14621_v16 = vld [vmem:[%s19823_s21] ss:$0 sm:$0xff]  ;;  %v14633_v37 = vld [vmem:[%s19826_s17 + $0x38] sm:$0xff]  ;;  %v14632_v38 = vld [vmem:[%s19826_s17 + $0x30] sm:$0xff]  ;;  %s19853_s1 = sld [smem:[#allocation28_spill]] }
  0xc1   : > { %s1552_s11 = scalar_lea.vmem %s19850_s5, %s14619_s2  ;;  %15903 = vmatprep.subr.mxu0 %v17659_v0  ;;  %v1726_v23 = vld [vmem:[%s19831_s3] sm:$0xff]  ;;  %v14631_v39 = vld [vmem:[%s19826_s17 + $0x28] sm:$0xff]  ;;  %v14640_v44 = vld [vmem:[%s19821_s25 + $0x38] sm:$0xff]  ;;  %s19854_s10 = sld [smem:[#allocation29_spill]] }
  0xc2   : > { %v1558_v4 = vld [vmem:[%s1552_s11] sm:$0xff]  ;;  %15904 = vmatpush3.msra.mxu0 %v1561_v5  ;;  %v14639_v45 = vld [vmem:[%s19821_s25 + $0x30] sm:$0xff]  ;;  %v14638_v46 = vld [vmem:[%s19821_s25 + $0x28] sm:$0xff]  ;;  %s19855_s7 = sld [smem:[#allocation30_spill]] }
  0xc3   : > { %v18033_v7 = vadd.f32 %v1558_v4, %v1557_v3  ;;  %15905 = vmatprep.subr.mxu0 %v17659_v0  ;;  %v14625_v33 = vld [vmem:[%s19829_s8] ss:$0 sm:$0xff]  ;;  %v14642_v52 = vld [vmem:[%s19820_s29 + $0x1] ss:$0 sm:$0xff]  ;;  %v14647_v58 = vld [vmem:[%s19831_s3 + $0x38] sm:$0xff]  ;;  %s19856_s11 = sld [smem:[#allocation12_spill]] }
  0xc4   : > { %15906 = vmatpush3.msra.mxu0 %v1560_v6  ;;  %v14630_v40 = vld [vmem:[%s19826_s17 + $0x20] sm:$0xff]  ;;  %v14646_v59 = vld [vmem:[%s19831_s3 + $0x30] sm:$0xff]  ;;  %v14645_v60 = vld [vmem:[%s19831_s3 + $0x28] sm:$0xff]  ;;  %s19859_s26 = sld [smem:[#allocation33_spill]] }
  0xc5   : > { %15908 = vmatmul.mubr.msk.f32.vlgmr.msra.gmra.mxu0 %vm1571_vm1, %v18033_v7  ;;  %15910 = vmatprep.subr.mxu0 %v17659_v0  ;;  %v14637_v47 = vld [vmem:[%s19821_s25 + $0x20] sm:$0xff]  ;;  %s19890_s22 = sld [smem:[#allocation53_spill]] }
  0xc6   : > { %15911 = vmatpush3.msra.mxu0 %v1648_v8  ;;  %15918 = vmatprep.mubr.msk.f32.mxu0 %vm17660_vm0, %v17659_v0  ;;  %v14635_v53 = vld [vmem:[%s19823_s21 + $0x1] ss:$0 sm:$0xff] }
  0xc7   : > { %15912 = vmatprep.subr.mxu0 %v17659_v0  ;;  %v14644_v61 = vld [vmem:[%s19831_s3 + $0x20] sm:$0xff] }
  0xc8   : > { %15913 = vmatpush3.msra.mxu0 %v1647_v9  ;;  %v14649_v9 = vld [vmem:[%s19829_s8 + $0x1] ss:$0 sm:$0xff] }
  0xc9   : > { %15914 = vmatprep.subr.mxu0 %v17659_v0  ;;  %s1556_s5 = scalar_lea.vmem %s19856_s11, %s14619_s2  ;;  %s19861_s11 = sld [smem:[#allocation31_spill]] }
  0xca   : > { %15915 = vmatpush3.msra.mxu0 %v1646_v10  ;;  %s19860_s2 = smov %s19859_s26 }
  0xcb   : > { %15916 = vmatprep.subr.mxu0 %v17659_v0  ;;  %s19891_s15 = smov %s19890_s22 }
  0xcc   : > { %15917 = vmatpush3.msra.mxu0 %v1645_v11 }
  0xcd   : > { %15919 = vmatmul.mubr.msk.f32.vlgmr.msra.gmra.mxu0 %vm1571_vm1, %v18033_v7  ;;  %15921 = vmatprep.subr.mxu0 %v17659_v0 }
  0xce   : > { %15929 = vmatprep.mubr.msk.f32.mxu0 %vm17660_vm0, %v17659_v0  ;;  %15922 = vmatpush3.msra.mxu0 %v1729_v20  ;;  %v14665_v20 = vld [vmem:[%s19821_s25 + $0x48] sm:$0xff] }
  0xcf   : > { %15923 = vmatprep.subr.mxu0 %v17659_v0 }
  0xd0   : > { %15924 = vmatpush3.msra.mxu0 %v1728_v21  ;;  %v14664_v21 = vld [vmem:[%s19821_s25 + $0x40] sm:$0xff] }
  0xd1   : > { %15925 = vmatprep.subr.mxu0 %v17659_v0 }
  0xd2   : > { %15926 = vmatpush3.msra.mxu0 %v1727_v22  ;;  %v14660_v22 = vld [vmem:[%s19826_s17 + $0x58] sm:$0xff] }
  0xd3   : > { %15927 = vmatprep.subr.mxu0 %v17659_v0 }
  0xd4   : > { %15928 = vmatpush3.msra.mxu0 %v1726_v23 }
  0xd5   : > { %15930 = vmatmul.mubr.msk.f32.vlgmr.msra.gmra.mxu0 %vm1571_vm1, %v18033_v7  ;;  %15942 = vmatprep.subr.mxu0 %v17659_v0 }
  0xd6   : > { %15950 = vmatprep.mubr.msk.f32.mxu0 %vm17660_vm0, %v17659_v0  ;;  %15943 = vmatpush3.msra.mxu0 %v14633_v37 }
  0xd7   : > { %15944 = vmatprep.subr.mxu0 %v17659_v0 }
  0xd8   : > { %15945 = vmatpush3.msra.mxu0 %v14632_v38 }
  0xd9   : > { %15946 = vmatprep.subr.mxu0 %v17659_v0 }
  0xda   : > { %15947 = vmatpush3.msra.mxu0 %v14631_v39 }
  0xdb   : > { %15948 = vmatprep.subr.mxu0 %v17659_v0 }
  0xdc   : > { %15949 = vmatpush3.msra.mxu0 %v14630_v40  ;;  %v14674_v40 = vld [vmem:[%s19831_s3 + $0x58] sm:$0xff] }
  0xdd   : > { %15951 = vmatmul.mubr.msk.f32.vlgmr.msra.gmra.mxu0 %vm1571_vm1, %v18033_v7  ;;  %15964 = vmatprep.subr.mxu0 %v17659_v0 }
  0xde   : > { %15972 = vmatprep.mubr.msk.f32.mxu0 %vm17660_vm0, %v17659_v0  ;;  %15965 = vmatpush3.msra.mxu0 %v14647_v58 }
  0xdf   : > { %15966 = vmatprep.subr.mxu0 %v17659_v0 }
  0xe0   : > { %15967 = vmatpush3.msra.mxu0 %v14646_v59 }
  0xe1   : > { %15968 = vmatprep.subr.mxu0 %v17659_v0 }
  0xe2   : > { %15969 = vmatpush3.msra.mxu0 %v14645_v60 }
  0xe3   : > { %15970 = vmatprep.subr.mxu0 %v17659_v0 }
  0xe4   : > { %15971 = vmatpush3.msra.mxu0 %v14644_v61  ;;  %v14686_v61 = vld [vmem:[%s19826_s17 + $0x78] sm:$0xff] }
  0xe5   : > { %15973 = vmatmul.mubr.msk.f32.vlgmr.msra.gmra.mxu0 %vm1571_vm1, %v18033_v7  ;;  %15985 = vmatprep.subr.mxu0 %v17659_v0 }
  0xe6   : > { %15987 = vmatprep.mubr.msk.f32.mxu0 %vm17660_vm0, %v17659_v0 }
 0x185   : > { %v1641_v12 = vpop.f32.mrf.mxu0 }
 0x186   : > { %v1642_v19 = vadd.f32 %v14621_v16, %v1641_v12 }
 0x187   : > { %v15909_v13 = vpop.f32.mrf.mxu0 }
 0x188   : > { %v14654_v13 = vld [vmem:[%s19827_s14 + $0x8] sm:$0xff] }
 0x189   : > { %15986 = vmatpush3.msra.mxu0 %v14654_v13 }
 0x18a   : > { %15995 = vmatprep.subr.mxu0 %v17659_v0 }
 0x18d   : > { %v1722_v15 = vpop.f32.mrf.mxu0 }
 0x18e   : > { %v1723_v17 = vadd.f32 %v14623_v14, %v1722_v15 }
 0x18f   : > { %v15920_v18 = vpop.f32.mrf.mxu0 }
 0x190   : > { %15933 = vmatpush3.xpose.msk.msra.mxu1 %vm1807_vm2, %v1723_v17  ;;  %v1969_v17 = vld [vmem:[%s19827_s14] sm:$0xff]  ;;  %v14667_v18 = vld [vmem:[%s19821_s25 + $0x58] sm:$0xff] }
 0x191   : > { %15937 = vmatprep.subr.mxu1 %v17659_v0 }
 0x193   : > { %15935 = vmatmul.mubr.msk.f32.vlgmr.msra.gmra.mxu1 %vm1807_vm2, %v1642_v19  ;;  %v14666_v19 = vld [vmem:[%s19821_s25 + $0x50] sm:$0xff] }
 0x194   : > { %15939 = vmatprep.mubr.msk.f32.mxu1 %vm17660_vm0, %v17659_v0 }
 0x195   : > { %v1803_v34 = vpop.f32.mrf.mxu0 }
 0x196   : > { %v1804_v35 = vadd.f32 %v14625_v33, %v1803_v34 }
 0x197   : > { %v15931_v36 = vpop.f32.mrf.mxu0 }
 0x198   : > { %15938 = vmatpush3.msra.mxu1 %v1804_v35  ;;  %v14662_v36 = vld [vmem:[%s19823_s21 + $0x2] ss:$0 sm:$0xff] }
 0x199   : > { %15953 = vmatprep.subr.mxu1 %v17659_v0 }
 0x19d   : > { %v2049_v48 = vpop.f32.mrf.mxu0 }
 0x19e   : > { %v2050_v56 = vadd.f32 %v14635_v53, %v2049_v48  ;;  %v14676_v53 = vld [vmem:[%s19829_s8 + $0x2] ss:$0 sm:$0xff] }
 0x19f   : > { %v15952_v49 = vpop.f32.mrf.mxu0 }
 0x1a5   : > { %v2215_v10 = vpop.f32.mrf.mxu0 }
 0x1a6   : > { %v2216_v11 = vadd.f32 %v14649_v9, %v2215_v10 }
 0x1a7   : > { %v15974_v12 = vpop.f32.mrf.mxu0 }
 0x253   : > { %v1880_v24 = vpop.f32.mrf.mxu1 }
 0x254   : > { %v1884_v25 = vmul.f32 0.35355338, %v1880_v24  ;;  %v14659_v24 = vld [vmem:[%s19826_s17 + $0x50] sm:$0xff] }
 0x255   : > { %v15936_v26 = vpop.f32.mrf.mxu1 }
 0x256   : > { %v1885_v27 = vsel %vm1807_vm2, %v1884_v25, -inf  ;;  %v14658_v26 = vld [vmem:[%s19826_s17 + $0x48] sm:$0xff] }
 0x257   : > { %1886 = vmax.xlane.f32.xlu0 %v1885_v27 }
 0x2e0   : > { %v1887_v28 = vpop.xlane.xlu0 %1886 }
 0x2e1   : > { %v1888_v29 = vsub.f32 %v1884_v25, %v1887_v28  ;;  %v14657_v28 = vld [vmem:[%s19826_s17 + $0x40] sm:$0xff] }
 0x2e3   : > { %v1889_v30 = vmul.f32 1.442695, %v1888_v29 }
 0x2e5   : > { %17359 = vpow2.f32 %v1889_v30  ;;  %v14669_v30 = vld [vmem:[%s19820_s29 + $0x2] ss:$0 sm:$0xff] }
 0x2f2   : > { %v17360_v31 = vpop.eup %17359 }
 0x2f3   : > { %v1891_v32 = vsel %vm1807_vm2, %v17360_v31, 0.0 }
 0x2f4   : > { %1892 = vadd.xlane.f32.xlu0 %v1891_v32 }
 0x37d   : > { %v1893_v41 = vpop.xlane.xlu0 %1892 }
 0x37e   : > { %17361 = vrcp.f32 %v1893_v41  ;;  %v14673_v41 = vld [vmem:[%s19831_s3 + $0x50] sm:$0xff] }
 0x38b   : > { %v17362_v42 = vpop.eup %17361 }
 0x38c   : > { %v1895_v43 = vmul.f32 %v17362_v42, %v17360_v31  ;;  %v14672_v42 = vld [vmem:[%s19831_s3 + $0x48] sm:$0xff] }
 0x38e   : > { %15940 = vmatmul.mubr.msk.f32.vlgmr.msra.gmra.mxu1 %vm1807_vm2, %v1895_v43  ;;  %v14671_v43 = vld [vmem:[%s19831_s3 + $0x40] sm:$0xff] }
 0x38f   : > { %15954 = vmatpush3.msra.mxu1 %v14640_v44  ;;  %15961 = vmatprep.mubr.msk.f32.mxu1 %vm17660_vm0, %v17659_v0 }
 0x390   : > { %15955 = vmatprep.subr.mxu1 %v17659_v0 }
 0x391   : > { %15956 = vmatpush3.msra.mxu1 %v14639_v45 }
 0x392   : > { %15957 = vmatprep.subr.mxu1 %v17659_v0 }
 0x393   : > { %15958 = vmatpush3.msra.mxu1 %v14638_v46 }
 0x394   : > { %15959 = vmatprep.subr.mxu1 %v17659_v0 }
 0x395   : > { %15960 = vmatpush3.msra.mxu1 %v14637_v47 }
 0x396   : > { %15962 = vmatmul.mubr.msk.f32.vlgmr.msra.gmra.mxu1 %vm1571_vm1, %v18033_v7  ;;  %15975 = vmatprep.subr.mxu1 %v17659_v0 }
 0x397   : > { %15977 = vmatprep.mubr.msk.f32.mxu1 %vm17660_vm0, %v17659_v0 }
 0x44e   : > { %v1965_v50 = vpop.f32.mrf.mxu1 }
 0x450   : > { %v15941_v51 = vpop.f32.mrf.mxu1 }
 0x456   : > { %v2132_v54 = vpop.f32.mrf.mxu1 }
 0x457   : > { %v2133_v55 = vadd.f32 %v14642_v52, %v2132_v54 }
 0x458   : > { %v15963_v57 = vpop.f32.mrf.mxu1 }
 0x459   : > { %15976 = vmatpush3.xpose.msk.msra.mxu1 %vm1807_vm2, %v2133_v55  ;;  %v14681_v57 = vld [vmem:[%s19827_s14 + $0x10] sm:$0xff] }
 0x45a   : > { %15980 = vmatprep.subr.mxu1 %v17659_v0 }
 0x45c   : > { %15978 = vmatmul.mubr.msk.f32.vlgmr.msra.gmra.mxu1 %vm1807_vm2, %v2050_v56 }
 0x45d   : > { %15982 = vmatprep.mubr.msk.f32.mxu1 %vm17660_vm0, %v17659_v0  ;;  %15981 = vmatpush3.msra.mxu1 %v2216_v11 }
 0x45e   : > { %15990 = vmatprep.subr.mxu1 %v17659_v0 }
 0x51c   : > { %v2291_v62 = vpop.f32.mrf.mxu1 }
 0x51d   : > { %v2295_v63 = vmul.f32 0.35355338, %v2291_v62  ;;  %v14685_v62 = vld [vmem:[%s19826_s17 + $0x70] sm:$0xff] }
 0x51e   : > { %v15979_v1 = vpop.f32.mrf.mxu1 }
 0x51f   : > { %v2296_v2 = vsel %vm1807_vm2, %v2295_v63, -inf  ;;  %v14683_v1 = vld [vmem:[%s19826_s17 + $0x60] sm:$0xff] }
 0x520   : > { %2297 = vmax.xlane.f32.xlu1 %v2296_v2  ;;  %v14693_v2 = vld [vmem:[%s19821_s25 + $0x78] sm:$0xff] }
 0x5a9   : > { %v2298_v3 = vpop.xlane.xlu1 %2297 }
 0x5aa   : > { %v2299_v4 = vsub.f32 %v2295_v63, %v2298_v3  ;;  %v14684_v63 = vld [vmem:[%s19826_s17 + $0x68] sm:$0xff] }
 0x5ac   : > { %v2300_v5 = vmul.f32 1.442695, %v2299_v4  ;;  %v14692_v4 = vld [vmem:[%s19821_s25 + $0x70] sm:$0xff] }
 0x5ae   : > { %17363 = vpow2.f32 %v2300_v5 }
 0x5bb   : > { %v17364_v6 = vpop.eup %17363 }
 0x5bc   : > { %v2302_v8 = vsel %vm1807_vm2, %v17364_v6, 0.0 }
 0x5bd   : > { %2303 = vadd.xlane.f32.xlu1 %v2302_v8  ;;  %v14690_v8 = vld [vmem:[%s19821_s25 + $0x60] sm:$0xff] }
 0x646   : > { %v2304_v14 = vpop.xlane.xlu1 %2303 }
 0x647   : > { %17365 = vrcp.f32 %v2304_v14 }
 0x654   : > { %v17366_v15 = vpop.eup %17365 }
 0x655   : > { %v2306_v16 = vmul.f32 %v17366_v15, %v17364_v6  ;;  %v14691_v6 = vld [vmem:[%s19821_s25 + $0x68] sm:$0xff]  ;;  %v14695_v15 = vld [vmem:[%s19820_s29 + $0x3] ss:$0 sm:$0xff] }
 0x657   : > { %15983 = vmatmul.mubr.msk.f32.vlgmr.msra.gmra.mxu1 %vm1807_vm2, %v2306_v16  ;;  %v14688_v16 = vld [vmem:[%s19823_s21 + $0x3] ss:$0 sm:$0xff] }
 0x658   : > { %15991 = vmatpush3.msra.mxu1 %v1969_v17  ;;  %15992 = vmatprep.mubr.msk.f32.mxu1 %vm17660_vm0, %v17659_v0 }
 0x659   : > { %16006 = vmatprep.subr.mxu1 %v17659_v0 }
 0x65b   : > { %15993 = vmatmul.mubr.msk.f32.vlgmr.msra.gmra.mxu1 %vm1807_vm2, %v1965_v50 }
 0x65c   : > { %16007 = vmatpush3.msra.mxu1 %v14667_v18  ;;  %16014 = vmatprep.mubr.msk.f32.mxu1 %vm17660_vm0, %v17659_v0 }
 0x65d   : > { %16008 = vmatprep.subr.mxu1 %v17659_v0 }
 0x65e   : > { %16009 = vmatpush3.msra.mxu1 %v14666_v19 }
 0x65f   : > { %16010 = vmatprep.subr.mxu1 %v17659_v0 }
 0x660   : > { %16011 = vmatpush3.msra.mxu1 %v14665_v20 }
 0x661   : > { %16012 = vmatprep.subr.mxu1 %v17659_v0 }
 0x662   : > { %16013 = vmatpush3.msra.mxu1 %v14664_v21  ;;  %v14700_v21 = vld [vmem:[%s19831_s3 + $0x78] sm:$0xff] }
 0x663   : > { %16015 = vmatmul.mubr.msk.f32.vlgmr.msra.gmra.mxu1 %vm1571_vm1, %v18033_v7  ;;  %16028 = vmatprep.subr.mxu1 %v17659_v0 }
 0x664   : > { %16030 = vmatprep.mubr.msk.f32.mxu1 %vm17660_vm0, %v17659_v0 }
 0x717   : > { %v2376_v23 = vpop.f32.mrf.mxu1 }
 0x718   : > { %15988 = vmatmul.mubr.msk.f32.vlgmr.msra.gmra.mxu0 %vm1807_vm2, %v2376_v23  ;;  %v14698_v23 = vld [vmem:[%s19831_s3 + $0x68] sm:$0xff] }
 0x719   : > { %15996 = vmatpush3.msra.mxu0 %v14660_v22  ;;  %v15984_v25 = vpop.f32.mrf.mxu1  ;;  %16003 = vmatprep.mubr.msk.f32.mxu0 %vm17660_vm0, %v17659_v0  ;;  %v14699_v22 = vld [vmem:[%s19831_s3 + $0x70] sm:$0xff] }
 0x71a   : > { %15997 = vmatprep.subr.mxu0 %v17659_v0 }
 0x71b   : > { %15998 = vmatpush3.msra.mxu0 %v14659_v24  ;;  %v18155_v27 = vpop.f32.mrf.mxu1  ;;  %v14697_v24 = vld [vmem:[%s19831_s3 + $0x60] sm:$0xff] }
 0x71c   : > { %15999 = vmatprep.subr.mxu0 %v17659_v0 }
 0x71d   : > { %16000 = vmatpush3.msra.mxu0 %v14658_v26  ;;  %v15994_v29 = vpop.f32.mrf.mxu1 }
 0x71e   : > { %16001 = vmatprep.subr.mxu0 %v17659_v0 }
 0x71f   : > { %16002 = vmatpush3.msra.mxu0 %v14657_v28 }
 0x720   : > { %16004 = vmatmul.mubr.msk.f32.vlgmr.msra.gmra.mxu0 %vm1571_vm1, %v18033_v7  ;;  %16017 = vmatprep.subr.mxu0 %v17659_v0 }
 0x721   : > { %16025 = vmatprep.mubr.msk.f32.mxu0 %vm17660_vm0, %v17659_v0  ;;  %16018 = vmatpush3.msra.mxu0 %v14674_v40 }
 0x722   : > { %16019 = vmatprep.subr.mxu0 %v17659_v0 }
 0x723   : > { %v2690_v31 = vpop.f32.mrf.mxu1  ;;  %16020 = vmatpush3.msra.mxu0 %v14673_v41 }
 0x724   : > { %v2691_v32 = vadd.f32 %v14669_v30, %v2690_v31  ;;  %16021 = vmatprep.subr.mxu0 %v17659_v0 }
 0x725   : > { %v16016_v33 = vpop.f32.mrf.mxu1  ;;  %16022 = vmatpush3.msra.mxu0 %v14672_v42 }
 0x726   : > { %16029 = vmatpush3.xpose.msk.msra.mxu1 %vm1807_vm2, %v2691_v32  ;;  %16023 = vmatprep.subr.mxu0 %v17659_v0 }
 0x727   : > { %16033 = vmatprep.subr.mxu1 %v17659_v0  ;;  %16024 = vmatpush3.msra.mxu0 %v14671_v43 }
 0x728   : > { %16026 = vmatmul.mubr.msk.f32.vlgmr.msra.gmra.mxu0 %vm1571_vm1, %v18033_v7  ;;  %16038 = vmatprep.subr.mxu0 %v17659_v0 }
 0x729   : > { %16040 = vmatprep.mubr.msk.f32.mxu0 %vm17660_vm0, %v17659_v0  ;;  %16039 = vmatpush3.msra.mxu0 %v14681_v57  ;;  %v3541_v57 = vld [vmem:[%s19830_s6 + $0x10] sm:$0xff] }
 0x72a   : > { %16054 = vmatprep.subr.mxu0 %v17659_v0 }
 0x7d8   : > { %v18168_v34 = vpop.f32.mrf.mxu0 }
 0x7d9   : > { %v2525_v11 = vadd.f32 %v18155_v27, %v18168_v34  ;;  %v14702_v34 = vld [vmem:[%s19829_s8 + $0x3] ss:$0 sm:$0xff] }
 0x7da   : > { %v15989_v35 = vpop.f32.mrf.mxu0 }
 0x7e0   : > { %v2607_v37 = vpop.f32.mrf.mxu0 }
 0x7e1   : > { %v2608_v38 = vadd.f32 %v14662_v36, %v2607_v37 }
 0x7e2   : > { %v16005_v39 = vpop.f32.mrf.mxu0 }
 0x7e3   : > { %16031 = vmatmul.mubr.msk.f32.vlgmr.msra.gmra.mxu1 %vm1807_vm2, %v2608_v38  ;;  %v14707_v38 = vld [vmem:[%s19827_s14 + $0x18] sm:$0xff] }
 0x7e4   : > { %16035 = vmatprep.mubr.msk.f32.mxu1 %vm17660_vm0, %v17659_v0 }
 0x7e8   : > { %v2773_v54 = vpop.f32.mrf.mxu0 }
 0x7e9   : > { %v2774_v55 = vadd.f32 %v14676_v53, %v2773_v54 }
 0x7ea   : > { %v16027_v56 = vpop.f32.mrf.mxu0 }
 0x7eb   : > { %16034 = vmatpush3.msra.mxu1 %v2774_v55  ;;  %v3542_v56 = vld [vmem:[%s19830_s6 + $0x18] sm:$0xff] }
 0x7ec   : > { %16043 = vmatprep.subr.mxu1 %v17659_v0 }
 0x8a3   : > { %v2849_v44 = vpop.f32.mrf.mxu1 }
 0x8a4   : > { %v2853_v45 = vmul.f32 0.35355338, %v2849_v44 }
 0x8a5   : > { %v16032_v46 = vpop.f32.mrf.mxu1 }
 0x8a6   : > { %v2854_v47 = vsel %vm1807_vm2, %v2853_v45, -inf }
 0x8a7   : > { %2855 = vmax.xlane.f32.xlu0 %v2854_v47 }
 0x930   : > { %v2856_v48 = vpop.xlane.xlu0 %2855 }
 0x931   : > { %v2857_v49 = vsub.f32 %v2853_v45, %v2856_v48  ;;  %v14709_v45 = vld [vmem:[%s19825_s19] ss:$0 sm:$0xff] }
 0x933   : > { %v2858_v50 = vmul.f32 1.442695, %v2857_v49 }
 0x935   : > { %17367 = vpow2.f32 %v2858_v50 }
 0x942   : > { %v17368_v51 = vpop.eup %17367 }
 0x943   : > { %v2860_v52 = vsel %vm1807_vm2, %v17368_v51, 0.0 }
 0x944   : > { %2861 = vadd.xlane.f32.xlu1 %v2860_v52 }
 0x9cd   : > { %v2862_v58 = vpop.xlane.xlu1 %2861 }
 0x9ce   : > { %17369 = vrcp.f32 %v2862_v58  ;;  %v3539_v58 = vld [vmem:[%s19830_s6] sm:$0xff] }
 0x9db   : > { %v17370_v59 = vpop.eup %17369 }
 0x9dc   : > { %v2864_v60 = vmul.f32 %v17370_v59, %v17368_v51  ;;  %v3559_v59 = vld [vmem:[%s19824_s20 + $0x78] sm:$0xff] }
 0x9de   : > { %16036 = vmatmul.mubr.msk.f32.vlgmr.msra.gmra.mxu1 %vm1807_vm2, %v2864_v60  ;;  %v3558_v60 = vld [vmem:[%s19824_s20 + $0x70] sm:$0xff] }
 0x9df   : > { %16051 = vmatprep.mubr.msk.f32.mxu1 %vm17660_vm0, %v17659_v0  ;;  %16044 = vmatpush3.msra.mxu1 %v14686_v61  ;;  %v3557_v61 = vld [vmem:[%s19824_s20 + $0x68] sm:$0xff] }
 0x9e0   : > { %16045 = vmatprep.subr.mxu1 %v17659_v0 }
 0x9e1   : > { %16046 = vmatpush3.msra.mxu1 %v14685_v62  ;;  %v3556_v62 = vld [vmem:[%s19824_s20 + $0x60] sm:$0xff] }
 0x9e2   : > { %16047 = vmatprep.subr.mxu1 %v17659_v0 }
 0x9e3   : > { %16048 = vmatpush3.msra.mxu1 %v14684_v63  ;;  %v3555_v63 = vld [vmem:[%s19824_s20 + $0x58] sm:$0xff] }
 0x9e4   : > { %16049 = vmatprep.subr.mxu1 %v17659_v0 }
 0x9e5   : > { %16050 = vmatpush3.msra.mxu1 %v14683_v1  ;;  %v3554_v1 = vld [vmem:[%s19824_s20 + $0x50] sm:$0xff] }
 0x9e6   : > { %16052 = vmatmul.mubr.msk.f32.vlgmr.msra.gmra.mxu1 %vm1571_vm1, %v18033_v7  ;;  %16065 = vmatprep.subr.mxu1 %v17659_v0 }
 0x9e7   : > { %16073 = vmatprep.mubr.msk.f32.mxu1 %vm17660_vm0, %v17659_v0  ;;  %16066 = vmatpush3.msra.mxu1 %v14700_v21  ;;  %v3544_v21 = vld [vmem:[%s19824_s20] sm:$0xff] }
 0x9e8   : > { %16067 = vmatprep.subr.mxu1 %v17659_v0 }
 0x9e9   : > { %16068 = vmatpush3.msra.mxu1 %v14699_v22  ;;  %v14712_v22 = vld [vmem:[%s19851_s16] ss:$0 sm:$0xff] }
 0x9ea   : > { %16069 = vmatprep.subr.mxu1 %v17659_v0 }
 0x9eb   : > { %16070 = vmatpush3.msra.mxu1 %v14698_v23 }
 0x9ec   : > { %16071 = vmatprep.subr.mxu1 %v17659_v0 }
 0x9ed   : > { %16072 = vmatpush3.msra.mxu1 %v14697_v24 }
 0x9ee   : > { %16074 = vmatmul.mubr.msk.f32.vlgmr.msra.gmra.mxu1 %vm1571_vm1, %v18033_v7  ;;  %16086 = vmatprep.subr.mxu1 %v17659_v0 }
 0x9ef   : > { %16088 = vmatprep.mubr.msk.f32.mxu1 %vm17660_vm0, %v17659_v0  ;;  %16087 = vmatpush3.msra.mxu1 %v14707_v38  ;;  %v14720_v38 = vld [vmem:[%s19826_s17 + $0x98] sm:$0xff] }
 0x9f0   : > { %16102 = vmatprep.subr.mxu1 %v17659_v0 }
 0xa9e   : > { %v2934_v3 = vpop.f32.mrf.mxu1 }
 0xa9f   : > { %16041 = vmatmul.mubr.msk.f32.vlgmr.msra.gmra.mxu0 %vm1807_vm2, %v2934_v3  ;;  %v3552_v3 = vld [vmem:[%s19824_s20 + $0x40] sm:$0xff] }
 0xaa0   : > { %16055 = vmatpush3.msra.mxu0 %v14693_v2  ;;  %v16037_v5 = vpop.f32.mrf.mxu1  ;;  %16062 = vmatprep.mubr.msk.f32.mxu0 %vm17660_vm0, %v17659_v0  ;;  %v3553_v2 = vld [vmem:[%s19824_s20 + $0x48] sm:$0xff] }
 0xaa1   : > { %16056 = vmatprep.subr.mxu0 %v17659_v0  ;;  %v3550_v5 = vld [vmem:[%s19824_s20 + $0x30] sm:$0xff] }
 0xaa2   : > { %16057 = vmatpush3.msra.mxu0 %v14692_v4  ;;  %v3551_v4 = vld [vmem:[%s19824_s20 + $0x38] sm:$0xff] }
 0xaa3   : > { %16058 = vmatprep.subr.mxu0 %v17659_v0 }
 0xaa4   : > { %16059 = vmatpush3.msra.mxu0 %v14691_v6  ;;  %v3549_v6 = vld [vmem:[%s19824_s20 + $0x28] sm:$0xff] }
 0xaa5   : > { %16060 = vmatprep.subr.mxu0 %v17659_v0 }
 0xaa6   : > { %16061 = vmatpush3.msra.mxu0 %v14690_v8  ;;  %v3093_v9 = vpop.f32.mrf.mxu1  ;;  %v3548_v8 = vld [vmem:[%s19824_s20 + $0x20] sm:$0xff] }
 0xaa7   : > { %16063 = vmatmul.mubr.msk.f32.vlgmr.msra.gmra.mxu0 %vm1571_vm1, %v18033_v7  ;;  %16076 = vmatprep.subr.mxu0 %v17659_v0  ;;  %v3094_v19 = vadd.f32 %v14688_v16, %v3093_v9  ;;  %v3547_v9 = vld [vmem:[%s19824_s20 + $0x18] sm:$0xff]  ;;  %v14711_v16 = vld [vmem:[%s19819_s30] ss:$0 sm:$0xff] }
 0xaa8   : > { %16078 = vmatprep.mubr.msk.f32.mxu0 %vm17660_vm0, %v17659_v0  ;;  %v16053_v10 = vpop.f32.mrf.mxu1 }
 0xaae   : > { %v3259_v35 = vpop.f32.mrf.mxu1 }
 0xaaf   : > { %v3260_v36 = vadd.f32 %v14702_v34, %v3259_v35 }
 0xab0   : > { %v16075_v37 = vpop.f32.mrf.mxu1 }
 0xb5f   : > { %v3009_v12 = vpop.f32.mrf.mxu0 }
 0xb60   : > { %v3013_v13 = vadd.f32 %v3009_v12, %v2525_v11 }
 0xb61   : > { %v16042_v14 = vpop.f32.mrf.mxu0 }
 0xb62   : > { %v14710_v14 = vld [vmem:[%s19822_s24] ss:$0 sm:$0xff] }
 0xb67   : > { %v3176_v17 = vpop.f32.mrf.mxu0 }
 0xb68   : > { %v3177_v18 = vadd.f32 %v14695_v15, %v3176_v17 }
 0xb69   : > { %v16064_v20 = vpop.f32.mrf.mxu0 }
 0xb6a   : > { %16077 = vmatpush3.xpose.msk.msra.mxu0 %vm1807_vm2, %v3177_v18  ;;  %v3545_v20 = vld [vmem:[%s19824_s20 + $0x8] sm:$0xff] }
 0xb6b   : > { %16081 = vmatprep.subr.mxu0 %v17659_v0 }
 0xb6d   : > { %16079 = vmatmul.mubr.msk.f32.vlgmr.msra.gmra.mxu0 %vm1807_vm2, %v3094_v19  ;;  %v3546_v19 = vld [vmem:[%s19824_s20 + $0x10] sm:$0xff] }
 0xb6e   : > { %16083 = vmatprep.mubr.msk.f32.mxu0 %vm17660_vm0, %v17659_v0  ;;  %16082 = vmatpush3.msra.mxu0 %v3260_v36 }
 0xb6f   : > { %16091 = vmatprep.subr.mxu0 %v17659_v0 }
 0xc2d   : > { %v3335_v25 = vpop.f32.mrf.mxu0 }
 0xc2e   : > { %v3339_v26 = vmul.f32 0.35355338, %v3335_v25 }
 0xc2f   : > { %v16080_v27 = vpop.f32.mrf.mxu0 }
 0xc30   : > { %v3340_v28 = vsel %vm1807_vm2, %v3339_v26, -inf  ;;  %v14714_v27 = vld [vmem:[%s19852_s18] ss:$0 sm:$0xff] }
 0xc31   : > { %3341 = vmax.xlane.f32.xlu0 %v3340_v28 }
 0xcba   : > { %v3342_v29 = vpop.xlane.xlu0 %3341 }
 0xcbb   : > { %v3343_v30 = vsub.f32 %v3339_v26, %v3342_v29 }
 0xcbd   : > { %v3344_v31 = vmul.f32 1.442695, %v3343_v30 }
 0xcbf   : > { %17371 = vpow2.f32 %v3344_v31 }
 0xccc   : > { %v17372_v32 = vpop.eup %17371 }
 0xccd   : > { %v3346_v33 = vsel %vm1807_vm2, %v17372_v32, 0.0 }
 0xcce   : > { %3347 = vadd.xlane.f32.xlu1 %v3346_v33 }
 0xd57   : > { %v3348_v39 = vpop.xlane.xlu1 %3347 }
 0xd58   : > { %17373 = vrcp.f32 %v3348_v39  ;;  %v14719_v39 = vld [vmem:[%s19826_s17 + $0x90] sm:$0xff] }
 0xd65   : > { %v17374_v40 = vpop.eup %17373 }
 0xd66   : > { %v3350_v41 = vmul.f32 %v17374_v40, %v17372_v32  ;;  %v14718_v40 = vld [vmem:[%s19826_s17 + $0x88] sm:$0xff] }
 0xd68   : > { %16084 = vmatmul.mubr.msk.f32.vlgmr.msra.gmra.mxu0 %vm1807_vm2, %v3350_v41  ;;  %v14717_v41 = vld [vmem:[%s19826_s17 + $0x80] sm:$0xff] }
 0xd69   : > { %16099 = vmatprep.mubr.msk.f32.mxu0 %vm17660_vm0, %v17659_v0  ;;  %16092 = vmatpush3.msra.mxu0 %v3542_v56  ;;  %v14733_v56 = vld [vmem:[%s19831_s3 + $0x90] sm:$0xff] }
 0xd6a   : > { %16093 = vmatprep.subr.mxu0 %v17659_v0 }
 0xd6b   : > { %16094 = vmatpush3.msra.mxu0 %v3541_v57  ;;  %v14732_v57 = vld [vmem:[%s19831_s3 + $0x88] sm:$0xff] }
 0xd6c   : > { %16095 = vmatprep.subr.mxu0 %v17659_v0 }
 0xe28   : > { %v3420_v42 = vpop.f32.mrf.mxu0 }
 0xe29   : > { %16089 = vmatmul.mubr.msk.f32.vlgmr.msra.gmra.mxu1 %vm1807_vm2, %v3420_v42 }
 0xe2a   : > { %v16085_v43 = vpop.f32.mrf.mxu0  ;;  %16134 = vmatprep.mubr.msk.f32.mxu1 %vm17660_vm0, %v17659_v0  ;;  %16103 = vmatpush3.msra.mxu1 %v3559_v59 }
 0xe2b   : > { %16104 = vmatprep.subr.mxu1 %v17659_v0 }
 0xe2c   : > { %16105 = vmatpush3.msra.mxu1 %v3558_v60  ;;  %v14729_v60 = vld [vmem:[%s19820_s29 + $0x4] ss:$0 sm:$0xff] }
 0xe2d   : > { %16106 = vmatprep.subr.mxu1 %v17659_v0 }
 0xe2e   : > { %16107 = vmatpush3.msra.mxu1 %v3557_v61 }
 0xe2f   : > { %16108 = vmatprep.subr.mxu1 %v17659_v0 }
 0xe30   : > { %16109 = vmatpush3.msra.mxu1 %v3556_v62  ;;  %v14722_v62 = vld [vmem:[%s19823_s21 + $0x4] ss:$0 sm:$0xff] }
 0xe31   : > { %16110 = vmatprep.subr.mxu1 %v17659_v0 }
 0xe32   : > { %16111 = vmatpush3.msra.mxu1 %v3555_v63 }
 0xe33   : > { %16112 = vmatprep.subr.mxu1 %v17659_v0 }
 0xe34   : > { %16113 = vmatpush3.msra.mxu1 %v3554_v1 }
 0xe35   : > { %16114 = vmatprep.subr.mxu1 %v17659_v0 }
 0xe36   : > { %16115 = vmatpush3.msra.mxu1 %v3553_v2 }
 0xe37   : > { %16116 = vmatprep.subr.mxu1 %v17659_v0 }
 0xe38   : > { %16117 = vmatpush3.msra.mxu1 %v3552_v3  ;;  %v14745_v3 = vld [vmem:[%s19826_s17 + $0xb8] sm:$0xff] }
 0xe39   : > { %16118 = vmatprep.subr.mxu1 %v17659_v0 }
 0xe3a   : > { %16119 = vmatpush3.msra.mxu1 %v3551_v4  ;;  %v14736_v4 = vld [vmem:[%s19829_s8 + $0x4] ss:$0 sm:$0xff] }
 0xe3b   : > { %16120 = vmatprep.subr.mxu1 %v17659_v0 }
 0xe3c   : > { %16121 = vmatpush3.msra.mxu1 %v3550_v5  ;;  %v14744_v5 = vld [vmem:[%s19826_s17 + $0xb0] sm:$0xff] }
 0xe3d   : > { %16122 = vmatprep.subr.mxu1 %v17659_v0 }
 0xe3e   : > { %16123 = vmatpush3.msra.mxu1 %v3549_v6 }
 0xe3f   : > { %16124 = vmatprep.subr.mxu1 %v17659_v0 }
 0xe40   : > { %16125 = vmatpush3.msra.mxu1 %v3548_v8  ;;  %v14743_v8 = vld [vmem:[%s19826_s17 + $0xa8] sm:$0xff] }
 0xe41   : > { %16126 = vmatprep.subr.mxu1 %v17659_v0 }
 0xe42   : > { %16127 = vmatpush3.msra.mxu1 %v3547_v9 }
 0xe43   : > { %16128 = vmatprep.subr.mxu1 %v17659_v0 }
 0xe44   : > { %16129 = vmatpush3.msra.mxu1 %v3546_v19 }
 0xe45   : > { %16130 = vmatprep.subr.mxu1 %v17659_v0 }
 0xe46   : > { %16131 = vmatpush3.msra.mxu1 %v3545_v20 }
 0xe47   : > { %16132 = vmatprep.subr.mxu1 %v17659_v0 }
 0xe48   : > { %16133 = vmatpush3.msra.mxu1 %v3544_v21 }
 0xe49   : > { %16175 = vmatprep.subr.mxu1 %v17659_v0 }
 0xee9   : > { %v3495_v44 = vpop.f32.mrf.mxu1 }
 0xeea   : > { %v3499_v46 = vadd.f32 %v3495_v44, %v3013_v13 }
 0xeeb   : > { %v16090_v47 = vpop.f32.mrf.mxu1 }
 0xeec   : > { %v3507_v48 = vadd.f32 %v14709_v45, %v3499_v46  ;;  %v14715_v46 = vld [vmem:[%s19853_s1] ss:$0 sm:$0xff] }
 0xeee   : > { %v3508_v49 = vadd.f32 %v3507_v48, %v18033_v7  ;;  %v3540_v7 = vld [vmem:[%s19830_s6 + $0x8] sm:$0xff]  ;;  %v14716_v48 = vld [vmem:[%s19854_s10] ss:$0 sm:$0xff] }
 0xeef   : > { %16096 = vmatpush3.msra.mxu0 %v3540_v7  ;;  %v14731_v7 = vld [vmem:[%s19831_s3 + $0x80] sm:$0xff] }
 0xef0   : > { %v3511_v50 = vsel %vm1571_vm1, %v3508_v49, 0.0  ;;  %16097 = vmatprep.subr.mxu0 %v17659_v0 }
 0xef1   : > { %3512 = vadd.xlane.f32.xlu0 %v3511_v50  ;;  %16098 = vmatpush3.msra.mxu0 %v3539_v58 }
 0xef2   : > { %16137 = vmatprep.subr.mxu0 %v17659_v0 }
 0xf7a   : > { %v3513_v51 = vpop.xlane.xlu0 %3512 }
 0xf7b   : > { %v3515_v52 = vmul.f32 0.03125, %v3513_v51  ;;  %v14727_v51 = vld [vmem:[%s19821_s25 + $0x98] sm:$0xff] }
 0xf7d   : > { %v3516_v53 = vsub.f32 %v3508_v49, %v3515_v52  ;;  %v14726_v52 = vld [vmem:[%s19821_s25 + $0x90] sm:$0xff] }
 0xf7f   : > { %v3517_v54 = vmul.f32 %v3516_v53, %v3516_v53 }
 0xf81   : > { %v3518_v55 = vsel %vm1571_vm1, %v3517_v54, 0.0  ;;  %v14724_v54 = vld [vmem:[%s19821_s25 + $0x80] sm:$0xff] }
 0xf82   : > { %3519 = vadd.xlane.f32.xlu1 %v3518_v55  ;;  %v14734_v55 = vld [vmem:[%s19831_s3 + $0x98] sm:$0xff] }
0x100b   : > { %v3520_v10 = vpop.xlane.xlu1 %3519 }
0x100c   : > { %v3521_v11 = vmul.f32 0.03125, %v3520_v10 }
0x100e   : > { %v3522_v12 = vadd.f32 1e-05, %v3521_v11  ;;  %v14742_v11 = vld [vmem:[%s19826_s17 + $0xa0] sm:$0xff] }
0x1010   : > { %17375 = vrsqrt.f32 %v3522_v12  ;;  %v14759_v12 = vld [vmem:[%s19831_s3 + $0xb8] sm:$0xff] }
0x101d   : > { %v17376_v13 = vpop.eup %17375 }
0x101e   : > { %v3524_v15 = vmul.f32 %v17376_v13, %v3516_v53  ;;  %v14725_v53 = vld [vmem:[%s19821_s25 + $0x88] sm:$0xff]  ;;  %v14758_v13 = vld [vmem:[%s19831_s3 + $0xb0] sm:$0xff] }
0x1020   : > { %v3531_v17 = vmul.f32 %v14710_v14, %v3524_v15  ;;  %v14757_v14 = vld [vmem:[%s19831_s3 + $0xa8] sm:$0xff]  ;;  %v14756_v15 = vld [vmem:[%s19831_s3 + $0xa0] sm:$0xff] }
0x1022   : > { %v3538_v18 = vadd.f32 %v14711_v16, %v3531_v17 }
0x1024   : > { %16100 = vmatmul.mubr.msk.f32.vlgmr.msra.gmra.mxu0 %vm1571_vm1, %v3538_v18 }
0x1025   : > { %16145 = vmatprep.mubr.msk.f32.mxu0 %vm17660_vm0, %v17659_v0  ;;  %16138 = vmatpush3.msra.mxu0 %v14720_v38  ;;  %v14754_v38 = vld [vmem:[%s19820_s29 + $0x5] ss:$0 sm:$0xff] }
0x1026   : > { %16139 = vmatprep.subr.mxu0 %v17659_v0 }
0x1027   : > { %16140 = vmatpush3.msra.mxu0 %v14719_v39 }
0x1028   : > { %16141 = vmatprep.subr.mxu0 %v17659_v0 }
0x1029   : > { %16142 = vmatpush3.msra.mxu0 %v14718_v40  ;;  %v14747_v40 = vld [vmem:[%s19823_s21 + $0x5] ss:$0 sm:$0xff] }
0x102a   : > { %16143 = vmatprep.subr.mxu0 %v17659_v0 }
0x102b   : > { %16144 = vmatpush3.msra.mxu0 %v14717_v41 }
0x102c   : > { %16148 = vmatprep.subr.mxu0 %v17659_v0 }
0x10e4   : > { %v3636_v23 = vpop.f32.mrf.mxu0 }
0x10e5   : > { %v3637_v24 = vadd.f32 %v14712_v22, %v3636_v23 }
0x10e6   : > { %v16101_v25 = vpop.f32.mrf.mxu0 }
0x10e7   : > { %v3640_v26 = vmax.f32 %v3637_v24, 0.0 }
0x10e9   : > { %16135 = vmatmul.mubr.f32.vlgmr.msra.gmra.mxu1 %v3640_v26 }
0x10ea   : > { %16177 = vmatprep.mubr.msk.f32.mxu1 %vm17660_vm0, %v17659_v0 }
0x11a9   : > { %v3713_v28 = vpop.f32.mrf.mxu1 }
0x11aa   : > { %v3714_v29 = vadd.f32 %v14714_v27, %v3713_v28 }
0x11ab   : > { %v16136_v30 = vpop.f32.mrf.mxu1 }
0x11ac   : > { %v3717_v31 = vadd.f32 %v3714_v29, %v3538_v18 }
0x11ae   : > { %v3720_v32 = vsel %vm1571_vm1, %v3717_v31, 0.0 }
0x11af   : > { %3721 = vadd.xlane.f32.xlu0 %v3720_v32  ;;  %v14752_v32 = vld [vmem:[%s19821_s25 + $0xb8] sm:$0xff] }
0x1238   : > { %v3722_v33 = vpop.xlane.xlu0 %3721 }
0x1239   : > { %v3723_v34 = vmul.f32 0.03125, %v3722_v33  ;;  %v14751_v33 = vld [vmem:[%s19821_s25 + $0xb0] sm:$0xff] }
0x123b   : > { %v3724_v35 = vsub.f32 %v3717_v31, %v3723_v34  ;;  %v14750_v34 = vld [vmem:[%s19821_s25 + $0xa8] sm:$0xff] }
0x123d   : > { %v3725_v36 = vmul.f32 %v3724_v35, %v3724_v35 }
0x123f   : > { %v3726_v37 = vsel %vm1571_vm1, %v3725_v36, 0.0 }
0x1240   : > { %3727 = vadd.xlane.f32.xlu1 %v3726_v37 }
0x12c9   : > { %v3728_v42 = vpop.xlane.xlu1 %3727 }
0x12ca   : > { %v3729_v43 = vmul.f32 0.03125, %v3728_v42  ;;  %v14761_v42 = vld [vmem:[%s19829_s8 + $0x5] ss:$0 sm:$0xff] }
0x12cc   : > { %v3730_v44 = vadd.f32 1e-05, %v3729_v43 }
0x12ce   : > { %17377 = vrsqrt.f32 %v3730_v44 }
0x12db   : > { %v17378_v45 = vpop.eup %17377 }
0x12dc   : > { %v3732_v47 = vmul.f32 %v17378_v45, %v3724_v35  ;;  %v14749_v35 = vld [vmem:[%s19821_s25 + $0xa0] sm:$0xff] }
0x12de   : > { %v3739_v49 = vmul.f32 %v14715_v46, %v3732_v47 }
0x12e0   : > { %v18320_v50 = vadd.f32 %v14716_v48, %v3739_v49 }
0x12e2   : > { %16146 = vmatmul.mubr.msk.f32.vlgmr.msra.gmra.mxu0 %vm1571_vm1, %v18320_v50 }
0x12e3   : > { %16149 = vmatpush3.msra.mxu0 %v14727_v51  ;;  %16156 = vmatprep.mubr.msk.f32.mxu0 %vm17660_vm0, %v17659_v0 }
0x12e4   : > { %16150 = vmatprep.subr.mxu0 %v17659_v0 }
0x12e5   : > { %16151 = vmatpush3.msra.mxu0 %v14726_v52 }
0x12e6   : > { %16152 = vmatprep.subr.mxu0 %v17659_v0 }
0x12e7   : > { %16153 = vmatpush3.msra.mxu0 %v14725_v53 }
0x12e8   : > { %16154 = vmatprep.subr.mxu0 %v17659_v0 }
0x12e9   : > { %16155 = vmatpush3.msra.mxu0 %v14724_v54 }
0x12ea   : > { %16157 = vmatmul.mubr.msk.f32.vlgmr.msra.gmra.mxu0 %vm1571_vm1, %v18320_v50  ;;  %16159 = vmatprep.subr.mxu0 %v17659_v0 }
0x12eb   : > { %16160 = vmatpush3.msra.mxu0 %v14734_v55  ;;  %16167 = vmatprep.mubr.msk.f32.mxu0 %vm17660_vm0, %v17659_v0 }
0x12ec   : > { %16161 = vmatprep.subr.mxu0 %v17659_v0 }
0x12ed   : > { %16162 = vmatpush3.msra.mxu0 %v14733_v56  ;;  %v14766_v56 = vld [vmem:[%s19827_s14 + $0x28] sm:$0xff] }
0x12ee   : > { %16163 = vmatprep.subr.mxu0 %v17659_v0 }
0x12ef   : > { %16164 = vmatpush3.msra.mxu0 %v14732_v57 }
0x12f0   : > { %16165 = vmatprep.subr.mxu0 %v17659_v0 }
0x12f1   : > { %16166 = vmatpush3.msra.mxu0 %v14731_v7 }
0x12f2   : > { %16168 = vmatmul.mubr.msk.f32.vlgmr.msra.gmra.mxu0 %vm1571_vm1, %v18320_v50  ;;  %16170 = vmatprep.subr.mxu0 %v17659_v0 }
0x12f3   : > { %16172 = vmatprep.mubr.msk.f32.mxu0 %vm17660_vm0, %v17659_v0 }
0x13a2   : > { %v3829_v58 = vpop.f32.mrf.mxu0 }
0x13a3   : > { %v3830_v2 = vadd.f32 %v14722_v62, %v3829_v58  ;;  %v14777_v62 = vld [vmem:[%s19821_s25 + $0xc8] sm:$0xff] }
0x13a4   : > { %v16147_v59 = vpop.f32.mrf.mxu0 }
0x13a5   : > { %v14741_v59 = vld [vmem:[%s19827_s14 + $0x20] sm:$0xff] }
0x13aa   : > { %v3912_v61 = vpop.f32.mrf.mxu0 }
0x13ab   : > { %v3913_v63 = vadd.f32 %v14729_v60, %v3912_v61  ;;  %v14779_v60 = vld [vmem:[%s19821_s25 + $0xd8] sm:$0xff]  ;;  %v14778_v61 = vld [vmem:[%s19821_s25 + $0xd0] sm:$0xff] }
0x13ac   : > { %v16158_v1 = vpop.f32.mrf.mxu0 }
0x13ad   : > { %16171 = vmatpush3.xpose.msk.msra.mxu0 %vm1807_vm2, %v3913_v63  ;;  %v14776_v63 = vld [vmem:[%s19821_s25 + $0xc0] sm:$0xff]  ;;  %v14772_v1 = vld [vmem:[%s19826_s17 + $0xd8] sm:$0xff] }
0x13ae   : > { %16180 = vmatprep.subr.mxu0 %v17659_v0 }
0x13b0   : > { %16173 = vmatmul.mubr.msk.f32.vlgmr.msra.gmra.mxu0 %vm1807_vm2, %v3830_v2 }
0x13b1   : > { %16181 = vmatpush3.msra.mxu0 %v14745_v3  ;;  %16188 = vmatprep.mubr.msk.f32.mxu0 %vm17660_vm0, %v17659_v0  ;;  %v14771_v3 = vld [vmem:[%s19826_s17 + $0xd0] sm:$0xff] }
0x13b2   : > { %v3995_v6 = vpop.f32.mrf.mxu0  ;;  %16182 = vmatprep.subr.mxu0 %v17659_v0 }
0x13b3   : > { %v3996_v9 = vadd.f32 %v14736_v4, %v3995_v6  ;;  %16183 = vmatpush3.msra.mxu0 %v14744_v5  ;;  %v14770_v5 = vld [vmem:[%s19826_s17 + $0xc8] sm:$0xff] }
0x13b4   : > { %v16169_v10 = vpop.f32.mrf.mxu0  ;;  %16184 = vmatprep.subr.mxu0 %v17659_v0 }
0x13b5   : > { %16176 = vmatpush3.msra.mxu1 %v3996_v9  ;;  %16185 = vmatpush3.msra.mxu0 %v14743_v8  ;;  %v14769_v8 = vld [vmem:[%s19826_s17 + $0xc0] sm:$0xff]  ;;  %v14786_v10 = vld [vmem:[%s19831_s3 + $0xd8] sm:$0xff] }
0x13b6   : > { %16186 = vmatprep.subr.mxu0 %v17659_v0  ;;  %16191 = vmatprep.subr.mxu1 %v17659_v0 }
0x13b7   : > { %16187 = vmatpush3.msra.mxu0 %v14742_v11  ;;  %v14785_v11 = vld [vmem:[%s19831_s3 + $0xd0] sm:$0xff] }
0x13b8   : > { %16189 = vmatmul.mubr.msk.f32.vlgmr.msra.gmra.mxu0 %vm1571_vm1, %v18320_v50  ;;  %16202 = vmatprep.subr.mxu0 %v17659_v0 }
0x13b9   : > { %16203 = vmatpush3.msra.mxu0 %v14759_v12  ;;  %16210 = vmatprep.mubr.msk.f32.mxu0 %vm17660_vm0, %v17659_v0  ;;  %v14781_v12 = vld [vmem:[%s19820_s29 + $0x6] ss:$0 sm:$0xff] }
0x13ba   : > { %16204 = vmatprep.subr.mxu0 %v17659_v0 }
0x13bb   : > { %16205 = vmatpush3.msra.mxu0 %v14758_v13  ;;  %v14784_v13 = vld [vmem:[%s19831_s3 + $0xc8] sm:$0xff] }
0x13bc   : > { %16206 = vmatprep.subr.mxu0 %v17659_v0 }
0x13bd   : > { %16207 = vmatpush3.msra.mxu0 %v14757_v14 }
0x13be   : > { %16208 = vmatprep.subr.mxu0 %v17659_v0 }
0x13bf   : > { %16209 = vmatpush3.msra.mxu0 %v14756_v15 }
0x13c0   : > { %16211 = vmatmul.mubr.msk.f32.vlgmr.msra.gmra.mxu0 %vm1571_vm1, %v18320_v50  ;;  %16223 = vmatprep.subr.mxu0 %v17659_v0 }
0x13c1   : > { %16225 = vmatprep.mubr.msk.f32.mxu0 %vm17660_vm0, %v17659_v0  ;;  %16224 = vmatpush3.msra.mxu0 %v14766_v56 }
0x13c2   : > { %16233 = vmatprep.subr.mxu0 %v17659_v0 }
0x1470   : > { %v4071_v16 = vpop.f32.mrf.mxu0 }
0x1471   : > { %v4075_v17 = vmul.f32 0.35355338, %v4071_v16  ;;  %v14783_v16 = vld [vmem:[%s19831_s3 + $0xc0] sm:$0xff] }
0x1472   : > { %v16174_v18 = vpop.f32.mrf.mxu0 }
0x1473   : > { %v4076_v19 = vsel %vm1807_vm2, %v4075_v17, -inf }
0x1474   : > { %4077 = vmax.xlane.f32.xlu0 %v4076_v19 }
0x1478   : > { %v4241_v20 = vpop.f32.mrf.mxu0 }
0x1479   : > { %v4242_v44 = vadd.f32 %v14747_v40, %v4241_v20  ;;  %v14774_v20 = vld [vmem:[%s19823_s21 + $0x6] ss:$0 sm:$0xff] }
0x147a   : > { %v16190_v21 = vpop.f32.mrf.mxu0 }
0x1480   : > { %v4407_v22 = vpop.f32.mrf.mxu0 }
0x1481   : > { %v4408_v45 = vadd.f32 %v14761_v42, %v4407_v22  ;;  %v14797_v42 = vld [vmem:[%s19826_s17 + $0xf0] sm:$0xff] }
0x1482   : > { %v16212_v23 = vpop.f32.mrf.mxu0 }
0x14fd   : > { %v4078_v24 = vpop.xlane.xlu0 %4077 }
0x14fe   : > { %v4079_v25 = vsub.f32 %v4075_v17, %v4078_v24  ;;  %v14788_v24 = vld [vmem:[%s19829_s8 + $0x6] ss:$0 sm:$0xff] }
0x1500   : > { %v4080_v26 = vmul.f32 1.442695, %v4079_v25 }
0x1502   : > { %17379 = vpow2.f32 %v4080_v26 }
0x150f   : > { %v17380_v27 = vpop.eup %17379 }
0x1510   : > { %v4082_v28 = vsel %vm1807_vm2, %v17380_v27, 0.0 }
0x1511   : > { %4083 = vadd.xlane.f32.xlu1 %v4082_v28 }
0x159a   : > { %v4084_v29 = vpop.xlane.xlu1 %4083 }
0x159b   : > { %17381 = vrcp.f32 %v4084_v29 }
0x15a8   : > { %v17382_v30 = vpop.eup %17381 }
0x15a9   : > { %v4086_v31 = vmul.f32 %v17382_v30, %v17380_v27 }
0x15ab   : > { %16178 = vmatmul.mubr.msk.f32.vlgmr.msra.gmra.mxu1 %vm1807_vm2, %v4086_v31 }
0x15ac   : > { %16192 = vmatpush3.msra.mxu1 %v14752_v32  ;;  %16199 = vmatprep.mubr.msk.f32.mxu1 %vm17660_vm0, %v17659_v0 }
0x15ad   : > { %16193 = vmatprep.subr.mxu1 %v17659_v0 }
0x15ae   : > { %16194 = vmatpush3.msra.mxu1 %v14751_v33 }
0x15af   : > { %16195 = vmatprep.subr.mxu1 %v17659_v0 }
0x15b0   : > { %16196 = vmatpush3.msra.mxu1 %v14750_v34 }
0x15b1   : > { %16197 = vmatprep.subr.mxu1 %v17659_v0 }
0x15b2   : > { %16198 = vmatpush3.msra.mxu1 %v14749_v35 }
0x15b3   : > { %16200 = vmatmul.mubr.msk.f32.vlgmr.msra.gmra.mxu1 %vm1571_vm1, %v18320_v50  ;;  %16213 = vmatprep.subr.mxu1 %v17659_v0 }
0x15b4   : > { %16215 = vmatprep.mubr.msk.f32.mxu1 %vm17660_vm0, %v17659_v0 }
0x166b   : > { %v4156_v36 = vpop.f32.mrf.mxu1 }
0x166d   : > { %v16179_v37 = vpop.f32.mrf.mxu1 }
0x166e   : > { %v14793_v37 = vld [vmem:[%s19827_s14 + $0x30] sm:$0xff] }
0x1673   : > { %v4324_v39 = vpop.f32.mrf.mxu1 }
0x1674   : > { %v4325_v41 = vadd.f32 %v14754_v38, %v4324_v39 }
0x1675   : > { %v16201_v43 = vpop.f32.mrf.mxu1 }
0x1676   : > { %16214 = vmatpush3.xpose.msk.msra.mxu1 %vm1807_vm2, %v4325_v41  ;;  %v14798_v41 = vld [vmem:[%s19826_s17 + $0xf8] sm:$0xff]  ;;  %v14796_v43 = vld [vmem:[%s19826_s17 + $0xe8] sm:$0xff] }
0x1677   : > { %16218 = vmatprep.subr.mxu1 %v17659_v0 }
0x1679   : > { %16216 = vmatmul.mubr.msk.f32.vlgmr.msra.gmra.mxu1 %vm1807_vm2, %v4242_v44  ;;  %v14795_v44 = vld [vmem:[%s19826_s17 + $0xe0] sm:$0xff] }
0x167a   : > { %16219 = vmatpush3.msra.mxu1 %v4408_v45  ;;  %16220 = vmatprep.mubr.msk.f32.mxu1 %vm17660_vm0, %v17659_v0  ;;  %v14812_v45 = vld [vmem:[%s19831_s3 + $0xf8] sm:$0xff] }
0x167b   : > { %16228 = vmatprep.subr.mxu1 %v17659_v0 }
0x1739   : > { %v4483_v46 = vpop.f32.mrf.mxu1 }
0x173a   : > { %v4487_v47 = vmul.f32 0.35355338, %v4483_v46  ;;  %v14811_v46 = vld [vmem:[%s19831_s3 + $0xf0] sm:$0xff] }
0x173b   : > { %v16217_v48 = vpop.f32.mrf.mxu1 }
0x173c   : > { %v4488_v49 = vsel %vm1807_vm2, %v4487_v47, -inf  ;;  %v14809_v48 = vld [vmem:[%s19831_s3 + $0xe0] sm:$0xff] }
0x173d   : > { %4489 = vmax.xlane.f32.xlu0 %v4488_v49  ;;  %v14805_v49 = vld [vmem:[%s19821_s25 + $0xf8] sm:$0xff] }
0x17c6   : > { %v4490_v51 = vpop.xlane.xlu0 %4489 }
0x17c7   : > { %v4491_v52 = vsub.f32 %v4487_v47, %v4490_v51  ;;  %v14810_v47 = vld [vmem:[%s19831_s3 + $0xe8] sm:$0xff]  ;;  %s19857_s3 = sld [smem:[#allocation32_spill]] }
0x17c9   : > { %v4492_v53 = vmul.f32 1.442695, %v4491_v52  ;;  %v14804_v52 = vld [vmem:[%s19821_s25 + $0xf0] sm:$0xff] }
0x17cb   : > { %17383 = vpow2.f32 %v4492_v53 }
0x17d8   : > { %v17384_v54 = vpop.eup %17383 }
0x17d9   : > { %v4494_v55 = vsel %vm1807_vm2, %v17384_v54, 0.0 }
0x17da   : > { %4495 = vadd.xlane.f32.xlu1 %v4494_v55  ;;  %v14802_v55 = vld [vmem:[%s19821_s25 + $0xe0] sm:$0xff] }
0x1863   : > { %v4496_v57 = vpop.xlane.xlu1 %4495 }
0x1864   : > { %17385 = vrcp.f32 %v4496_v57 }
0x1871   : > { %v17386_v7 = vpop.eup %17385 }
0x1872   : > { %v4498_v58 = vmul.f32 %v17386_v7, %v17384_v54  ;;  %v14803_v54 = vld [vmem:[%s19821_s25 + $0xe8] sm:$0xff]  ;;  %s19885_s25 = sld [smem:[#allocation52_spill]] }
0x1874   : > { %16221 = vmatmul.mubr.msk.f32.vlgmr.msra.gmra.mxu1 %vm1807_vm2, %v4498_v58 }
0x1875   : > { %16229 = vmatpush3.msra.mxu1 %v14741_v59  ;;  %16230 = vmatprep.mubr.msk.f32.mxu1 %vm17660_vm0, %v17659_v0 }
0x1876   : > { %16244 = vmatprep.subr.mxu1 %v17659_v0 }
0x1878   : > { %16231 = vmatmul.mubr.msk.f32.vlgmr.msra.gmra.mxu1 %vm1807_vm2, %v4156_v36 }
0x1879   : > { %16245 = vmatpush3.msra.mxu1 %v14779_v60  ;;  %16252 = vmatprep.mubr.msk.f32.mxu1 %vm17660_vm0, %v17659_v0 }
0x187a   : > { %16246 = vmatprep.subr.mxu1 %v17659_v0 }
0x187b   : > { %16247 = vmatpush3.msra.mxu1 %v14778_v61 }
0x187c   : > { %16248 = vmatprep.subr.mxu1 %v17659_v0 }
0x187d   : > { %16249 = vmatpush3.msra.mxu1 %v14777_v62 }
0x187e   : > { %16250 = vmatprep.subr.mxu1 %v17659_v0 }
0x187f   : > { %16251 = vmatpush3.msra.mxu1 %v14776_v63  ;;  %v14807_v63 = vld [vmem:[%s19820_s29 + $0x7] ss:$0 sm:$0xff]  ;;  %s19888_s29 = sld [smem:[#allocation49_spill]] }
0x1880   : > { %16253 = vmatmul.mubr.msk.f32.vlgmr.msra.gmra.mxu1 %vm1571_vm1, %v18320_v50  ;;  %16266 = vmatprep.subr.mxu1 %v17659_v0 }
0x1881   : > { %16268 = vmatprep.mubr.msk.f32.mxu1 %vm17660_vm0, %v17659_v0 }
0x1934   : > { %v4568_v2 = vpop.f32.mrf.mxu1 }
0x1935   : > { %16226 = vmatmul.mubr.msk.f32.vlgmr.msra.gmra.mxu0 %vm1807_vm2, %v4568_v2  ;;  %v14800_v2 = vld [vmem:[%s19823_s21 + $0x7] ss:$0 sm:$0xff] }
0x1936   : > { %16234 = vmatpush3.msra.mxu0 %v14772_v1  ;;  %v16222_v4 = vpop.f32.mrf.mxu1  ;;  %16241 = vmatprep.mubr.msk.f32.mxu0 %vm17660_vm0, %v17659_v0 }
0x1937   : > { %16235 = vmatprep.subr.mxu0 %v17659_v0  ;;  %v14814_v4 = vld [vmem:[%s19829_s8 + $0x7] ss:$0 sm:$0xff] }
0x1938   : > { %16236 = vmatpush3.msra.mxu0 %v14771_v3  ;;  %v18440_v6 = vpop.f32.mrf.mxu1 }
0x1939   : > { %16237 = vmatprep.subr.mxu0 %v17659_v0 }
0x193a   : > { %16238 = vmatpush3.msra.mxu0 %v14770_v5  ;;  %v16232_v9 = vpop.f32.mrf.mxu1 }
0x193b   : > { %16239 = vmatprep.subr.mxu0 %v17659_v0 }
0x193c   : > { %16240 = vmatpush3.msra.mxu0 %v14769_v8 }
0x193d   : > { %16242 = vmatmul.mubr.msk.f32.vlgmr.msra.gmra.mxu0 %vm1571_vm1, %v18320_v50  ;;  %16255 = vmatprep.subr.mxu0 %v17659_v0 }
0x193e   : > { %16256 = vmatpush3.msra.mxu0 %v14786_v10  ;;  %16263 = vmatprep.mubr.msk.f32.mxu0 %vm17660_vm0, %v17659_v0 }
0x193f   : > { %16257 = vmatprep.subr.mxu0 %v17659_v0 }
0x1940   : > { %v4882_v14 = vpop.f32.mrf.mxu1  ;;  %16258 = vmatpush3.msra.mxu0 %v14785_v11 }
0x1941   : > { %v4883_v15 = vadd.f32 %v14781_v12, %v4882_v14  ;;  %16259 = vmatprep.subr.mxu0 %v17659_v0 }
0x1942   : > { %v16254_v17 = vpop.f32.mrf.mxu1  ;;  %16260 = vmatpush3.msra.mxu0 %v14784_v13 }
0x1943   : > { %16261 = vmatprep.subr.mxu0 %v17659_v0  ;;  %16267 = vmatpush3.xpose.msk.msra.mxu1 %vm1807_vm2, %v4883_v15 }
0x1944   : > { %16262 = vmatpush3.msra.mxu0 %v14783_v16  ;;  %16271 = vmatprep.subr.mxu1 %v17659_v0 }
0x1945   : > { %16264 = vmatmul.mubr.msk.f32.vlgmr.msra.gmra.mxu0 %vm1571_vm1, %v18320_v50  ;;  %16276 = vmatprep.subr.mxu0 %v17659_v0 }
0x1946   : > { %16278 = vmatprep.mubr.msk.f32.mxu0 %vm17660_vm0, %v17659_v0  ;;  %16277 = vmatpush3.msra.mxu0 %v14793_v37  ;;  %v14829_v37 = vld [vmem:[%s19830_s6 + $0x30] sm:$0xff] }
0x1947   : > { %16292 = vmatprep.subr.mxu0 %v17659_v0 }
0x19f5   : > { %v18465_v18 = vpop.f32.mrf.mxu0 }
0x19f6   : > { %v4717_v59 = vadd.f32 %v18440_v6, %v18465_v18  ;;  %v14819_v18 = vld [vmem:[%s19827_s14 + $0x38] sm:$0xff]  ;;  %s19871_s14 = sld [smem:[#allocation43_spill]] }
0x19f7   : > { %v16227_v19 = vpop.f32.mrf.mxu0 }
0x19fd   : > { %v4799_v21 = vpop.f32.mrf.mxu0 }
0x19fe   : > { %v4800_v22 = vadd.f32 %v14774_v20, %v4799_v21 }
0x19ff   : > { %v16243_v23 = vpop.f32.mrf.mxu0 }
0x1a00   : > { %16269 = vmatmul.mubr.msk.f32.vlgmr.msra.gmra.mxu1 %vm1807_vm2, %v4800_v22 }
0x1a01   : > { %16273 = vmatprep.mubr.msk.f32.mxu1 %vm17660_vm0, %v17659_v0 }
0x1a05   : > { %v4965_v25 = vpop.f32.mrf.mxu0 }
0x1a06   : > { %v4966_v26 = vadd.f32 %v14788_v24, %v4965_v25  ;;  %v14822_v25 = vld [vmem:[%s19825_s19 + $0x1] ss:$0 sm:$0xff]  ;;  %s19879_s19 = sld [smem:[#allocation45_spill]] }
0x1a07   : > { %v16265_v27 = vpop.f32.mrf.mxu0 }
0x1a08   : > { %16272 = vmatpush3.msra.mxu1 %v4966_v26 }
0x1a09   : > { %16281 = vmatprep.subr.mxu1 %v17659_v0 }
0x1ac0   : > { %v5041_v28 = vpop.f32.mrf.mxu1 }
0x1ac1   : > { %v5045_v29 = vmul.f32 0.35355338, %v5041_v28 }
0x1ac2   : > { %v16270_v30 = vpop.f32.mrf.mxu1 }
0x1ac3   : > { %v5046_v31 = vsel %vm1807_vm2, %v5045_v29, -inf }
0x1ac4   : > { %5047 = vmax.xlane.f32.xlu0 %v5046_v31 }
0x1b4d   : > { %v5048_v32 = vpop.xlane.xlu0 %5047 }
0x1b4e   : > { %v5049_v33 = vsub.f32 %v5045_v29, %v5048_v32 }
0x1b50   : > { %v5050_v34 = vmul.f32 1.442695, %v5049_v33 }
0x1b52   : > { %17387 = vpow2.f32 %v5050_v34 }
0x1b5f   : > { %v17388_v35 = vpop.eup %17387 }
0x1b60   : > { %v5052_v36 = vsel %vm1807_vm2, %v17388_v35, 0.0 }
0x1b61   : > { %5053 = vadd.xlane.f32.xlu1 %v5052_v36  ;;  %v14830_v36 = vld [vmem:[%s19830_s6 + $0x38] sm:$0xff] }
0x1bea   : > { %v5054_v38 = vpop.xlane.xlu1 %5053 }
0x1beb   : > { %17389 = vrcp.f32 %v5054_v38  ;;  %v14827_v38 = vld [vmem:[%s19830_s6 + $0x20] sm:$0xff] }
0x1bf8   : > { %v17390_v39 = vpop.eup %17389 }
0x1bf9   : > { %v5056_v40 = vmul.f32 %v17390_v39, %v17388_v35  ;;  %v14847_v39 = vld [vmem:[%s19824_s20 + $0xf8] sm:$0xff] }
0x1bfb   : > { %16274 = vmatmul.mubr.msk.f32.vlgmr.msra.gmra.mxu1 %vm1807_vm2, %v5056_v40  ;;  %v14846_v40 = vld [vmem:[%s19824_s20 + $0xf0] sm:$0xff] }
0x1bfc   : > { %16282 = vmatpush3.msra.mxu1 %v14798_v41  ;;  %16289 = vmatprep.mubr.msk.f32.mxu1 %vm17660_vm0, %v17659_v0  ;;  %v14845_v41 = vld [vmem:[%s19824_s20 + $0xe8] sm:$0xff] }
0x1bfd   : > { %16283 = vmatprep.subr.mxu1 %v17659_v0 }
0x1bfe   : > { %16284 = vmatpush3.msra.mxu1 %v14797_v42  ;;  %v14844_v42 = vld [vmem:[%s19824_s20 + $0xe0] sm:$0xff] }
0x1bff   : > { %16285 = vmatprep.subr.mxu1 %v17659_v0 }
0x1c00   : > { %16286 = vmatpush3.msra.mxu1 %v14796_v43  ;;  %v14843_v43 = vld [vmem:[%s19824_s20 + $0xd8] sm:$0xff] }
0x1c01   : > { %16287 = vmatprep.subr.mxu1 %v17659_v0 }
0x1c02   : > { %16288 = vmatpush3.msra.mxu1 %v14795_v44  ;;  %v14842_v44 = vld [vmem:[%s19824_s20 + $0xd0] sm:$0xff] }
0x1c03   : > { %16290 = vmatmul.mubr.msk.f32.vlgmr.msra.gmra.mxu1 %vm1571_vm1, %v18320_v50  ;;  %16303 = vmatprep.subr.mxu1 %v17659_v0 }
0x1c04   : > { %16304 = vmatpush3.msra.mxu1 %v14812_v45  ;;  %16311 = vmatprep.mubr.msk.f32.mxu1 %vm17660_vm0, %v17659_v0  ;;  %v14841_v45 = vld [vmem:[%s19824_s20 + $0xc8] sm:$0xff] }
0x1c05   : > { %16305 = vmatprep.subr.mxu1 %v17659_v0 }
0x1c06   : > { %16306 = vmatpush3.msra.mxu1 %v14811_v46  ;;  %v14840_v46 = vld [vmem:[%s19824_s20 + $0xc0] sm:$0xff] }
0x1c07   : > { %16307 = vmatprep.subr.mxu1 %v17659_v0 }
0x1c08   : > { %16308 = vmatpush3.msra.mxu1 %v14810_v47  ;;  %v14839_v47 = vld [vmem:[%s19824_s20 + $0xb8] sm:$0xff] }
0x1c09   : > { %16309 = vmatprep.subr.mxu1 %v17659_v0 }
0x1c0a   : > { %16310 = vmatpush3.msra.mxu1 %v14809_v48  ;;  %v14838_v48 = vld [vmem:[%s19824_s20 + $0xb0] sm:$0xff] }
0x1c0b   : > { %16312 = vmatmul.mubr.msk.f32.vlgmr.msra.gmra.mxu1 %vm1571_vm1, %v18320_v50  ;;  %16324 = vmatprep.subr.mxu1 %v17659_v0 }
0x1c0c   : > { %16326 = vmatprep.mubr.msk.f32.mxu1 %vm17660_vm0, %v17659_v0  ;;  %16325 = vmatpush3.msra.mxu1 %v14819_v18 }
0x1c0d   : > { %16340 = vmatprep.subr.mxu1 %v17659_v0 }
0x1cbb   : > { %v5126_v51 = vpop.f32.mrf.mxu1 }
0x1cbc   : > { %16279 = vmatmul.mubr.msk.f32.vlgmr.msra.gmra.mxu0 %vm1807_vm2, %v5126_v51  ;;  %v14836_v51 = vld [vmem:[%s19824_s20 + $0xa0] sm:$0xff] }
0x1cbd   : > { %16293 = vmatpush3.msra.mxu0 %v14805_v49  ;;  %v16275_v53 = vpop.f32.mrf.mxu1  ;;  %16300 = vmatprep.mubr.msk.f32.mxu0 %vm17660_vm0, %v17659_v0  ;;  %v14837_v49 = vld [vmem:[%s19824_s20 + $0xa8] sm:$0xff] }
0x1cbe   : > { %16294 = vmatprep.subr.mxu0 %v17659_v0 }
0x1cbf   : > { %16295 = vmatpush3.msra.mxu0 %v14804_v52  ;;  %v14835_v52 = vld [vmem:[%s19824_s20 + $0x98] sm:$0xff] }
0x1cc0   : > { %16296 = vmatprep.subr.mxu0 %v17659_v0 }
0x1cc1   : > { %16297 = vmatpush3.msra.mxu0 %v14803_v54 }
0x1cc2   : > { %16298 = vmatprep.subr.mxu0 %v17659_v0 }
0x1cc3   : > { %v5285_v56 = vpop.f32.mrf.mxu1  ;;  %16299 = vmatpush3.msra.mxu0 %v14802_v55 }
0x1cc4   : > { %16301 = vmatmul.mubr.msk.f32.vlgmr.msra.gmra.mxu0 %vm1571_vm1, %v18320_v50  ;;  %16314 = vmatprep.subr.mxu0 %v17659_v0  ;;  %v5286_v8 = vadd.f32 %v14800_v2, %v5285_v56  ;;  %v5978_v2 = vld [vmem:[%s19855_s7] sm:$0xff] }
0x1cc5   : > { %v16291_v57 = vpop.f32.mrf.mxu1  ;;  %16316 = vmatprep.mubr.msk.f32.mxu0 %vm17660_vm0, %v17659_v0 }
0x1cc6   : > { %v14825_v57 = vld [vmem:[%s19822_s24 + $0x1] ss:$0 sm:$0xff]  ;;  %s19884_s24 = sld [smem:[#allocation50_spill]] }
0x1ccb   : > { %v5451_v7 = vpop.f32.mrf.mxu1 }
0x1ccc   : > { %v5452_v9 = vadd.f32 %v14814_v4, %v5451_v7 }
0x1ccd   : > { %v16313_v58 = vpop.f32.mrf.mxu1 }
0x1cce   : > { %v14826_v58 = vld [vmem:[%s19819_s30 + $0x1] ss:$0 sm:$0xff]  ;;  %s19889_s30 = sld [smem:[#allocation51_spill]] }
0x1d7c   : > { %v5201_v60 = vpop.f32.mrf.mxu0 }
0x1d7d   : > { %v5205_v61 = vadd.f32 %v5201_v60, %v4717_v59 }
0x1d7e   : > { %v16280_v62 = vpop.f32.mrf.mxu0 }
0x1d7f   : > { %v5980_v62 = vld [vmem:[%s19855_s7 + $0x10] sm:$0xff] }
0x1d84   : > { %v5368_v1 = vpop.f32.mrf.mxu0 }
0x1d85   : > { %v5369_v3 = vadd.f32 %v14807_v63, %v5368_v1  ;;  %v5976_v63 = vld [vmem:[%s1556_s5] sm:$0xff]  ;;  %v5979_v1 = vld [vmem:[%s19855_s7 + $0x8] sm:$0xff]  ;;  %s19858_s5 = sld [smem:[#allocation34_spill]] }
0x1d86   : > { %v16302_v5 = vpop.f32.mrf.mxu0 }
0x1d87   : > { %16315 = vmatpush3.xpose.msk.msra.mxu0 %vm1807_vm2, %v5369_v3  ;;  %v17483_v3 = vld [vmem:[%s19828_s13] sm:$0xff]  ;;  %v6065_v5 = vld [vmem:[%s19857_s3 + $0x18] sm:$0xff] }
0x1d88   : > { %16319 = vmatprep.subr.mxu0 %v17659_v0  ;;  %v18596_v4 = vadd.f32 %v17483_v3, %v5976_v63 }
0x1d8a   : > { %16317 = vmatmul.mubr.msk.f32.vlgmr.msra.gmra.mxu0 %vm1807_vm2, %v5286_v8  ;;  %v6064_v8 = vld [vmem:[%s19857_s3 + $0x10] sm:$0xff] }
0x1d8b   : > { %16320 = vmatpush3.msra.mxu0 %v5452_v9  ;;  %16321 = vmatprep.mubr.msk.f32.mxu0 %vm17660_vm0, %v17659_v0  ;;  %v6063_v9 = vld [vmem:[%s19857_s3 + $0x8] sm:$0xff]  ;;  %v14884_v3 = vld [vmem:[%s19858_s5 + $0x38] sm:$0xff] }
0x1d8c   : > { %16329 = vmatprep.subr.mxu0 %v17659_v0 }
0x1e4a   : > { %v5527_v6 = vpop.f32.mrf.mxu0 }
0x1e4b   : > { %v5531_v10 = vmul.f32 0.35355338, %v5527_v6  ;;  %v6062_v6 = vld [vmem:[%s19857_s3] sm:$0xff] }
0x1e4c   : > { %v16318_v11 = vpop.f32.mrf.mxu0 }
0x1e4d   : > { %v5532_v12 = vsel %vm1807_vm2, %v5531_v10, -inf  ;;  %v14833_v11 = vld [vmem:[%s19824_s20 + $0x88] sm:$0xff] }
0x1e4e   : > { %5533 = vmax.xlane.f32.xlu0 %v5532_v12  ;;  %v14832_v12 = vld [vmem:[%s19824_s20 + $0x80] sm:$0xff] }
0x1ed7   : > { %v5534_v13 = vpop.xlane.xlu0 %5533 }
0x1ed8   : > { %v5535_v14 = vsub.f32 %v5531_v10, %v5534_v13  ;;  %v14834_v10 = vld [vmem:[%s19824_s20 + $0x90] sm:$0xff]  ;;  %v6146_v13 = vld [vmem:[%s19858_s5 + $0x18] sm:$0xff] }
0x1eda   : > { %v5536_v15 = vmul.f32 1.442695, %v5535_v14  ;;  %v6145_v14 = vld [vmem:[%s19858_s5 + $0x10] sm:$0xff] }
0x1edc   : > { %17391 = vpow2.f32 %v5536_v15  ;;  %v6144_v15 = vld [vmem:[%s19858_s5 + $0x8] sm:$0xff] }
0x1ee9   : > { %v17392_v16 = vpop.eup %17391 }
0x1eea   : > { %v5538_v17 = vsel %vm1807_vm2, %v17392_v16, 0.0 }
0x1eeb   : > { %5539 = vadd.xlane.f32.xlu1 %v5538_v17  ;;  %v14849_v17 = vld [vmem:[%s19851_s16 + $0x1] ss:$0 sm:$0xff]  ;;  %s19872_s16 = sld [smem:[#allocation40_spill]] }
0x1f74   : > { %v5540_v19 = vpop.xlane.xlu1 %5539 }
0x1f75   : > { %17393 = vrcp.f32 %v5540_v19 }
0x1f82   : > { %v17394_v20 = vpop.eup %17393 }
0x1f83   : > { %v5542_v21 = vmul.f32 %v17394_v20, %v17392_v16  ;;  %v6143_v16 = vld [vmem:[%s19858_s5] sm:$0xff] }
0x1f85   : > { %16322 = vmatmul.mubr.msk.f32.vlgmr.msra.gmra.mxu0 %vm1807_vm2, %v5542_v21 }
0x1f86   : > { %16337 = vmatprep.mubr.msk.f32.mxu0 %vm17660_vm0, %v17659_v0  ;;  %16330 = vmatpush3.msra.mxu0 %v14830_v36 }
0x1f87   : > { %16331 = vmatprep.subr.mxu0 %v17659_v0 }
0x1f88   : > { %16332 = vmatpush3.msra.mxu0 %v14829_v37 }
0x1f89   : > { %16333 = vmatprep.subr.mxu0 %v17659_v0 }
0x2045   : > { %v5612_v22 = vpop.f32.mrf.mxu0 }
0x2046   : > { %16327 = vmatmul.mubr.msk.f32.vlgmr.msra.gmra.mxu1 %vm1807_vm2, %v5612_v22 }
0x2047   : > { %v16323_v23 = vpop.f32.mrf.mxu0  ;;  %16372 = vmatprep.mubr.msk.f32.mxu1 %vm17660_vm0, %v17659_v0  ;;  %16341 = vmatpush3.msra.mxu1 %v14847_v39 }
0x2048   : > { %16342 = vmatprep.subr.mxu1 %v17659_v0 }
0x2049   : > { %16343 = vmatpush3.msra.mxu1 %v14846_v40 }
0x204a   : > { %16344 = vmatprep.subr.mxu1 %v17659_v0 }
0x204b   : > { %16345 = vmatpush3.msra.mxu1 %v14845_v41 }
0x204c   : > { %16346 = vmatprep.subr.mxu1 %v17659_v0 }
0x204d   : > { %16347 = vmatpush3.msra.mxu1 %v14844_v42 }
0x204e   : > { %16348 = vmatprep.subr.mxu1 %v17659_v0 }
0x204f   : > { %16349 = vmatpush3.msra.mxu1 %v14843_v43 }
0x2050   : > { %16350 = vmatprep.subr.mxu1 %v17659_v0 }
0x2051   : > { %16351 = vmatpush3.msra.mxu1 %v14842_v44  ;;  %v14870_v44 = vld [vmem:[%s19855_s7 + $0x38] sm:$0xff] }
0x2052   : > { %16352 = vmatprep.subr.mxu1 %v17659_v0 }
0x2053   : > { %16353 = vmatpush3.msra.mxu1 %v14841_v45  ;;  %v14869_v45 = vld [vmem:[%s19855_s7 + $0x30] sm:$0xff] }
0x2054   : > { %16354 = vmatprep.subr.mxu1 %v17659_v0 }
0x2055   : > { %16355 = vmatpush3.msra.mxu1 %v14840_v46  ;;  %v14868_v46 = vld [vmem:[%s19855_s7 + $0x28] sm:$0xff] }
0x2056   : > { %16356 = vmatprep.subr.mxu1 %v17659_v0 }
0x2057   : > { %16357 = vmatpush3.msra.mxu1 %v14839_v47  ;;  %v14867_v47 = vld [vmem:[%s19855_s7 + $0x20] sm:$0xff] }
0x2058   : > { %16358 = vmatprep.subr.mxu1 %v17659_v0 }
0x2059   : > { %16359 = vmatpush3.msra.mxu1 %v14838_v48 }
0x205a   : > { %16360 = vmatprep.subr.mxu1 %v17659_v0 }
0x205b   : > { %16361 = vmatpush3.msra.mxu1 %v14837_v49 }
0x205c   : > { %16362 = vmatprep.subr.mxu1 %v17659_v0 }
0x205d   : > { %16363 = vmatpush3.msra.mxu1 %v14836_v51 }
0x205e   : > { %16364 = vmatprep.subr.mxu1 %v17659_v0 }
0x205f   : > { %16365 = vmatpush3.msra.mxu1 %v14835_v52  ;;  %v14877_v52 = vld [vmem:[%s19857_s3 + $0x38] sm:$0xff] }
0x2060   : > { %16366 = vmatprep.subr.mxu1 %v17659_v0 }
0x2061   : > { %16367 = vmatpush3.msra.mxu1 %v14834_v10 }
0x2062   : > { %16368 = vmatprep.subr.mxu1 %v17659_v0 }
0x2063   : > { %16369 = vmatpush3.msra.mxu1 %v14833_v11 }
0x2064   : > { %16370 = vmatprep.subr.mxu1 %v17659_v0 }
0x2065   : > { %16371 = vmatpush3.msra.mxu1 %v14832_v12 }
0x2066   : > { %16413 = vmatprep.subr.mxu1 %v17659_v0 }
0x2106   : > { %v5687_v24 = vpop.f32.mrf.mxu1 }
0x2107   : > { %v5691_v26 = vadd.f32 %v5687_v24, %v5205_v61  ;;  %v5981_v61 = vld [vmem:[%s19855_s7 + $0x18] sm:$0xff]  ;;  %v14860_v24 = vld [vmem:[%s19859_s26] ss:$0 sm:$0xff]  ;;  %s19863_s26 = sld [smem:[#allocation36_spill]] }
0x2108   : > { %v16328_v27 = vpop.f32.mrf.mxu1 }
0x2109   : > { %v5700_v28 = vadd.f32 %v14822_v25, %v5691_v26  ;;  %v14858_v26 = vld [vmem:[%s19861_s11] ss:$0 sm:$0xff] }
0x210b   : > { %v5701_v29 = vadd.f32 %v5700_v28, %v18320_v50  ;;  %v14828_v50 = vld [vmem:[%s19830_s6 + $0x28] sm:$0xff]  ;;  %s19862_s6 = sld [smem:[#allocation35_spill]] }
0x210c   : > { %16334 = vmatpush3.msra.mxu0 %v14828_v50 }
0x210d   : > { %v5706_v30 = vsel %vm1571_vm1, %v5701_v29, 0.0  ;;  %16335 = vmatprep.subr.mxu0 %v17659_v0  ;;  %s19864_s8 = smov %s19863_s26 }
0x210e   : > { %5707 = vadd.xlane.f32.xlu0 %v5706_v30  ;;  %16336 = vmatpush3.msra.mxu0 %v14827_v38 }
0x210f   : > { %16375 = vmatprep.subr.mxu0 %v17659_v0 }
0x2111   : > { %v14862_v30 = vld [vmem:[%s19862_s6] ss:$0 sm:$0xff] }
0x2197   : > { %v5708_v31 = vpop.xlane.xlu0 %5707 }
0x2198   : > { %v5709_v32 = vmul.f32 0.03125, %v5708_v31 }
0x219a   : > { %v5710_v33 = vsub.f32 %v5701_v29, %v5709_v32 }
0x219c   : > { %v5711_v34 = vmul.f32 %v5710_v33, %v5710_v33 }
0x219e   : > { %v5712_v35 = vsel %vm1571_vm1, %v5711_v34, 0.0 }
0x219f   : > { %5713 = vadd.xlane.f32.xlu1 %v5712_v35 }
0x2228   : > { %v5714_v53 = vpop.xlane.xlu1 %5713 }
0x2229   : > { %v5715_v54 = vmul.f32 0.03125, %v5714_v53  ;;  %v14876_v53 = vld [vmem:[%s19857_s3 + $0x30] sm:$0xff] }
0x222b   : > { %v5716_v55 = vadd.f32 1e-05, %v5715_v54  ;;  %v14875_v54 = vld [vmem:[%s19857_s3 + $0x28] sm:$0xff] }
0x222d   : > { %17395 = vrsqrt.f32 %v5716_v55  ;;  %v14874_v55 = vld [vmem:[%s19857_s3 + $0x20] sm:$0xff] }
0x223a   : > { %v17396_v56 = vpop.eup %17395 }
0x223b   : > { %v5718_v7 = vmul.f32 %v17396_v56, %v5710_v33 }
0x223d   : > { %v5725_v59 = vmul.f32 %v14825_v57, %v5718_v7 }
0x223f   : > { %v18580_v60 = vadd.f32 %v14826_v58, %v5725_v59  ;;  %v14879_v59 = vld [vmem:[%s19860_s2 + $0x1] ss:$0 sm:$0xff] }
0x2241   : > { %16338 = vmatmul.mubr.msk.f32.vlgmr.msra.gmra.mxu0 %vm1571_vm1, %v18580_v60 }
0x2242   : > { %16376 = vmatpush3.msra.mxu0 %v5981_v61  ;;  %16383 = vmatprep.mubr.msk.f32.mxu0 %vm17660_vm0, %v17659_v0  ;;  %v14872_v61 = vld [vmem:[%s19861_s11 + $0x1] ss:$0 sm:$0xff] }
0x2243   : > { %16377 = vmatprep.subr.mxu0 %v17659_v0 }
0x2244   : > { %16378 = vmatpush3.msra.mxu0 %v5980_v62 }
0x2245   : > { %16379 = vmatprep.subr.mxu0 %v17659_v0 }
0x2246   : > { %16380 = vmatpush3.msra.mxu0 %v5979_v1 }
0x2247   : > { %16381 = vmatprep.subr.mxu0 %v17659_v0 }
0x2248   : > { %16382 = vmatpush3.msra.mxu0 %v5978_v2 }
0x2249   : > { %16384 = vmatmul.mubr.msk.f32.vlgmr.msra.gmra.mxu0 %vm1571_vm1, %v18596_v4  ;;  %16386 = vmatprep.subr.mxu0 %v17659_v0 }
0x224a   : > { %16387 = vmatpush3.msra.mxu0 %v6065_v5  ;;  %16394 = vmatprep.mubr.msk.f32.mxu0 %vm17660_vm0, %v17659_v0  ;;  %v14883_v5 = vld [vmem:[%s19858_s5 + $0x30] sm:$0xff] }
0x224b   : > { %16388 = vmatprep.subr.mxu0 %v17659_v0 }
0x224c   : > { %16389 = vmatpush3.msra.mxu0 %v6064_v8  ;;  %v14882_v8 = vld [vmem:[%s19858_s5 + $0x28] sm:$0xff] }
0x224d   : > { %16390 = vmatprep.subr.mxu0 %v17659_v0 }
0x224e   : > { %16391 = vmatpush3.msra.mxu0 %v6063_v9  ;;  %v14881_v9 = vld [vmem:[%s19858_s5 + $0x20] sm:$0xff] }
0x224f   : > { %16392 = vmatprep.subr.mxu0 %v17659_v0 }
0x2250   : > { %16393 = vmatpush3.msra.mxu0 %v6062_v6 }
0x2251   : > { %16395 = vmatmul.mubr.msk.f32.vlgmr.msra.gmra.mxu0 %vm1571_vm1, %v18596_v4  ;;  %16397 = vmatprep.subr.mxu0 %v17659_v0 }
0x2252   : > { %16405 = vmatprep.mubr.msk.f32.mxu0 %vm17660_vm0, %v17659_v0  ;;  %16398 = vmatpush3.msra.mxu0 %v6146_v13 }
0x2253   : > { %16399 = vmatprep.subr.mxu0 %v17659_v0 }
0x2254   : > { %16400 = vmatpush3.msra.mxu0 %v6145_v14 }
0x2255   : > { %16401 = vmatprep.subr.mxu0 %v17659_v0 }
0x2256   : > { %16402 = vmatpush3.msra.mxu0 %v6144_v15 }
0x2257   : > { %16403 = vmatprep.subr.mxu0 %v17659_v0 }
0x2258   : > { %16404 = vmatpush3.msra.mxu0 %v6143_v16 }
0x2259   : > { %16406 = vmatmul.mubr.msk.f32.vlgmr.msra.gmra.mxu0 %vm1571_vm1, %v18596_v4  ;;  %16408 = vmatprep.subr.mxu0 %v17659_v0 }
0x225a   : > { %16410 = vmatprep.mubr.msk.f32.mxu0 %vm17660_vm0, %v17659_v0 }
0x2301   : > { %v5834_v18 = vpop.f32.mrf.mxu0 }
0x2302   : > { %v5835_v19 = vadd.f32 %v14849_v17, %v5834_v18  ;;  %v14886_v18 = vld [vmem:[%s19862_s6 + $0x1] ss:$0 sm:$0xff] }
0x2303   : > { %v16339_v20 = vpop.f32.mrf.mxu0 }
0x2304   : > { %v5838_v21 = vmax.f32 %v5835_v19, 0.0 }
0x2306   : > { %16373 = vmatmul.mubr.f32.vlgmr.msra.gmra.mxu1 %v5838_v21 }
0x2307   : > { %16415 = vmatprep.mubr.msk.f32.mxu1 %vm17660_vm0, %v17659_v0 }
0x2309   : > { %v6058_v22 = vpop.f32.mrf.mxu0 }
0x230a   : > { %v6059_v29 = vadd.f32 %v14858_v26, %v6058_v22  ;;  %v14891_v22 = vld [vmem:[%s19863_s26 + $0x8] sm:$0xff]  ;;  %v6385_v26 = vld [vmem:[%s19864_s8] sm:$0xff]  ;;  %s19865_s26 = sld [smem:[#allocation42_spill]] }
0x230b   : > { %v16385_v23 = vpop.f32.mrf.mxu0 }
0x2310   : > { %s19866_s9 = smov %s19865_s26 }
0x2311   : > { %v6139_v25 = vpop.f32.mrf.mxu0 }
0x2312   : > { %v6140_v27 = vadd.f32 %v14860_v24, %v6139_v25 }
0x2313   : > { %v16396_v28 = vpop.f32.mrf.mxu0 }
0x2314   : > { %16409 = vmatpush3.xpose.msk.msra.mxu0 %vm1807_vm2, %v6140_v27  ;;  %v14904_v27 = vld [vmem:[%s19857_s3 + $0x58] sm:$0xff]  ;;  %v14903_v28 = vld [vmem:[%s19857_s3 + $0x50] sm:$0xff] }
0x2315   : > { %16418 = vmatprep.subr.mxu0 %v17659_v0 }
0x2317   : > { %16411 = vmatmul.mubr.msk.f32.vlgmr.msra.gmra.mxu0 %vm1807_vm2, %v6059_v29  ;;  %v14902_v29 = vld [vmem:[%s19857_s3 + $0x48] sm:$0xff] }
0x2318   : > { %16426 = vmatprep.mubr.msk.f32.mxu0 %vm17660_vm0, %v17659_v0  ;;  %16419 = vmatpush3.msra.mxu0 %v14870_v44 }
0x2319   : > { %v6220_v31 = vpop.f32.mrf.mxu0  ;;  %16420 = vmatprep.subr.mxu0 %v17659_v0 }
0x231a   : > { %v6221_v32 = vadd.f32 %v14862_v30, %v6220_v31  ;;  %16421 = vmatpush3.msra.mxu0 %v14869_v45  ;;  %v14901_v30 = vld [vmem:[%s19857_s3 + $0x40] sm:$0xff]  ;;  %v14897_v31 = vld [vmem:[%s19855_s7 + $0x58] sm:$0xff] }
0x231b   : > { %v16407_v33 = vpop.f32.mrf.mxu0  ;;  %16422 = vmatprep.subr.mxu0 %v17659_v0  ;;  %v14899_v45 = vld [vmem:[%s19861_s11 + $0x2] ss:$0 sm:$0xff] }
0x231c   : > { %16414 = vmatpush3.msra.mxu1 %v6221_v32  ;;  %16423 = vmatpush3.msra.mxu0 %v14868_v46  ;;  %v14896_v33 = vld [vmem:[%s19855_s7 + $0x50] sm:$0xff] }
0x231d   : > { %16429 = vmatprep.subr.mxu1 %v17659_v0  ;;  %16424 = vmatprep.subr.mxu0 %v17659_v0 }
0x231e   : > { %16425 = vmatpush3.msra.mxu0 %v14867_v47 }
0x231f   : > { %16427 = vmatmul.mubr.msk.f32.vlgmr.msra.gmra.mxu0 %vm1571_vm1, %v18596_v4  ;;  %16440 = vmatprep.subr.mxu0 %v17659_v0 }
0x2320   : > { %16448 = vmatprep.mubr.msk.f32.mxu0 %vm17660_vm0, %v17659_v0  ;;  %16441 = vmatpush3.msra.mxu0 %v14884_v3 }
0x2321   : > { %16442 = vmatprep.subr.mxu0 %v17659_v0 }
0x2322   : > { %16443 = vmatpush3.msra.mxu0 %v14883_v5  ;;  %v14918_v5 = vld [vmem:[%s19864_s8 + $0x10] sm:$0xff] }
0x2323   : > { %16444 = vmatprep.subr.mxu0 %v17659_v0 }
0x2324   : > { %16445 = vmatpush3.msra.mxu0 %v14882_v8 }
0x2325   : > { %16446 = vmatprep.subr.mxu0 %v17659_v0 }
0x2326   : > { %16447 = vmatpush3.msra.mxu0 %v14881_v9 }
0x2327   : > { %16449 = vmatmul.mubr.msk.f32.vlgmr.msra.gmra.mxu0 %vm1571_vm1, %v18596_v4  ;;  %16461 = vmatprep.subr.mxu0 %v17659_v0 }
0x2328   : > { %16463 = vmatprep.mubr.msk.f32.mxu0 %vm17660_vm0, %v17659_v0  ;;  %16462 = vmatpush3.msra.mxu0 %v14891_v22 }
0x2329   : > { %16471 = vmatprep.subr.mxu0 %v17659_v0 }
0x23c6   : > { %v18646_v34 = vpop.f32.mrf.mxu1 }
0x23c8   : > { %v16374_v35 = vpop.f32.mrf.mxu1 }
0x23d7   : > { %v6296_v36 = vpop.f32.mrf.mxu0 }
0x23d8   : > { %v6300_v37 = vmul.f32 0.35355338, %v6296_v36  ;;  %v14895_v36 = vld [vmem:[%s19855_s7 + $0x48] sm:$0xff] }
0x23d9   : > { %v16412_v50 = vpop.f32.mrf.mxu0 }
0x23da   : > { %v6301_v38 = vsel %vm1807_vm2, %v6300_v37, -inf  ;;  %v14894_v50 = vld [vmem:[%s19855_s7 + $0x40] sm:$0xff] }
0x23db   : > { %6302 = vmax.xlane.f32.xlu0 %v6301_v38 }
0x23df   : > { %v6465_v56 = vpop.f32.mrf.mxu0 }
0x23e0   : > { %v6466_v1 = vadd.f32 %v14872_v61, %v6465_v56 }
0x23e1   : > { %v16428_v57 = vpop.f32.mrf.mxu0 }
0x23e7   : > { %v6631_v19 = vpop.f32.mrf.mxu0 }
0x23e8   : > { %v6632_v20 = vadd.f32 %v14886_v18, %v6631_v19  ;;  %v14928_v18 = vld [vmem:[%s19857_s3 + $0x68] sm:$0xff]  ;;  %v14927_v19 = vld [vmem:[%s19857_s3 + $0x60] sm:$0xff] }
0x23e9   : > { %v16450_v21 = vpop.f32.mrf.mxu0 }
0x2464   : > { %v6303_v39 = vpop.xlane.xlu0 %6302 }
0x2465   : > { %v6304_v40 = vsub.f32 %v6300_v37, %v6303_v39  ;;  %v14906_v39 = vld [vmem:[%s19860_s2 + $0x2] ss:$0 sm:$0xff] }
0x2467   : > { %v6305_v41 = vmul.f32 1.442695, %v6304_v40 }
0x2469   : > { %17397 = vpow2.f32 %v6305_v41 }
0x2476   : > { %v17398_v42 = vpop.eup %17397 }
0x2477   : > { %v6307_v43 = vsel %vm1807_vm2, %v17398_v42, 0.0 }
0x2478   : > { %6308 = vadd.xlane.f32.xlu1 %v6307_v43 }
0x2501   : > { %v6309_v48 = vpop.xlane.xlu1 %6308 }
0x2502   : > { %17399 = vrcp.f32 %v6309_v48 }
0x250f   : > { %v17400_v49 = vpop.eup %17399 }
0x2510   : > { %v6311_v51 = vmul.f32 %v17400_v49, %v17398_v42  ;;  %v14911_v49 = vld [vmem:[%s19858_s5 + $0x58] sm:$0xff] }
0x2512   : > { %16416 = vmatmul.mubr.msk.f32.vlgmr.msra.gmra.mxu1 %vm1807_vm2, %v6311_v51  ;;  %v14910_v51 = vld [vmem:[%s19858_s5 + $0x50] sm:$0xff] }
0x2513   : > { %16430 = vmatpush3.msra.mxu1 %v14877_v52  ;;  %16437 = vmatprep.mubr.msk.f32.mxu1 %vm17660_vm0, %v17659_v0  ;;  %v14909_v52 = vld [vmem:[%s19858_s5 + $0x48] sm:$0xff] }
0x2514   : > { %16431 = vmatprep.subr.mxu1 %v17659_v0 }
0x2515   : > { %16432 = vmatpush3.msra.mxu1 %v14876_v53  ;;  %v14908_v53 = vld [vmem:[%s19858_s5 + $0x40] sm:$0xff] }
0x2516   : > { %16433 = vmatprep.subr.mxu1 %v17659_v0 }
0x2517   : > { %16434 = vmatpush3.msra.mxu1 %v14875_v54 }
0x2518   : > { %16435 = vmatprep.subr.mxu1 %v17659_v0 }
0x2519   : > { %16436 = vmatpush3.msra.mxu1 %v14874_v55 }
0x251a   : > { %16438 = vmatmul.mubr.msk.f32.vlgmr.msra.gmra.mxu1 %vm1571_vm1, %v18596_v4  ;;  %16451 = vmatprep.subr.mxu1 %v17659_v0 }
0x251b   : > { %16453 = vmatprep.mubr.msk.f32.mxu1 %vm17660_vm0, %v17659_v0 }
0x25d2   : > { %v6381_v7 = vpop.f32.mrf.mxu1 }
0x25d4   : > { %v16417_v58 = vpop.f32.mrf.mxu1 }
0x25da   : > { %v6548_v62 = vpop.f32.mrf.mxu1 }
0x25db   : > { %v6549_v63 = vadd.f32 %v14879_v59, %v6548_v62 }
0x25dc   : > { %v16439_v2 = vpop.f32.mrf.mxu1 }
0x25dd   : > { %16452 = vmatpush3.xpose.msk.msra.mxu1 %vm1807_vm2, %v6549_v63  ;;  %v14913_v63 = vld [vmem:[%s19862_s6 + $0x2] ss:$0 sm:$0xff] }
0x25de   : > { %16456 = vmatprep.subr.mxu1 %v17659_v0 }
0x25e0   : > { %16454 = vmatmul.mubr.msk.f32.vlgmr.msra.gmra.mxu1 %vm1807_vm2, %v6466_v1 }
0x25e1   : > { %16458 = vmatprep.mubr.msk.f32.mxu1 %vm17660_vm0, %v17659_v0  ;;  %16457 = vmatpush3.msra.mxu1 %v6632_v20 }
0x25e2   : > { %16466 = vmatprep.subr.mxu1 %v17659_v0 }
0x26a0   : > { %v6707_v6 = vpop.f32.mrf.mxu1 }
0x26a1   : > { %v6711_v10 = vmul.f32 0.35355338, %v6707_v6 }
0x26a2   : > { %v16455_v11 = vpop.f32.mrf.mxu1 }
0x26a3   : > { %v6712_v12 = vsel %vm1807_vm2, %v6711_v10, -inf  ;;  %v14922_v11 = vld [vmem:[%s19855_s7 + $0x70] sm:$0xff] }
0x26a4   : > { %6713 = vmax.xlane.f32.xlu0 %v6712_v12  ;;  %v14921_v12 = vld [vmem:[%s19855_s7 + $0x68] sm:$0xff] }
0x272d   : > { %v6714_v13 = vpop.xlane.xlu0 %6713 }
0x272e   : > { %v6715_v14 = vsub.f32 %v6711_v10, %v6714_v13  ;;  %v14923_v10 = vld [vmem:[%s19855_s7 + $0x78] sm:$0xff]  ;;  %v14920_v13 = vld [vmem:[%s19855_s7 + $0x60] sm:$0xff] }
0x2730   : > { %v6716_v15 = vmul.f32 1.442695, %v6715_v14  ;;  %v14930_v14 = vld [vmem:[%s19857_s3 + $0x78] sm:$0xff] }
0x2732   : > { %17401 = vpow2.f32 %v6716_v15 }
0x273f   : > { %v17402_v16 = vpop.eup %17401 }
0x2740   : > { %v6718_v17 = vsel %vm1807_vm2, %v17402_v16, 0.0 }
0x2741   : > { %6719 = vadd.xlane.f32.xlu1 %v6718_v17 }
0x27ca   : > { %v6720_v23 = vpop.xlane.xlu1 %6719 }
0x27cb   : > { %17403 = vrcp.f32 %v6720_v23 }
0x27d8   : > { %v17404_v24 = vpop.eup %17403 }
0x27d9   : > { %v6722_v25 = vmul.f32 %v17404_v24, %v17402_v16  ;;  %v14929_v16 = vld [vmem:[%s19857_s3 + $0x70] sm:$0xff] }
0x27db   : > { %16459 = vmatmul.mubr.msk.f32.vlgmr.msra.gmra.mxu1 %vm1807_vm2, %v6722_v25 }
0x27dc   : > { %16467 = vmatpush3.msra.mxu1 %v6385_v26  ;;  %16468 = vmatprep.mubr.msk.f32.mxu1 %vm17660_vm0, %v17659_v0  ;;  %v14932_v26 = vld [vmem:[%s19860_s2 + $0x3] ss:$0 sm:$0xff] }
0x27dd   : > { %16482 = vmatprep.subr.mxu1 %v17659_v0 }
0x27df   : > { %16469 = vmatmul.mubr.msk.f32.vlgmr.msra.gmra.mxu1 %vm1807_vm2, %v6381_v7 }
0x27e0   : > { %16483 = vmatpush3.msra.mxu1 %v14904_v27  ;;  %16490 = vmatprep.mubr.msk.f32.mxu1 %vm17660_vm0, %v17659_v0  ;;  %v14925_v27 = vld [vmem:[%s19861_s11 + $0x3] ss:$0 sm:$0xff] }
0x27e1   : > { %16484 = vmatprep.subr.mxu1 %v17659_v0 }
0x27e2   : > { %16485 = vmatpush3.msra.mxu1 %v14903_v28 }
0x27e3   : > { %16486 = vmatprep.subr.mxu1 %v17659_v0 }
0x27e4   : > { %16487 = vmatpush3.msra.mxu1 %v14902_v29 }
0x27e5   : > { %16488 = vmatprep.subr.mxu1 %v17659_v0 }
0x27e6   : > { %16489 = vmatpush3.msra.mxu1 %v14901_v30 }
0x27e7   : > { %16491 = vmatmul.mubr.msk.f32.vlgmr.msra.gmra.mxu1 %vm1571_vm1, %v18596_v4  ;;  %16504 = vmatprep.subr.mxu1 %v17659_v0 }
0x27e8   : > { %16506 = vmatprep.mubr.msk.f32.mxu1 %vm17660_vm0, %v17659_v0 }
0x289b   : > { %v6792_v32 = vpop.f32.mrf.mxu1 }
0x289c   : > { %16464 = vmatmul.mubr.msk.f32.vlgmr.msra.gmra.mxu0 %vm1807_vm2, %v6792_v32  ;;  %v14937_v32 = vld [vmem:[%s19858_s5 + $0x78] sm:$0xff] }
0x289d   : > { %16472 = vmatpush3.msra.mxu0 %v14897_v31  ;;  %v16460_v35 = vpop.f32.mrf.mxu1  ;;  %16479 = vmatprep.mubr.msk.f32.mxu0 %vm17660_vm0, %v17659_v0 }
0x289e   : > { %16473 = vmatprep.subr.mxu0 %v17659_v0  ;;  %v14935_v35 = vld [vmem:[%s19858_s5 + $0x68] sm:$0xff] }
0x289f   : > { %16474 = vmatpush3.msra.mxu0 %v14896_v33  ;;  %v18729_v37 = vpop.f32.mrf.mxu1  ;;  %v14936_v33 = vld [vmem:[%s19858_s5 + $0x70] sm:$0xff] }
0x28a0   : > { %16475 = vmatprep.subr.mxu0 %v17659_v0 }
0x28a1   : > { %16476 = vmatpush3.msra.mxu0 %v14895_v36  ;;  %v16470_v38 = vpop.f32.mrf.mxu1  ;;  %v14934_v36 = vld [vmem:[%s19858_s5 + $0x60] sm:$0xff] }
0x28a2   : > { %16477 = vmatprep.subr.mxu0 %v17659_v0 }
0x28a3   : > { %16478 = vmatpush3.msra.mxu0 %v14894_v50 }
0x28a4   : > { %16480 = vmatmul.mubr.msk.f32.vlgmr.msra.gmra.mxu0 %vm1571_vm1, %v18596_v4  ;;  %16493 = vmatprep.subr.mxu0 %v17659_v0 }
0x28a5   : > { %16501 = vmatprep.mubr.msk.f32.mxu0 %vm17660_vm0, %v17659_v0  ;;  %16494 = vmatpush3.msra.mxu0 %v14911_v49 }
0x28a6   : > { %16495 = vmatprep.subr.mxu0 %v17659_v0 }
0x28a7   : > { %v7106_v40 = vpop.f32.mrf.mxu1  ;;  %16496 = vmatpush3.msra.mxu0 %v14910_v51 }
0x28a8   : > { %v7107_v41 = vadd.f32 %v14906_v39, %v7106_v40  ;;  %16497 = vmatprep.subr.mxu0 %v17659_v0 }
0x28a9   : > { %v16492_v42 = vpop.f32.mrf.mxu1  ;;  %16498 = vmatpush3.msra.mxu0 %v14909_v52 }
0x28aa   : > { %16505 = vmatpush3.xpose.msk.msra.mxu1 %vm1807_vm2, %v7107_v41  ;;  %16499 = vmatprep.subr.mxu0 %v17659_v0 }
0x28ab   : > { %16509 = vmatprep.subr.mxu1 %v17659_v0  ;;  %16500 = vmatpush3.msra.mxu0 %v14908_v53 }
0x28ac   : > { %16502 = vmatmul.mubr.msk.f32.vlgmr.msra.gmra.mxu0 %vm1571_vm1, %v18596_v4  ;;  %16514 = vmatprep.subr.mxu0 %v17659_v0 }
0x28ad   : > { %16516 = vmatprep.mubr.msk.f32.mxu0 %vm17660_vm0, %v17659_v0  ;;  %16515 = vmatpush3.msra.mxu0 %v14918_v5 }
0x28ae   : > { %16530 = vmatprep.subr.mxu0 %v17659_v0 }
0x295c   : > { %v18742_v43 = vpop.f32.mrf.mxu0 }
0x295d   : > { %v6941_v22 = vadd.f32 %v18729_v37, %v18742_v43  ;;  %v14851_v37 = vld [vmem:[%s19852_s18 + $0x1] ss:$0 sm:$0xff] }
0x295e   : > { %v16465_v44 = vpop.f32.mrf.mxu0  ;;  %v5912_v50 = vadd.f32 %v14851_v37, %v18646_v34 }
0x2960   : > { %v5915_v42 = vadd.f32 %v5912_v50, %v18580_v60  ;;  %v14939_v60 = vld [vmem:[%s19862_s6 + $0x3] ss:$0 sm:$0xff] }
0x2962   : > { %v5920_v43 = vsel %vm1571_vm1, %v5915_v42, 0.0 }
0x2964   : > { %v7023_v46 = vpop.f32.mrf.mxu0 }
0x2965   : > { %v7024_v47 = vadd.f32 %v14899_v45, %v7023_v46 }
0x2966   : > { %v16481_v48 = vpop.f32.mrf.mxu0 }
0x2967   : > { %16507 = vmatmul.mubr.msk.f32.vlgmr.msra.gmra.mxu1 %vm1807_vm2, %v7024_v47 }
0x2968   : > { %16511 = vmatprep.mubr.msk.f32.mxu1 %vm17660_vm0, %v17659_v0 }
0x296c   : > { %v7189_v1 = vpop.f32.mrf.mxu0 }
0x296d   : > { %v7190_v2 = vadd.f32 %v14913_v63, %v7189_v1  ;;  %v14854_v1 = vld [vmem:[%s19853_s1 + $0x1] ss:$0 sm:$0xff]  ;;  %s19867_s1 = sld [smem:[#allocation56_spill]] }
0x296e   : > { %v16503_v3 = vpop.f32.mrf.mxu0 }
0x296f   : > { %16510 = vmatpush3.msra.mxu1 %v7190_v2  ;;  %v14855_v3 = vld [vmem:[%s19854_s10 + $0x1] ss:$0 sm:$0xff]  ;;  %s19868_s10 = sld [smem:[#allocation57_spill]] }
0x2970   : > { %16519 = vmatprep.subr.mxu1 %v17659_v0 }
0x2a27   : > { %v7265_v54 = vpop.f32.mrf.mxu1 }
0x2a28   : > { %v7269_v55 = vmul.f32 0.35355338, %v7265_v54 }
0x2a29   : > { %v16508_v56 = vpop.f32.mrf.mxu1 }
0x2a2a   : > { %v7270_v57 = vsel %vm1807_vm2, %v7269_v55, -inf }
0x2a2b   : > { %7271 = vmax.xlane.f32.xlu0 %v7270_v57 }
0x2ab4   : > { %v7272_v7 = vpop.xlane.xlu0 %7271 }
0x2ab5   : > { %v7273_v58 = vsub.f32 %v7269_v55, %v7272_v7 }
0x2ab7   : > { %v7274_v59 = vmul.f32 1.442695, %v7273_v58 }
0x2ab9   : > { %17405 = vpow2.f32 %v7274_v59 }
0x2ac6   : > { %v17406_v61 = vpop.eup %17405 }
0x2ac7   : > { %v7276_v62 = vsel %vm1807_vm2, %v17406_v61, 0.0 }
0x2ac8   : > { %7277 = vadd.xlane.f32.xlu1 %v7276_v62 }
0x2b51   : > { %v7278_v8 = vpop.xlane.xlu1 %7277 }
0x2b52   : > { %17407 = vrcp.f32 %v7278_v8 }
0x2b5f   : > { %v17408_v9 = vpop.eup %17407 }
0x2b60   : > { %v7280_v6 = vmul.f32 %v17408_v9, %v17406_v61 }
0x2b62   : > { %16512 = vmatmul.mubr.msk.f32.vlgmr.msra.gmra.mxu1 %vm1807_vm2, %v7280_v6  ;;  %v14944_v6 = vld [vmem:[%s19864_s8 + $0x18] sm:$0xff] }
0x2b63   : > { %16527 = vmatprep.mubr.msk.f32.mxu1 %vm17660_vm0, %v17659_v0  ;;  %16520 = vmatpush3.msra.mxu1 %v14923_v10 }
0x2b64   : > { %16521 = vmatprep.subr.mxu1 %v17659_v0 }
0x2b65   : > { %16522 = vmatpush3.msra.mxu1 %v14922_v11 }
0x2b66   : > { %16523 = vmatprep.subr.mxu1 %v17659_v0 }
0x2b67   : > { %16524 = vmatpush3.msra.mxu1 %v14921_v12 }
0x2b68   : > { %16525 = vmatprep.subr.mxu1 %v17659_v0 }
0x2b69   : > { %16526 = vmatpush3.msra.mxu1 %v14920_v13 }
0x2b6a   : > { %16528 = vmatmul.mubr.msk.f32.vlgmr.msra.gmra.mxu1 %vm1571_vm1, %v18596_v4  ;;  %16541 = vmatprep.subr.mxu1 %v17659_v0 }
0x2b6b   : > { %16549 = vmatprep.mubr.msk.f32.mxu1 %vm17660_vm0, %v17659_v0  ;;  %16542 = vmatpush3.msra.mxu1 %v14937_v32 }
0x2b6c   : > { %16543 = vmatprep.subr.mxu1 %v17659_v0 }
0x2b6d   : > { %16544 = vmatpush3.msra.mxu1 %v14936_v33 }
0x2b6e   : > { %16545 = vmatprep.subr.mxu1 %v17659_v0 }
0x2b6f   : > { %16546 = vmatpush3.msra.mxu1 %v14935_v35 }
0x2b70   : > { %16547 = vmatprep.subr.mxu1 %v17659_v0 }
0x2b71   : > { %16548 = vmatpush3.msra.mxu1 %v14934_v36 }
0x2b72   : > { %16550 = vmatmul.mubr.msk.f32.vlgmr.msra.gmra.mxu1 %vm1571_vm1, %v18596_v4  ;;  %16562 = vmatprep.subr.mxu1 %v17659_v0 }
0x2b73   : > { %16564 = vmatprep.mubr.msk.f32.mxu1 %vm17660_vm0, %v17659_v0  ;;  %16563 = vmatpush3.msra.mxu1 %v14944_v6 }
0x2b74   : > { %16578 = vmatprep.subr.mxu1 %v17659_v0 }
0x2c22   : > { %v7350_v15 = vpop.f32.mrf.mxu1 }
0x2c23   : > { %16517 = vmatmul.mubr.msk.f32.vlgmr.msra.gmra.mxu0 %vm1807_vm2, %v7350_v15  ;;  %v8041_v15 = vld [vmem:[%s19865_s26 + $0x18] sm:$0xff]  ;;  %s19869_s26 = sld [smem:[#allocation37_spill]] }
0x2c24   : > { %16531 = vmatpush3.msra.mxu0 %v14930_v14  ;;  %v16513_v17 = vpop.f32.mrf.mxu1  ;;  %16538 = vmatprep.mubr.msk.f32.mxu0 %vm17660_vm0, %v17659_v0 }
0x2c25   : > { %16532 = vmatprep.subr.mxu0 %v17659_v0  ;;  %v8040_v17 = vld [vmem:[%s19866_s9 + $0x10] sm:$0xff] }
0x2c26   : > { %16533 = vmatpush3.msra.mxu0 %v14929_v16 }
0x2c27   : > { %16534 = vmatprep.subr.mxu0 %v17659_v0 }
0x2c28   : > { %16535 = vmatpush3.msra.mxu0 %v14928_v18 }
0x2c29   : > { %16536 = vmatprep.subr.mxu0 %v17659_v0  ;;  %s19870_s13 = smov %s19869_s26  ;;  %v14946_v32 = vld [vmem:[%s19869_s26] ss:$0 sm:$0xff]  ;;  %s19875_s26 = sld [smem:[#allocation44_spill]] }
0x2c2a   : > { %16537 = vmatpush3.msra.mxu0 %v14927_v19  ;;  %v7509_v20 = vpop.f32.mrf.mxu1  ;;  %v8039_v19 = vld [vmem:[%s19866_s9 + $0x8] sm:$0xff] }
0x2c2b   : > { %16539 = vmatmul.mubr.msk.f32.vlgmr.msra.gmra.mxu0 %vm1571_vm1, %v18596_v4  ;;  %16552 = vmatprep.subr.mxu0 %v17659_v0  ;;  %v7510_v30 = vadd.f32 %v14925_v27, %v7509_v20  ;;  %v8038_v20 = vld [vmem:[%s19866_s9] sm:$0xff] }
0x2c2c   : > { %16554 = vmatprep.mubr.msk.f32.mxu0 %vm17660_vm0, %v17659_v0  ;;  %v16529_v21 = vpop.f32.mrf.mxu1 }
0x2c2f   : > { %s19876_s17 = smov %s19875_s26 }
0x2c32   : > { %v7675_v54 = vpop.f32.mrf.mxu1 }
0x2c33   : > { %v7676_v55 = vadd.f32 %v14939_v60, %v7675_v54 }
0x2c34   : > { %v16551_v56 = vpop.f32.mrf.mxu1 }
0x2ce3   : > { %v7425_v23 = vpop.f32.mrf.mxu0 }
0x2ce4   : > { %v18798_v24 = vadd.f32 %v7425_v23, %v6941_v22 }
0x2ce5   : > { %v16518_v25 = vpop.f32.mrf.mxu0 }
0x2ceb   : > { %v7592_v28 = vpop.f32.mrf.mxu0 }
0x2cec   : > { %v7593_v29 = vadd.f32 %v14932_v26, %v7592_v28  ;;  %v14856_v26 = vld [vmem:[%s19867_s1] ss:$0 sm:$0xff]  ;;  %s19873_s1 = sld [smem:[#allocation38_spill]] }
0x2ced   : > { %v16540_v31 = vpop.f32.mrf.mxu0  ;;  %v14857_v28 = vld [vmem:[%s19868_s10] ss:$0 sm:$0xff]  ;;  %s19874_s10 = sld [smem:[#allocation39_spill]] }
0x2cee   : > { %16553 = vmatpush3.xpose.msk.msra.mxu0 %vm1807_vm2, %v7593_v29 }
0x2cef   : > { %16557 = vmatprep.subr.mxu0 %v17659_v0 }
0x2cf1   : > { %16555 = vmatmul.mubr.msk.f32.vlgmr.msra.gmra.mxu0 %vm1807_vm2, %v7510_v30 }
0x2cf2   : > { %16559 = vmatprep.mubr.msk.f32.mxu0 %vm17660_vm0, %v17659_v0  ;;  %16558 = vmatpush3.msra.mxu0 %v7676_v55 }
0x2cf3   : > { %16567 = vmatprep.subr.mxu0 %v17659_v0  ;;  %v14948_v54 = vld [vmem:[%s19874_s10] ss:$0 sm:$0xff] }
0x2db1   : > { %v7751_v38 = vpop.f32.mrf.mxu0 }
0x2db2   : > { %v7755_v39 = vmul.f32 0.35355338, %v7751_v38  ;;  %v14951_v38 = vld [vmem:[%s19871_s14] ss:$0 sm:$0xff] }
0x2db3   : > { %v16556_v40 = vpop.f32.mrf.mxu0 }
0x2db4   : > { %v7756_v41 = vsel %vm1807_vm2, %v7755_v39, -inf }
0x2db5   : > { %7757 = vmax.xlane.f32.xlu0 %v7756_v41 }
0x2db9   : > { %5921 = vadd.xlane.f32.xlu0 %v5920_v43 }
0x2e3e   : > { %v7758_v44 = vpop.xlane.xlu0 %7757 }
0x2e3f   : > { %v7759_v45 = vsub.f32 %v7755_v39, %v7758_v44 }
0x2e41   : > { %v7760_v46 = vmul.f32 1.442695, %v7759_v45  ;;  %v7957_v45 = vld [vmem:[%s19872_s16 + $0x18] sm:$0xff] }
0x2e42   : > { %v5922_v47 = vpop.xlane.xlu0 %5921 }
0x2e43   : > { %17409 = vpow2.f32 %v7760_v46  ;;  %v5923_v48 = vmul.f32 0.03125, %v5922_v47  ;;  %v7956_v46 = vld [vmem:[%s19872_s16 + $0x10] sm:$0xff]  ;;  %v7955_v47 = vld [vmem:[%s19872_s16 + $0x8] sm:$0xff] }
0x2e45   : > { %v5924_v49 = vsub.f32 %v5915_v42, %v5923_v48  ;;  %v7954_v48 = vld [vmem:[%s19872_s16] sm:$0xff] }
0x2e47   : > { %v5925_v52 = vmul.f32 %v5924_v49, %v5924_v49 }
0x2e49   : > { %v5926_v53 = vsel %vm1571_vm1, %v5925_v52, 0.0 }
0x2e50   : > { %v17410_v34 = vpop.eup %17409 }
0x2e51   : > { %v7762_v51 = vsel %vm1807_vm2, %v17410_v34, 0.0 }
0x2e52   : > { %7763 = vadd.xlane.f32.xlu1 %v7762_v51 }
0x2e56   : > { %5927 = vadd.xlane.f32.xlu1 %v5926_v53  ;;  %v14947_v53 = vld [vmem:[%s19873_s1] ss:$0 sm:$0xff] }
0x2edb   : > { %v7764_v57 = vpop.xlane.xlu1 %7763 }
0x2edc   : > { %17411 = vrcp.f32 %v7764_v57  ;;  %v8125_v57 = vld [vmem:[%s19875_s26 + $0x18] sm:$0xff]  ;;  %s19877_s26 = sld [smem:[#allocation41_spill]] }
0x2edf   : > { %v5928_v7 = vpop.xlane.xlu1 %5927 }
0x2ee0   : > { %v5929_v58 = vmul.f32 0.03125, %v5928_v7  ;;  %v8124_v7 = vld [vmem:[%s19876_s17 + $0x10] sm:$0xff] }
0x2ee2   : > { %v5930_v59 = vadd.f32 1e-05, %v5929_v58  ;;  %v8123_v58 = vld [vmem:[%s19876_s17 + $0x8] sm:$0xff]  ;;  %s19878_s18 = smov %s19877_s26 }
0x2ee4   : > { %17413 = vrsqrt.f32 %v5930_v59  ;;  %v8122_v59 = vld [vmem:[%s19876_s17] sm:$0xff] }
0x2ee9   : > { %v17412_v61 = vpop.eup %17411 }
0x2eea   : > { %v7766_v62 = vmul.f32 %v17412_v61, %v17410_v34  ;;  %v14961_v61 = vld [vmem:[%s19872_s16 + $0x38] sm:$0xff] }
0x2eec   : > { %16560 = vmatmul.mubr.msk.f32.vlgmr.msra.gmra.mxu0 %vm1807_vm2, %v7766_v62  ;;  %v14960_v62 = vld [vmem:[%s19872_s16 + $0x30] sm:$0xff] }
0x2eed   : > { %16575 = vmatprep.mubr.msk.f32.mxu0 %vm17660_vm0, %v17659_v0  ;;  %16568 = vmatpush3.msra.mxu0 %v7957_v45 }
0x2eee   : > { %16569 = vmatprep.subr.mxu0 %v17659_v0 }
0x2eef   : > { %16570 = vmatpush3.msra.mxu0 %v7956_v46 }
0x2ef0   : > { %16571 = vmatprep.subr.mxu0 %v17659_v0 }
0x2ef1   : > { %v17414_v63 = vpop.eup %17413  ;;  %16572 = vmatpush3.msra.mxu0 %v7955_v47 }
0x2ef2   : > { %v5932_v2 = vmul.f32 %v17414_v63, %v5924_v49  ;;  %16573 = vmatprep.subr.mxu0 %v17659_v0  ;;  %v14959_v63 = vld [vmem:[%s19872_s16 + $0x28] sm:$0xff] }
0x2ef3   : > { %16574 = vmatpush3.msra.mxu0 %v7954_v48 }
0x2ef4   : > { %v5939_v5 = vmul.f32 %v14854_v1, %v5932_v2  ;;  %16589 = vmatprep.subr.mxu0 %v17659_v0  ;;  %v14958_v1 = vld [vmem:[%s19872_s16 + $0x20] sm:$0xff]  ;;  %v14975_v2 = vld [vmem:[%s19876_s17 + $0x38] sm:$0xff] }
0x2ef6   : > { %v5946_v8 = vadd.f32 %v14855_v3, %v5939_v5  ;;  %v14974_v3 = vld [vmem:[%s19876_s17 + $0x30] sm:$0xff]  ;;  %v14973_v5 = vld [vmem:[%s19876_s17 + $0x28] sm:$0xff] }
0x2ef8   : > { %v5949_v9 = vsel %vm1571_vm1, %v5946_v8, 0.0 }
0x2ef9   : > { %5950 = vadd.xlane.f32.xlu0 %v5949_v9  ;;  %v14949_v9 = vld [vmem:[%s19877_s26] ss:$0 sm:$0xff]  ;;  %s19880_s26 = sld [smem:[#allocation46_spill]] }
0x2eff   : > { %s19881_s20 = smov %s19880_s26 }
0x2f82   : > { %v5951_v10 = vpop.xlane.xlu0 %5950 }
0x2f83   : > { %v5952_v11 = vmul.f32 0.03125, %v5951_v10 }
0x2f85   : > { %v5953_v12 = vsub.f32 %v5946_v8, %v5952_v11  ;;  %v14972_v8 = vld [vmem:[%s19876_s17 + $0x20] sm:$0xff] }
0x2f87   : > { %v5954_v13 = vmul.f32 %v5953_v12, %v5953_v12 }
0x2f89   : > { %v5955_v14 = vsel %vm1571_vm1, %v5954_v13, 0.0 }
0x2f8a   : > { %5956 = vadd.xlane.f32.xlu0 %v5955_v14 }
0x2fac   : > { %v7836_v16 = vpop.f32.mrf.mxu0 }
0x2fad   : > { %16565 = vmatmul.mubr.msk.f32.vlgmr.msra.gmra.mxu1 %vm1807_vm2, %v7836_v16 }
0x2fae   : > { %v16561_v18 = vpop.f32.mrf.mxu0  ;;  %16579 = vmatpush3.msra.mxu1 %v8041_v15  ;;  %16586 = vmatprep.mubr.msk.f32.mxu1 %vm17660_vm0, %v17659_v0 }
0x2faf   : > { %16580 = vmatprep.subr.mxu1 %v17659_v0 }
0x2fb0   : > { %16581 = vmatpush3.msra.mxu1 %v8040_v17 }
0x2fb1   : > { %16582 = vmatprep.subr.mxu1 %v17659_v0 }
0x2fb2   : > { %16583 = vmatpush3.msra.mxu1 %v8039_v19 }
0x2fb3   : > { %16584 = vmatprep.subr.mxu1 %v17659_v0 }
0x2fb4   : > { %16585 = vmatpush3.msra.mxu1 %v8038_v20 }
0x2fb5   : > { %16600 = vmatprep.subr.mxu1 %v17659_v0 }
0x3013   : > { %v5957_v21 = vpop.xlane.xlu0 %5956 }
0x3014   : > { %v5958_v22 = vmul.f32 0.03125, %v5957_v21 }
0x3016   : > { %v5959_v23 = vadd.f32 1e-05, %v5958_v22 }
0x3018   : > { %17415 = vrsqrt.f32 %v5959_v23 }
0x3025   : > { %v17416_v25 = vpop.eup %17415 }
0x3026   : > { %v5961_v27 = vmul.f32 %v17416_v25, %v5953_v12  ;;  %v14953_v12 = vld [vmem:[%s19879_s19] ss:$0 sm:$0xff] }
0x3028   : > { %v5968_v29 = vmul.f32 %v14856_v26, %v5961_v27 }
0x302a   : > { %v18850_v30 = vadd.f32 %v14857_v28, %v5968_v29 }
0x302c   : > { %16587 = vmatmul.mubr.msk.f32.vlgmr.msra.gmra.mxu1 %vm1571_vm1, %v18850_v30 }
0x302d   : > { %16602 = vmatprep.mubr.msk.f32.mxu1 %vm17660_vm0, %v17659_v0 }
0x306d   : > { %v7911_v31 = vpop.f32.mrf.mxu1 }
0x306e   : > { %v7915_v33 = vadd.f32 %v7911_v31, %v18798_v24 }
0x306f   : > { %v16566_v35 = vpop.f32.mrf.mxu1 }
0x3070   : > { %v7923_v36 = vadd.f32 %v14946_v32, %v7915_v33  ;;  %v14968_v35 = vld [vmem:[%s19866_s9 + $0x38] sm:$0xff] }
0x3072   : > { %v7924_v37 = vadd.f32 %v7923_v36, %v18596_v4  ;;  %v14967_v36 = vld [vmem:[%s19866_s9 + $0x30] sm:$0xff] }
0x3074   : > { %v7927_v50 = vsel %vm1571_vm1, %v7924_v37, 0.0 }
0x3075   : > { %7928 = vadd.xlane.f32.xlu1 %v7927_v50  ;;  %v14965_v50 = vld [vmem:[%s19866_s9 + $0x20] sm:$0xff] }
0x30ec   : > { %v8118_v39 = vpop.f32.mrf.mxu1 }
0x30ed   : > { %v8119_v40 = vadd.f32 %v14951_v38, %v8118_v39 }
0x30ee   : > { %v16588_v41 = vpop.f32.mrf.mxu1 }
0x30ef   : > { %16601 = vmatpush3.xpose.msk.msra.mxu1 %vm1807_vm2, %v8119_v40  ;;  %v14970_v40 = vld [vmem:[%s19871_s14 + $0x1] ss:$0 sm:$0xff] }
0x30f0   : > { %16605 = vmatprep.subr.mxu1 %v17659_v0 }
0x30fe   : > { %v7929_v24 = vpop.xlane.xlu1 %7928 }
0x30ff   : > { %v7930_v42 = vmul.f32 0.03125, %v7929_v24  ;;  %v14963_v24 = vld [vmem:[%s19878_s18 + $0x1] ss:$0 sm:$0xff] }
0x3101   : > { %v7931_v43 = vsub.f32 %v7924_v37, %v7930_v42  ;;  %v14966_v37 = vld [vmem:[%s19866_s9 + $0x28] sm:$0xff] }
0x3103   : > { %v7932_v44 = vmul.f32 %v7931_v43, %v7931_v43 }
0x3105   : > { %v7933_v4 = vsel %vm1571_vm1, %v7932_v44, 0.0 }
0x3106   : > { %7934 = vadd.xlane.f32.xlu1 %v7933_v4 }
0x318f   : > { %v7935_v49 = vpop.xlane.xlu1 %7934 }
0x3190   : > { %v7936_v34 = vmul.f32 0.03125, %v7935_v49 }
0x3192   : > { %v7937_v51 = vadd.f32 1e-05, %v7936_v34 }
0x3194   : > { %17417 = vrsqrt.f32 %v7937_v51 }
0x31a1   : > { %v17418_v52 = vpop.eup %17417 }
0x31a2   : > { %v7939_v60 = vmul.f32 %v17418_v52, %v7931_v43  ;;  %v14977_v43 = vld [vmem:[%s19879_s19 + $0x1] ss:$0 sm:$0xff] }
0x31a4   : > { %v7946_v55 = vmul.f32 %v14947_v53, %v7939_v60 }
0x31a6   : > { %v18874_v56 = vadd.f32 %v14948_v54, %v7946_v55  ;;  %v14982_v54 = vld [vmem:[%s19880_s26 + $0x8] sm:$0xff]  ;;  %s19882_s26 = sld [smem:[#allocation47_spill]] }
0x31a8   : > { %16576 = vmatmul.mubr.msk.f32.vlgmr.msra.gmra.mxu0 %vm1571_vm1, %v18874_v56 }
0x31a9   : > { %16590 = vmatpush3.msra.mxu0 %v8125_v57  ;;  %16597 = vmatprep.mubr.msk.f32.mxu0 %vm17660_vm0, %v17659_v0 }
0x31aa   : > { %16591 = vmatprep.subr.mxu0 %v17659_v0 }
0x31ab   : > { %16592 = vmatpush3.msra.mxu0 %v8124_v7 }
0x31ac   : > { %16593 = vmatprep.subr.mxu0 %v17659_v0  ;;  %s19883_s21 = smov %s19882_s26 }
0x31ad   : > { %16594 = vmatpush3.msra.mxu0 %v8123_v58  ;;  %v8364_v58 = vld [vmem:[%s19881_s20] sm:$0xff] }
0x31ae   : > { %16595 = vmatprep.subr.mxu0 %v17659_v0 }
0x31af   : > { %16596 = vmatpush3.msra.mxu0 %v8122_v59  ;;  %v14995_v59 = vld [vmem:[%s19866_s9 + $0x58] sm:$0xff] }
0x31b0   : > { %16598 = vmatmul.mubr.msk.f32.vlgmr.msra.gmra.mxu0 %vm1571_vm1, %v18850_v30  ;;  %16610 = vmatprep.subr.mxu0 %v17659_v0 }
0x31b1   : > { %16611 = vmatpush3.msra.mxu0 %v14961_v61  ;;  %16618 = vmatprep.mubr.msk.f32.mxu0 %vm17660_vm0, %v17659_v0  ;;  %v14994_v61 = vld [vmem:[%s19866_s9 + $0x50] sm:$0xff] }
0x31b2   : > { %16612 = vmatprep.subr.mxu0 %v17659_v0 }
0x31b3   : > { %16613 = vmatpush3.msra.mxu0 %v14960_v62  ;;  %v14993_v62 = vld [vmem:[%s19866_s9 + $0x48] sm:$0xff] }
0x31b4   : > { %16614 = vmatprep.subr.mxu0 %v17659_v0 }
0x31b5   : > { %16615 = vmatpush3.msra.mxu0 %v14959_v63  ;;  %v14992_v63 = vld [vmem:[%s19866_s9 + $0x40] sm:$0xff] }
0x31b6   : > { %16616 = vmatprep.subr.mxu0 %v17659_v0 }
0x31b7   : > { %16617 = vmatpush3.msra.mxu0 %v14958_v1  ;;  %v14988_v1 = vld [vmem:[%s19872_s16 + $0x58] sm:$0xff] }
0x31b8   : > { %16619 = vmatmul.mubr.msk.f32.vlgmr.msra.gmra.mxu0 %vm1571_vm1, %v18874_v56  ;;  %16632 = vmatprep.subr.mxu0 %v17659_v0 }
0x31b9   : > { %16633 = vmatpush3.msra.mxu0 %v14975_v2  ;;  %16640 = vmatprep.mubr.msk.f32.mxu0 %vm17660_vm0, %v17659_v0 }
0x31ba   : > { %16634 = vmatprep.subr.mxu0 %v17659_v0 }
0x31bb   : > { %16635 = vmatpush3.msra.mxu0 %v14974_v3  ;;  %v14987_v3 = vld [vmem:[%s19872_s16 + $0x50] sm:$0xff] }
0x31bc   : > { %16636 = vmatprep.subr.mxu0 %v17659_v0 }
0x31bd   : > { %16637 = vmatpush3.msra.mxu0 %v14973_v5 }
0x31be   : > { %16638 = vmatprep.subr.mxu0 %v17659_v0 }
0x31bf   : > { %16639 = vmatpush3.msra.mxu0 %v14972_v8  ;;  %v14986_v8 = vld [vmem:[%s19872_s16 + $0x48] sm:$0xff] }
0x31c0   : > { %16641 = vmatmul.mubr.msk.f32.vlgmr.msra.gmra.mxu0 %vm1571_vm1, %v18850_v30  ;;  %16653 = vmatprep.subr.mxu0 %v17659_v0 }
0x31c1   : > { %16655 = vmatprep.mubr.msk.f32.mxu0 %vm17660_vm0, %v17659_v0  ;;  %16654 = vmatpush3.msra.mxu0 %v14982_v54  ;;  %v15018_v54 = vld [vmem:[%s19866_s9 + $0x60] sm:$0xff] }
0x31c2   : > { %16663 = vmatprep.subr.mxu0 %v17659_v0 }
0x3268   : > { %v8034_v6 = vpop.f32.mrf.mxu0 }
0x3269   : > { %v8035_v10 = vadd.f32 %v14949_v9, %v8034_v6  ;;  %v14985_v6 = vld [vmem:[%s19872_s16 + $0x40] sm:$0xff] }
0x326a   : > { %v16577_v11 = vpop.f32.mrf.mxu0 }
0x326b   : > { %16603 = vmatmul.mubr.msk.f32.vlgmr.msra.gmra.mxu1 %vm1807_vm2, %v8035_v10  ;;  %v15002_v11 = vld [vmem:[%s19876_s17 + $0x58] sm:$0xff] }
0x326c   : > { %16607 = vmatprep.mubr.msk.f32.mxu1 %vm17660_vm0, %v17659_v0 }
0x3270   : > { %v8199_v13 = vpop.f32.mrf.mxu0 }
0x3271   : > { %v8200_v14 = vadd.f32 %v14953_v12, %v8199_v13  ;;  %v15001_v12 = vld [vmem:[%s19876_s17 + $0x50] sm:$0xff]  ;;  %v14997_v13 = vld [vmem:[%s19871_s14 + $0x2] ss:$0 sm:$0xff] }
0x3272   : > { %v16599_v15 = vpop.f32.mrf.mxu0 }
0x3273   : > { %16606 = vmatpush3.msra.mxu1 %v8200_v14  ;;  %v15000_v14 = vld [vmem:[%s19876_s17 + $0x48] sm:$0xff] }
0x3274   : > { %16621 = vmatprep.subr.mxu1 %v17659_v0 }
0x3278   : > { %v8444_v16 = vpop.f32.mrf.mxu0 }
0x3279   : > { %v8445_v4 = vadd.f32 %v14963_v24, %v8444_v16 }
0x327a   : > { %v16620_v17 = vpop.f32.mrf.mxu0 }
0x327b   : > { %v14999_v17 = vld [vmem:[%s19876_s17 + $0x40] sm:$0xff] }
0x3280   : > { %v8610_v18 = vpop.f32.mrf.mxu0 }
0x3281   : > { %v8611_v45 = vadd.f32 %v14977_v43, %v8610_v18  ;;  %v15014_v43 = vld [vmem:[%s19872_s16 + $0x78] sm:$0xff] }
0x3282   : > { %v16642_v19 = vpop.f32.mrf.mxu0 }
0x332b   : > { %v8275_v20 = vpop.f32.mrf.mxu1 }
0x332c   : > { %v8279_v21 = vmul.f32 0.35355338, %v8275_v20 }
0x332d   : > { %v16604_v22 = vpop.f32.mrf.mxu1 }
0x332e   : > { %v8280_v23 = vsel %vm1807_vm2, %v8279_v21, -inf }
0x332f   : > { %8281 = vmax.xlane.f32.xlu0 %v8280_v23 }
0x33b8   : > { %v8282_v25 = vpop.xlane.xlu0 %8281 }
0x33b9   : > { %v8283_v26 = vsub.f32 %v8279_v21, %v8282_v25  ;;  %v14990_v21 = vld [vmem:[%s19878_s18 + $0x2] ss:$0 sm:$0xff] }
0x33bb   : > { %v8284_v27 = vmul.f32 1.442695, %v8283_v26  ;;  %v15004_v26 = vld [vmem:[%s19879_s19 + $0x2] ss:$0 sm:$0xff] }
0x33bd   : > { %17419 = vpow2.f32 %v8284_v27 }
0x33ca   : > { %v17420_v28 = vpop.eup %17419 }
0x33cb   : > { %v8286_v29 = vsel %vm1807_vm2, %v17420_v28, 0.0 }
0x33cc   : > { %8287 = vadd.xlane.f32.xlu1 %v8286_v29 }
0x3455   : > { %v8288_v31 = vpop.xlane.xlu1 %8287 }
0x3456   : > { %17421 = vrcp.f32 %v8288_v31 }
0x3463   : > { %v17422_v32 = vpop.eup %17421 }
0x3464   : > { %v8290_v33 = vmul.f32 %v17422_v32, %v17420_v28 }
0x3466   : > { %16608 = vmatmul.mubr.msk.f32.vlgmr.msra.gmra.mxu1 %vm1807_vm2, %v8290_v33 }
0x3467   : > { %16622 = vmatpush3.msra.mxu1 %v14968_v35  ;;  %16629 = vmatprep.mubr.msk.f32.mxu1 %vm17660_vm0, %v17659_v0 }
0x3468   : > { %16623 = vmatprep.subr.mxu1 %v17659_v0 }
0x3469   : > { %16624 = vmatpush3.msra.mxu1 %v14967_v36 }
0x346a   : > { %16625 = vmatprep.subr.mxu1 %v17659_v0 }
0x346b   : > { %16626 = vmatpush3.msra.mxu1 %v14966_v37 }
0x346c   : > { %16627 = vmatprep.subr.mxu1 %v17659_v0 }
0x346d   : > { %16628 = vmatpush3.msra.mxu1 %v14965_v50 }
0x346e   : > { %16630 = vmatmul.mubr.msk.f32.vlgmr.msra.gmra.mxu1 %vm1571_vm1, %v18850_v30  ;;  %16643 = vmatprep.subr.mxu1 %v17659_v0 }
0x346f   : > { %16645 = vmatprep.mubr.msk.f32.mxu1 %vm17660_vm0, %v17659_v0 }
0x3526   : > { %v8360_v38 = vpop.f32.mrf.mxu1 }
0x3528   : > { %v16609_v39 = vpop.f32.mrf.mxu1 }
0x352e   : > { %v8527_v41 = vpop.f32.mrf.mxu1 }
0x352f   : > { %v8528_v42 = vadd.f32 %v14970_v40, %v8527_v41  ;;  %v15009_v40 = vld [vmem:[%s19881_s20 + $0x10] sm:$0xff] }
0x3530   : > { %v16631_v44 = vpop.f32.mrf.mxu1 }
0x3531   : > { %16644 = vmatpush3.xpose.msk.msra.mxu1 %vm1807_vm2, %v8528_v42  ;;  %v15013_v44 = vld [vmem:[%s19872_s16 + $0x70] sm:$0xff] }
0x3532   : > { %16648 = vmatprep.subr.mxu1 %v17659_v0 }
0x3534   : > { %16646 = vmatmul.mubr.msk.f32.vlgmr.msra.gmra.mxu1 %vm1807_vm2, %v8445_v4  ;;  %v15012_v4 = vld [vmem:[%s19872_s16 + $0x68] sm:$0xff] }
0x3535   : > { %16649 = vmatpush3.msra.mxu1 %v8611_v45  ;;  %16650 = vmatprep.mubr.msk.f32.mxu1 %vm17660_vm0, %v17659_v0  ;;  %v15011_v45 = vld [vmem:[%s19872_s16 + $0x60] sm:$0xff] }
0x3536   : > { %16658 = vmatprep.subr.mxu1 %v17659_v0 }
0x35f4   : > { %v8686_v46 = vpop.f32.mrf.mxu1 }
0x35f5   : > { %v8690_v47 = vmul.f32 0.35355338, %v8686_v46  ;;  %v15028_v46 = vld [vmem:[%s19876_s17 + $0x78] sm:$0xff] }
0x35f6   : > { %v16647_v48 = vpop.f32.mrf.mxu1 }
0x35f7   : > { %v8691_v49 = vsel %vm1807_vm2, %v8690_v47, -inf  ;;  %v15026_v48 = vld [vmem:[%s19876_s17 + $0x68] sm:$0xff] }
0x35f8   : > { %8692 = vmax.xlane.f32.xlu0 %v8691_v49  ;;  %v15025_v49 = vld [vmem:[%s19876_s17 + $0x60] sm:$0xff] }
0x3681   : > { %v8693_v34 = vpop.xlane.xlu0 %8692 }
0x3682   : > { %v8694_v51 = vsub.f32 %v8690_v47, %v8693_v34  ;;  %v15027_v47 = vld [vmem:[%s19876_s17 + $0x70] sm:$0xff]  ;;  %v15021_v34 = vld [vmem:[%s19866_s9 + $0x78] sm:$0xff] }
0x3684   : > { %v8695_v52 = vmul.f32 1.442695, %v8694_v51 }
0x3686   : > { %17423 = vpow2.f32 %v8695_v52  ;;  %v15020_v52 = vld [vmem:[%s19866_s9 + $0x70] sm:$0xff] }
0x3693   : > { %v17424_v53 = vpop.eup %17423 }
0x3694   : > { %v8697_v60 = vsel %vm1807_vm2, %v17424_v53, 0.0 }
0x3695   : > { %8698 = vadd.xlane.f32.xlu1 %v8697_v60  ;;  %v15019_v60 = vld [vmem:[%s19866_s9 + $0x68] sm:$0xff] }
0x371e   : > { %v8699_v55 = vpop.xlane.xlu1 %8698 }
0x371f   : > { %17425 = vrcp.f32 %v8699_v55 }
0x372c   : > { %v17426_v57 = vpop.eup %17425 }
0x372d   : > { %v8701_v7 = vmul.f32 %v17426_v57, %v17424_v53 }
0x372f   : > { %16651 = vmatmul.mubr.msk.f32.vlgmr.msra.gmra.mxu1 %vm1807_vm2, %v8701_v7 }
0x3730   : > { %16659 = vmatpush3.msra.mxu1 %v8364_v58  ;;  %16660 = vmatprep.mubr.msk.f32.mxu1 %vm17660_vm0, %v17659_v0 }
0x3731   : > { %16674 = vmatprep.subr.mxu1 %v17659_v0 }
0x3733   : > { %16661 = vmatmul.mubr.msk.f32.vlgmr.msra.gmra.mxu1 %vm1807_vm2, %v8360_v38 }
0x3734   : > { %16675 = vmatpush3.msra.mxu1 %v14995_v59  ;;  %16682 = vmatprep.mubr.msk.f32.mxu1 %vm17660_vm0, %v17659_v0 }
0x3735   : > { %16676 = vmatprep.subr.mxu1 %v17659_v0 }
0x3736   : > { %16677 = vmatpush3.msra.mxu1 %v14994_v61 }
0x3737   : > { %16678 = vmatprep.subr.mxu1 %v17659_v0 }
0x3738   : > { %16679 = vmatpush3.msra.mxu1 %v14993_v62 }
0x3739   : > { %16680 = vmatprep.subr.mxu1 %v17659_v0 }
0x373a   : > { %16681 = vmatpush3.msra.mxu1 %v14992_v63 }
0x373b   : > { %16683 = vmatmul.mubr.msk.f32.vlgmr.msra.gmra.mxu1 %vm1571_vm1, %v18850_v30  ;;  %16696 = vmatprep.subr.mxu1 %v17659_v0 }
0x373c   : > { %16698 = vmatprep.mubr.msk.f32.mxu1 %vm17660_vm0, %v17659_v0 }
0x37ef   : > { %v8771_v2 = vpop.f32.mrf.mxu1 }
0x37f0   : > { %16656 = vmatmul.mubr.msk.f32.vlgmr.msra.gmra.mxu0 %vm1807_vm2, %v8771_v2 }
0x37f1   : > { %16664 = vmatpush3.msra.mxu0 %v14988_v1  ;;  %v16652_v5 = vpop.f32.mrf.mxu1  ;;  %16671 = vmatprep.mubr.msk.f32.mxu0 %vm17660_vm0, %v17659_v0  ;;  %v15023_v1 = vld [vmem:[%s19871_s14 + $0x3] ss:$0 sm:$0xff] }
0x37f2   : > { %16665 = vmatprep.subr.mxu0 %v17659_v0 }
0x37f3   : > { %16666 = vmatpush3.msra.mxu0 %v14987_v3  ;;  %v18979_v9 = vpop.f32.mrf.mxu1  ;;  %v15016_v3 = vld [vmem:[%s19878_s18 + $0x3] ss:$0 sm:$0xff] }
0x37f4   : > { %16667 = vmatprep.subr.mxu0 %v17659_v0 }
0x37f5   : > { %16668 = vmatpush3.msra.mxu0 %v14986_v8  ;;  %v16662_v10 = vpop.f32.mrf.mxu1  ;;  %v15030_v8 = vld [vmem:[%s19879_s19 + $0x3] ss:$0 sm:$0xff] }
0x37f6   : > { %16669 = vmatprep.subr.mxu0 %v17659_v0 }
0x37f7   : > { %16670 = vmatpush3.msra.mxu0 %v14985_v6 }
0x37f8   : > { %16672 = vmatmul.mubr.msk.f32.vlgmr.msra.gmra.mxu0 %vm1571_vm1, %v18874_v56  ;;  %16685 = vmatprep.subr.mxu0 %v17659_v0 }
0x37f9   : > { %16686 = vmatpush3.msra.mxu0 %v15002_v11  ;;  %16693 = vmatprep.mubr.msk.f32.mxu0 %vm17660_vm0, %v17659_v0 }
0x37fa   : > { %16687 = vmatprep.subr.mxu0 %v17659_v0 }
0x37fb   : > { %v9085_v15 = vpop.f32.mrf.mxu1  ;;  %16688 = vmatpush3.msra.mxu0 %v15001_v12 }
0x37fc   : > { %v9086_v16 = vadd.f32 %v14997_v13, %v9085_v15  ;;  %16689 = vmatprep.subr.mxu0 %v17659_v0 }
0x37fd   : > { %v16684_v18 = vpop.f32.mrf.mxu1  ;;  %16690 = vmatpush3.msra.mxu0 %v15000_v14 }
0x37fe   : > { %16691 = vmatprep.subr.mxu0 %v17659_v0  ;;  %16697 = vmatpush3.xpose.msk.msra.mxu1 %vm1807_vm2, %v9086_v16 }
0x37ff   : > { %16692 = vmatpush3.msra.mxu0 %v14999_v17  ;;  %16701 = vmatprep.subr.mxu1 %v17659_v0 }
0x3800   : > { %16694 = vmatmul.mubr.msk.f32.vlgmr.msra.gmra.mxu0 %vm1571_vm1, %v18850_v30  ;;  %16706 = vmatprep.subr.mxu0 %v17659_v0 }
0x3801   : > { %16708 = vmatprep.mubr.msk.f32.mxu0 %vm17660_vm0, %v17659_v0  ;;  %16707 = vmatpush3.msra.mxu0 %v15009_v40  ;;  %v9936_v40 = vld [vmem:[%s19884_s24 + $0x18] sm:$0xff] }
0x3802   : > { %16722 = vmatprep.subr.mxu0 %v17659_v0 }
0x38b0   : > { %v19004_v19 = vpop.f32.mrf.mxu0 }
0x38b1   : > { %v8920_v59 = vadd.f32 %v18979_v9, %v19004_v19 }
0x38b2   : > { %v16657_v20 = vpop.f32.mrf.mxu0 }
0x38b3   : > { %v15035_v20 = vld [vmem:[%s19881_s20 + $0x18] sm:$0xff] }
0x38b8   : > { %v9002_v22 = vpop.f32.mrf.mxu0 }
0x38b9   : > { %v9003_v23 = vadd.f32 %v14990_v21, %v9002_v22 }
0x38ba   : > { %v16673_v25 = vpop.f32.mrf.mxu0 }
0x38bb   : > { %16699 = vmatmul.mubr.msk.f32.vlgmr.msra.gmra.mxu1 %vm1807_vm2, %v9003_v23 }
0x38bc   : > { %16703 = vmatprep.mubr.msk.f32.mxu1 %vm17660_vm0, %v17659_v0 }
0x38c0   : > { %v9168_v27 = vpop.f32.mrf.mxu0 }
0x38c1   : > { %v9169_v28 = vadd.f32 %v15004_v26, %v9168_v27 }
0x38c2   : > { %v16695_v29 = vpop.f32.mrf.mxu0 }
0x38c3   : > { %16702 = vmatpush3.msra.mxu1 %v9169_v28  ;;  %v15037_v28 = vld [vmem:[%s19882_s26] ss:$0 sm:$0xff]  ;;  %s19886_s26 = sld [smem:[#allocation48_spill]] }
0x38c4   : > { %16711 = vmatprep.subr.mxu1 %v17659_v0 }
0x38c9   : > { %s19887_s27 = smov %s19886_s26 }
0x397b   : > { %v9244_v31 = vpop.f32.mrf.mxu1 }
0x397c   : > { %v9248_v32 = vmul.f32 0.35355338, %v9244_v31 }
0x397d   : > { %v16700_v33 = vpop.f32.mrf.mxu1 }
0x397e   : > { %v9249_v35 = vsel %vm1807_vm2, %v9248_v32, -inf }
0x397f   : > { %9250 = vmax.xlane.f32.xlu0 %v9249_v35 }
0x3a08   : > { %v9251_v36 = vpop.xlane.xlu0 %9250 }
0x3a09   : > { %v9252_v37 = vsub.f32 %v9248_v32, %v9251_v36 }
0x3a0b   : > { %v9253_v50 = vmul.f32 1.442695, %v9252_v37 }
0x3a0d   : > { %17427 = vpow2.f32 %v9253_v50 }
0x3a1a   : > { %v17428_v38 = vpop.eup %17427 }
0x3a1b   : > { %v9255_v39 = vsel %vm1807_vm2, %v17428_v38, 0.0 }
0x3a1c   : > { %9256 = vadd.xlane.f32.xlu1 %v9255_v39 }
0x3aa5   : > { %v9257_v41 = vpop.xlane.xlu1 %9256 }
0x3aa6   : > { %17429 = vrcp.f32 %v9257_v41  ;;  %v9935_v41 = vld [vmem:[%s19884_s24 + $0x10] sm:$0xff] }
0x3ab3   : > { %v17430_v24 = vpop.eup %17429 }
0x3ab4   : > { %v9259_v42 = vmul.f32 %v17430_v24, %v17428_v38  ;;  %v9933_v24 = vld [vmem:[%s19884_s24] sm:$0xff] }
0x3ab6   : > { %16704 = vmatmul.mubr.msk.f32.vlgmr.msra.gmra.mxu1 %vm1807_vm2, %v9259_v42  ;;  %v9953_v42 = vld [vmem:[%s19885_s25 + $0x78] sm:$0xff] }
0x3ab7   : > { %16712 = vmatpush3.msra.mxu1 %v15014_v43  ;;  %16719 = vmatprep.mubr.msk.f32.mxu1 %vm17660_vm0, %v17659_v0  ;;  %v9952_v43 = vld [vmem:[%s19885_s25 + $0x70] sm:$0xff] }
0x3ab8   : > { %16713 = vmatprep.subr.mxu1 %v17659_v0 }
0x3ab9   : > { %16714 = vmatpush3.msra.mxu1 %v15013_v44  ;;  %v9951_v44 = vld [vmem:[%s19885_s25 + $0x68] sm:$0xff] }
0x3aba   : > { %16715 = vmatprep.subr.mxu1 %v17659_v0 }
0x3abb   : > { %16716 = vmatpush3.msra.mxu1 %v15012_v4  ;;  %v9950_v4 = vld [vmem:[%s19885_s25 + $0x60] sm:$0xff] }
0x3abc   : > { %16717 = vmatprep.subr.mxu1 %v17659_v0 }
0x3abd   : > { %16718 = vmatpush3.msra.mxu1 %v15011_v45  ;;  %v9949_v45 = vld [vmem:[%s19885_s25 + $0x58] sm:$0xff] }
0x3abe   : > { %16720 = vmatmul.mubr.msk.f32.vlgmr.msra.gmra.mxu1 %vm1571_vm1, %v18874_v56  ;;  %16733 = vmatprep.subr.mxu1 %v17659_v0 }
0x3abf   : > { %16734 = vmatpush3.msra.mxu1 %v15028_v46  ;;  %16741 = vmatprep.mubr.msk.f32.mxu1 %vm17660_vm0, %v17659_v0  ;;  %v9948_v46 = vld [vmem:[%s19885_s25 + $0x50] sm:$0xff] }
0x3ac0   : > { %16735 = vmatprep.subr.mxu1 %v17659_v0 }
0x3ac1   : > { %16736 = vmatpush3.msra.mxu1 %v15027_v47  ;;  %v9947_v47 = vld [vmem:[%s19885_s25 + $0x48] sm:$0xff] }
0x3ac2   : > { %16737 = vmatprep.subr.mxu1 %v17659_v0 }
0x3ac3   : > { %16738 = vmatpush3.msra.mxu1 %v15026_v48  ;;  %v9946_v48 = vld [vmem:[%s19885_s25 + $0x40] sm:$0xff] }
0x3ac4   : > { %16739 = vmatprep.subr.mxu1 %v17659_v0 }
0x3ac5   : > { %16740 = vmatpush3.msra.mxu1 %v15025_v49  ;;  %v9945_v49 = vld [vmem:[%s19885_s25 + $0x38] sm:$0xff] }
0x3ac6   : > { %16742 = vmatmul.mubr.msk.f32.vlgmr.msra.gmra.mxu1 %vm1571_vm1, %v18850_v30  ;;  %16754 = vmatprep.subr.mxu1 %v17659_v0 }
0x3ac7   : > { %16756 = vmatprep.mubr.msk.f32.mxu1 %vm17660_vm0, %v17659_v0  ;;  %16755 = vmatpush3.msra.mxu1 %v15035_v20 }
0x3ac8   : > { %16770 = vmatprep.subr.mxu1 %v17659_v0 }
0x3b76   : > { %v9329_v51 = vpop.f32.mrf.mxu1 }
0x3b77   : > { %16709 = vmatmul.mubr.msk.f32.vlgmr.msra.gmra.mxu0 %vm1807_vm2, %v9329_v51  ;;  %v9943_v51 = vld [vmem:[%s19885_s25 + $0x28] sm:$0xff] }
0x3b78   : > { %16723 = vmatpush3.msra.mxu0 %v15021_v34  ;;  %v16705_v53 = vpop.f32.mrf.mxu1  ;;  %16730 = vmatprep.mubr.msk.f32.mxu0 %vm17660_vm0, %v17659_v0  ;;  %v9944_v34 = vld [vmem:[%s19885_s25 + $0x30] sm:$0xff] }
0x3b79   : > { %16724 = vmatprep.subr.mxu0 %v17659_v0  ;;  %v9941_v53 = vld [vmem:[%s19885_s25 + $0x18] sm:$0xff] }
0x3b7a   : > { %16725 = vmatpush3.msra.mxu0 %v15020_v52  ;;  %v9942_v52 = vld [vmem:[%s19885_s25 + $0x20] sm:$0xff] }
0x3b7b   : > { %16726 = vmatprep.subr.mxu0 %v17659_v0 }
0x3b7c   : > { %16727 = vmatpush3.msra.mxu0 %v15019_v60 }
0x3b7d   : > { %16728 = vmatprep.subr.mxu0 %v17659_v0 }
0x3b7e   : > { %v9488_v55 = vpop.f32.mrf.mxu1  ;;  %16729 = vmatpush3.msra.mxu0 %v15018_v54 }
0x3b7f   : > { %16731 = vmatmul.mubr.msk.f32.vlgmr.msra.gmra.mxu0 %vm1571_vm1, %v18850_v30  ;;  %16744 = vmatprep.subr.mxu0 %v17659_v0  ;;  %v9489_v10 = vadd.f32 %v15016_v3, %v9488_v55  ;;  %v15040_v3 = vld [vmem:[%s19889_s30] ss:$0 sm:$0xff] }
0x3b80   : > { %v16721_v57 = vpop.f32.mrf.mxu1  ;;  %16746 = vmatprep.mubr.msk.f32.mxu0 %vm17660_vm0, %v17659_v0 }
0x3b86   : > { %v9654_v7 = vpop.f32.mrf.mxu1 }
0x3b87   : > { %v9655_v11 = vadd.f32 %v15030_v8, %v9654_v7  ;;  %v15038_v7 = vld [vmem:[%s19886_s26] ss:$0 sm:$0xff]  ;;  %s19894_s26 = sld [smem:[#allocation55_spill]] }
0x3b88   : > { %v16743_v58 = vpop.f32.mrf.mxu1 }
0x3b8d   : > { %s19895_s0 = smov %s19894_s26 }
0x3c37   : > { %v9404_v61 = vpop.f32.mrf.mxu0 }
0x3c38   : > { %v9408_v62 = vadd.f32 %v9404_v61, %v8920_v59  ;;  %v15039_v59 = vld [vmem:[%s19888_s29] ss:$0 sm:$0xff] }
0x3c39   : > { %v16710_v63 = vpop.f32.mrf.mxu0 }
0x3c3a   : > { %v9940_v63 = vld [vmem:[%s19885_s25 + $0x10] sm:$0xff] }
0x3c3f   : > { %v9571_v2 = vpop.f32.mrf.mxu0 }
0x3c40   : > { %v9572_v5 = vadd.f32 %v15023_v1, %v9571_v2  ;;  %v9939_v1 = vld [vmem:[%s19885_s25 + $0x8] sm:$0xff]  ;;  %v9938_v2 = vld [vmem:[%s19885_s25] sm:$0xff] }
0x3c41   : > { %v16732_v6 = vpop.f32.mrf.mxu0 }
0x3c42   : > { %16745 = vmatpush3.xpose.msk.msra.mxu0 %vm1807_vm2, %v9572_v5 }
0x3c43   : > { %16749 = vmatprep.subr.mxu0 %v17659_v0 }
0x3c45   : > { %16747 = vmatmul.mubr.msk.f32.vlgmr.msra.gmra.mxu0 %vm1807_vm2, %v9489_v10 }
0x3c46   : > { %16750 = vmatpush3.msra.mxu0 %v9655_v11  ;;  %16751 = vmatprep.mubr.msk.f32.mxu0 %vm17660_vm0, %v17659_v0  ;;  %v15042_v11 = vld [vmem:[%s19890_s22] ss:$0 sm:$0xff]  ;;  %s19892_s22 = sld [smem:[#allocation54_spill]] }
0x3c47   : > { %16759 = vmatprep.subr.mxu0 %v17659_v0 }
0x3c4c   : > { %s19893_s12 = smov %s19892_s22 }
0x3d05   : > { %v9730_v9 = vpop.f32.mrf.mxu0 }
0x3d06   : > { %v9734_v12 = vmul.f32 0.35355338, %v9730_v9 }
0x3d07   : > { %v16748_v13 = vpop.f32.mrf.mxu0 }
0x3d08   : > { %v9735_v14 = vsel %vm1807_vm2, %v9734_v12, -inf }
0x3d09   : > { %9736 = vmax.xlane.f32.xlu0 %v9735_v14 }
0x3d92   : > { %v9737_v15 = vpop.xlane.xlu0 %9736 }
0x3d93   : > { %v9738_v16 = vsub.f32 %v9734_v12, %v9737_v15 }
0x3d95   : > { %v9739_v17 = vmul.f32 1.442695, %v9738_v16 }
0x3d97   : > { %17431 = vpow2.f32 %v9739_v17 }
0x3da4   : > { %v17432_v18 = vpop.eup %17431 }
0x3da5   : > { %v9741_v19 = vsel %vm1807_vm2, %v17432_v18, 0.0 }
0x3da6   : > { %9742 = vadd.xlane.f32.xlu1 %v9741_v19 }
0x3e2f   : > { %v9743_v21 = vpop.xlane.xlu1 %9742 }
0x3e30   : > { %17433 = vrcp.f32 %v9743_v21  ;;  %v15048_v21 = vld [vmem:[%s19855_s7 + $0x98] sm:$0xff] }
0x3e3d   : > { %v17434_v22 = vpop.eup %17433 }
0x3e3e   : > { %v9745_v23 = vmul.f32 %v17434_v22, %v17432_v18  ;;  %v15047_v22 = vld [vmem:[%s19855_s7 + $0x90] sm:$0xff] }
0x3e40   : > { %16752 = vmatmul.mubr.msk.f32.vlgmr.msra.gmra.mxu0 %vm1807_vm2, %v9745_v23  ;;  %v15046_v23 = vld [vmem:[%s19855_s7 + $0x88] sm:$0xff] }
0x3e41   : > { %16767 = vmatprep.mubr.msk.f32.mxu0 %vm17660_vm0, %v17659_v0  ;;  %16760 = vmatpush3.msra.mxu0 %v9936_v40  ;;  %v15062_v40 = vld [vmem:[%s19858_s5 + $0x98] sm:$0xff] }
0x3e42   : > { %16761 = vmatprep.subr.mxu0 %v17659_v0 }
0x3e43   : > { %16762 = vmatpush3.msra.mxu0 %v9935_v41  ;;  %v15061_v41 = vld [vmem:[%s19858_s5 + $0x90] sm:$0xff] }
0x3e44   : > { %16763 = vmatprep.subr.mxu0 %v17659_v0 }
0x3f00   : > { %v9815_v25 = vpop.f32.mrf.mxu0 }
0x3f01   : > { %16757 = vmatmul.mubr.msk.f32.vlgmr.msra.gmra.mxu1 %vm1807_vm2, %v9815_v25  ;;  %v15045_v25 = vld [vmem:[%s19855_s7 + $0x80] sm:$0xff] }
0x3f02   : > { %v16753_v26 = vpop.f32.mrf.mxu0  ;;  %16802 = vmatprep.mubr.msk.f32.mxu1 %vm17660_vm0, %v17659_v0  ;;  %16771 = vmatpush3.msra.mxu1 %v9953_v42 }
0x3f03   : > { %16772 = vmatprep.subr.mxu1 %v17659_v0 }
0x3f04   : > { %16773 = vmatpush3.msra.mxu1 %v9952_v43 }
0x3f05   : > { %16774 = vmatprep.subr.mxu1 %v17659_v0 }
0x3f06   : > { %16775 = vmatpush3.msra.mxu1 %v9951_v44  ;;  %v15057_v44 = vld [vmem:[%s19860_s2 + $0x4] ss:$0 sm:$0xff] }
0x3f07   : > { %16776 = vmatprep.subr.mxu1 %v17659_v0 }
0x3f08   : > { %16777 = vmatpush3.msra.mxu1 %v9950_v4 }
0x3f09   : > { %16778 = vmatprep.subr.mxu1 %v17659_v0 }
0x3f0a   : > { %16779 = vmatpush3.msra.mxu1 %v9949_v45  ;;  %v15050_v45 = vld [vmem:[%s19861_s11 + $0x4] ss:$0 sm:$0xff] }
0x3f0b   : > { %16780 = vmatprep.subr.mxu1 %v17659_v0 }
0x3f0c   : > { %16781 = vmatpush3.msra.mxu1 %v9948_v46 }
0x3f0d   : > { %16782 = vmatprep.subr.mxu1 %v17659_v0 }
0x3f0e   : > { %16783 = vmatpush3.msra.mxu1 %v9947_v47 }
0x3f0f   : > { %16784 = vmatprep.subr.mxu1 %v17659_v0 }
0x3f10   : > { %16785 = vmatpush3.msra.mxu1 %v9946_v48 }
0x3f11   : > { %16786 = vmatprep.subr.mxu1 %v17659_v0 }
0x3f12   : > { %16787 = vmatpush3.msra.mxu1 %v9945_v49  ;;  %v15073_v49 = vld [vmem:[%s19855_s7 + $0xb8] sm:$0xff] }
0x3f13   : > { %16788 = vmatprep.subr.mxu1 %v17659_v0 }
0x3f14   : > { %16789 = vmatpush3.msra.mxu1 %v9944_v34  ;;  %v15064_v34 = vld [vmem:[%s19862_s6 + $0x4] ss:$0 sm:$0xff] }
0x3f15   : > { %16790 = vmatprep.subr.mxu1 %v17659_v0 }
0x3f16   : > { %16791 = vmatpush3.msra.mxu1 %v9943_v51  ;;  %v15072_v51 = vld [vmem:[%s19855_s7 + $0xb0] sm:$0xff] }
0x3f17   : > { %16792 = vmatprep.subr.mxu1 %v17659_v0 }
0x3f18   : > { %16793 = vmatpush3.msra.mxu1 %v9942_v52 }
0x3f19   : > { %16794 = vmatprep.subr.mxu1 %v17659_v0 }
0x3f1a   : > { %16795 = vmatpush3.msra.mxu1 %v9941_v53  ;;  %v15071_v53 = vld [vmem:[%s19855_s7 + $0xa8] sm:$0xff] }
0x3f1b   : > { %16796 = vmatprep.subr.mxu1 %v17659_v0 }
0x3f1c   : > { %16797 = vmatpush3.msra.mxu1 %v9940_v63 }
0x3f1d   : > { %16798 = vmatprep.subr.mxu1 %v17659_v0 }
0x3f1e   : > { %16799 = vmatpush3.msra.mxu1 %v9939_v1 }
0x3f1f   : > { %16800 = vmatprep.subr.mxu1 %v17659_v0 }
0x3f20   : > { %16801 = vmatpush3.msra.mxu1 %v9938_v2 }
0x3f21   : > { %16843 = vmatprep.subr.mxu1 %v17659_v0 }
0x3fc1   : > { %v9890_v27 = vpop.f32.mrf.mxu1 }
0x3fc2   : > { %v9894_v29 = vadd.f32 %v9890_v27, %v9408_v62 }
0x3fc3   : > { %v16758_v31 = vpop.f32.mrf.mxu1 }
0x3fc4   : > { %v9902_v32 = vadd.f32 %v15037_v28, %v9894_v29  ;;  %v15043_v31 = vld [vmem:[%s19892_s22] ss:$0 sm:$0xff]  ;;  %s19896_s22 = sld [smem:[#allocation58_spill]] }
0x3fc6   : > { %v9903_v33 = vadd.f32 %v9902_v32, %v18874_v56  ;;  %v9934_v56 = vld [vmem:[%s19884_s24 + $0x8] sm:$0xff] }
0x3fc7   : > { %16764 = vmatpush3.msra.mxu0 %v9934_v56  ;;  %v15060_v56 = vld [vmem:[%s19858_s5 + $0x88] sm:$0xff] }
0x3fc8   : > { %v9906_v35 = vsel %vm1571_vm1, %v9903_v33, 0.0  ;;  %16765 = vmatprep.subr.mxu0 %v17659_v0 }
0x3fc9   : > { %9907 = vadd.xlane.f32.xlu0 %v9906_v35  ;;  %16766 = vmatpush3.msra.mxu0 %v9933_v24  ;;  %v15059_v24 = vld [vmem:[%s19858_s5 + $0x80] sm:$0xff] }
0x3fca   : > { %16805 = vmatprep.subr.mxu0 %v17659_v0 }
0x4052   : > { %v9908_v36 = vpop.xlane.xlu0 %9907 }
0x4053   : > { %v9909_v37 = vmul.f32 0.03125, %v9908_v36 }
0x4055   : > { %v9910_v50 = vsub.f32 %v9903_v33, %v9909_v37  ;;  %v15044_v33 = vld [vmem:[%s19894_s26] ss:$0 sm:$0xff]  ;;  %v15055_v37 = vld [vmem:[%s19857_s3 + $0x98] sm:$0xff]  ;;  %s19897_s26 = sld [smem:[#allocation65_spill]] }
0x4057   : > { %v9911_v38 = vmul.f32 %v9910_v50, %v9910_v50 }
0x4059   : > { %v9912_v39 = vsel %vm1571_vm1, %v9911_v38, 0.0  ;;  %v15053_v38 = vld [vmem:[%s19857_s3 + $0x88] sm:$0xff] }
0x405a   : > { %9913 = vadd.xlane.f32.xlu1 %v9912_v39  ;;  %v15052_v39 = vld [vmem:[%s19857_s3 + $0x80] sm:$0xff] }
0x40e3   : > { %v9914_v60 = vpop.xlane.xlu1 %9913 }
0x40e4   : > { %v9915_v54 = vmul.f32 0.03125, %v9914_v60 }
0x40e6   : > { %v9916_v55 = vadd.f32 1e-05, %v9915_v54 }
0x40e8   : > { %17435 = vrsqrt.f32 %v9916_v55  ;;  %v15070_v55 = vld [vmem:[%s19855_s7 + $0xa0] sm:$0xff] }
0x40f5   : > { %v17436_v57 = vpop.eup %17435 }
0x40f6   : > { %v9918_v58 = vmul.f32 %v17436_v57, %v9910_v50  ;;  %v15054_v50 = vld [vmem:[%s19857_s3 + $0x90] sm:$0xff]  ;;  %v15087_v57 = vld [vmem:[%s19858_s5 + $0xb8] sm:$0xff] }
0x40f8   : > { %v9925_v61 = vmul.f32 %v15038_v7, %v9918_v58  ;;  %v15086_v7 = vld [vmem:[%s19858_s5 + $0xb0] sm:$0xff]  ;;  %v15085_v58 = vld [vmem:[%s19858_s5 + $0xa8] sm:$0xff] }
0x40fa   : > { %v9932_v62 = vadd.f32 %v15039_v59, %v9925_v61  ;;  %v15084_v59 = vld [vmem:[%s19858_s5 + $0xa0] sm:$0xff] }
0x40fc   : > { %16768 = vmatmul.mubr.msk.f32.vlgmr.msra.gmra.mxu0 %vm1571_vm1, %v9932_v62 }
0x40fd   : > { %16813 = vmatprep.mubr.msk.f32.mxu0 %vm17660_vm0, %v17659_v0  ;;  %16806 = vmatpush3.msra.mxu0 %v15048_v21 }
0x40fe   : > { %16807 = vmatprep.subr.mxu0 %v17659_v0 }
0x40ff   : > { %16808 = vmatpush3.msra.mxu0 %v15047_v22  ;;  %v15082_v22 = vld [vmem:[%s19860_s2 + $0x5] ss:$0 sm:$0xff] }
0x4100   : > { %16809 = vmatprep.subr.mxu0 %v17659_v0 }
0x4101   : > { %16810 = vmatpush3.msra.mxu0 %v15046_v23 }
0x4102   : > { %16811 = vmatprep.subr.mxu0 %v17659_v0 }
0x4103   : > { %16812 = vmatpush3.msra.mxu0 %v15045_v25  ;;  %v15075_v25 = vld [vmem:[%s19861_s11 + $0x5] ss:$0 sm:$0xff] }
0x4104   : > { %16816 = vmatprep.subr.mxu0 %v17659_v0 }
0x41bc   : > { %v10030_v5 = vpop.f32.mrf.mxu0 }
0x41bd   : > { %v10031_v8 = vadd.f32 %v15040_v3, %v10030_v5 }
0x41be   : > { %v16769_v6 = vpop.f32.mrf.mxu0 }
0x41bf   : > { %v10034_v10 = vmax.f32 %v10031_v8, 0.0 }
0x41c1   : > { %16803 = vmatmul.mubr.f32.vlgmr.msra.gmra.mxu1 %v10034_v10 }
0x41c2   : > { %16845 = vmatprep.mubr.msk.f32.mxu1 %vm17660_vm0, %v17659_v0 }
0x4281   : > { %v10107_v9 = vpop.f32.mrf.mxu1 }
0x4282   : > { %v10108_v12 = vadd.f32 %v15042_v11, %v10107_v9 }
0x4283   : > { %v16804_v13 = vpop.f32.mrf.mxu1 }
0x4284   : > { %v10111_v14 = vadd.f32 %v10108_v12, %v9932_v62 }
0x4286   : > { %v10114_v15 = vsel %vm1571_vm1, %v10111_v14, 0.0 }
0x4287   : > { %10115 = vadd.xlane.f32.xlu0 %v10114_v15 }
0x4310   : > { %v10116_v16 = vpop.xlane.xlu0 %10115 }
0x4311   : > { %v10117_v17 = vmul.f32 0.03125, %v10116_v16  ;;  %v15080_v16 = vld [vmem:[%s19857_s3 + $0xb8] sm:$0xff] }
0x4313   : > { %v10118_v18 = vsub.f32 %v10111_v14, %v10117_v17  ;;  %v15079_v17 = vld [vmem:[%s19857_s3 + $0xb0] sm:$0xff] }
0x4315   : > { %v10119_v19 = vmul.f32 %v10118_v18, %v10118_v18 }
0x4317   : > { %v10120_v20 = vsel %vm1571_vm1, %v10119_v19, 0.0  ;;  %v15077_v19 = vld [vmem:[%s19857_s3 + $0xa0] sm:$0xff] }
0x4318   : > { %10121 = vadd.xlane.f32.xlu1 %v10120_v20 }
0x43a1   : > { %v10122_v26 = vpop.xlane.xlu1 %10121 }
0x43a2   : > { %v10123_v27 = vmul.f32 0.03125, %v10122_v26 }
0x43a4   : > { %v10124_v28 = vadd.f32 1e-05, %v10123_v27  ;;  %v15089_v27 = vld [vmem:[%s19862_s6 + $0x5] ss:$0 sm:$0xff] }
0x43a6   : > { %17437 = vrsqrt.f32 %v10124_v28 }
0x43b3   : > { %v17438_v29 = vpop.eup %17437 }
0x43b4   : > { %v10126_v32 = vmul.f32 %v17438_v29, %v10118_v18  ;;  %v15078_v18 = vld [vmem:[%s19857_s3 + $0xa8] sm:$0xff] }
0x43b6   : > { %v10133_v35 = vmul.f32 %v15043_v31, %v10126_v32 }
0x43b8   : > { %v19144_v36 = vadd.f32 %v15044_v33, %v10133_v35 }
0x43ba   : > { %16814 = vmatmul.mubr.msk.f32.vlgmr.msra.gmra.mxu0 %vm1571_vm1, %v19144_v36 }
0x43bb   : > { %16817 = vmatpush3.msra.mxu0 %v15055_v37  ;;  %16824 = vmatprep.mubr.msk.f32.mxu0 %vm17660_vm0, %v17659_v0 }
0x43bc   : > { %16818 = vmatprep.subr.mxu0 %v17659_v0 }
0x43bd   : > { %16819 = vmatpush3.msra.mxu0 %v15054_v50 }
0x43be   : > { %16820 = vmatprep.subr.mxu0 %v17659_v0 }
0x43bf   : > { %16821 = vmatpush3.msra.mxu0 %v15053_v38 }
0x43c0   : > { %16822 = vmatprep.subr.mxu0 %v17659_v0 }
0x43c1   : > { %16823 = vmatpush3.msra.mxu0 %v15052_v39 }
0x43c2   : > { %16825 = vmatmul.mubr.msk.f32.vlgmr.msra.gmra.mxu0 %vm1571_vm1, %v19144_v36  ;;  %16827 = vmatprep.subr.mxu0 %v17659_v0 }
0x43c3   : > { %16828 = vmatpush3.msra.mxu0 %v15062_v40  ;;  %16835 = vmatprep.mubr.msk.f32.mxu0 %vm17660_vm0, %v17659_v0 }
0x43c4   : > { %16829 = vmatprep.subr.mxu0 %v17659_v0 }
0x43c5   : > { %16830 = vmatpush3.msra.mxu0 %v15061_v41 }
0x43c6   : > { %16831 = vmatprep.subr.mxu0 %v17659_v0 }
0x43c7   : > { %16832 = vmatpush3.msra.mxu0 %v15060_v56  ;;  %v15094_v56 = vld [vmem:[%s19864_s8 + $0x28] sm:$0xff] }
0x43c8   : > { %16833 = vmatprep.subr.mxu0 %v17659_v0 }
0x43c9   : > { %16834 = vmatpush3.msra.mxu0 %v15059_v24 }
0x43ca   : > { %16836 = vmatmul.mubr.msk.f32.vlgmr.msra.gmra.mxu0 %vm1571_vm1, %v19144_v36  ;;  %16838 = vmatprep.subr.mxu0 %v17659_v0 }
0x43cb   : > { %16840 = vmatprep.mubr.msk.f32.mxu0 %vm17660_vm0, %v17659_v0 }
0x447a   : > { %v10223_v42 = vpop.f32.mrf.mxu0 }
0x447b   : > { %v10224_v48 = vadd.f32 %v15050_v45, %v10223_v42  ;;  %v15106_v45 = vld [vmem:[%s19857_s3 + $0xd0] sm:$0xff] }
0x447c   : > { %v16815_v43 = vpop.f32.mrf.mxu0 }
0x4482   : > { %v10306_v4 = vpop.f32.mrf.mxu0 }
0x4483   : > { %v10307_v46 = vadd.f32 %v15057_v44, %v10306_v4  ;;  %v15069_v44 = vld [vmem:[%s19864_s8 + $0x20] sm:$0xff]  ;;  %v15107_v4 = vld [vmem:[%s19857_s3 + $0xd8] sm:$0xff] }
0x4484   : > { %v16826_v47 = vpop.f32.mrf.mxu0 }
0x4485   : > { %16839 = vmatpush3.xpose.msk.msra.mxu0 %vm1807_vm2, %v10307_v46  ;;  %v15105_v46 = vld [vmem:[%s19857_s3 + $0xc8] sm:$0xff]  ;;  %v15104_v47 = vld [vmem:[%s19857_s3 + $0xc0] sm:$0xff] }
0x4486   : > { %16848 = vmatprep.subr.mxu0 %v17659_v0 }
0x4488   : > { %16841 = vmatmul.mubr.msk.f32.vlgmr.msra.gmra.mxu0 %vm1807_vm2, %v10224_v48  ;;  %v15100_v48 = vld [vmem:[%s19855_s7 + $0xd8] sm:$0xff] }
0x4489   : > { %16849 = vmatpush3.msra.mxu0 %v15073_v49  ;;  %16856 = vmatprep.mubr.msk.f32.mxu0 %vm17660_vm0, %v17659_v0 }
0x448a   : > { %v10389_v52 = vpop.f32.mrf.mxu0  ;;  %16850 = vmatprep.subr.mxu0 %v17659_v0 }
0x448b   : > { %v10390_v60 = vadd.f32 %v15064_v34, %v10389_v52  ;;  %16851 = vmatpush3.msra.mxu0 %v15072_v51  ;;  %v15099_v34 = vld [vmem:[%s19855_s7 + $0xd0] sm:$0xff]  ;;  %v15098_v52 = vld [vmem:[%s19855_s7 + $0xc8] sm:$0xff] }
0x448c   : > { %v16837_v54 = vpop.f32.mrf.mxu0  ;;  %16852 = vmatprep.subr.mxu0 %v17659_v0 }
0x448d   : > { %16844 = vmatpush3.msra.mxu1 %v10390_v60  ;;  %16853 = vmatpush3.msra.mxu0 %v15071_v53  ;;  %v15097_v60 = vld [vmem:[%s19855_s7 + $0xc0] sm:$0xff] }
0x448e   : > { %16854 = vmatprep.subr.mxu0 %v17659_v0  ;;  %16859 = vmatprep.subr.mxu1 %v17659_v0 }
0x448f   : > { %16855 = vmatpush3.msra.mxu0 %v15070_v55  ;;  %v15114_v55 = vld [vmem:[%s19858_s5 + $0xd8] sm:$0xff] }
0x4490   : > { %16857 = vmatmul.mubr.msk.f32.vlgmr.msra.gmra.mxu0 %vm1571_vm1, %v19144_v36  ;;  %16870 = vmatprep.subr.mxu0 %v17659_v0 }
0x4491   : > { %16871 = vmatpush3.msra.mxu0 %v15087_v57  ;;  %16878 = vmatprep.mubr.msk.f32.mxu0 %vm17660_vm0, %v17659_v0  ;;  %v15113_v57 = vld [vmem:[%s19858_s5 + $0xd0] sm:$0xff] }
0x4492   : > { %16872 = vmatprep.subr.mxu0 %v17659_v0 }
0x4493   : > { %16873 = vmatpush3.msra.mxu0 %v15086_v7  ;;  %v15109_v7 = vld [vmem:[%s19860_s2 + $0x6] ss:$0 sm:$0xff] }
0x4494   : > { %16874 = vmatprep.subr.mxu0 %v17659_v0 }
0x4495   : > { %16875 = vmatpush3.msra.mxu0 %v15085_v58  ;;  %v15112_v58 = vld [vmem:[%s19858_s5 + $0xc8] sm:$0xff] }
0x4496   : > { %16876 = vmatprep.subr.mxu0 %v17659_v0 }
0x4497   : > { %16877 = vmatpush3.msra.mxu0 %v15084_v59 }
0x4498   : > { %16879 = vmatmul.mubr.msk.f32.vlgmr.msra.gmra.mxu0 %vm1571_vm1, %v19144_v36  ;;  %16891 = vmatprep.subr.mxu0 %v17659_v0 }
0x4499   : > { %16893 = vmatprep.mubr.msk.f32.mxu0 %vm17660_vm0, %v17659_v0  ;;  %16892 = vmatpush3.msra.mxu0 %v15094_v56  ;;  %v15130_v56 = vld [vmem:[%s19857_s3 + $0xe0] sm:$0xff] }
0x449a   : > { %16901 = vmatprep.subr.mxu0 %v17659_v0 }
0x4548   : > { %v10465_v61 = vpop.f32.mrf.mxu0 }
0x4549   : > { %v10469_v62 = vmul.f32 0.35355338, %v10465_v61 }
0x454a   : > { %v16842_v63 = vpop.f32.mrf.mxu0 }
0x454b   : > { %v10470_v1 = vsel %vm1807_vm2, %v10469_v62, -inf }
0x454c   : > { %10471 = vmax.xlane.f32.xlu0 %v10470_v1 }
0x4550   : > { %v10635_v2 = vpop.f32.mrf.mxu0 }
0x4551   : > { %v10636_v29 = vadd.f32 %v15075_v25, %v10635_v2 }
0x4552   : > { %v16858_v3 = vpop.f32.mrf.mxu0 }
0x4553   : > { %v15102_v3 = vld [vmem:[%s19861_s11 + $0x6] ss:$0 sm:$0xff] }
0x4558   : > { %v10801_v5 = vpop.f32.mrf.mxu0 }
0x4559   : > { %v10802_v31 = vadd.f32 %v15089_v27, %v10801_v5  ;;  %v15126_v27 = vld [vmem:[%s19855_s7 + $0xf8] sm:$0xff] }
0x455a   : > { %v16880_v8 = vpop.f32.mrf.mxu0 }
0x45d5   : > { %v10472_v6 = vpop.xlane.xlu0 %10471 }
0x45d6   : > { %v10473_v10 = vsub.f32 %v10469_v62, %v10472_v6  ;;  %v15111_v62 = vld [vmem:[%s19858_s5 + $0xc0] sm:$0xff] }
0x45d8   : > { %v10474_v11 = vmul.f32 1.442695, %v10473_v10  ;;  %v15116_v10 = vld [vmem:[%s19862_s6 + $0x6] ss:$0 sm:$0xff] }
0x45da   : > { %17439 = vpow2.f32 %v10474_v11 }
0x45e7   : > { %v17440_v9 = vpop.eup %17439 }
0x45e8   : > { %v10476_v12 = vsel %vm1807_vm2, %v17440_v9, 0.0 }
0x45e9   : > { %10477 = vadd.xlane.f32.xlu1 %v10476_v12 }
0x4672   : > { %v10478_v13 = vpop.xlane.xlu1 %10477 }
0x4673   : > { %17441 = vrcp.f32 %v10478_v13 }
0x4680   : > { %v17442_v14 = vpop.eup %17441 }
0x4681   : > { %v10480_v15 = vmul.f32 %v17442_v14, %v17440_v9 }
0x4683   : > { %16846 = vmatmul.mubr.msk.f32.vlgmr.msra.gmra.mxu1 %vm1807_vm2, %v10480_v15 }
0x4684   : > { %16860 = vmatpush3.msra.mxu1 %v15080_v16  ;;  %16867 = vmatprep.mubr.msk.f32.mxu1 %vm17660_vm0, %v17659_v0 }
0x4685   : > { %16861 = vmatprep.subr.mxu1 %v17659_v0 }
0x4686   : > { %16862 = vmatpush3.msra.mxu1 %v15079_v17 }
0x4687   : > { %16863 = vmatprep.subr.mxu1 %v17659_v0 }
0x4688   : > { %16864 = vmatpush3.msra.mxu1 %v15078_v18 }
0x4689   : > { %16865 = vmatprep.subr.mxu1 %v17659_v0 }
0x468a   : > { %16866 = vmatpush3.msra.mxu1 %v15077_v19 }
0x468b   : > { %16868 = vmatmul.mubr.msk.f32.vlgmr.msra.gmra.mxu1 %vm1571_vm1, %v19144_v36  ;;  %16881 = vmatprep.subr.mxu1 %v17659_v0 }
0x468c   : > { %16883 = vmatprep.mubr.msk.f32.mxu1 %vm17660_vm0, %v17659_v0 }
0x4743   : > { %v10550_v20 = vpop.f32.mrf.mxu1 }
0x4745   : > { %v16847_v21 = vpop.f32.mrf.mxu1 }
0x474b   : > { %v10718_v23 = vpop.f32.mrf.mxu1 }
0x474c   : > { %v10719_v26 = vadd.f32 %v15082_v22, %v10718_v23  ;;  %v15121_v22 = vld [vmem:[%s19864_s8 + $0x30] sm:$0xff] }
0x474d   : > { %v16869_v28 = vpop.f32.mrf.mxu1 }
0x474e   : > { %16882 = vmatpush3.xpose.msk.msra.mxu1 %vm1807_vm2, %v10719_v26  ;;  %v15125_v28 = vld [vmem:[%s19855_s7 + $0xf0] sm:$0xff] }
0x474f   : > { %16886 = vmatprep.subr.mxu1 %v17659_v0 }
0x4751   : > { %16884 = vmatmul.mubr.msk.f32.vlgmr.msra.gmra.mxu1 %vm1807_vm2, %v10636_v29  ;;  %v15124_v29 = vld [vmem:[%s19855_s7 + $0xe8] sm:$0xff] }
0x4752   : > { %16887 = vmatpush3.msra.mxu1 %v10802_v31  ;;  %16888 = vmatprep.mubr.msk.f32.mxu1 %vm17660_vm0, %v17659_v0  ;;  %v15123_v31 = vld [vmem:[%s19855_s7 + $0xe0] sm:$0xff] }
0x4753   : > { %16896 = vmatprep.subr.mxu1 %v17659_v0 }
0x4811   : > { %v10877_v32 = vpop.f32.mrf.mxu1 }
0x4812   : > { %v10881_v33 = vmul.f32 0.35355338, %v10877_v32  ;;  %v15140_v32 = vld [vmem:[%s19858_s5 + $0xf8] sm:$0xff] }
0x4813   : > { %v16885_v35 = vpop.f32.mrf.mxu1 }
0x4814   : > { %v10882_v37 = vsel %vm1807_vm2, %v10881_v33, -inf  ;;  %v15138_v35 = vld [vmem:[%s19858_s5 + $0xe8] sm:$0xff] }
0x4815   : > { %10883 = vmax.xlane.f32.xlu0 %v10882_v37  ;;  %v15137_v37 = vld [vmem:[%s19858_s5 + $0xe0] sm:$0xff] }
0x489e   : > { %v10884_v50 = vpop.xlane.xlu0 %10883 }
0x489f   : > { %v10885_v38 = vsub.f32 %v10881_v33, %v10884_v50  ;;  %v15139_v33 = vld [vmem:[%s19858_s5 + $0xf0] sm:$0xff]  ;;  %v15133_v50 = vld [vmem:[%s19857_s3 + $0xf8] sm:$0xff] }
0x48a1   : > { %v10886_v39 = vmul.f32 1.442695, %v10885_v38 }
0x48a3   : > { %17443 = vpow2.f32 %v10886_v39  ;;  %v15132_v39 = vld [vmem:[%s19857_s3 + $0xf0] sm:$0xff] }
0x48b0   : > { %v17444_v40 = vpop.eup %17443 }
0x48b1   : > { %v10888_v41 = vsel %vm1807_vm2, %v17444_v40, 0.0 }
0x48b2   : > { %10889 = vadd.xlane.f32.xlu1 %v10888_v41  ;;  %v15131_v41 = vld [vmem:[%s19857_s3 + $0xe8] sm:$0xff]  ;;  %s15299_s3 = sshll.u32 %s19897_s26, 7 }
0x493b   : > { %v10890_v24 = vpop.xlane.xlu1 %10889 }
0x493c   : > { %17445 = vrcp.f32 %v10890_v24 }
0x4949   : > { %v17446_v42 = vpop.eup %17445 }
0x494a   : > { %v10892_v43 = vmul.f32 %v17446_v42, %v17444_v40 }
0x494c   : > { %16889 = vmatmul.mubr.msk.f32.vlgmr.msra.gmra.mxu1 %vm1807_vm2, %v10892_v43 }
0x494d   : > { %16897 = vmatpush3.msra.mxu1 %v15069_v44  ;;  %16898 = vmatprep.mubr.msk.f32.mxu1 %vm17660_vm0, %v17659_v0 }
0x494e   : > { %16912 = vmatprep.subr.mxu1 %v17659_v0 }
0x4950   : > { %16899 = vmatmul.mubr.msk.f32.vlgmr.msra.gmra.mxu1 %vm1807_vm2, %v10550_v20 }
0x4951   : > { %16913 = vmatpush3.msra.mxu1 %v15107_v4  ;;  %16920 = vmatprep.mubr.msk.f32.mxu1 %vm17660_vm0, %v17659_v0 }
0x4952   : > { %16914 = vmatprep.subr.mxu1 %v17659_v0 }
0x4953   : > { %16915 = vmatpush3.msra.mxu1 %v15106_v45 }
0x4954   : > { %16916 = vmatprep.subr.mxu1 %v17659_v0 }
0x4955   : > { %16917 = vmatpush3.msra.mxu1 %v15105_v46 }
0x4956   : > { %16918 = vmatprep.subr.mxu1 %v17659_v0 }
0x4957   : > { %16919 = vmatpush3.msra.mxu1 %v15104_v47 }
0x4958   : > { %16921 = vmatmul.mubr.msk.f32.vlgmr.msra.gmra.mxu1 %vm1571_vm1, %v19144_v36  ;;  %16934 = vmatprep.subr.mxu1 %v17659_v0 }
0x4959   : > { %16936 = vmatprep.mubr.msk.f32.mxu1 %vm17660_vm0, %v17659_v0 }
0x4a0c   : > { %v10962_v49 = vpop.f32.mrf.mxu1 }
0x4a0d   : > { %16894 = vmatmul.mubr.msk.f32.vlgmr.msra.gmra.mxu0 %vm1807_vm2, %v10962_v49 }
0x4a0e   : > { %16902 = vmatpush3.msra.mxu0 %v15100_v48  ;;  %v16890_v51 = vpop.f32.mrf.mxu1  ;;  %16909 = vmatprep.mubr.msk.f32.mxu0 %vm17660_vm0, %v17659_v0  ;;  %v15135_v48 = vld [vmem:[%s19860_s2 + $0x7] ss:$0 sm:$0xff] }
0x4a0f   : > { %16903 = vmatprep.subr.mxu0 %v17659_v0 }
0x4a10   : > { %16904 = vmatpush3.msra.mxu0 %v15099_v34  ;;  %v19264_v53 = vpop.f32.mrf.mxu1  ;;  %v15128_v34 = vld [vmem:[%s19861_s11 + $0x7] ss:$0 sm:$0xff] }
0x4a11   : > { %16905 = vmatprep.subr.mxu0 %v17659_v0 }
0x4a12   : > { %16906 = vmatpush3.msra.mxu0 %v15098_v52  ;;  %v16900_v54 = vpop.f32.mrf.mxu1  ;;  %v15142_v52 = vld [vmem:[%s19862_s6 + $0x7] ss:$0 sm:$0xff] }
0x4a13   : > { %16907 = vmatprep.subr.mxu0 %v17659_v0 }
0x4a14   : > { %16908 = vmatpush3.msra.mxu0 %v15097_v60 }
0x4a15   : > { %16910 = vmatmul.mubr.msk.f32.vlgmr.msra.gmra.mxu0 %vm1571_vm1, %v19144_v36  ;;  %16923 = vmatprep.subr.mxu0 %v17659_v0 }
0x4a16   : > { %16924 = vmatpush3.msra.mxu0 %v15114_v55  ;;  %16931 = vmatprep.mubr.msk.f32.mxu0 %vm17660_vm0, %v17659_v0 }
0x4a17   : > { %16925 = vmatprep.subr.mxu0 %v17659_v0 }
0x4a18   : > { %v11276_v59 = vpop.f32.mrf.mxu1  ;;  %16926 = vmatpush3.msra.mxu0 %v15113_v57 }
0x4a19   : > { %v11277_v61 = vadd.f32 %v15109_v7, %v11276_v59  ;;  %16927 = vmatprep.subr.mxu0 %v17659_v0 }
0x4a1a   : > { %v16922_v63 = vpop.f32.mrf.mxu1  ;;  %16928 = vmatpush3.msra.mxu0 %v15112_v58 }
0x4a1b   : > { %16929 = vmatprep.subr.mxu0 %v17659_v0  ;;  %16935 = vmatpush3.xpose.msk.msra.mxu1 %vm1807_vm2, %v11277_v61 }
0x4a1c   : > { %16930 = vmatpush3.msra.mxu0 %v15111_v62  ;;  %16939 = vmatprep.subr.mxu1 %v17659_v0 }
0x4a1d   : > { %16932 = vmatmul.mubr.msk.f32.vlgmr.msra.gmra.mxu0 %vm1571_vm1, %v19144_v36  ;;  %16944 = vmatprep.subr.mxu0 %v17659_v0 }
0x4a1e   : > { %16946 = vmatprep.mubr.msk.f32.mxu0 %vm17660_vm0, %v17659_v0  ;;  %16945 = vmatpush3.msra.mxu0 %v15121_v22 }
0x4a1f   : > { %16960 = vmatprep.subr.mxu0 %v17659_v0 }
0x4acd   : > { %v19289_v1 = vpop.f32.mrf.mxu0 }
0x4ace   : > { %v11111_v4 = vadd.f32 %v19264_v53, %v19289_v1 }
0x4acf   : > { %v16895_v2 = vpop.f32.mrf.mxu0 }
0x4ad0   : > { %v15147_v2 = vld [vmem:[%s19864_s8 + $0x38] sm:$0xff] }
0x4ad5   : > { %v11193_v5 = vpop.f32.mrf.mxu0 }
0x4ad6   : > { %v11194_v8 = vadd.f32 %v15102_v3, %v11193_v5 }
0x4ad7   : > { %v16911_v6 = vpop.f32.mrf.mxu0 }
0x4ad8   : > { %16937 = vmatmul.mubr.msk.f32.vlgmr.msra.gmra.mxu1 %vm1807_vm2, %v11194_v8  ;;  %v15165_v6 = vld [vmem:[%s19866_s9 + $0x98] sm:$0xff] }
0x4ad9   : > { %16941 = vmatprep.mubr.msk.f32.mxu1 %vm17660_vm0, %v17659_v0 }
0x4add   : > { %v11359_v11 = vpop.f32.mrf.mxu0 }
0x4ade   : > { %v11360_v9 = vadd.f32 %v15116_v10, %v11359_v11  ;;  %v15164_v11 = vld [vmem:[%s19866_s9 + $0x90] sm:$0xff] }
0x4adf   : > { %v16933_v12 = vpop.f32.mrf.mxu0 }
0x4ae0   : > { %16940 = vmatpush3.msra.mxu1 %v11360_v9  ;;  %v15163_v12 = vld [vmem:[%s19866_s9 + $0x88] sm:$0xff] }
0x4ae1   : > { %16949 = vmatprep.subr.mxu1 %v17659_v0 }
0x4b98   : > { %v11435_v13 = vpop.f32.mrf.mxu1 }
0x4b99   : > { %v11439_v14 = vmul.f32 0.35355338, %v11435_v13  ;;  %v15162_v13 = vld [vmem:[%s19866_s9 + $0x80] sm:$0xff] }
0x4b9a   : > { %v16938_v15 = vpop.f32.mrf.mxu1 }
0x4b9b   : > { %v11440_v16 = vsel %vm1807_vm2, %v11439_v14, -inf  ;;  %v15150_v15 = vld [vmem:[%s19870_s13 + $0x1] ss:$0 sm:$0xff] }
0x4b9c   : > { %11441 = vmax.xlane.f32.xlu0 %v11440_v16 }
0x4c25   : > { %v11442_v17 = vpop.xlane.xlu0 %11441 }
0x4c26   : > { %v11443_v18 = vsub.f32 %v11439_v14, %v11442_v17 }
0x4c28   : > { %v11444_v19 = vmul.f32 1.442695, %v11443_v18 }
0x4c2a   : > { %17447 = vpow2.f32 %v11444_v19 }
0x4c37   : > { %v17448_v20 = vpop.eup %17447 }
0x4c38   : > { %v11446_v21 = vsel %vm1807_vm2, %v17448_v20, 0.0 }
0x4c39   : > { %11447 = vadd.xlane.f32.xlu1 %v11446_v21 }
0x4cc2   : > { %v11448_v23 = vpop.xlane.xlu1 %11447 }
0x4cc3   : > { %17449 = vrcp.f32 %v11448_v23 }
0x4cd0   : > { %v17450_v25 = vpop.eup %17449 }
0x4cd1   : > { %v11450_v26 = vmul.f32 %v17450_v25, %v17448_v20  ;;  %v15167_v20 = vld [vmem:[%s19871_s14 + $0x4] ss:$0 sm:$0xff] }
0x4cd3   : > { %16942 = vmatmul.mubr.msk.f32.vlgmr.msra.gmra.mxu1 %vm1807_vm2, %v11450_v26 }
0x4cd4   : > { %16950 = vmatpush3.msra.mxu1 %v15126_v27  ;;  %16957 = vmatprep.mubr.msk.f32.mxu1 %vm17660_vm0, %v17659_v0 }
0x4cd5   : > { %16951 = vmatprep.subr.mxu1 %v17659_v0 }
0x4cd6   : > { %16952 = vmatpush3.msra.mxu1 %v15125_v28 }
0x4cd7   : > { %16953 = vmatprep.subr.mxu1 %v17659_v0 }
0x4cd8   : > { %16954 = vmatpush3.msra.mxu1 %v15124_v29 }
0x4cd9   : > { %16955 = vmatprep.subr.mxu1 %v17659_v0 }
0x4cda   : > { %16956 = vmatpush3.msra.mxu1 %v15123_v31  ;;  %v15158_v31 = vld [vmem:[%s19872_s16 + $0x98] sm:$0xff] }
0x4cdb   : > { %16958 = vmatmul.mubr.msk.f32.vlgmr.msra.gmra.mxu1 %vm1571_vm1, %v19144_v36  ;;  %16971 = vmatprep.subr.mxu1 %v17659_v0 }
0x4cdc   : > { %16972 = vmatpush3.msra.mxu1 %v15140_v32  ;;  %16979 = vmatprep.mubr.msk.f32.mxu1 %vm17660_vm0, %v17659_v0  ;;  %v15157_v32 = vld [vmem:[%s19872_s16 + $0x90] sm:$0xff] }
0x4cdd   : > { %16973 = vmatprep.subr.mxu1 %v17659_v0 }
0x4cde   : > { %16974 = vmatpush3.msra.mxu1 %v15139_v33  ;;  %v15156_v33 = vld [vmem:[%s19872_s16 + $0x88] sm:$0xff] }
0x4cdf   : > { %16975 = vmatprep.subr.mxu1 %v17659_v0 }
0x4ce0   : > { %16976 = vmatpush3.msra.mxu1 %v15138_v35  ;;  %v15155_v35 = vld [vmem:[%s19872_s16 + $0x80] sm:$0xff] }
0x4ce1   : > { %16977 = vmatprep.subr.mxu1 %v17659_v0 }
0x4ce2   : > { %16978 = vmatpush3.msra.mxu1 %v15137_v37 }
0x4ce3   : > { %16980 = vmatmul.mubr.msk.f32.vlgmr.msra.gmra.mxu1 %vm1571_vm1, %v19144_v36  ;;  %16992 = vmatprep.subr.mxu1 %v17659_v0 }
0x4ce4   : > { %16994 = vmatprep.mubr.msk.f32.mxu1 %vm17660_vm0, %v17659_v0  ;;  %16993 = vmatpush3.msra.mxu1 %v15147_v2 }
0x4ce5   : > { %17008 = vmatprep.subr.mxu1 %v17659_v0 }
0x4d93   : > { %v11520_v38 = vpop.f32.mrf.mxu1 }
0x4d94   : > { %16947 = vmatmul.mubr.msk.f32.vlgmr.msra.gmra.mxu0 %vm1807_vm2, %v11520_v38 }
0x4d95   : > { %16961 = vmatpush3.msra.mxu0 %v15133_v50  ;;  %v16943_v40 = vpop.f32.mrf.mxu1  ;;  %16968 = vmatprep.mubr.msk.f32.mxu0 %vm17660_vm0, %v17659_v0 }
0x4d96   : > { %16962 = vmatprep.subr.mxu0 %v17659_v0  ;;  %v15153_v40 = vld [vmem:[%s19873_s1 + $0x1] ss:$0 sm:$0xff]  ;;  %s1546_s1 = sand.u32 1, %s17596_s23  }
0x4d97   : > { %16963 = vmatpush3.msra.mxu0 %v15132_v39  ;;  %s14618_s2 = sshll.u32 %s1546_s1, 3  ;;  %s14453_s7 = scalar_lea.sflag [#allocation4], %s1546_s1 }
0x4d98   : > { %16964 = vmatprep.subr.mxu0 %v17659_v0 }
0x4d99   : > { %16965 = vmatpush3.msra.mxu0 %v15131_v41 }
0x4d9a   : > { %16966 = vmatprep.subr.mxu0 %v17659_v0 }
0x4d9b   : > { %v11679_v24 = vpop.f32.mrf.mxu1  ;;  %16967 = vmatpush3.msra.mxu0 %v15130_v56  ;;  %v15154_v56 = vld [vmem:[%s19874_s10 + $0x1] ss:$0 sm:$0xff] }
0x4d9c   : > { %16969 = vmatmul.mubr.msk.f32.vlgmr.msra.gmra.mxu0 %vm1571_vm1, %v19144_v36  ;;  %16982 = vmatprep.subr.mxu0 %v17659_v0  ;;  %v11680_v54 = vadd.f32 %v15128_v34, %v11679_v24  ;;  %v15197_v34 = vld [vmem:[%s19876_s17 + $0xb8] sm:$0xff] }
0x4d9d   : > { %v16959_v42 = vpop.f32.mrf.mxu1  ;;  %16984 = vmatprep.mubr.msk.f32.mxu0 %vm17660_vm0, %v17659_v0 }
0x4da3   : > { %v11845_v43 = vpop.f32.mrf.mxu1 }
0x4da4   : > { %v11846_v55 = vadd.f32 %v15142_v52, %v11845_v43  ;;  %v15172_v43 = vld [vmem:[%s19876_s17 + $0x98] sm:$0xff]  ;;  %v15195_v52 = vld [vmem:[%s19876_s17 + $0xa8] sm:$0xff] }
0x4da5   : > { %v16981_v44 = vpop.f32.mrf.mxu1 }
0x4da6   : > { %v15171_v44 = vld [vmem:[%s19876_s17 + $0x90] sm:$0xff] }
0x4e54   : > { %v11595_v45 = vpop.f32.mrf.mxu0 }
0x4e55   : > { %v11599_v46 = vadd.f32 %v11595_v45, %v11111_v4  ;;  %v15170_v4 = vld [vmem:[%s19876_s17 + $0x88] sm:$0xff]  ;;  %v15169_v45 = vld [vmem:[%s19876_s17 + $0x80] sm:$0xff] }
0x4e56   : > { %v16948_v47 = vpop.f32.mrf.mxu0 }
0x4e57   : > { %v15182_v47 = vld [vmem:[%s19872_s16 + $0xb0] sm:$0xff] }
0x4e5c   : > { %v11762_v49 = vpop.f32.mrf.mxu0 }
0x4e5d   : > { %v11763_v51 = vadd.f32 %v15135_v48, %v11762_v49  ;;  %v15181_v48 = vld [vmem:[%s19872_s16 + $0xa8] sm:$0xff]  ;;  %v15180_v49 = vld [vmem:[%s19872_s16 + $0xa0] sm:$0xff] }
0x4e5e   : > { %v16970_v60 = vpop.f32.mrf.mxu0 }
0x4e5f   : > { %16983 = vmatpush3.xpose.msk.msra.mxu0 %vm1807_vm2, %v11763_v51  ;;  %v15196_v51 = vld [vmem:[%s19876_s17 + $0xb0] sm:$0xff]  ;;  %v15194_v60 = vld [vmem:[%s19876_s17 + $0xa0] sm:$0xff] }
0x4e60   : > { %16987 = vmatprep.subr.mxu0 %v17659_v0 }
0x4e62   : > { %16985 = vmatmul.mubr.msk.f32.vlgmr.msra.gmra.mxu0 %vm1807_vm2, %v11680_v54  ;;  %v15160_v54 = vld [vmem:[%s19878_s18 + $0x4] ss:$0 sm:$0xff] }
0x4e63   : > { %16988 = vmatpush3.msra.mxu0 %v11846_v55  ;;  %16989 = vmatprep.mubr.msk.f32.mxu0 %vm17660_vm0, %v17659_v0 }
0x4e64   : > { %16997 = vmatprep.subr.mxu0 %v17659_v0 }
0x4f22   : > { %v11921_v53 = vpop.f32.mrf.mxu0 }
0x4f23   : > { %v11925_v57 = vmul.f32 0.35355338, %v11921_v53 }
0x4f24   : > { %v16986_v7 = vpop.f32.mrf.mxu0 }
0x4f25   : > { %v11926_v58 = vsel %vm1807_vm2, %v11925_v57, -inf  ;;  %v15174_v7 = vld [vmem:[%s19879_s19 + $0x4] ss:$0 sm:$0xff] }
0x4f26   : > { %11927 = vmax.xlane.f32.xlu0 %v11926_v58 }
0x4faf   : > { %v11928_v59 = vpop.xlane.xlu0 %11927 }
0x4fb0   : > { %v11929_v61 = vsub.f32 %v11925_v57, %v11928_v59 }
0x4fb2   : > { %v11930_v62 = vmul.f32 1.442695, %v11929_v61 }
0x4fb4   : > { %17451 = vpow2.f32 %v11930_v62 }
0x4fc1   : > { %v17452_v63 = vpop.eup %17451 }
0x4fc2   : > { %v11932_v1 = vsel %vm1807_vm2, %v17452_v63, 0.0 }
0x4fc3   : > { %11933 = vadd.xlane.f32.xlu1 %v11932_v1 }
0x504c   : > { %v11934_v3 = vpop.xlane.xlu1 %11933 }
0x504d   : > { %17453 = vrcp.f32 %v11934_v3 }
0x505a   : > { %v17454_v5 = vpop.eup %17453 }
0x505b   : > { %v11936_v8 = vmul.f32 %v17454_v5, %v17452_v63 }
0x505d   : > { %16990 = vmatmul.mubr.msk.f32.vlgmr.msra.gmra.mxu0 %vm1807_vm2, %v11936_v8 }
0x505e   : > { %17005 = vmatprep.mubr.msk.f32.mxu0 %vm17660_vm0, %v17659_v0  ;;  %16998 = vmatpush3.msra.mxu0 %v15158_v31 }
0x505f   : > { %16999 = vmatprep.subr.mxu0 %v17659_v0 }
0x5060   : > { %17000 = vmatpush3.msra.mxu0 %v15157_v32 }
0x5061   : > { %17001 = vmatprep.subr.mxu0 %v17659_v0 }
0x5062   : > { %17002 = vmatpush3.msra.mxu0 %v15156_v33 }
0x5063   : > { %17003 = vmatprep.subr.mxu0 %v17659_v0 }
0x5064   : > { %17004 = vmatpush3.msra.mxu0 %v15155_v35 }
0x5065   : > { %17019 = vmatprep.subr.mxu0 %v17659_v0 }
0x511d   : > { %v12006_v10 = vpop.f32.mrf.mxu0 }
0x511e   : > { %16995 = vmatmul.mubr.msk.f32.vlgmr.msra.gmra.mxu1 %vm1807_vm2, %v12006_v10 }
0x511f   : > { %17009 = vmatpush3.msra.mxu1 %v15165_v6  ;;  %v16991_v9 = vpop.f32.mrf.mxu0  ;;  %17016 = vmatprep.mubr.msk.f32.mxu1 %vm17660_vm0, %v17659_v0 }
0x5120   : > { %17010 = vmatprep.subr.mxu1 %v17659_v0 }
0x5121   : > { %17011 = vmatpush3.msra.mxu1 %v15164_v11 }
0x5122   : > { %17012 = vmatprep.subr.mxu1 %v17659_v0 }
0x5123   : > { %17013 = vmatpush3.msra.mxu1 %v15163_v12 }
0x5124   : > { %17014 = vmatprep.subr.mxu1 %v17659_v0 }
0x5125   : > { %17015 = vmatpush3.msra.mxu1 %v15162_v13 }
0x5126   : > { %17017 = vmatmul.mubr.msk.f32.vlgmr.msra.gmra.mxu1 %vm1571_vm1, %v18850_v30  ;;  %17030 = vmatprep.subr.mxu1 %v17659_v0 }
0x5127   : > { %17032 = vmatprep.mubr.msk.f32.mxu1 %vm17660_vm0, %v17659_v0 }
0x51de   : > { %v12081_v14 = vpop.f32.mrf.mxu1 }
0x51df   : > { %v12085_v16 = vadd.f32 %v12081_v14, %v11599_v46  ;;  %v15183_v46 = vld [vmem:[%s19872_s16 + $0xb8] sm:$0xff] }
0x51e0   : > { %v16996_v17 = vpop.f32.mrf.mxu1 }
0x51e1   : > { %v12094_v18 = vadd.f32 %v15150_v15, %v12085_v16  ;;  %v15190_v17 = vld [vmem:[%s19866_s9 + $0xb8] sm:$0xff] }
0x51e3   : > { %v12095_v19 = vadd.f32 %v12094_v18, %v19144_v36  ;;  %v15189_v18 = vld [vmem:[%s19866_s9 + $0xb0] sm:$0xff] }
0x51e5   : > { %v12100_v21 = vsel %vm1571_vm1, %v12095_v19, 0.0 }
0x51e6   : > { %v12292_v22 = vpop.f32.mrf.mxu1  ;;  %12101 = vadd.xlane.f32.xlu0 %v12100_v21 }
0x51e7   : > { %v12293_v23 = vadd.f32 %v15167_v20, %v12292_v22  ;;  %v15187_v20 = vld [vmem:[%s19866_s9 + $0xa0] sm:$0xff] }
0x51e8   : > { %v17018_v25 = vpop.f32.mrf.mxu1 }
0x51e9   : > { %17031 = vmatpush3.xpose.msk.msra.mxu1 %vm1807_vm2, %v12293_v23  ;;  %v15192_v23 = vld [vmem:[%s19871_s14 + $0x5] ss:$0 sm:$0xff] }
0x51ea   : > { %17035 = vmatprep.subr.mxu1 %v17659_v0 }
0x526f   : > { %v12102_v26 = vpop.xlane.xlu0 %12101 }
0x5270   : > { %v12103_v27 = vmul.f32 0.03125, %v12102_v26  ;;  %v15185_v26 = vld [vmem:[%s19878_s18 + $0x5] ss:$0 sm:$0xff] }
0x5272   : > { %v12104_v28 = vsub.f32 %v12095_v19, %v12103_v27  ;;  %v15188_v19 = vld [vmem:[%s19866_s9 + $0xa8] sm:$0xff] }
0x5274   : > { %v12105_v29 = vmul.f32 %v12104_v28, %v12104_v28 }
0x5276   : > { %v12106_v36 = vsel %vm1571_vm1, %v12105_v29, 0.0 }
0x5277   : > { %12107 = vadd.xlane.f32.xlu1 %v12106_v36 }
0x5300   : > { %v12108_v37 = vpop.xlane.xlu1 %12107 }
0x5301   : > { %v12109_v50 = vmul.f32 0.03125, %v12108_v37 }
0x5303   : > { %v12110_v38 = vadd.f32 1e-05, %v12109_v50 }
0x5305   : > { %17455 = vrsqrt.f32 %v12110_v38 }
0x5312   : > { %v17456_v39 = vpop.eup %17455 }
0x5313   : > { %v12112_v41 = vmul.f32 %v17456_v39, %v12104_v28  ;;  %v15199_v28 = vld [vmem:[%s19879_s19 + $0x5] ss:$0 sm:$0xff] }
0x5315   : > { %v12119_v24 = vmul.f32 %v15153_v40, %v12112_v41 }
0x5317   : > { %v19393_v42 = vadd.f32 %v15154_v56, %v12119_v24  ;;  %v15204_v56 = vld [vmem:[%s19881_s20 + $0x28] sm:$0xff] }
0x5319   : > { %17006 = vmatmul.mubr.msk.f32.vlgmr.msra.gmra.mxu0 %vm1571_vm1, %v19393_v42 }
0x531a   : > { %17020 = vmatpush3.msra.mxu0 %v15172_v43  ;;  %17027 = vmatprep.mubr.msk.f32.mxu0 %vm17660_vm0, %v17659_v0 }
0x531b   : > { %17021 = vmatprep.subr.mxu0 %v17659_v0 }
0x531c   : > { %17022 = vmatpush3.msra.mxu0 %v15171_v44 }
0x531d   : > { %17023 = vmatprep.subr.mxu0 %v17659_v0 }
0x531e   : > { %17024 = vmatpush3.msra.mxu0 %v15170_v4  ;;  %v15179_v4 = vld [vmem:[%s19881_s20 + $0x20] sm:$0xff] }
0x531f   : > { %17025 = vmatprep.subr.mxu0 %v17659_v0 }
0x5320   : > { %17026 = vmatpush3.msra.mxu0 %v15169_v45  ;;  %v15217_v45 = vld [vmem:[%s19866_s9 + $0xd8] sm:$0xff] }
0x5321   : > { %17028 = vmatmul.mubr.msk.f32.vlgmr.msra.gmra.mxu0 %vm1571_vm1, %v18850_v30  ;;  %17040 = vmatprep.subr.mxu0 %v17659_v0 }
0x5322   : > { %17041 = vmatpush3.msra.mxu0 %v15183_v46  ;;  %17048 = vmatprep.mubr.msk.f32.mxu0 %vm17660_vm0, %v17659_v0  ;;  %v15216_v46 = vld [vmem:[%s19866_s9 + $0xd0] sm:$0xff] }
0x5323   : > { %17042 = vmatprep.subr.mxu0 %v17659_v0 }
0x5324   : > { %17043 = vmatpush3.msra.mxu0 %v15182_v47  ;;  %v15215_v47 = vld [vmem:[%s19866_s9 + $0xc8] sm:$0xff] }
0x5325   : > { %17044 = vmatprep.subr.mxu0 %v17659_v0 }
0x5326   : > { %17045 = vmatpush3.msra.mxu0 %v15181_v48  ;;  %v15214_v48 = vld [vmem:[%s19866_s9 + $0xc0] sm:$0xff] }
0x5327   : > { %17046 = vmatprep.subr.mxu0 %v17659_v0 }
0x5328   : > { %17047 = vmatpush3.msra.mxu0 %v15180_v49  ;;  %v15210_v49 = vld [vmem:[%s19872_s16 + $0xd8] sm:$0xff] }
0x5329   : > { %17049 = vmatmul.mubr.msk.f32.vlgmr.msra.gmra.mxu0 %vm1571_vm1, %v19393_v42  ;;  %17062 = vmatprep.subr.mxu0 %v17659_v0 }
0x532a   : > { %17063 = vmatpush3.msra.mxu0 %v15197_v34  ;;  %17070 = vmatprep.mubr.msk.f32.mxu0 %vm17660_vm0, %v17659_v0 }
0x532b   : > { %17064 = vmatprep.subr.mxu0 %v17659_v0 }
0x532c   : > { %17065 = vmatpush3.msra.mxu0 %v15196_v51  ;;  %v15209_v51 = vld [vmem:[%s19872_s16 + $0xd0] sm:$0xff] }
0x532d   : > { %17066 = vmatprep.subr.mxu0 %v17659_v0 }
0x532e   : > { %17067 = vmatpush3.msra.mxu0 %v15195_v52 }
0x532f   : > { %17068 = vmatprep.subr.mxu0 %v17659_v0 }
0x5330   : > { %17069 = vmatpush3.msra.mxu0 %v15194_v60  ;;  %v15208_v60 = vld [vmem:[%s19872_s16 + $0xc8] sm:$0xff] }
0x5331   : > { %17071 = vmatmul.mubr.msk.f32.vlgmr.msra.gmra.mxu0 %vm1571_vm1, %v18850_v30  ;;  %17083 = vmatprep.subr.mxu0 %v17659_v0 }
0x5332   : > { %17085 = vmatprep.mubr.msk.f32.mxu0 %vm17660_vm0, %v17659_v0  ;;  %17084 = vmatpush3.msra.mxu0 %v15204_v56  ;;  %v15240_v56 = vld [vmem:[%s19866_s9 + $0xe0] sm:$0xff] }
0x5333   : > { %17093 = vmatprep.subr.mxu0 %v17659_v0 }
0x53d9   : > { %v12209_v55 = vpop.f32.mrf.mxu0 }
0x53da   : > { %v12210_v53 = vadd.f32 %v15160_v54, %v12209_v55  ;;  %v15207_v55 = vld [vmem:[%s19872_s16 + $0xc0] sm:$0xff] }
0x53db   : > { %v17007_v57 = vpop.f32.mrf.mxu0 }
0x53dc   : > { %17033 = vmatmul.mubr.msk.f32.vlgmr.msra.gmra.mxu1 %vm1807_vm2, %v12210_v53  ;;  %v15224_v57 = vld [vmem:[%s19876_s17 + $0xd8] sm:$0xff] }
0x53dd   : > { %17037 = vmatprep.mubr.msk.f32.mxu1 %vm17660_vm0, %v17659_v0 }
0x53e1   : > { %v12375_v58 = vpop.f32.mrf.mxu0 }
0x53e2   : > { %v12376_v59 = vadd.f32 %v15174_v7, %v12375_v58  ;;  %v15223_v7 = vld [vmem:[%s19876_s17 + $0xd0] sm:$0xff]  ;;  %v15219_v58 = vld [vmem:[%s19871_s14 + $0x6] ss:$0 sm:$0xff] }
0x53e3   : > { %v17029_v61 = vpop.f32.mrf.mxu0 }
0x53e4   : > { %17036 = vmatpush3.msra.mxu1 %v12376_v59  ;;  %v15222_v59 = vld [vmem:[%s19876_s17 + $0xc8] sm:$0xff] }
0x53e5   : > { %17051 = vmatprep.subr.mxu1 %v17659_v0 }
0x53e9   : > { %v12621_v62 = vpop.f32.mrf.mxu0 }
0x53ea   : > { %v12622_v36 = vadd.f32 %v15185_v26, %v12621_v62 }
0x53eb   : > { %v17050_v63 = vpop.f32.mrf.mxu0 }
0x53ec   : > { %v15221_v63 = vld [vmem:[%s19876_s17 + $0xc0] sm:$0xff] }
0x53f1   : > { %v12787_v1 = vpop.f32.mrf.mxu0 }
0x53f2   : > { %v12788_v31 = vadd.f32 %v15199_v28, %v12787_v1  ;;  %v15236_v28 = vld [vmem:[%s19872_s16 + $0xf8] sm:$0xff] }
0x53f3   : > { %v17072_v2 = vpop.f32.mrf.mxu0 }
0x549c   : > { %v12451_v3 = vpop.f32.mrf.mxu1 }
0x549d   : > { %v12455_v5 = vmul.f32 0.35355338, %v12451_v3 }
0x549e   : > { %v17034_v8 = vpop.f32.mrf.mxu1 }
0x549f   : > { %v12456_v6 = vsel %vm1807_vm2, %v12455_v5, -inf }
0x54a0   : > { %12457 = vmax.xlane.f32.xlu0 %v12456_v6 }
0x5529   : > { %v12458_v10 = vpop.xlane.xlu0 %12457 }
0x552a   : > { %v12459_v11 = vsub.f32 %v12455_v5, %v12458_v10  ;;  %v15212_v5 = vld [vmem:[%s19878_s18 + $0x6] ss:$0 sm:$0xff] }
0x552c   : > { %v12460_v9 = vmul.f32 1.442695, %v12459_v11  ;;  %v15226_v11 = vld [vmem:[%s19879_s19 + $0x6] ss:$0 sm:$0xff] }
0x552e   : > { %17457 = vpow2.f32 %v12460_v9 }
0x553b   : > { %v17458_v12 = vpop.eup %17457 }
0x553c   : > { %v12462_v13 = vsel %vm1807_vm2, %v17458_v12, 0.0 }
0x553d   : > { %12463 = vadd.xlane.f32.xlu1 %v12462_v13 }
0x55c6   : > { %v12464_v14 = vpop.xlane.xlu1 %12463 }
0x55c7   : > { %17459 = vrcp.f32 %v12464_v14 }
0x55d4   : > { %v17460_v15 = vpop.eup %17459 }
0x55d5   : > { %v12466_v16 = vmul.f32 %v17460_v15, %v17458_v12 }
0x55d7   : > { %17038 = vmatmul.mubr.msk.f32.vlgmr.msra.gmra.mxu1 %vm1807_vm2, %v12466_v16 }
0x55d8   : > { %17052 = vmatpush3.msra.mxu1 %v15190_v17  ;;  %17059 = vmatprep.mubr.msk.f32.mxu1 %vm17660_vm0, %v17659_v0 }
0x55d9   : > { %17053 = vmatprep.subr.mxu1 %v17659_v0 }
0x55da   : > { %17054 = vmatpush3.msra.mxu1 %v15189_v18 }
0x55db   : > { %17055 = vmatprep.subr.mxu1 %v17659_v0 }
0x55dc   : > { %17056 = vmatpush3.msra.mxu1 %v15188_v19 }
0x55dd   : > { %17057 = vmatprep.subr.mxu1 %v17659_v0 }
0x55de   : > { %17058 = vmatpush3.msra.mxu1 %v15187_v20 }
0x55df   : > { %17060 = vmatmul.mubr.msk.f32.vlgmr.msra.gmra.mxu1 %vm1571_vm1, %v18850_v30  ;;  %17073 = vmatprep.subr.mxu1 %v17659_v0 }
0x55e0   : > { %17075 = vmatprep.mubr.msk.f32.mxu1 %vm17660_vm0, %v17659_v0 }
0x5697   : > { %v12536_v21 = vpop.f32.mrf.mxu1 }
0x5699   : > { %v17039_v22 = vpop.f32.mrf.mxu1 }
0x569f   : > { %v12704_v25 = vpop.f32.mrf.mxu1 }
0x56a0   : > { %v12705_v27 = vadd.f32 %v15192_v23, %v12704_v25  ;;  %v15231_v23 = vld [vmem:[%s19881_s20 + $0x30] sm:$0xff] }
0x56a1   : > { %v17061_v29 = vpop.f32.mrf.mxu1 }
0x56a2   : > { %17074 = vmatpush3.xpose.msk.msra.mxu1 %vm1807_vm2, %v12705_v27  ;;  %v15235_v29 = vld [vmem:[%s19872_s16 + $0xf0] sm:$0xff] }
0x56a3   : > { %17078 = vmatprep.subr.mxu1 %v17659_v0 }
0x56a5   : > { %17076 = vmatmul.mubr.msk.f32.vlgmr.msra.gmra.mxu1 %vm1807_vm2, %v12622_v36  ;;  %v15234_v36 = vld [vmem:[%s19872_s16 + $0xe8] sm:$0xff] }
0x56a6   : > { %17079 = vmatpush3.msra.mxu1 %v12788_v31  ;;  %17080 = vmatprep.mubr.msk.f32.mxu1 %vm17660_vm0, %v17659_v0  ;;  %v15233_v31 = vld [vmem:[%s19872_s16 + $0xe0] sm:$0xff] }
0x56a7   : > { %17088 = vmatprep.subr.mxu1 %v17659_v0 }
0x5765   : > { %v12863_v32 = vpop.f32.mrf.mxu1 }
0x5766   : > { %v12867_v33 = vmul.f32 0.35355338, %v12863_v32  ;;  %v15250_v32 = vld [vmem:[%s19876_s17 + $0xf8] sm:$0xff] }
0x5767   : > { %v17077_v35 = vpop.f32.mrf.mxu1 }
0x5768   : > { %v12868_v37 = vsel %vm1807_vm2, %v12867_v33, -inf  ;;  %v15248_v35 = vld [vmem:[%s19876_s17 + $0xe8] sm:$0xff] }
0x5769   : > { %12869 = vmax.xlane.f32.xlu0 %v12868_v37  ;;  %v15247_v37 = vld [vmem:[%s19876_s17 + $0xe0] sm:$0xff] }
0x57f2   : > { %v12870_v50 = vpop.xlane.xlu0 %12869 }
0x57f3   : > { %v12871_v38 = vsub.f32 %v12867_v33, %v12870_v50  ;;  %v15249_v33 = vld [vmem:[%s19876_s17 + $0xf0] sm:$0xff]  ;;  %v15243_v50 = vld [vmem:[%s19866_s9 + $0xf8] sm:$0xff] }
0x57f5   : > { %v12872_v39 = vmul.f32 1.442695, %v12871_v38 }
0x57f7   : > { %17461 = vpow2.f32 %v12872_v39  ;;  %v15242_v39 = vld [vmem:[%s19866_s9 + $0xf0] sm:$0xff] }
0x5804   : > { %v17462_v40 = vpop.eup %17461 }
0x5805   : > { %v12874_v41 = vsel %vm1807_vm2, %v17462_v40, 0.0 }
0x5806   : > { %12875 = vadd.xlane.f32.xlu1 %v12874_v41  ;;  %v15241_v41 = vld [vmem:[%s19866_s9 + $0xe8] sm:$0xff]  ;;  %s17661_s9 = smov [#allocation7]  }
0x5807   : > { %s17540_s10 = sshll.u32 %s17661_s9, 4  ;;  %s17541_s10 = int_to_ptr.vmem [resolvable:$false] %s17540_s10 }
0x5808   : > { %s17542_s11 = scalar_lea.vmem %s17541_s10, 256 }
0x588f   : > { %v12876_v24 = vpop.xlane.xlu1 %12875 }
0x5890   : > { %17463 = vrcp.f32 %v12876_v24 }
0x589d   : > { %v17464_v43 = vpop.eup %17463 }
0x589e   : > { %v12878_v44 = vmul.f32 %v17464_v43, %v17462_v40 }
0x58a0   : > { %17081 = vmatmul.mubr.msk.f32.vlgmr.msra.gmra.mxu1 %vm1807_vm2, %v12878_v44 }
0x58a1   : > { %17089 = vmatpush3.msra.mxu1 %v15179_v4  ;;  %17090 = vmatprep.mubr.msk.f32.mxu1 %vm17660_vm0, %v17659_v0 }
0x58a2   : > { %17104 = vmatprep.subr.mxu1 %v17659_v0 }
0x58a4   : > { %17091 = vmatmul.mubr.msk.f32.vlgmr.msra.gmra.mxu1 %vm1807_vm2, %v12536_v21 }
0x58a5   : > { %17105 = vmatpush3.msra.mxu1 %v15217_v45  ;;  %17112 = vmatprep.mubr.msk.f32.mxu1 %vm17660_vm0, %v17659_v0 }
0x58a6   : > { %17106 = vmatprep.subr.mxu1 %v17659_v0 }
0x58a7   : > { %17107 = vmatpush3.msra.mxu1 %v15216_v46 }
0x58a8   : > { %17108 = vmatprep.subr.mxu1 %v17659_v0 }
0x58a9   : > { %17109 = vmatpush3.msra.mxu1 %v15215_v47 }
0x58aa   : > { %17110 = vmatprep.subr.mxu1 %v17659_v0 }
0x58ab   : > { %17111 = vmatpush3.msra.mxu1 %v15214_v48 }
0x58ac   : > { %17113 = vmatmul.mubr.msk.f32.vlgmr.msra.gmra.mxu1 %vm1571_vm1, %v18850_v30  ;;  %17126 = vmatprep.subr.mxu1 %v17659_v0 }
0x58ad   : > { %17128 = vmatprep.mubr.msk.f32.mxu1 %vm17660_vm0, %v17659_v0 }
0x5960   : > { %v12948_v34 = vpop.f32.mrf.mxu1 }
0x5961   : > { %17086 = vmatmul.mubr.msk.f32.vlgmr.msra.gmra.mxu0 %vm1807_vm2, %v12948_v34 }
0x5962   : > { %17094 = vmatpush3.msra.mxu0 %v15210_v49  ;;  %v17082_v52 = vpop.f32.mrf.mxu1  ;;  %17101 = vmatprep.mubr.msk.f32.mxu0 %vm17660_vm0, %v17659_v0  ;;  %v15245_v49 = vld [vmem:[%s19871_s14 + $0x7] ss:$0 sm:$0xff] }
0x5963   : > { %17095 = vmatprep.subr.mxu0 %v17659_v0 }
0x5964   : > { %17096 = vmatpush3.msra.mxu0 %v15209_v51  ;;  %v19498_v54 = vpop.f32.mrf.mxu1  ;;  %v15238_v51 = vld [vmem:[%s19878_s18 + $0x7] ss:$0 sm:$0xff] }
0x5965   : > { %17097 = vmatprep.subr.mxu0 %v17659_v0 }
0x5966   : > { %17098 = vmatpush3.msra.mxu0 %v15208_v60  ;;  %v17092_v53 = vpop.f32.mrf.mxu1  ;;  %v15252_v60 = vld [vmem:[%s19879_s19 + $0x7] ss:$0 sm:$0xff] }
0x5967   : > { %17099 = vmatprep.subr.mxu0 %v17659_v0 }
0x5968   : > { %17100 = vmatpush3.msra.mxu0 %v15207_v55 }
0x5969   : > { %17102 = vmatmul.mubr.msk.f32.vlgmr.msra.gmra.mxu0 %vm1571_vm1, %v19393_v42  ;;  %17115 = vmatprep.subr.mxu0 %v17659_v0 }
0x596a   : > { %17116 = vmatpush3.msra.mxu0 %v15224_v57  ;;  %17123 = vmatprep.mubr.msk.f32.mxu0 %vm17660_vm0, %v17659_v0 }
0x596b   : > { %17117 = vmatprep.subr.mxu0 %v17659_v0 }
0x596c   : > { %v13262_v61 = vpop.f32.mrf.mxu1  ;;  %17118 = vmatpush3.msra.mxu0 %v15223_v7 }
0x596d   : > { %v13263_v62 = vadd.f32 %v15219_v58, %v13262_v61  ;;  %17119 = vmatprep.subr.mxu0 %v17659_v0 }
0x596e   : > { %v17114_v1 = vpop.f32.mrf.mxu1  ;;  %17120 = vmatpush3.msra.mxu0 %v15222_v59 }
0x596f   : > { %17121 = vmatprep.subr.mxu0 %v17659_v0  ;;  %17127 = vmatpush3.xpose.msk.msra.mxu1 %vm1807_vm2, %v13263_v62 }
0x5970   : > { %17122 = vmatpush3.msra.mxu0 %v15221_v63  ;;  %17131 = vmatprep.subr.mxu1 %v17659_v0 }
0x5971   : > { %17124 = vmatmul.mubr.msk.f32.vlgmr.msra.gmra.mxu0 %vm1571_vm1, %v18850_v30  ;;  %17136 = vmatprep.subr.mxu0 %v17659_v0 }
0x5972   : > { %17138 = vmatprep.mubr.msk.f32.mxu0 %vm17660_vm0, %v17659_v0  ;;  %17137 = vmatpush3.msra.mxu0 %v15231_v23  ;;  %v15267_v23 = vld [vmem:[%s19884_s24 + $0x30] sm:$0xff] }
0x5973   : > { %17152 = vmatprep.subr.mxu0 %v17659_v0 }
0x5a21   : > { %v19523_v2 = vpop.f32.mrf.mxu0 }
0x5a22   : > { %v13097_v45 = vadd.f32 %v19498_v54, %v19523_v2  ;;  %v15257_v2 = vld [vmem:[%s19881_s20 + $0x38] sm:$0xff] }
0x5a23   : > { %v17087_v3 = vpop.f32.mrf.mxu0 }
0x5a29   : > { %v13179_v8 = vpop.f32.mrf.mxu0 }
0x5a2a   : > { %v13180_v6 = vadd.f32 %v15212_v5, %v13179_v8 }
0x5a2b   : > { %v17103_v10 = vpop.f32.mrf.mxu0 }
0x5a2c   : > { %17129 = vmatmul.mubr.msk.f32.vlgmr.msra.gmra.mxu1 %vm1807_vm2, %v13180_v6 }
0x5a2d   : > { %17133 = vmatprep.mubr.msk.f32.mxu1 %vm17660_vm0, %v17659_v0 }
0x5a31   : > { %v13345_v9 = vpop.f32.mrf.mxu0 }
0x5a32   : > { %v13346_v12 = vadd.f32 %v15226_v11, %v13345_v9  ;;  %v15260_v9 = vld [vmem:[%s19883_s21 + $0x1] ss:$0 sm:$0xff] }
0x5a33   : > { %v17125_v13 = vpop.f32.mrf.mxu0 }
0x5a34   : > { %17132 = vmatpush3.msra.mxu1 %v13346_v12 }
0x5a35   : > { %17141 = vmatprep.subr.mxu1 %v17659_v0 }
0x5aec   : > { %v13421_v14 = vpop.f32.mrf.mxu1 }
0x5aed   : > { %v13425_v15 = vmul.f32 0.35355338, %v13421_v14 }
0x5aee   : > { %v17130_v16 = vpop.f32.mrf.mxu1 }
0x5aef   : > { %v13426_v17 = vsel %vm1807_vm2, %v13425_v15, -inf }
0x5af0   : > { %13427 = vmax.xlane.f32.xlu0 %v13426_v17 }
0x5b79   : > { %v13428_v18 = vpop.xlane.xlu0 %13427 }
0x5b7a   : > { %v13429_v19 = vsub.f32 %v13425_v15, %v13428_v18 }
0x5b7c   : > { %v13430_v20 = vmul.f32 1.442695, %v13429_v19 }
0x5b7e   : > { %17465 = vpow2.f32 %v13430_v20 }
0x5b8b   : > { %v17466_v21 = vpop.eup %17465 }
0x5b8c   : > { %v13432_v22 = vsel %vm1807_vm2, %v17466_v21, 0.0 }
0x5b8d   : > { %13433 = vadd.xlane.f32.xlu1 %v13432_v22  ;;  %v15268_v22 = vld [vmem:[%s19884_s24 + $0x38] sm:$0xff] }
0x5c16   : > { %v13434_v25 = vpop.xlane.xlu1 %13433 }
0x5c17   : > { %17467 = vrcp.f32 %v13434_v25  ;;  %v15265_v25 = vld [vmem:[%s19884_s24 + $0x20] sm:$0xff] }
0x5c24   : > { %v17468_v26 = vpop.eup %17467 }
0x5c25   : > { %v13436_v27 = vmul.f32 %v17468_v26, %v17466_v21  ;;  %v15285_v26 = vld [vmem:[%s19885_s25 + $0xf8] sm:$0xff] }
0x5c27   : > { %17134 = vmatmul.mubr.msk.f32.vlgmr.msra.gmra.mxu1 %vm1807_vm2, %v13436_v27  ;;  %v15284_v27 = vld [vmem:[%s19885_s25 + $0xf0] sm:$0xff] }
0x5c28   : > { %17142 = vmatpush3.msra.mxu1 %v15236_v28  ;;  %17149 = vmatprep.mubr.msk.f32.mxu1 %vm17660_vm0, %v17659_v0  ;;  %v15283_v28 = vld [vmem:[%s19885_s25 + $0xe8] sm:$0xff] }
0x5c29   : > { %17143 = vmatprep.subr.mxu1 %v17659_v0 }
0x5c2a   : > { %17144 = vmatpush3.msra.mxu1 %v15235_v29  ;;  %v15282_v29 = vld [vmem:[%s19885_s25 + $0xe0] sm:$0xff] }
0x5c2b   : > { %17145 = vmatprep.subr.mxu1 %v17659_v0 }
0x5c2c   : > { %17146 = vmatpush3.msra.mxu1 %v15234_v36  ;;  %v15281_v36 = vld [vmem:[%s19885_s25 + $0xd8] sm:$0xff] }
0x5c2d   : > { %17147 = vmatprep.subr.mxu1 %v17659_v0 }
0x5c2e   : > { %17148 = vmatpush3.msra.mxu1 %v15233_v31  ;;  %v15280_v31 = vld [vmem:[%s19885_s25 + $0xd0] sm:$0xff] }
0x5c2f   : > { %17150 = vmatmul.mubr.msk.f32.vlgmr.msra.gmra.mxu1 %vm1571_vm1, %v19393_v42  ;;  %17163 = vmatprep.subr.mxu1 %v17659_v0 }
0x5c30   : > { %17164 = vmatpush3.msra.mxu1 %v15250_v32  ;;  %17171 = vmatprep.mubr.msk.f32.mxu1 %vm17660_vm0, %v17659_v0  ;;  %v15279_v32 = vld [vmem:[%s19885_s25 + $0xc8] sm:$0xff] }
0x5c31   : > { %17165 = vmatprep.subr.mxu1 %v17659_v0 }
0x5c32   : > { %17166 = vmatpush3.msra.mxu1 %v15249_v33  ;;  %v15278_v33 = vld [vmem:[%s19885_s25 + $0xc0] sm:$0xff] }
0x5c33   : > { %17167 = vmatprep.subr.mxu1 %v17659_v0 }
0x5c34   : > { %17168 = vmatpush3.msra.mxu1 %v15248_v35  ;;  %v15277_v35 = vld [vmem:[%s19885_s25 + $0xb8] sm:$0xff] }
0x5c35   : > { %17169 = vmatprep.subr.mxu1 %v17659_v0 }
0x5c36   : > { %17170 = vmatpush3.msra.mxu1 %v15247_v37  ;;  %v15276_v37 = vld [vmem:[%s19885_s25 + $0xb0] sm:$0xff] }
0x5c37   : > { %17172 = vmatmul.mubr.msk.f32.vlgmr.msra.gmra.mxu1 %vm1571_vm1, %v18850_v30  ;;  %17184 = vmatprep.subr.mxu1 %v17659_v0 }
0x5c38   : > { %17186 = vmatprep.mubr.msk.f32.mxu1 %vm17660_vm0, %v17659_v0  ;;  %17185 = vmatpush3.msra.mxu1 %v15257_v2 }
0x5c39   : > { %17200 = vmatprep.subr.mxu1 %v17659_v0 }
0x5ce7   : > { %v13506_v38 = vpop.f32.mrf.mxu1 }
0x5ce8   : > { %17139 = vmatmul.mubr.msk.f32.vlgmr.msra.gmra.mxu0 %vm1807_vm2, %v13506_v38  ;;  %v15274_v38 = vld [vmem:[%s19885_s25 + $0xa0] sm:$0xff] }
0x5ce9   : > { %17153 = vmatpush3.msra.mxu0 %v15243_v50  ;;  %v17135_v40 = vpop.f32.mrf.mxu1  ;;  %17160 = vmatprep.mubr.msk.f32.mxu0 %vm17660_vm0, %v17659_v0  ;;  %v15275_v50 = vld [vmem:[%s19885_s25 + $0xa8] sm:$0xff] }
0x5cea   : > { %17154 = vmatprep.subr.mxu0 %v17659_v0 }
0x5ceb   : > { %17155 = vmatpush3.msra.mxu0 %v15242_v39  ;;  %v15273_v39 = vld [vmem:[%s19885_s25 + $0x98] sm:$0xff] }
0x5cec   : > { %17156 = vmatprep.subr.mxu0 %v17659_v0 }
0x5ced   : > { %17157 = vmatpush3.msra.mxu0 %v15241_v41 }
0x5cee   : > { %17158 = vmatprep.subr.mxu0 %v17659_v0 }
0x5cef   : > { %v13665_v24 = vpop.f32.mrf.mxu1  ;;  %17159 = vmatpush3.msra.mxu0 %v15240_v56 }
0x5cf0   : > { %17161 = vmatmul.mubr.msk.f32.vlgmr.msra.gmra.mxu0 %vm1571_vm1, %v18850_v30  ;;  %17174 = vmatprep.subr.mxu0 %v17659_v0  ;;  %v13666_v55 = vadd.f32 %v15238_v51, %v13665_v24 }
0x5cf1   : > { %v17151_v43 = vpop.f32.mrf.mxu1  ;;  %17176 = vmatprep.mubr.msk.f32.mxu0 %vm17660_vm0, %v17659_v0 }
0x5cf2   : > { %v15263_v43 = vld [vmem:[%s19887_s27 + $0x1] ss:$0 sm:$0xff] }
0x5cf7   : > { %v13831_v44 = vpop.f32.mrf.mxu1 }
0x5cf8   : > { %v13832_v53 = vadd.f32 %v15252_v60, %v13831_v44 }
0x5cf9   : > { %v17173_v4 = vpop.f32.mrf.mxu1 }
0x5cfa   : > { %v15264_v4 = vld [vmem:[%s19888_s29 + $0x1] ss:$0 sm:$0xff] }
0x5da8   : > { %v13581_v46 = vpop.f32.mrf.mxu0 }
0x5da9   : > { %v13585_v47 = vadd.f32 %v13581_v46, %v13097_v45 }
0x5daa   : > { %v17140_v48 = vpop.f32.mrf.mxu0 }
0x5dab   : > { %v15271_v48 = vld [vmem:[%s19885_s25 + $0x88] sm:$0xff] }
0x5db0   : > { %v13748_v34 = vpop.f32.mrf.mxu0 }
0x5db1   : > { %v13749_v52 = vadd.f32 %v15245_v49, %v13748_v34  ;;  %v15270_v49 = vld [vmem:[%s19885_s25 + $0x80] sm:$0xff] }
0x5db2   : > { %v17162_v30 = vpop.f32.mrf.mxu0  ;;  %v15287_v34 = vld [vmem:[%s19889_s30 + $0x1] ss:$0 sm:$0xff] }
0x5db3   : > { %17175 = vmatpush3.xpose.msk.msra.mxu0 %vm1807_vm2, %v13749_v52 }
0x5db4   : > { %17179 = vmatprep.subr.mxu0 %v17659_v0 }
0x5db6   : > { %17177 = vmatmul.mubr.msk.f32.vlgmr.msra.gmra.mxu0 %vm1807_vm2, %v13666_v55  ;;  %v15289_v55 = vld [vmem:[%s19891_s15 + $0x1] ss:$0 sm:$0xff] }
0x5db7   : > { %17180 = vmatpush3.msra.mxu0 %v13832_v53  ;;  %17181 = vmatprep.mubr.msk.f32.mxu0 %vm17660_vm0, %v17659_v0 }
0x5db8   : > { %17189 = vmatprep.subr.mxu0 %v17659_v0 }
0x5e76   : > { %v13907_v54 = vpop.f32.mrf.mxu0 }
0x5e77   : > { %v13911_v57 = vmul.f32 0.35355338, %v13907_v54 }
0x5e78   : > { %v17178_v7 = vpop.f32.mrf.mxu0 }
0x5e79   : > { %v13912_v58 = vsel %vm1807_vm2, %v13911_v57, -inf }
0x5e7a   : > { %13913 = vmax.xlane.f32.xlu0 %v13912_v58 }
0x5f03   : > { %v13914_v59 = vpop.xlane.xlu0 %13913 }
0x5f04   : > { %v13915_v61 = vsub.f32 %v13911_v57, %v13914_v59 }
0x5f06   : > { %v13916_v62 = vmul.f32 1.442695, %v13915_v61 }
0x5f08   : > { %17469 = vpow2.f32 %v13916_v62 }
0x5f15   : > { %v17470_v63 = vpop.eup %17469 }
0x5f16   : > { %v13918_v1 = vsel %vm1807_vm2, %v17470_v63, 0.0 }
0x5f17   : > { %13919 = vadd.xlane.f32.xlu1 %v13918_v1 }
0x5fa0   : > { %v13920_v3 = vpop.xlane.xlu1 %13919 }
0x5fa1   : > { %17471 = vrcp.f32 %v13920_v3 }
0x5fae   : > { %v17472_v5 = vpop.eup %17471 }
0x5faf   : > { %v13922_v8 = vmul.f32 %v17472_v5, %v17470_v63 }
0x5fb1   : > { %17182 = vmatmul.mubr.msk.f32.vlgmr.msra.gmra.mxu0 %vm1807_vm2, %v13922_v8 }
0x5fb2   : > { %17197 = vmatprep.mubr.msk.f32.mxu0 %vm17660_vm0, %v17659_v0  ;;  %17190 = vmatpush3.msra.mxu0 %v15268_v22  ;;  %v14356_v22 = vld [vmem:[%s19818_s4] sm:$0xff] }
0x5fb3   : > { %17191 = vmatprep.subr.mxu0 %v17659_v0 }
0x5fb4   : > { %17192 = vmatpush3.msra.mxu0 %v15267_v23 }
0x5fb5   : > { %17193 = vmatprep.subr.mxu0 %v17659_v0 }
0x6071   : > { %v13992_v6 = vpop.f32.mrf.mxu0 }
0x6072   : > { %17187 = vmatmul.mubr.msk.f32.vlgmr.msra.gmra.mxu1 %vm1807_vm2, %v13992_v6  ;;  %v15292_v6 = vld [vmem:[%s19893_s12 + $0x1] ss:$0 sm:$0xff] }
0x6073   : > { %v17183_v10 = vpop.f32.mrf.mxu0  ;;  %17232 = vmatprep.mubr.msk.f32.mxu1 %vm17660_vm0, %v17659_v0  ;;  %17201 = vmatpush3.msra.mxu1 %v15285_v26 }
0x6074   : > { %17202 = vmatprep.subr.mxu1 %v17659_v0 }
0x6075   : > { %17203 = vmatpush3.msra.mxu1 %v15284_v27  ;;  %v15294_v27 = vld [vmem:[%s19896_s22] ss:$0 sm:$0xff]  ;;  %s19899_s22 = sld [smem:[#allocation68_spill]] }
0x6076   : > { %17204 = vmatprep.subr.mxu1 %v17659_v0 }
0x6077   : > { %17205 = vmatpush3.msra.mxu1 %v15283_v28 }
0x6078   : > { %17206 = vmatprep.subr.mxu1 %v17659_v0 }
0x6079   : > { %17207 = vmatpush3.msra.mxu1 %v15282_v29  ;;  %v15295_v29 = vld [vmem:[#allocation2] ss:$0 sm:$0xff] }
0x607a   : > { %17208 = vmatprep.subr.mxu1 %v17659_v0 }
0x607b   : > { %17209 = vmatpush3.msra.mxu1 %v15281_v36  ;;  %p19900_p10 = scmp.ne.s32.totalorder %s19899_s22, 0 }
0x607c   : > { %17210 = vmatprep.subr.mxu1 %v17659_v0 }
0x607d   : > { %17211 = vmatpush3.msra.mxu1 %v15280_v31 }
0x607e   : > { %17212 = vmatprep.subr.mxu1 %v17659_v0 }
0x607f   : > { %17213 = vmatpush3.msra.mxu1 %v15279_v32  ;;  %v15296_v32 = vld [vmem:[#allocation5] ss:$0 sm:$0xff] }
0x6080   : > { %17214 = vmatprep.subr.mxu1 %v17659_v0 }
0x6081   : > { %17215 = vmatpush3.msra.mxu1 %v15278_v33 }
0x6082   : > { %17216 = vmatprep.subr.mxu1 %v17659_v0 }
0x6083   : > { %17217 = vmatpush3.msra.mxu1 %v15277_v35 }
0x6084   : > { %17218 = vmatprep.subr.mxu1 %v17659_v0 }
0x6085   : > { %17219 = vmatpush3.msra.mxu1 %v15276_v37 }
0x6086   : > { %17220 = vmatprep.subr.mxu1 %v17659_v0 }
0x6087   : > { %17221 = vmatpush3.msra.mxu1 %v15275_v50 }
0x6088   : > { %17222 = vmatprep.subr.mxu1 %v17659_v0 }
0x6089   : > { %17223 = vmatpush3.msra.mxu1 %v15274_v38 }
0x608a   : > { %17224 = vmatprep.subr.mxu1 %v17659_v0 }
0x608b   : > { %17225 = vmatpush3.msra.mxu1 %v15273_v39 }
0x608c   : > { %17226 = vmatprep.subr.mxu1 %v17659_v0 }
0x6132   : > { %v14067_v11 = vpop.f32.mrf.mxu1 }
0x6133   : > { %v14071_v12 = vadd.f32 %v14067_v11, %v13585_v47  ;;  %v15272_v47 = vld [vmem:[%s19885_s25 + $0x90] sm:$0xff]  ;;  %v15293_v11 = vld [vmem:[%s19895_s0 + $0x1] ss:$0 sm:$0xff]  ;;  %s19898_s0 = sld [smem:[#allocation62_spill]] }
0x6134   : > { %v17188_v13 = vpop.f32.mrf.mxu1  ;;  %17227 = vmatpush3.msra.mxu1 %v15272_v47 }
0x6135   : > { %v14080_v14 = vadd.f32 %v15260_v9, %v14071_v12  ;;  %17228 = vmatprep.subr.mxu1 %v17659_v0 }
0x6136   : > { %17229 = vmatpush3.msra.mxu1 %v15271_v48 }
0x6137   : > { %v14081_v15 = vadd.f32 %v14080_v14, %v19393_v42  ;;  %v15266_v42 = vld [vmem:[%s19884_s24 + $0x28] sm:$0xff]  ;;  %17230 = vmatprep.subr.mxu1 %v17659_v0 }
0x6138   : > { %17194 = vmatpush3.msra.mxu0 %v15266_v42  ;;  %17231 = vmatpush3.msra.mxu1 %v15270_v49 }
0x6139   : > { %v14086_v16 = vsel %vm1571_vm1, %v14081_v15, 0.0  ;;  %17195 = vmatprep.subr.mxu0 %v17659_v0  ;;  %s14464_s6 = scalar_lea.hbm %s19898_s0, %s15299_s3 }
0x613a   : > { %14087 = vadd.xlane.f32.xlu0 %v14086_v16  ;;  %17196 = vmatpush3.msra.mxu0 %v15265_v25 }
0x613b   : > { %17235 = vmatprep.subr.mxu0 %v17659_v0 }
0x61c3   : > { %v14088_v17 = vpop.xlane.xlu0 %14087 }
0x61c4   : > { %v14089_v18 = vmul.f32 0.03125, %v14088_v17 }
0x61c6   : > { %v14090_v19 = vsub.f32 %v14081_v15, %v14089_v18 }
0x61c8   : > { %v14091_v20 = vmul.f32 %v14090_v19, %v14090_v19 }
0x61ca   : > { %v14092_v21 = vsel %vm1571_vm1, %v14091_v20, 0.0  ;;  %v14358_v20 = vld [vmem:[%s19818_s4 + $0x10] sm:$0xff] }
0x61cb   : > { %14093 = vadd.xlane.f32.xlu1 %v14092_v21  ;;  %v14357_v21 = vld [vmem:[%s19818_s4 + $0x8] sm:$0xff] }
0x6254   : > { %v14094_v40 = vpop.xlane.xlu1 %14093 }
0x6255   : > { %v14095_v41 = vmul.f32 0.03125, %v14094_v40 }
0x6257   : > { %v14096_v56 = vadd.f32 1e-05, %v14095_v41 }
0x6259   : > { %17473 = vrsqrt.f32 %v14096_v56 }
0x6266   : > { %v17474_v24 = vpop.eup %17473 }
0x6267   : > { %v14098_v44 = vmul.f32 %v17474_v24, %v14090_v19  ;;  %v14359_v19 = vld [vmem:[%s19818_s4 + $0x18] sm:$0xff]  ;;  %s1548_s4 = scalar_lea.vmem [#allocation7], %s14618_s2 }
0x6268   : > { %s14466_s5 = sshll.u32 %s1548_s4, 4  ;;  %s14467_s5 = int_to_ptr.vmem [resolvable:$true] %s14466_s5 }
0x6269   : > { %v14105_v45 = vmul.f32 %v15263_v43, %v14098_v44  ;;  %s17536_s8 = scalar_lea.vmem %s14467_s5, 128  ;;  %p17543_p8 = scmp.lt.s32.totalorder %s14467_s5, %s17541_s10 }
0x626a   : > { %p17537_p6 = scmp.ne.s32.totalorder %s14467_s5, %s17536_s8  ;;  %p17544_p11 = scmp.lt.s32.totalorder %s17542_s11, %s17536_s8 }
0x626b   : > { %v14112_v46 = vadd.f32 %v15264_v4, %v14105_v45 }
0x626c   : > { %p17538_p12 = pnand %p17537_p6, %p19900_p10  ;;  %p17545_p0 = por %p17544_p11, %p17543_p8 }
0x626d   : > { %17198 = vmatmul.mubr.msk.f32.vlgmr.msra.gmra.mxu0 %vm1571_vm1, %v14112_v46 }
0x626e   : > { %17243 = vmatprep.mubr.msk.f32.mxu0 %vm17660_vm0, %v17659_v0  ;;  %17236 = vmatpush3.msra.mxu0 %v14359_v19  ;;  %p17539_p7 = pneg %p17538_p12 }
0x626f   : > { %17237 = vmatprep.subr.mxu0 %v17659_v0 }
0x6270   : > { %17238 = vmatpush3.msra.mxu0 %v14358_v20  ;;  %p17546_p1 = pnand %p17545_p0, %p17539_p7 }
0x6271   : > { %17239 = vmatprep.subr.mxu0 %v17659_v0 }
0x6272   : > { %17240 = vmatpush3.msra.mxu0 %v14357_v21 }
0x6273   : > { %17241 = vmatprep.subr.mxu0 %v17659_v0 }
0x6274   : > { %17242 = vmatpush3.msra.mxu0 %v14356_v22 }
0x632d   : > { %v14214_v51 = vpop.f32.mrf.mxu0 }
0x632e   : > { %v14215_v52 = vadd.f32 %v15287_v34, %v14214_v51 }
0x632f   : > { %v17199_v60 = vpop.f32.mrf.mxu0 }
0x6330   : > { %v14218_v30 = vmax.f32 %v14215_v52, 0.0 }
0x6332   : > { %17233 = vmatmul.mubr.f32.vlgmr.msra.gmra.mxu1 %v14218_v30 }
0x63f2   : > { %v14291_v53 = vpop.f32.mrf.mxu1 }
0x63f3   : > { %v14292_v54 = vadd.f32 %v15289_v55, %v14291_v53 }
0x63f4   : > { %v17234_v57 = vpop.f32.mrf.mxu1 }
0x63f5   : > { %v14295_v7 = vadd.f32 %v14292_v54, %v14112_v46 }
0x63f7   : > { %v14300_v58 = vsel %vm1571_vm1, %v14295_v7, 0.0 }
0x63f8   : > { %14301 = vadd.xlane.f32.xlu0 %v14300_v58 }
0x6481   : > { %v14302_v59 = vpop.xlane.xlu0 %14301 }
0x6482   : > { %v14303_v61 = vmul.f32 0.03125, %v14302_v59 }
0x6484   : > { %v14304_v62 = vsub.f32 %v14295_v7, %v14303_v61 }
0x6486   : > { %v14305_v63 = vmul.f32 %v14304_v62, %v14304_v62 }
0x6488   : > { %v14306_v1 = vsel %vm1571_vm1, %v14305_v63, 0.0 }
0x6489   : > { %14307 = vadd.xlane.f32.xlu1 %v14306_v1 }
0x6512   : > { %v14308_v2 = vpop.xlane.xlu1 %14307 }
0x6513   : > { %v14309_v3 = vmul.f32 0.03125, %v14308_v2 }
0x6515   : > { %v14310_v5 = vadd.f32 1e-05, %v14309_v3 }
0x6517   : > { %17475 = vrsqrt.f32 %v14310_v5 }
0x6524   : > { %v17476_v8 = vpop.eup %17475 }
0x6525   : > { %v14312_v10 = vmul.f32 %v17476_v8, %v14304_v62 }
0x6527   : > { %v14319_v9 = vmul.f32 %v15292_v6, %v14312_v10 }
0x6529   : > { %v14326_v12 = vadd.f32 %v15293_v11, %v14319_v9 }
0x652b   : > { %v14329_v13 = vsel %vm1571_vm1, %v14326_v12, 0.0 }
0x652c   : > { %14330 = vadd.xlane.f32.xlu0 %v14329_v13 }
0x65b5   : > { %v14331_v14 = vpop.xlane.xlu0 %14330 }
0x65b6   : > { %v14332_v15 = vmul.f32 0.03125, %v14331_v14 }
0x65b8   : > { %v14333_v16 = vsub.f32 %v14326_v12, %v14332_v15 }
0x65ba   : > { %v14334_v17 = vmul.f32 %v14333_v16, %v14333_v16 }
0x65bc   : > { %v14335_v18 = vsel %vm1571_vm1, %v14334_v17, 0.0 }
0x65bd   : > { %14336 = vadd.xlane.f32.xlu1 %v14335_v18 }
0x6646   : > { %v14337_v23 = vpop.xlane.xlu1 %14336 }
0x6647   : > { %v14338_v42 = vmul.f32 0.03125, %v14337_v23 }
0x6649   : > { %v14339_v25 = vadd.f32 1e-05, %v14338_v42 }
0x664b   : > { %17477 = vrsqrt.f32 %v14339_v25 }
0x6658   : > { %v17478_v26 = vpop.eup %17477 }
0x6659   : > { %v14341_v28 = vmul.f32 %v17478_v26, %v14333_v16 }
0x665b   : > { %v14348_v36 = vmul.f32 %v15294_v27, %v14341_v28 }
0x665d   : > { %v14355_v31 = vadd.f32 %v15295_v29, %v14348_v36 }
0x665f   : > { %17244 = vmatmul.mubr.msk.f32.vlgmr.msra.gmra.mxu0 %vm1571_vm1, %v14355_v31 }
0x671f   : > { %v14436_v33 = vpop.f32.mrf.mxu0 }
0x6720   : > { %v14437_v35 = vadd.f32 %v15296_v32, %v14436_v33 }
0x6721   : > { %v17245_v37 = vpop.f32.mrf.mxu0 }
0x6722   : > { %v14440_v0 = vsel %vm1807_vm2, %v14437_v35, -inf }
0x6723   : > { %14441 = vmax.xlane.f32.xlu0 %v14440_v0 }
0x67ac   : > { %v14442_v50 = vpop.xlane.xlu0 %14441 }
0x67ad   : > { %v14443_v38 = vsub.f32 %v14437_v35, %v14442_v50 }
0x67af   : > { %v14444_v39 = vmul.f32 1.442695, %v14443_v38 }
0x67b1   : > { %17479 = vpow2.f32 %v14444_v39 }
0x67be   : > { %v17480_v40 = vpop.eup %17479 }
0x67bf   : > { %v14446_v41 = vsel %vm1807_vm2, %v17480_v40, 0.0 }
0x67c0   : > { %14447 = vadd.xlane.f32.xlu1 %v14446_v41 }
0x6849   : > { %v14448_v56 = vpop.xlane.xlu1 %14447 }
0x684a   : > { %17481 = vrcp.f32 %v14448_v56 }
0x6857   : > { %v17482_v24 = vpop.eup %17481 }
0x6858   : > { %v14450_v43 = vmul.f32 %v17482_v24, %v17480_v40 }
0x685a   : > { %14451 = vst.msk [vmem:[%s1548_s4] sm:$0xff] %vm1807_vm2, %v14450_v43 }
0x685b   : > { %17549 = shalt.err (!%p17546_p1)
}
0x685c   : > { %s17550_s2 = scalar_lea.hbm %s14464_s6, 128  ;;  %s17554_s3 = scalar_lea.hbm %s19898_s0, 256 }
0x685d   : > { %p17551_p2 = scmp.ne.s32.totalorder %s14464_s6, %s17550_s2  ;;  %p17555_p9 = scmp.lt.s32.totalorder %s14464_s6, %s19898_s0 }
0x685e   : > { %p17556_p13 = scmp.lt.s32.totalorder %s17554_s3, %s17550_s2 }
0x685f   : > { %p17552_p3 = pnand %p17551_p2, %p19900_p10 }
0x6860   : > { %p17557_p5 = por %p17556_p13, %p17555_p9 }
0x6861   : > { %p17553_p4 = pneg %p17552_p3 }
0x6863   : > { %p17558_p6 = pnand %p17557_p5, %p17553_p4 }
0x6865   : > { %17561 = shalt.err (!%p17558_p6)
}
0x6866   : > { %17254 = dma.vmem_to_hbm [thread:$0]  (%p19900_p10), %s14467_s5, 128, %s14464_s6, %s14453_s7  }
0x6867 PF: > { %s19901_s9 = sld [smem:[#allocation63_spill]]  ;;  %p17271_p12 = scmp.ge.s32.totalorder %s17604_s28, 2 }
0x6868   : > { %s19902_s8 = sld [smem:[#allocation69_spill]] }
0x686d   : > { %s14478_s4 = sand.u32 1, %s19901_s9  }
0x686e   : > { %p19903_p7 = scmp.ne.s32.totalorder %s19902_s8, 0  ;;  %s14479_s11 = scalar_lea.sflag [#allocation4], %s14478_s4 }
0x6870   : > { %p17264_p8 = pnand %p17271_p12, %p19903_p7 }
0x6872   : > { %p17265_p11 = pneg %p17264_p8 }
0x6874   : > { %17587 = dma.done.wait (%p17265_p11), %s14479_s11, 128  }
0x6875   : > { %17589 = vsyncadd (%p17265_p11), %s14479_s11, 4294967168  ;;  %s19904_s28 = sld [smem:[#allocation66_spill]]  ;;  %s19907_s22 = smov %s17596_s23 }
0x6876   : > { %s19905_s1 = sld [smem:[#allocation64_spill]] }
0x6877   : > { %s19906_s26 = sld [smem:[#allocation67_spill]] }
0x687b   : > { %p115_p0 = scmp.ge.s32.totalorder %s19904_s28, 4  }
0x687c   : > { %s19908_s23 = smov %s19905_s1 }
0x687d   :  { %117 = sbr.rel (!%p115_p0) target bundleno = 130 (0x82), region = 490 }
0x6882   :  { %14484 = vsyncpa [#allocation3], 1 }
0x6883   :  { %14486 = vsyncpa [#allocation3 + $0x1], 1 }
0x6884   :  { %14487 = vsyncpa [#allocation6], 1 }
0x6885   :  { %14488 = vsyncpa [#allocation4], 1 }
0x6886   :  { %14490 = vsyncpa [#allocation4 + $0x1], 1 }

</bundles_post_ra>
